<compile_context>
chip_gen: v7x
topology: tpu7x:2x2x1
jax: 0.10.0
libtpu: 0.0.40
codegen_flags: <defaults>
</compile_context>

<pallas_src>
import jax
import jax.numpy as jnp
from jax import lax
from jax.experimental import pallas as pl
from jax.experimental.pallas import tpu as pltpu


def _resblock_kernel(x_ref, w1_ref, w2_ref, shift_ref, alpha_ref, o_ref, xpad_ref):
    """Fused ResBlock for one batch element (NHWC, bf16 in / bf16 out).

    x_ref     : (1, H, W, C)   bf16  input activation tile
    w1_ref    : (9, C, C)      bf16  conv1 weights (ky*3+kx, Cin, Cout), BN1 scale folded in
    w2_ref    : (9, C, C)      bf16  conv2 weights, BN2 scale folded in
    shift_ref : (2, C)         f32   row 0 = BN1 shift, row 1 = BN2 shift
    alpha_ref : (1,)  in SMEM  f32   PReLU scalar slope
    o_ref     : (1, H, W, C)   bf16  output tile
    xpad_ref  : (H+2, W+2, C)  bf16  persistent VMEM scratch (zero-halo padded activation)
    """
    H, W, C = x_ref.shape[1], x_ref.shape[2], x_ref.shape[3]
    alpha = alpha_ref[0]                               # scalar f32 from SMEM

    # --- zero the 1-pixel halo border (strips only; done every step so megacore
    # sharding of the batch axis can never skip the init). The interior writes
    # below never touch the border, so it stays zero for both convs. -----------
    zrow = jnp.zeros((1, W + 2, C), jnp.bfloat16)
    zcol = jnp.zeros((H, 1, C), jnp.bfloat16)
    xpad_ref[0:1, :, :] = zrow
    xpad_ref[H + 1:H + 2, :, :] = zrow
    xpad_ref[1:H + 1, 0:1, :] = zcol
    xpad_ref[1:H + 1, W + 1:W + 2, :] = zcol

    # Input tile stays live in VMEM (x_ref) for the residual add later.
    x = x_ref[0]                                       # (H, W, C) bf16
    xpad_ref[1:H + 1, 1:W + 1, :] = x                  # interior of padded tile

    def conv3x3(w_ref):
        # 3x3 'same' conv as 9 back-to-back accumulating MXU dots on shifted
        # views of the padded scratch (no slab, no concats). kx=0 taps are
        # sublane-aligned; kx=1,2 cost one XLU sublane shift each — still far
        # less vld/vst traffic than materializing an im2col slab.
        acc = None
        for ky in range(3):
            for kx in range(3):
                tap = xpad_ref[ky:ky + H, kx:kx + W, :].reshape(H * W, C)
                d = jnp.dot(tap, w_ref[ky * 3 + kx],
                            preferred_element_type=jnp.float32)
                acc = d if acc is None else acc + d
        return acc                                     # (H*W, C) f32

    # conv1 (BN1 scale pre-folded into w1) + BN1 shift + PReLU, f32 epilogue.
    h = conv3x3(w1_ref) + shift_ref[0:1, :]
    h = jnp.where(h > 0, h, alpha * h)

    # Reuse the padded scratch as the conv2 input: overwrite the interior with
    # the bf16 inter-stage activation (border is still zero).
    xpad_ref[1:H + 1, 1:W + 1, :] = h.astype(jnp.bfloat16).reshape(H, W, C)

    # conv2 (BN2 scale pre-folded into w2) + BN2 shift + residual add.
    out = conv3x3(w2_ref) + shift_ref[1:2, :] + x.astype(jnp.float32).reshape(H * W, C)
    o_ref[0] = out.astype(o_ref.dtype).reshape(H, W, C)


def fold_bn(gamma, beta, mean, var, eps=1e-5):
    """Inference-mode BatchNorm folded to per-channel scale/shift."""
    # TODO(synk): training-mode BatchNorm (batch statistics + running-stat
    # updates) is not implemented; this kernel covers the eval-mode forward.
    scale = gamma / jnp.sqrt(var + eps)
    shift = beta - mean * scale
    return scale, shift


def _prep_conv_weights(w_oihw, bn_scale):
    """OIHW conv weights -> (9, Cin, Cout) bf16 with the BatchNorm scale folded in.

    The scale is applied in f32 *before* the bf16 cast, so folding costs only the
    single bf16 quantization of the effective weight.
    """
    c_out, c_in = w_oihw.shape[0], w_oihw.shape[1]
    w = jnp.transpose(w_oihw, (2, 3, 1, 0)).reshape(9, c_in, c_out).astype(jnp.float32)
    w = w * bn_scale.reshape(1, 1, c_out).astype(jnp.float32)
    return w.astype(jnp.bfloat16)


def resblock_forward_nhwc(x_nhwc, w1_oihw, w2_oihw,
                          bn1_scale, bn1_shift, bn2_scale, bn2_shift, alpha):
    """NHWC fast path: (N, H, W, C) in -> bf16 (N, H, W, C) out, no wrapper layout passes."""
    N, H, W, C = x_nhwc.shape
    assert w1_oihw.shape == (C, C, 3, 3) and w2_oihw.shape == (C, C, 3, 3)

    x = x_nhwc.astype(jnp.bfloat16)
    w1m = _prep_conv_weights(w1_oihw, bn1_scale)
    w2m = _prep_conv_weights(w2_oihw, bn2_scale)
    shifts = jnp.stack([bn1_shift, bn2_shift]).astype(jnp.float32)   # (2, C)
    alpha1 = jnp.asarray(alpha, jnp.float32).reshape(1)

    return pl.pallas_call(
        _resblock_kernel,
        out_shape=jax.ShapeDtypeStruct((N, H, W, C), jnp.bfloat16),
        grid=(N,),
        in_specs=[
            pl.BlockSpec((1, H, W, C), lambda b: (b, 0, 0, 0)),   # x
            pl.BlockSpec((9, C, C), lambda b: (0, 0, 0)),         # conv1 w (BN1 scale folded)
            pl.BlockSpec((9, C, C), lambda b: (0, 0, 0)),         # conv2 w (BN2 scale folded)
            pl.BlockSpec((2, C), lambda b: (0, 0)),               # BN shifts (coalesced)
            pl.BlockSpec(memory_space=pltpu.MemorySpace.SMEM),    # PReLU alpha (scalar)
        ],
        out_specs=pl.BlockSpec((1, H, W, C), lambda b: (b, 0, 0, 0)),
        scratch_shapes=[pltpu.VMEM((H + 2, W + 2, C), jnp.bfloat16)],
        compiler_params=pltpu.CompilerParams(
            dimension_semantics=("parallel",)),
    )(x, w1m, w2m, shifts, alpha1)


def resblock_forward_nchw(x_nchw, w1_oihw, w2_oihw,
                          bn1_scale, bn1_shift, bn2_scale, bn2_shift, alpha):
    """PyTorch-equivalent NCHW interface (layout adaptation only).

    Casting to bf16 before the transpose halves the bytes both wrapper HBM
    passes move; prefer `resblock_forward_nhwc` inside an NHWC pipeline.
    """
    x = jnp.transpose(x_nchw.astype(jnp.bfloat16), (0, 2, 3, 1))
    out = resblock_forward_nhwc(x, w1_oihw, w2_oihw,
                                bn1_scale, bn1_shift, bn2_scale, bn2_shift, alpha)
    return jnp.transpose(out, (0, 3, 1, 2)).astype(x_nchw.dtype)


def _reference_forward(x_nchw, w1_oihw, w2_oihw, bn1, bn2, alpha, eps=1e-5):
    """Pure-JAX f32 reference (lax.conv, unfused BN) for correctness checking."""
    x = jnp.transpose(x_nchw, (0, 2, 3, 1)).astype(jnp.float32)

    def conv(h, w_oihw):
        w = jnp.transpose(w_oihw, (2, 3, 1, 0)).astype(jnp.float32)
        return lax.conv_general_dilated(
            h, w, window_strides=(1, 1), padding="SAME",
            dimension_numbers=("NHWC", "HWIO", "NHWC"))

    (g1, b1, m1, v1), (g2, b2, m2, v2) = bn1, bn2
    h = conv(x, w1_oihw)
    h = (h - m1) / jnp.sqrt(v1 + eps) * g1 + b1
    h = jnp.where(h > 0, h, alpha * h)
    h = conv(h, w2_oihw)
    h = (h - m2) / jnp.sqrt(v2 + eps) * g2 + b2
    return jnp.transpose(h + x, (0, 3, 1, 2))


def _run_case(C, key):
    N, H, W, eps = 2, 16, 16, 1e-5
    ks = jax.random.split(key, 11)

    x = jax.random.normal(ks[0], (N, C, H, W), jnp.float32)
    w1 = 0.05 * jax.random.normal(ks[1], (C, C, 3, 3), jnp.float32)   # OIHW, bias=False
    w2 = 0.05 * jax.random.normal(ks[2], (C, C, 3, 3), jnp.float32)
    g1 = 1.0 + 0.1 * jax.random.normal(ks[3], (C,), jnp.float32)
    b1 = 0.1 * jax.random.normal(ks[4], (C,), jnp.float32)
    m1 = 0.1 * jax.random.normal(ks[5], (C,), jnp.float32)
    v1 = 1.0 + 0.1 * jax.random.uniform(ks[6], (C,), jnp.float32)
    g2 = 1.0 + 0.1 * jax.random.normal(ks[7], (C,), jnp.float32)
    b2 = 0.1 * jax.random.normal(ks[8], (C,), jnp.float32)
    m2 = 0.1 * jax.random.normal(ks[9], (C,), jnp.float32)
    v2 = 1.0 + 0.1 * jax.random.uniform(ks[10], (C,), jnp.float32)
    alpha = jnp.float32(0.25)    # PReLU default init

    # Pre-round activations / weights to bf16 values so kernel and f32 reference
    # start from identical inputs; the remaining differences are the bf16
    # inter-stage activation, the bf16 folded weights, and the bf16 output.
    x_bf = x.astype(jnp.bfloat16).astype(jnp.float32)
    w1_bf = w1.astype(jnp.bfloat16).astype(jnp.float32)
    w2_bf = w2.astype(jnp.bfloat16).astype(jnp.float32)

    s1, t1 = fold_bn(g1, b1, m1, v1, eps)
    s2, t2 = fold_bn(g2, b2, m2, v2, eps)

    out = jax.block_until_ready(
        jax.jit(resblock_forward_nchw)(x_bf, w1_bf, w2_bf, s1, t1, s2, t2, alpha))
    ref = jax.block_until_ready(
        _reference_forward(x_bf, w1_bf, w2_bf,
                           (g1, b1, m1, v1), (g2, b2, m2, v2), alpha, eps))

    assert out.shape == (N, C, H, W), out.shape
    max_err = float(jnp.max(jnp.abs(out - ref)))
    # Tolerance covers the bf16 inter-stage activation, bf16 folded weights and
    # bf16 output of the kernel vs. the pure-f32 reference.
    assert jnp.allclose(out, ref, atol=8e-2, rtol=5e-2), (C, max_err)
    return max_err


if __name__ == "__main__":
    k64, k128 = jax.random.split(jax.random.PRNGKey(0))
    _run_case(C=64, key=k64)      # module default (ResBlock(64, 64))
    _run_case(C=128, key=k128)    # lane-dense fast path (C multiple of 128)
    print("KERNEL_OK")
</pallas_src>

<mosaic_0001>
module attributes {stable_mosaic.version = 11 : i64} {
  func.func @_resblock_kernel(%arg0: i32, %arg1: memref<1x16x16x64xbf16, #tpu.memory_space<vmem>>, %arg2: memref<9x64x64xbf16, #tpu.memory_space<vmem>>, %arg3: memref<9x64x64xbf16, #tpu.memory_space<vmem>>, %arg4: memref<2x64xf32, #tpu.memory_space<vmem>>, %arg5: memref<1xf32, #tpu.memory_space<smem>>, %arg6: memref<1x16x16x64xbf16, #tpu.memory_space<vmem>>, %arg7: memref<18x18x64xbf16, #tpu.memory_space<vmem>>) attributes {dimension_semantics = [#tpu.dimension_semantics<parallel>], iteration_bounds = array<i64: 2>, scalar_prefetch = 0 : i64, scratch_operands = 1 : i64, tpu.core_type = #tpu.core_type<tc>, window_params = [{transform_indices = @transform_0, window_bounds = array<i64: 1, 16, 16, 64>}, {pipeline_mode = #tpu.pipeline_mode<synchronous>, transform_indices = @transform_1, window_bounds = array<i64: 9, 64, 64>}, {pipeline_mode = #tpu.pipeline_mode<synchronous>, transform_indices = @transform_2, window_bounds = array<i64: 9, 64, 64>}, {pipeline_mode = #tpu.pipeline_mode<synchronous>, transform_indices = @transform_3, window_bounds = array<i64: 2, 64>}, {transform_indices = @transform_4, window_bounds = array<i64: 1>}, {transform_indices = @transform_5, window_bounds = array<i64: 1, 16, 16, 64>}]} {
    %c0 = arith.constant 0 : index
    %0 = memref.load %arg5[%c0] : memref<1xf32, #tpu.memory_space<smem>>
    %cst = arith.constant 0.000000e+00 : bf16
    %1 = vector.broadcast %cst : bf16 to vector<1x18x64xbf16>
    %cst_0 = arith.constant 0.000000e+00 : bf16
    %2 = vector.broadcast %cst_0 : bf16 to vector<16x1x64xbf16>
    %c0_1 = arith.constant 0 : index
    %c0_2 = arith.constant 0 : index
    %c0_3 = arith.constant 0 : index
    %3 = vector.load %arg7[%c0_1, %c0_2, %c0_3] : memref<18x18x64xbf16, #tpu.memory_space<vmem>>, vector<1x18x64xbf16>
    tpu.vector_store %arg7[%c0_1, %c0_2, %c0_3], %1 {strides = array<i32>} : memref<18x18x64xbf16, #tpu.memory_space<vmem>>, vector<1x18x64xbf16>,
    %c17 = arith.constant 17 : index
    %c0_4 = arith.constant 0 : index
    %c0_5 = arith.constant 0 : index
    %4 = vector.load %arg7[%c17, %c0_4, %c0_5] : memref<18x18x64xbf16, #tpu.memory_space<vmem>>, vector<1x18x64xbf16>
    tpu.vector_store %arg7[%c17, %c0_4, %c0_5], %1 {strides = array<i32>} : memref<18x18x64xbf16, #tpu.memory_space<vmem>>, vector<1x18x64xbf16>,
    %c1 = arith.constant 1 : index
    %c0_6 = arith.constant 0 : index
    %c0_7 = arith.constant 0 : index
    %5 = vector.load %arg7[%c1, %c0_6, %c0_7] : memref<18x18x64xbf16, #tpu.memory_space<vmem>>, vector<16x1x64xbf16>
    tpu.vector_store %arg7[%c1, %c0_6, %c0_7], %2 {strides = array<i32>} : memref<18x18x64xbf16, #tpu.memory_space<vmem>>, vector<16x1x64xbf16>,
    %c1_8 = arith.constant 1 : index
    %c17_9 = arith.constant 17 : index
    %c0_10 = arith.constant 0 : index
    %6 = vector.load %arg7[%c1_8, %c17_9, %c0_10] : memref<18x18x64xbf16, #tpu.memory_space<vmem>>, vector<16x1x64xbf16>
    tpu.vector_store %arg7[%c1_8, %c17_9, %c0_10], %2 {strides = array<i32>} : memref<18x18x64xbf16, #tpu.memory_space<vmem>>, vector<16x1x64xbf16>,
    %c0_11 = arith.constant 0 : index
    %c0_12 = arith.constant 0 : index
    %c0_13 = arith.constant 0 : index
    %c0_14 = arith.constant 0 : index
    %7 = vector.load %arg1[%c0_11, %c0_12, %c0_13, %c0_14] : memref<1x16x16x64xbf16, #tpu.memory_space<vmem>>, vector<1x16x16x64xbf16>
    %8 = vector.shape_cast %7 : vector<1x16x16x64xbf16> to vector<16x16x64xbf16>
    %c1_15 = arith.constant 1 : index
    %c1_16 = arith.constant 1 : index
    %c0_17 = arith.constant 0 : index
    %9 = vector.load %arg7[%c1_15, %c1_16, %c0_17] : memref<18x18x64xbf16, #tpu.memory_space<vmem>>, vector<16x16x64xbf16>
    tpu.vector_store %arg7[%c1_15, %c1_16, %c0_17], %8 {strides = array<i32>} : memref<18x18x64xbf16, #tpu.memory_space<vmem>>, vector<16x16x64xbf16>,
    %c0_18 = arith.constant 0 : index
    %c0_19 = arith.constant 0 : index
    %c0_20 = arith.constant 0 : index
    %10 = vector.load %arg7[%c0_18, %c0_19, %c0_20] : memref<18x18x64xbf16, #tpu.memory_space<vmem>>, vector<16x16x64xbf16>
    %11 = vector.shape_cast %10 : vector<16x16x64xbf16> to vector<256x64xbf16>
    %c0_21 = arith.constant 0 : index
    %c0_22 = arith.constant 0 : index
    %c0_23 = arith.constant 0 : index
    %12 = vector.load %arg2[%c0_21, %c0_22, %c0_23] : memref<9x64x64xbf16, #tpu.memory_space<vmem>>, vector<1x64x64xbf16>
    %13 = vector.shape_cast %12 : vector<1x64x64xbf16> to vector<64x64xbf16>
    %cst_24 = arith.constant dense<0.000000e+00> : vector<256x64xf32>
    %14 = tpu.matmul %11, %13, %cst_24 {dimension_numbers = #tpu.dot_dimension_numbers<[1], [0], [0], [1], [0, 0, 1, 1], [], []>} : vector<256x64xbf16>, vector<64x64xbf16>, vector<256x64xf32> -> vector<256x64xf32>
    %c0_25 = arith.constant 0 : index
    %c1_26 = arith.constant 1 : index
    %c0_27 = arith.constant 0 : index
    %15 = vector.load %arg7[%c0_25, %c1_26, %c0_27] : memref<18x18x64xbf16, #tpu.memory_space<vmem>>, vector<16x16x64xbf16>
    %16 = vector.shape_cast %15 : vector<16x16x64xbf16> to vector<256x64xbf16>
    %c1_28 = arith.constant 1 : index
    %c0_29 = arith.constant 0 : index
    %c0_30 = arith.constant 0 : index
    %17 = vector.load %arg2[%c1_28, %c0_29, %c0_30] : memref<9x64x64xbf16, #tpu.memory_space<vmem>>, vector<1x64x64xbf16>
    %18 = vector.shape_cast %17 : vector<1x64x64xbf16> to vector<64x64xbf16>
    %cst_31 = arith.constant dense<0.000000e+00> : vector<256x64xf32>
    %19 = tpu.matmul %16, %18, %cst_31 {dimension_numbers = #tpu.dot_dimension_numbers<[1], [0], [0], [1], [0, 0, 1, 1], [], []>} : vector<256x64xbf16>, vector<64x64xbf16>, vector<256x64xf32> -> vector<256x64xf32>
    %20 = arith.addf %14, %19 : vector<256x64xf32>
    %c0_32 = arith.constant 0 : index
    %c2 = arith.constant 2 : index
    %c0_33 = arith.constant 0 : index
    %21 = vector.load %arg7[%c0_32, %c2, %c0_33] : memref<18x18x64xbf16, #tpu.memory_space<vmem>>, vector<16x16x64xbf16>
    %22 = vector.shape_cast %21 : vector<16x16x64xbf16> to vector<256x64xbf16>
    %c2_34 = arith.constant 2 : index
    %c0_35 = arith.constant 0 : index
    %c0_36 = arith.constant 0 : index
    %23 = vector.load %arg2[%c2_34, %c0_35, %c0_36] : memref<9x64x64xbf16, #tpu.memory_space<vmem>>, vector<1x64x64xbf16>
    %24 = vector.shape_cast %23 : vector<1x64x64xbf16> to vector<64x64xbf16>
    %cst_37 = arith.constant dense<0.000000e+00> : vector<256x64xf32>
    %25 = tpu.matmul %22, %24, %cst_37 {dimension_numbers = #tpu.dot_dimension_numbers<[1], [0], [0], [1], [0, 0, 1, 1], [], []>} : vector<256x64xbf16>, vector<64x64xbf16>, vector<256x64xf32> -> vector<256x64xf32>
    %26 = arith.addf %20, %25 : vector<256x64xf32>
    %c1_38 = arith.constant 1 : index
    %c0_39 = arith.constant 0 : index
    %c0_40 = arith.constant 0 : index
    %27 = vector.load %arg7[%c1_38, %c0_39, %c0_40] : memref<18x18x64xbf16, #tpu.memory_space<vmem>>, vector<16x16x64xbf16>
    %28 = vector.shape_cast %27 : vector<16x16x64xbf16> to vector<256x64xbf16>
    %c3 = arith.constant 3 : index
    %c0_41 = arith.constant 0 : index
    %c0_42 = arith.constant 0 : index
    %29 = vector.load %arg2[%c3, %c0_41, %c0_42] : memref<9x64x64xbf16, #tpu.memory_space<vmem>>, vector<1x64x64xbf16>
    %30 = vector.shape_cast %29 : vector<1x64x64xbf16> to vector<64x64xbf16>
    %cst_43 = arith.constant dense<0.000000e+00> : vector<256x64xf32>
    %31 = tpu.matmul %28, %30, %cst_43 {dimension_numbers = #tpu.dot_dimension_numbers<[1], [0], [0], [1], [0, 0, 1, 1], [], []>} : vector<256x64xbf16>, vector<64x64xbf16>, vector<256x64xf32> -> vector<256x64xf32>
    %32 = arith.addf %26, %31 : vector<256x64xf32>
    %c1_44 = arith.constant 1 : index
    %c1_45 = arith.constant 1 : index
    %c0_46 = arith.constant 0 : index
    %33 = vector.load %arg7[%c1_44, %c1_45, %c0_46] : memref<18x18x64xbf16, #tpu.memory_space<vmem>>, vector<16x16x64xbf16>
    %34 = vector.shape_cast %33 : vector<16x16x64xbf16> to vector<256x64xbf16>
    %c4 = arith.constant 4 : index
    %c0_47 = arith.constant 0 : index
    %c0_48 = arith.constant 0 : index
    %35 = vector.load %arg2[%c4, %c0_47, %c0_48] : memref<9x64x64xbf16, #tpu.memory_space<vmem>>, vector<1x64x64xbf16>
    %36 = vector.shape_cast %35 : vector<1x64x64xbf16> to vector<64x64xbf16>
    %cst_49 = arith.constant dense<0.000000e+00> : vector<256x64xf32>
    %37 = tpu.matmul %34, %36, %cst_49 {dimension_numbers = #tpu.dot_dimension_numbers<[1], [0], [0], [1], [0, 0, 1, 1], [], []>} : vector<256x64xbf16>, vector<64x64xbf16>, vector<256x64xf32> -> vector<256x64xf32>
    %38 = arith.addf %32, %37 : vector<256x64xf32>
    %c1_50 = arith.constant 1 : index
    %c2_51 = arith.constant 2 : index
    %c0_52 = arith.constant 0 : index
    %39 = vector.load %arg7[%c1_50, %c2_51, %c0_52] : memref<18x18x64xbf16, #tpu.memory_space<vmem>>, vector<16x16x64xbf16>
    %40 = vector.shape_cast %39 : vector<16x16x64xbf16> to vector<256x64xbf16>
    %c5 = arith.constant 5 : index
    %c0_53 = arith.constant 0 : index
    %c0_54 = arith.constant 0 : index
    %41 = vector.load %arg2[%c5, %c0_53, %c0_54] : memref<9x64x64xbf16, #tpu.memory_space<vmem>>, vector<1x64x64xbf16>
    %42 = vector.shape_cast %41 : vector<1x64x64xbf16> to vector<64x64xbf16>
    %cst_55 = arith.constant dense<0.000000e+00> : vector<256x64xf32>
    %43 = tpu.matmul %40, %42, %cst_55 {dimension_numbers = #tpu.dot_dimension_numbers<[1], [0], [0], [1], [0, 0, 1, 1], [], []>} : vector<256x64xbf16>, vector<64x64xbf16>, vector<256x64xf32> -> vector<256x64xf32>
    %44 = arith.addf %38, %43 : vector<256x64xf32>
    %c2_56 = arith.constant 2 : index
    %c0_57 = arith.constant 0 : index
    %c0_58 = arith.constant 0 : index
    %45 = vector.load %arg7[%c2_56, %c0_57, %c0_58] : memref<18x18x64xbf16, #tpu.memory_space<vmem>>, vector<16x16x64xbf16>
    %46 = vector.shape_cast %45 : vector<16x16x64xbf16> to vector<256x64xbf16>
    %c6 = arith.constant 6 : index
    %c0_59 = arith.constant 0 : index
    %c0_60 = arith.constant 0 : index
    %47 = vector.load %arg2[%c6, %c0_59, %c0_60] : memref<9x64x64xbf16, #tpu.memory_space<vmem>>, vector<1x64x64xbf16>
    %48 = vector.shape_cast %47 : vector<1x64x64xbf16> to vector<64x64xbf16>
    %cst_61 = arith.constant dense<0.000000e+00> : vector<256x64xf32>
    %49 = tpu.matmul %46, %48, %cst_61 {dimension_numbers = #tpu.dot_dimension_numbers<[1], [0], [0], [1], [0, 0, 1, 1], [], []>} : vector<256x64xbf16>, vector<64x64xbf16>, vector<256x64xf32> -> vector<256x64xf32>
    %50 = arith.addf %44, %49 : vector<256x64xf32>
    %c2_62 = arith.constant 2 : index
    %c1_63 = arith.constant 1 : index
    %c0_64 = arith.constant 0 : index
    %51 = vector.load %arg7[%c2_62, %c1_63, %c0_64] : memref<18x18x64xbf16, #tpu.memory_space<vmem>>, vector<16x16x64xbf16>
    %52 = vector.shape_cast %51 : vector<16x16x64xbf16> to vector<256x64xbf16>
    %c7 = arith.constant 7 : index
    %c0_65 = arith.constant 0 : index
    %c0_66 = arith.constant 0 : index
    %53 = vector.load %arg2[%c7, %c0_65, %c0_66] : memref<9x64x64xbf16, #tpu.memory_space<vmem>>, vector<1x64x64xbf16>
    %54 = vector.shape_cast %53 : vector<1x64x64xbf16> to vector<64x64xbf16>
    %cst_67 = arith.constant dense<0.000000e+00> : vector<256x64xf32>
    %55 = tpu.matmul %52, %54, %cst_67 {dimension_numbers = #tpu.dot_dimension_numbers<[1], [0], [0], [1], [0, 0, 1, 1], [], []>} : vector<256x64xbf16>, vector<64x64xbf16>, vector<256x64xf32> -> vector<256x64xf32>
    %56 = arith.addf %50, %55 : vector<256x64xf32>
    %c2_68 = arith.constant 2 : index
    %c2_69 = arith.constant 2 : index
    %c0_70 = arith.constant 0 : index
    %57 = vector.load %arg7[%c2_68, %c2_69, %c0_70] : memref<18x18x64xbf16, #tpu.memory_space<vmem>>, vector<16x16x64xbf16>
    %58 = vector.shape_cast %57 : vector<16x16x64xbf16> to vector<256x64xbf16>
    %c8 = arith.constant 8 : index
    %c0_71 = arith.constant 0 : index
    %c0_72 = arith.constant 0 : index
    %59 = vector.load %arg2[%c8, %c0_71, %c0_72] : memref<9x64x64xbf16, #tpu.memory_space<vmem>>, vector<1x64x64xbf16>
    %60 = vector.shape_cast %59 : vector<1x64x64xbf16> to vector<64x64xbf16>
    %cst_73 = arith.constant dense<0.000000e+00> : vector<256x64xf32>
    %61 = tpu.matmul %58, %60, %cst_73 {dimension_numbers = #tpu.dot_dimension_numbers<[1], [0], [0], [1], [0, 0, 1, 1], [], []>} : vector<256x64xbf16>, vector<64x64xbf16>, vector<256x64xf32> -> vector<256x64xf32>
    %62 = arith.addf %56, %61 : vector<256x64xf32>
    %c0_74 = arith.constant 0 : index
    %c0_75 = arith.constant 0 : index
    %63 = vector.load %arg4[%c0_74, %c0_75] : memref<2x64xf32, #tpu.memory_space<vmem>>, vector<1x64xf32>
    %64 = vector.broadcast %63 : vector<1x64xf32> to vector<256x64xf32>
    %65 = arith.addf %62, %64 : vector<256x64xf32>
    %cst_76 = arith.constant 0.000000e+00 : f32
    %66 = vector.broadcast %cst_76 : f32 to vector<256x64xf32>
    %67 = arith.cmpf ogt, %65, %66 : vector<256x64xf32>
    %68 = vector.broadcast %0 : f32 to vector<256x64xf32>
    %69 = arith.mulf %68, %65 : vector<256x64xf32>
    %70 = arith.select %67, %65, %69 : vector<256x64xi1>, vector<256x64xf32>
    %71 = arith.truncf %70 : vector<256x64xf32> to vector<256x64xbf16>
    %72 = vector.shape_cast %71 : vector<256x64xbf16> to vector<16x16x64xbf16>
    %c1_77 = arith.constant 1 : index
    %c1_78 = arith.constant 1 : index
    %c0_79 = arith.constant 0 : index
    %73 = vector.load %arg7[%c1_77, %c1_78, %c0_79] : memref<18x18x64xbf16, #tpu.memory_space<vmem>>, vector<16x16x64xbf16>
    tpu.vector_store %arg7[%c1_77, %c1_78, %c0_79], %72 {strides = array<i32>} : memref<18x18x64xbf16, #tpu.memory_space<vmem>>, vector<16x16x64xbf16>,
    %c0_80 = arith.constant 0 : index
    %c0_81 = arith.constant 0 : index
    %c0_82 = arith.constant 0 : index
    %74 = vector.load %arg7[%c0_80, %c0_81, %c0_82] : memref<18x18x64xbf16, #tpu.memory_space<vmem>>, vector<16x16x64xbf16>
    %75 = vector.shape_cast %74 : vector<16x16x64xbf16> to vector<256x64xbf16>
    %c0_83 = arith.constant 0 : index
    %c0_84 = arith.constant 0 : index
    %c0_85 = arith.constant 0 : index
    %76 = vector.load %arg3[%c0_83, %c0_84, %c0_85] : memref<9x64x64xbf16, #tpu.memory_space<vmem>>, vector<1x64x64xbf16>
    %77 = vector.shape_cast %76 : vector<1x64x64xbf16> to vector<64x64xbf16>
    %cst_86 = arith.constant dense<0.000000e+00> : vector<256x64xf32>
    %78 = tpu.matmul %75, %77, %cst_86 {dimension_numbers = #tpu.dot_dimension_numbers<[1], [0], [0], [1], [0, 0, 1, 1], [], []>} : vector<256x64xbf16>, vector<64x64xbf16>, vector<256x64xf32> -> vector<256x64xf32>
    %c0_87 = arith.constant 0 : index
    %c1_88 = arith.constant 1 : index
    %c0_89 = arith.constant 0 : index
    %79 = vector.load %arg7[%c0_87, %c1_88, %c0_89] : memref<18x18x64xbf16, #tpu.memory_space<vmem>>, vector<16x16x64xbf16>
    %80 = vector.shape_cast %79 : vector<16x16x64xbf16> to vector<256x64xbf16>
    %c1_90 = arith.constant 1 : index
    %c0_91 = arith.constant 0 : index
    %c0_92 = arith.constant 0 : index
    %81 = vector.load %arg3[%c1_90, %c0_91, %c0_92] : memref<9x64x64xbf16, #tpu.memory_space<vmem>>, vector<1x64x64xbf16>
    %82 = vector.shape_cast %81 : vector<1x64x64xbf16> to vector<64x64xbf16>
    %cst_93 = arith.constant dense<0.000000e+00> : vector<256x64xf32>
    %83 = tpu.matmul %80, %82, %cst_93 {dimension_numbers = #tpu.dot_dimension_numbers<[1], [0], [0], [1], [0, 0, 1, 1], [], []>} : vector<256x64xbf16>, vector<64x64xbf16>, vector<256x64xf32> -> vector<256x64xf32>
    %84 = arith.addf %78, %83 : vector<256x64xf32>
    %c0_94 = arith.constant 0 : index
    %c2_95 = arith.constant 2 : index
    %c0_96 = arith.constant 0 : index
    %85 = vector.load %arg7[%c0_94, %c2_95, %c0_96] : memref<18x18x64xbf16, #tpu.memory_space<vmem>>, vector<16x16x64xbf16>
    %86 = vector.shape_cast %85 : vector<16x16x64xbf16> to vector<256x64xbf16>
    %c2_97 = arith.constant 2 : index
    %c0_98 = arith.constant 0 : index
    %c0_99 = arith.constant 0 : index
    %87 = vector.load %arg3[%c2_97, %c0_98, %c0_99] : memref<9x64x64xbf16, #tpu.memory_space<vmem>>, vector<1x64x64xbf16>
    %88 = vector.shape_cast %87 : vector<1x64x64xbf16> to vector<64x64xbf16>
    %cst_100 = arith.constant dense<0.000000e+00> : vector<256x64xf32>
    %89 = tpu.matmul %86, %88, %cst_100 {dimension_numbers = #tpu.dot_dimension_numbers<[1], [0], [0], [1], [0, 0, 1, 1], [], []>} : vector<256x64xbf16>, vector<64x64xbf16>, vector<256x64xf32> -> vector<256x64xf32>
    %90 = arith.addf %84, %89 : vector<256x64xf32>
    %c1_101 = arith.constant 1 : index
    %c0_102 = arith.constant 0 : index
    %c0_103 = arith.constant 0 : index
    %91 = vector.load %arg7[%c1_101, %c0_102, %c0_103] : memref<18x18x64xbf16, #tpu.memory_space<vmem>>, vector<16x16x64xbf16>
    %92 = vector.shape_cast %91 : vector<16x16x64xbf16> to vector<256x64xbf16>
    %c3_104 = arith.constant 3 : index
    %c0_105 = arith.constant 0 : index
    %c0_106 = arith.constant 0 : index
    %93 = vector.load %arg3[%c3_104, %c0_105, %c0_106] : memref<9x64x64xbf16, #tpu.memory_space<vmem>>, vector<1x64x64xbf16>
    %94 = vector.shape_cast %93 : vector<1x64x64xbf16> to vector<64x64xbf16>
    %cst_107 = arith.constant dense<0.000000e+00> : vector<256x64xf32>
    %95 = tpu.matmul %92, %94, %cst_107 {dimension_numbers = #tpu.dot_dimension_numbers<[1], [0], [0], [1], [0, 0, 1, 1], [], []>} : vector<256x64xbf16>, vector<64x64xbf16>, vector<256x64xf32> -> vector<256x64xf32>
    %96 = arith.addf %90, %95 : vector<256x64xf32>
    %c1_108 = arith.constant 1 : index
    %c1_109 = arith.constant 1 : index
    %c0_110 = arith.constant 0 : index
    %97 = vector.load %arg7[%c1_108, %c1_109, %c0_110] : memref<18x18x64xbf16, #tpu.memory_space<vmem>>, vector<16x16x64xbf16>
    %98 = vector.shape_cast %97 : vector<16x16x64xbf16> to vector<256x64xbf16>
    %c4_111 = arith.constant 4 : index
    %c0_112 = arith.constant 0 : index
    %c0_113 = arith.constant 0 : index
    %99 = vector.load %arg3[%c4_111, %c0_112, %c0_113] : memref<9x64x64xbf16, #tpu.memory_space<vmem>>, vector<1x64x64xbf16>
    %100 = vector.shape_cast %99 : vector<1x64x64xbf16> to vector<64x64xbf16>
    %cst_114 = arith.constant dense<0.000000e+00> : vector<256x64xf32>
    %101 = tpu.matmul %98, %100, %cst_114 {dimension_numbers = #tpu.dot_dimension_numbers<[1], [0], [0], [1], [0, 0, 1, 1], [], []>} : vector<256x64xbf16>, vector<64x64xbf16>, vector<256x64xf32> -> vector<256x64xf32>
    %102 = arith.addf %96, %101 : vector<256x64xf32>
    %c1_115 = arith.constant 1 : index
    %c2_116 = arith.constant 2 : index
    %c0_117 = arith.constant 0 : index
    %103 = vector.load %arg7[%c1_115, %c2_116, %c0_117] : memref<18x18x64xbf16, #tpu.memory_space<vmem>>, vector<16x16x64xbf16>
    %104 = vector.shape_cast %103 : vector<16x16x64xbf16> to vector<256x64xbf16>
    %c5_118 = arith.constant 5 : index
    %c0_119 = arith.constant 0 : index
    %c0_120 = arith.constant 0 : index
    %105 = vector.load %arg3[%c5_118, %c0_119, %c0_120] : memref<9x64x64xbf16, #tpu.memory_space<vmem>>, vector<1x64x64xbf16>
    %106 = vector.shape_cast %105 : vector<1x64x64xbf16> to vector<64x64xbf16>
    %cst_121 = arith.constant dense<0.000000e+00> : vector<256x64xf32>
    %107 = tpu.matmul %104, %106, %cst_121 {dimension_numbers = #tpu.dot_dimension_numbers<[1], [0], [0], [1], [0, 0, 1, 1], [], []>} : vector<256x64xbf16>, vector<64x64xbf16>, vector<256x64xf32> -> vector<256x64xf32>
    %108 = arith.addf %102, %107 : vector<256x64xf32>
    %c2_122 = arith.constant 2 : index
    %c0_123 = arith.constant 0 : index
    %c0_124 = arith.constant 0 : index
    %109 = vector.load %arg7[%c2_122, %c0_123, %c0_124] : memref<18x18x64xbf16, #tpu.memory_space<vmem>>, vector<16x16x64xbf16>
    %110 = vector.shape_cast %109 : vector<16x16x64xbf16> to vector<256x64xbf16>
    %c6_125 = arith.constant 6 : index
    %c0_126 = arith.constant 0 : index
    %c0_127 = arith.constant 0 : index
    %111 = vector.load %arg3[%c6_125, %c0_126, %c0_127] : memref<9x64x64xbf16, #tpu.memory_space<vmem>>, vector<1x64x64xbf16>
    %112 = vector.shape_cast %111 : vector<1x64x64xbf16> to vector<64x64xbf16>
    %cst_128 = arith.constant dense<0.000000e+00> : vector<256x64xf32>
    %113 = tpu.matmul %110, %112, %cst_128 {dimension_numbers = #tpu.dot_dimension_numbers<[1], [0], [0], [1], [0, 0, 1, 1], [], []>} : vector<256x64xbf16>, vector<64x64xbf16>, vector<256x64xf32> -> vector<256x64xf32>
    %114 = arith.addf %108, %113 : vector<256x64xf32>
    %c2_129 = arith.constant 2 : index
    %c1_130 = arith.constant 1 : index
    %c0_131 = arith.constant 0 : index
    %115 = vector.load %arg7[%c2_129, %c1_130, %c0_131] : memref<18x18x64xbf16, #tpu.memory_space<vmem>>, vector<16x16x64xbf16>
    %116 = vector.shape_cast %115 : vector<16x16x64xbf16> to vector<256x64xbf16>
    %c7_132 = arith.constant 7 : index
    %c0_133 = arith.constant 0 : index
    %c0_134 = arith.constant 0 : index
    %117 = vector.load %arg3[%c7_132, %c0_133, %c0_134] : memref<9x64x64xbf16, #tpu.memory_space<vmem>>, vector<1x64x64xbf16>
    %118 = vector.shape_cast %117 : vector<1x64x64xbf16> to vector<64x64xbf16>
    %cst_135 = arith.constant dense<0.000000e+00> : vector<256x64xf32>
    %119 = tpu.matmul %116, %118, %cst_135 {dimension_numbers = #tpu.dot_dimension_numbers<[1], [0], [0], [1], [0, 0, 1, 1], [], []>} : vector<256x64xbf16>, vector<64x64xbf16>, vector<256x64xf32> -> vector<256x64xf32>
    %120 = arith.addf %114, %119 : vector<256x64xf32>
    %c2_136 = arith.constant 2 : index
    %c2_137 = arith.constant 2 : index
    %c0_138 = arith.constant 0 : index
    %121 = vector.load %arg7[%c2_136, %c2_137, %c0_138] : memref<18x18x64xbf16, #tpu.memory_space<vmem>>, vector<16x16x64xbf16>
    %122 = vector.shape_cast %121 : vector<16x16x64xbf16> to vector<256x64xbf16>
    %c8_139 = arith.constant 8 : index
    %c0_140 = arith.constant 0 : index
    %c0_141 = arith.constant 0 : index
    %123 = vector.load %arg3[%c8_139, %c0_140, %c0_141] : memref<9x64x64xbf16, #tpu.memory_space<vmem>>, vector<1x64x64xbf16>
    %124 = vector.shape_cast %123 : vector<1x64x64xbf16> to vector<64x64xbf16>
    %cst_142 = arith.constant dense<0.000000e+00> : vector<256x64xf32>
    %125 = tpu.matmul %122, %124, %cst_142 {dimension_numbers = #tpu.dot_dimension_numbers<[1], [0], [0], [1], [0, 0, 1, 1], [], []>} : vector<256x64xbf16>, vector<64x64xbf16>, vector<256x64xf32> -> vector<256x64xf32>
    %126 = arith.addf %120, %125 : vector<256x64xf32>
    %c1_143 = arith.constant 1 : index
    %c0_144 = arith.constant 0 : index
    %127 = vector.load %arg4[%c1_143, %c0_144] : memref<2x64xf32, #tpu.memory_space<vmem>>, vector<1x64xf32>
    %128 = vector.broadcast %127 : vector<1x64xf32> to vector<256x64xf32>
    %129 = arith.addf %126, %128 : vector<256x64xf32>
    %130 = arith.extf %8 : vector<16x16x64xbf16> to vector<16x16x64xf32>
    %131 = vector.shape_cast %130 : vector<16x16x64xf32> to vector<256x64xf32>
    %132 = arith.addf %129, %131 : vector<256x64xf32>
    %133 = arith.truncf %132 : vector<256x64xf32> to vector<256x64xbf16>
    %134 = vector.shape_cast %133 : vector<256x64xbf16> to vector<16x16x64xbf16>
    %c0_145 = arith.constant 0 : index
    %c0_146 = arith.constant 0 : index
    %c0_147 = arith.constant 0 : index
    %c0_148 = arith.constant 0 : index
    %135 = vector.load %arg6[%c0_145, %c0_146, %c0_147, %c0_148] : memref<1x16x16x64xbf16, #tpu.memory_space<vmem>>, vector<1x16x16x64xbf16>
    %136 = vector.shape_cast %135 : vector<1x16x16x64xbf16> to vector<16x16x64xbf16>
    %137 = vector.shape_cast %134 : vector<16x16x64xbf16> to vector<1x16x16x64xbf16>
    tpu.vector_store %arg6[%c0_145, %c0_146, %c0_147, %c0_148], %137 {strides = array<i32>} : memref<1x16x16x64xbf16, #tpu.memory_space<vmem>>, vector<1x16x16x64xbf16>,
    return
  }
  func.func @transform_0(%arg0: i32) -> (i32, i32, i32, i32) {
    %c0_i32 = arith.constant 0 : i32
    %c0_i32_0 = arith.constant 0 : i32
    %c0_i32_1 = arith.constant 0 : i32
    %c0_i32_2 = arith.constant 0 : i32
    return %arg0, %c0_i32, %c0_i32_0, %c0_i32_1 : i32, i32, i32, i32
  }
  func.func @transform_1(%arg0: i32) -> (i32, i32, i32) {
    %c0_i32 = arith.constant 0 : i32
    %c0_i32_0 = arith.constant 0 : i32
    %c0_i32_1 = arith.constant 0 : i32
    %c0_i32_2 = arith.constant 0 : i32
    return %c0_i32, %c0_i32_0, %c0_i32_1 : i32, i32, i32
  }
  func.func @transform_2(%arg0: i32) -> (i32, i32, i32) {
    %c0_i32 = arith.constant 0 : i32
    %c0_i32_0 = arith.constant 0 : i32
    %c0_i32_1 = arith.constant 0 : i32
    %c0_i32_2 = arith.constant 0 : i32
    return %c0_i32, %c0_i32_0, %c0_i32_1 : i32, i32, i32
  }
  func.func @transform_3(%arg0: i32) -> (i32, i32) {
    %c0_i32 = arith.constant 0 : i32
    %c0_i32_0 = arith.constant 0 : i32
    %c0_i32_1 = arith.constant 0 : i32
    return %c0_i32, %c0_i32_0 : i32, i32
  }
  func.func @transform_4(%arg0: i32) -> i32 {
    %c0_i32 = arith.constant 0 : i32
    %c0_i32_0 = arith.constant 0 : i32
    return %c0_i32 : i32
  }
  func.func @transform_5(%arg0: i32) -> (i32, i32, i32, i32) {
    %c0_i32 = arith.constant 0 : i32
    %c0_i32_0 = arith.constant 0 : i32
    %c0_i32_1 = arith.constant 0 : i32
    %c0_i32_2 = arith.constant 0 : i32
    return %arg0, %c0_i32, %c0_i32_0, %c0_i32_1 : i32, i32, i32, i32
  }
}

</mosaic_0001>

<bundles_post_ra>
// kernel: resblock_forward_nchw.1
= control target key start
LH: loop header
LB: loop body
LE: loop exit
PB: predicated region body
PF: predicated region fallthrough
CT: control target
= control target key end

     0   :  { %s14295_s20 = smov 0   ;;  %s17866_s0 = inlined_call_operand.vmem [shape: bf16[2,16,16,64], index: 0, kind: input, shape index: {}]   ;;  %s17867_s1 = inlined_call_operand.vmem [shape: bf16[9,64,64], index: 1, kind: input, shape index: {}]   ;;  %s17868_s2 = inlined_call_operand.vmem [shape: bf16[9,64,64], index: 2, kind: input, shape index: {}]   ;;  %s17869_s3 = inlined_call_operand.vmem [shape: f32[2,64], index: 3, kind: input, shape index: {}]   ;;  %s17870_s4 = inlined_call_operand.<no memory space> [shape: f32[1], index: 4, kind: input, shape index: {}]   ;;  %s17871_s5 = inlined_call_operand.vmem [shape: bf16[2,16,16,64], index: 5, kind: output, shape index: {}]  }
   0x1   :  { %10 = sst [smem:[#allocation3]] %s17870_s4 }
   0x2 LB: > { %s11394_s21 = sadd.s32 4294967295, %s14259_s20   ;;  %p11398_p0 = scmp.ge.s32.totalorder %s14259_s20, 1  ;;  %s14259_s20 = sphi %s14295_s20, %s16_s20  }
   0x3   : > { %p188_p1 = scmp.lt.s32.totalorder %s14259_s20, 3 }
   0x5   : > { %p189_p2 = pnand %p11398_p0, %p188_p1 }
   0x7   : > { %192 = sbr.rel (%p189_p2) target bundleno = 1739 (0x6cb), region = 40 }
   0xe   : > { %v14010_v0 = vld [vmem:[%s17867_s1 + $0x20] sm:$0xff]   ;;  %vm228_vm0 = vcmask 519168   ;;  %v14011_v1 = vld [vmem:[%s17867_s1 + $0x28] sm:$0xff]   ;;  %v14261_v2 = vmov 0   ;;  %vm231_vm1 = vcmask 516096   ;;  %v14012_v3 = vld [vmem:[%s17867_s1 + $0x30] sm:$0xff]  }
   0xf   : > { %12769 = vmatprep.subr.bf16.mxu0 %v14010_v0  ;;  %229 = vst.msk [vmem:[#allocation2] sm:$0xf] %vm228_vm0, %v14261_v2  ;;  %230 = vst.msk [vmem:[#allocation2 + $0x4] sm:$0xf] %vm228_vm0, %v14261_v2  ;;  %vm239_vm2 = vsmask.f32 256 }
  0x10   : > { %234 = vst.msk [vmem:[#allocation2 + $0xcc] sm:$0xf] %vm228_vm0, %v14261_v2  ;;  %235 = vst.msk [vmem:[#allocation2 + $0xd0] sm:$0xf] %vm228_vm0, %v14261_v2  ;;  %12770 = vmatpush3.bf16.msra.mxu0 %v14010_v0  ;;  %vm289_vm3 = vsmask.f32 7938 }
  0x11   : > { %232 = vst.msk [vmem:[#allocation2 + $0x8] sm:$0x1] %vm231_vm1, %v14261_v2  ;;  %236 = vst.msk [vmem:[#allocation2 + $0xd4] sm:$0x1] %vm231_vm1, %v14261_v2  ;;  %12771 = vmatprep.subr.bf16.mxu0 %v14011_v1  ;;  %v17957_v4 = vmov 0  ;;  %p216_p3 = scmp.lt.s32.totalorder %s11394_s21, 1 }
  0x12   : > { %vm14317_vm4 = vmand %vm231_vm1, %vm239_vm2  ;;  %vm863_vm5 = vsmask.f32 3328  ;;  %vm864_vm7 = vsmask.f32 7440  ;;  %v241_v6 = vld [vmem:[#allocation2 + $0xc] sm:$0x1] }
  0x13   : > { %v17958_v4 = vsel %vm14317_vm4, 4294967295, %v17957_v4  ;;  %vm14322_vm6 = vmand %vm231_vm1, %vm289_vm3  ;;  %v242_v7 = vsel %vm14317_vm4, 0, %v241_v6  ;;  %v291_v8 = vld [vmem:[#allocation2 + $0x14] sm:$0x1]  ;;  %v244_v9 = vld [vmem:[#allocation2 + $0x18] sm:$0x1] }
  0x14   : > { %17959 = vst [vmem:[#allocation4_spill] sm:$0xff] %v17958_v4  ;;  %12772 = vmatpush3.bf16.msra.mxu0 %v14011_v1  ;;  %v14013_v10 = vld [vmem:[%s17867_s1 + $0x38] sm:$0xff]   ;;  %s18162_s21 = smov (!%p216_p3, %s11394_s21), 1  ;;  %243 = vst [vmem:[#allocation2 + $0xc] sm:$0x1] %v242_v7  ;;  %v292_v11 = vsel %vm14322_vm6, 0, %v291_v8 }
  0x15   : > { %12773 = vmatprep.subr.bf16.mxu0 %v14012_v3  ;;  %v245_v12 = vsel %vm14317_vm4, 0, %v244_v9  ;;  %v294_v13 = vld [vmem:[#allocation2 + $0x20] sm:$0x1]  ;;  %293 = vst [vmem:[#allocation2 + $0x14] sm:$0x1] %v292_v11  ;;  %vm1331_vm8 = vcmask 523264   ;;  %vm14364_vm10 = vmor %vm863_vm5, %vm864_vm7 }
  0x16   : > { %v807_v14 = vld [vmem:[#allocation2] sm:$0xf]  ;;  %v808_v15 = vld [vmem:[#allocation2 + $0x4] sm:$0xf]  ;;  %246 = vst [vmem:[#allocation2 + $0x18] sm:$0x1] %v245_v12  ;;  %vm14371_vm11 = vmand %vm228_vm0, %vm289_vm3 }
  0x17   : > { %v295_v16 = vsel %vm14322_vm6, 0, %v294_v13  ;;  %v867_v18 = vshrl.u32 %v807_v14, 16  ;;  %v870_v19 = vshll.u32 %v807_v14, 16  ;;  %v876_v20 = vshll.u32 %v808_v15, 16  ;;  %v14346_v22 = vld [vmem:[%s17867_s1] sm:$0xff]   ;;  %s12343_s6 = sshll.u32 %s18162_s21, 7 }
  0x18   : > { %v847_v17 = vld [vmem:[#allocation2 + $0x8] sm:$0x1]  ;;  %v880_v21 = vshrl.u32 %v808_v15, 16  ;;  %296 = vst [vmem:[#allocation2 + $0x20] sm:$0x1] %v295_v16  ;;  %12774 = vmatpush3.bf16.msra.mxu0 %v14012_v3  ;;  %s14354_s9 = scalar_lea.vmem %s17866_s0, %s12343_s6  ;;  %v17964_v50 = vmov 0  ;;  %s17740_s24 = scalar_lea.vmem %s17871_s5, %s12343_s6 }
  0x19   : > { %v886_v23 = vshll.u32 %v847_v17, 16  ;;  %vm371_vm9 = vsmask.f32 4368  ;;  %v247_v24 = vld [vmem:[#allocation2 + $0x24] sm:$0x1]  ;;  %12775 = vmatprep.subr.bf16.mxu0 %v14013_v10  ;;  %v869_v25 = vrot.slane %v867_v18, 4 }
  0x1a   : > { %v872_v26 = vrot.slane %v870_v19, 5  ;;  %v878_v27 = vrot.slane %v876_v20, 5  ;;  %v882_v28 = vrot.slane %v880_v21, 4  ;;  %v297_v29 = vld [vmem:[#allocation2 + $0x2c] sm:$0x1]  ;;  %v248_v33 = vsel %vm14317_vm4, 0, %v247_v24  ;;  %vm14383_vm12 = vmor %vm239_vm2, %vm371_vm9 }
  0x1b   : > { %v888_v30 = vrot.slane %v886_v23, 5  ;;  %v339_v31 = vld [vmem:[%s14354_s9] sm:$0xf]  ;;  %v340_v32 = vld [vmem:[%s14354_s9 + $0x4] sm:$0xf]  ;;  %v17965_v50 = vsel %vm14371_vm11, 4294967295, %v17964_v50 }
  0x1c   : > { %v873_v34 = vor.u32 %v872_v26, %v869_v25  ;;  %v883_v35 = vor.u32 %v882_v28, %v878_v27  ;;  %v374_v36 = vshrl.u32 %v339_v31, 16  ;;  %v377_v37 = vshll.u32 %v339_v31, 16  ;;  %v341_v38 = vld [vmem:[%s14354_s9 + $0x8] sm:$0xf]  ;;  %v342_v39 = vld [vmem:[%s14354_s9 + $0xc] sm:$0xf]  ;;  %12776 = vmatpush3.bf16.msra.mxu0 %v14013_v10 }
  0x1d   : > { %249 = vst [vmem:[#allocation2 + $0x24] sm:$0x1] %v248_v33  ;;  %v382_v41 = vshrl.u32 %v340_v32, 16  ;;  %v385_v42 = vshll.u32 %v340_v32, 16  ;;  %v391_v43 = vshrl.u32 %v341_v38, 16  ;;  %v394_v44 = vshll.u32 %v341_v38, 16  ;;  %12809 = vmatprep.subr.bf16.mxu0 %v14346_v22 }
  0x1e   : > { %v874_v45 = vrot.slane %v873_v34, 4  ;;  %v884_v46 = vrot.slane %v883_v35, 4  ;;  %v376_v47 = vrot.slane %v374_v36, 7  ;;  %v695_v48 = vld [vmem:[#allocation2 + $0xc] sm:$0xf]  ;;  %v399_v49 = vshrl.u32 %v342_v39, 16 }
  0x1f   : > { %17966 = vst [vmem:[#allocation5_spill] sm:$0xff] %v17965_v50  ;;  %v384_v51 = vrot.slane %v382_v41, 7  ;;  %v699_v52 = vld [vmem:[#allocation2 + $0x14] sm:$0x1]  ;;  %v393_v53 = vrot.slane %v391_v43, 7  ;;  %v402_v54 = vshll.u32 %v342_v39, 16 }
  0x20   : > { %v298_v55 = vsel %vm14322_vm6, 0, %v297_v29  ;;  %v879_v56 = vsel %vm14364_vm10, %v874_v45, %v878_v27  ;;  %v889_v57 = vsel %vm14364_vm10, %v884_v46, %v888_v30  ;;  %v17967_v58 = vmov 0  ;;  %v702_v61 = vld [vmem:[#allocation2 + $0x18] sm:$0xf]  ;;  %v343_v62 = vld [vmem:[%s14354_s9 + $0x10] sm:$0xf] }
  0x21   : > { %v17968_v58 = vsel %vm14383_vm12, 4294967295, %v17967_v58  ;;  %v379_v59 = vor.u32 %v377_v37, %v376_v47  ;;  %v380_v60 = vrot.slane %v376_v47, 4  ;;  %299 = vst [vmem:[#allocation2 + $0x2c] sm:$0x1] %v298_v55  ;;  %v11411_v63 = vcombine.low %v879_v56, %v889_v57  ;;  %v706_v3 = vld [vmem:[#allocation2 + $0x20] sm:$0x1] }
  0x22   : > { %17969 = vst [vmem:[#allocation6_spill] sm:$0xff] %v17968_v58  ;;  %v387_v0 = vor.u32 %v385_v42, %v384_v51  ;;  %v389_v1 = vrot.slane %v384_v51, 4  ;;  %v396_v2 = vor.u32 %v394_v44, %v393_v53  ;;  %v344_v6 = vld [vmem:[%s14354_s9 + $0x14] sm:$0xf]  ;;  %v250_v7 = vld [vmem:[#allocation2 + $0x30] sm:$0x1] }
  0x23   : > { %v696_v8 = vsel %vm14371_vm11, %v379_v59, %v695_v48  ;;  %v397_v9 = vrot.slane %v393_v53, 4  ;;  %v401_v10 = vrot.slane %v399_v49, 7  ;;  %v408_v11 = vshrl.u32 %v343_v62, 16  ;;  %v300_v12 = vld [vmem:[#allocation2 + $0x38] sm:$0x1]  ;;  %12777 = vmatprep.mubr.msk.bf16.mxu0 %vm1331_vm8, %v11411_v63  ;;  %v14033_v5 = vld [vmem:[%s17867_s1 + $0x88] sm:$0xff]  }
  0x24   : > { %v388_v13 = vsel %vm14383_vm12, %v380_v60, %v387_v0  ;;  %697 = vst [vmem:[#allocation2 + $0xc] sm:$0xf] %v696_v8  ;;  %v700_v14 = vsel %vm14317_vm4, %v389_v1, %v699_v52  ;;  %v703_v15 = vsel %vm14371_vm11, %v396_v2, %v702_v61  ;;  %v411_v16 = vshll.u32 %v343_v62, 16  ;;  %v709_v17 = vld [vmem:[#allocation2 + $0x24] sm:$0xf]  ;;  %s227_s18 = sld [smem:[#allocation3]] }
  0x25   : > { %v345_v18 = vld [vmem:[%s14354_s9 + $0x18] sm:$0xf]  ;;  %698 = vst.msk [vmem:[#allocation2 + $0x10] sm:$0xf] %vm228_vm0, %v388_v13  ;;  %701 = vst [vmem:[#allocation2 + $0x14] sm:$0x1] %v700_v14  ;;  %v404_v19 = vor.u32 %v402_v54, %v401_v10 }
  0x26   : > { %v406_v20 = vrot.slane %v401_v10, 4  ;;  %704 = vst [vmem:[#allocation2 + $0x18] sm:$0xf] %v703_v15  ;;  %v410_v21 = vrot.slane %v408_v11, 7  ;;  %v416_v23 = vshrl.u32 %v344_v6, 16  ;;  %v419_v25 = vshll.u32 %v344_v6, 16 }
  0x27   : > { %v346_v24 = vld [vmem:[%s14354_s9 + $0x1c] sm:$0xf]  ;;  %v251_v26 = vsel %vm14317_vm4, 0, %v250_v7  ;;  %v301_v27 = vsel %vm14322_vm6, 0, %v300_v12  ;;  %v425_v28 = vshrl.u32 %v345_v18, 16  ;;  %v405_v29 = vsel %vm14383_vm12, %v397_v9, %v404_v19 }
  0x28   : > { %v707_v30 = vsel %vm14317_vm4, %v406_v20, %v706_v3  ;;  %v413_v31 = vor.u32 %v411_v16, %v410_v21  ;;  %v414_v32 = vrot.slane %v410_v21, 4  ;;  %252 = vst [vmem:[#allocation2 + $0x30] sm:$0x1] %v251_v26  ;;  %302 = vst [vmem:[#allocation2 + $0x38] sm:$0x1] %v301_v27  ;;  %v418_v34 = vrot.slane %v416_v23, 7 }
  0x29   : > { %v253_v33 = vld [vmem:[#allocation2 + $0x3c] sm:$0x1]  ;;  %705 = vst.msk [vmem:[#allocation2 + $0x1c] sm:$0xf] %vm228_vm0, %v405_v29  ;;  %708 = vst [vmem:[#allocation2 + $0x20] sm:$0x1] %v707_v30 }
  0x2a   : > { %v713_v35 = vld [vmem:[#allocation2 + $0x2c] sm:$0x1]  ;;  %v427_v36 = vrot.slane %v425_v28, 7  ;;  %v428_v37 = vshll.u32 %v345_v18, 16  ;;  %v433_v38 = vshrl.u32 %v346_v24, 16  ;;  %v710_v39 = vsel %vm14371_vm11, %v413_v31, %v709_v17 }
  0x2b   : > { %v254_v41 = vsel %vm14317_vm4, 0, %v253_v33  ;;  %v303_v42 = vld [vmem:[#allocation2 + $0x44] sm:$0x1]  ;;  %v14415_v43 = vld [vmem:[%s14354_s9 + $0x20] sm:$0xf]  ;;  %v421_v44 = vor.u32 %v419_v25, %v418_v34  ;;  %v423_v45 = vrot.slane %v418_v34, 4 }
  0x2c   : > { %711 = vst [vmem:[#allocation2 + $0x24] sm:$0xf] %v710_v39  ;;  %v430_v46 = vor.u32 %v428_v37, %v427_v36  ;;  %v436_v47 = vshll.u32 %v346_v24, 16  ;;  %255 = vst [vmem:[#allocation2 + $0x3c] sm:$0x1] %v254_v41  ;;  %v431_v49 = vrot.slane %v427_v36, 4 }
  0x2d   : > { %v809_v48 = vld [vmem:[#allocation2 + $0xc] sm:$0xf]  ;;  %v14417_v51 = vrot.slane %v433_v38, 7  ;;  %v304_v52 = vsel %vm14322_vm6, 0, %v303_v42  ;;  %v442_v53 = vshrl.u32 %v14415_v43, 16  ;;  %v422_v59 = vsel %vm14383_vm12, %v414_v32, %v421_v44 }
  0x2e   : > { %v810_v54 = vld [vmem:[#allocation2 + $0x10] sm:$0xf]  ;;  %v848_v55 = vld [vmem:[#allocation2 + $0x14] sm:$0x1]  ;;  %v891_v56 = vshrl.u32 %v809_v48, 16  ;;  %v894_v57 = vshll.u32 %v809_v48, 16  ;;  %v714_v60 = vsel %vm14317_vm4, %v423_v45, %v713_v35 }
  0x2f   : > { %305 = vst [vmem:[#allocation2 + $0x44] sm:$0x1] %v304_v52  ;;  %v900_v61 = vshll.u32 %v810_v54, 16  ;;  %v904_v62 = vshrl.u32 %v810_v54, 16  ;;  %v910_v63 = vshll.u32 %v848_v55, 16  ;;  %v445_v1 = vshll.u32 %v14415_v43, 16 }
  0x30   : > { %v811_v0 = vld [vmem:[#allocation2 + $0x18] sm:$0xf]  ;;  %712 = vst.msk [vmem:[#allocation2 + $0x28] sm:$0xf] %vm228_vm0, %v422_v59  ;;  %715 = vst [vmem:[#allocation2 + $0x2c] sm:$0x1] %v714_v60  ;;  %v438_v12 = vor.u32 %v436_v47, %v14417_v51 }
  0x31   : > { %v893_v2 = vrot.slane %v891_v56, 4  ;;  %v896_v3 = vrot.slane %v894_v57, 5  ;;  %v915_v6 = vshrl.u32 %v811_v0, 16  ;;  %v918_v7 = vshll.u32 %v811_v0, 16  ;;  %v812_v11 = vld [vmem:[#allocation2 + $0x1c] sm:$0xf] }
  0x32   : > { %v902_v8 = vrot.slane %v900_v61, 5  ;;  %v906_v9 = vrot.slane %v904_v62, 4  ;;  %v912_v10 = vrot.slane %v910_v63, 5  ;;  %v849_v14 = vld [vmem:[#allocation2 + $0x20] sm:$0x1]  ;;  %v924_v17 = vshll.u32 %v812_v11, 16 }
  0x33   : > { %v897_v13 = vor.u32 %v896_v3, %v893_v2  ;;  %v917_v15 = vrot.slane %v915_v6, 4  ;;  %v920_v16 = vrot.slane %v918_v7, 5  ;;  %v928_v19 = vshrl.u32 %v812_v11, 16  ;;  %v813_v21 = vld [vmem:[#allocation2 + $0x24] sm:$0xf]  ;;  %v14015_v55 = vld [vmem:[%s17867_s1 + $0x8] sm:$0xff]  }
  0x34   : > { %v907_v18 = vor.u32 %v906_v9, %v902_v8  ;;  %v934_v20 = vshll.u32 %v849_v14, 16  ;;  %v439_v23 = vsel %vm14383_vm12, %v431_v49, %v438_v12  ;;  %v716_v24 = vld [vmem:[#allocation2 + $0x30] sm:$0xf]  ;;  %v926_v27 = vrot.slane %v924_v17, 5  ;;  %v348_v45 = vld [vmem:[%s14354_s9 + $0x24] sm:$0xf] }
  0x35   : > { %v898_v25 = vrot.slane %v897_v13, 4  ;;  %v921_v26 = vor.u32 %v920_v16, %v917_v15  ;;  %v939_v28 = vshrl.u32 %v813_v21, 16  ;;  %719 = vst.msk [vmem:[#allocation2 + $0x34] sm:$0xf] %vm228_vm0, %v439_v23  ;;  %v930_v30 = vrot.slane %v928_v19, 4 }
  0x36   : > { %v908_v29 = vrot.slane %v907_v18, 4  ;;  %v936_v31 = vrot.slane %v934_v20, 5  ;;  %v942_v32 = vshll.u32 %v813_v21, 16  ;;  %v717_v38 = vsel %vm14371_vm11, %v430_v46, %v716_v24  ;;  %v720_v54 = vld [vmem:[#allocation2 + $0x38] sm:$0x1] }
  0x37   : > { %v903_v33 = vsel %vm14364_vm10, %v898_v25, %v902_v8  ;;  %v922_v34 = vrot.slane %v921_v26, 4  ;;  %v814_v35 = vld [vmem:[#allocation2 + $0x28] sm:$0xf]  ;;  %v850_v36 = vld [vmem:[#allocation2 + $0x2c] sm:$0x1]  ;;  %v941_v37 = vrot.slane %v939_v28, 4  ;;  %v931_v41 = vor.u32 %v930_v30, %v926_v27 }
  0x38   : > { %v913_v39 = vsel %vm14364_vm10, %v908_v29, %v912_v10  ;;  %v944_v42 = vrot.slane %v942_v32, 5  ;;  %v948_v44 = vshll.u32 %v814_v35, 16  ;;  %718 = vst [vmem:[#allocation2 + $0x30] sm:$0xf] %v717_v38  ;;  %v952_v49 = vshrl.u32 %v814_v35, 16 }
  0x39   : > { %v11412_v47 = vcombine.low %v903_v33, %v913_v39  ;;  %v927_v48 = vsel %vm14364_vm10, %v922_v34, %v926_v27  ;;  %v958_v52 = vshll.u32 %v850_v36, 16  ;;  %v932_v46 = vrot.slane %v931_v41, 4  ;;  %v727_v16 = vld [vmem:[#allocation2 + $0x44] sm:$0x1]  ;;  %v306_v17 = vld [vmem:[#allocation2 + $0x50] sm:$0x1] }
  0x3a   : > { %v945_v56 = vor.u32 %v944_v42, %v941_v37  ;;  %v950_v57 = vrot.slane %v948_v44, 5  ;;  %v440_v59 = vrot.slane %v14417_v51, 4  ;;  %v954_v60 = vrot.slane %v952_v49, 4  ;;  %v256_v51 = vld [vmem:[#allocation2 + $0x48] sm:$0x1]  ;;  %v14017_v33 = vld [vmem:[%s17867_s1 + $0x18] sm:$0xff]  }
  0x3b   : > { %12778 = vmatmul.mubr.msk.bf16.vlgmr.msra.gmra.mrb[0].mxu0 %vm1331_vm8, %v11412_v47  ;;  %v960_v61 = vrot.slane %v958_v52, 5  ;;  %v444_v62 = vrot.slane %v442_v53, 7  ;;  %v450_v63 = vshrl.u32 %v348_v45, 16  ;;  %v937_v0 = vsel %vm14364_vm10, %v932_v46, %v936_v31  ;;  %v723_v53 = vld [vmem:[#allocation2 + $0x3c] sm:$0xf] }
  0x3c   : > { %12810 = vmatpush3.bf16.msra.mxu0 %v14346_v22  ;;  %v946_v2 = vrot.slane %v945_v56, 4  ;;  %v721_v3 = vsel %vm14317_vm4, %v440_v59, %v720_v54  ;;  %v816_v6 = vld [vmem:[#allocation2 + $0x34] sm:$0xf]  ;;  %v453_v7 = vshll.u32 %v348_v45, 16  ;;  %v11413_v8 = vcombine.low %v927_v48, %v937_v0  ;;  %v349_v18 = vld [vmem:[%s14354_s9 + $0x28] sm:$0xf] }
  0x3d   : > { %v955_v9 = vor.u32 %v954_v60, %v950_v57  ;;  %722 = vst [vmem:[#allocation2 + $0x38] sm:$0x1] %v721_v3  ;;  %v972_v10 = vshll.u32 %v816_v6, 16  ;;  %v976_v11 = vshrl.u32 %v816_v6, 16  ;;  %12811 = vmatprep.subr.bf16.mxu0 %v14015_v55  ;;  %v14016_v22 = vld [vmem:[%s17867_s1 + $0x10] sm:$0xff]   ;;  %v447_v13 = vor.u32 %v445_v1, %v444_v62  ;;  %v14018_v0 = vld [vmem:[%s17867_s1 + $0x40] sm:$0xff]  }
  0x3e   : > { %v951_v12 = vsel %vm14364_vm10, %v946_v2, %v950_v57  ;;  %v448_v14 = vrot.slane %v444_v62, 4  ;;  %v452_v15 = vrot.slane %v450_v63, 7  ;;  %12781 = vmatprep.mubr.msk.bf16.mxu0 %vm1331_vm8, %v11413_v8  ;;  %v257_v24 = vsel %vm14317_vm4, 0, %v256_v51  ;;  %v350_v25 = vld [vmem:[%s14354_s9 + $0x2c] sm:$0xf] }
  0x3f   : > { %v956_v19 = vrot.slane %v955_v9, 4  ;;  %v815_v20 = vld [vmem:[#allocation2 + $0x30] sm:$0xf]  ;;  %v14462_v21 = vrot.slane %v972_v10, 5  ;;  %v978_v23 = vrot.slane %v976_v11, 4  ;;  %v724_v30 = vsel %vm14371_vm11, %v447_v13, %v723_v53 }
  0x40   : > { %v963_v26 = vshrl.u32 %v815_v20, 16  ;;  %v966_v27 = vshll.u32 %v815_v20, 16  ;;  %v455_v43 = vor.u32 %v453_v7, %v452_v15  ;;  %v457_v1 = vrot.slane %v452_v15, 4  ;;  %12812 = vmatpush3.bf16.msra.mxu0 %v14015_v55  ;;  %258 = vst [vmem:[#allocation2 + $0x48] sm:$0x1] %v257_v24 }
  0x41   : > { %v961_v28 = vsel %vm14364_vm10, %v956_v19, %v960_v61  ;;  %v979_v29 = vor.u32 %v978_v23, %v14462_v21  ;;  %v307_v31 = vsel %vm14322_vm6, 0, %v306_v17  ;;  %v259_v32 = vld [vmem:[#allocation2 + $0x54] sm:$0x1]  ;;  %12813 = vmatprep.subr.bf16.mxu0 %v14016_v22  ;;  %725 = vst [vmem:[#allocation2 + $0x3c] sm:$0xf] %v724_v30  ;;  %v459_v44 = vshrl.u32 %v349_v18, 16 }
  0x42   : > { %v11414_v34 = vcombine.low %v951_v12, %v961_v28  ;;  %v965_v35 = vrot.slane %v963_v26, 4  ;;  %v968_v36 = vrot.slane %v966_v27, 5  ;;  %v456_v37 = vsel %vm14383_vm12, %v448_v14, %v455_v43  ;;  %308 = vst [vmem:[#allocation2 + $0x50] sm:$0x1] %v307_v31  ;;  %v309_v38 = vld [vmem:[#allocation2 + $0x5c] sm:$0x1] }
  0x43   : > { %v351_v39 = vld [vmem:[%s14354_s9 + $0x30] sm:$0xf]  ;;  %v980_v41 = vrot.slane %v979_v29, 4  ;;  %726 = vst.msk [vmem:[#allocation2 + $0x40] sm:$0xf] %vm228_vm0, %v456_v37  ;;  %v728_v42 = vsel %vm14317_vm4, %v457_v1, %v727_v16  ;;  %v462_v45 = vshll.u32 %v349_v18, 16 }
  0x44   : > { %v14484_v47 = vld [vmem:[%s14354_s9 + $0x34] sm:$0xf]  ;;  %12782 = vmatmul.mubr.msk.bf16.gmra.mrb[4].mxu0 %vm1331_vm8, %v11414_v34  ;;  %v851_v48 = vld [vmem:[#allocation2 + $0x38] sm:$0x1]  ;;  %v969_v49 = vor.u32 %v968_v36, %v965_v35  ;;  %729 = vst [vmem:[#allocation2 + $0x44] sm:$0x1] %v728_v42 }
  0x45   : > { %v467_v52 = vshrl.u32 %v350_v25, 16  ;;  %v470_v54 = vshll.u32 %v350_v25, 16  ;;  %v260_v55 = vsel %vm14317_vm4, 0, %v259_v32  ;;  %v982_v46 = vshll.u32 %v851_v48, 16  ;;  %12814 = vmatpush3.bf16.msra.mxu0 %v14016_v22  ;;  %v262_v16 = vld [vmem:[#allocation2 + $0x60] sm:$0x1] }
  0x46   : > { %v461_v56 = vrot.slane %v459_v44, 7  ;;  %261 = vst [vmem:[#allocation2 + $0x54] sm:$0x1] %v260_v55  ;;  %v310_v57 = vsel %vm14322_vm6, 0, %v309_v38  ;;  %v476_v59 = vshrl.u32 %v351_v39, 16  ;;  %v970_v60 = vrot.slane %v969_v49, 4  ;;  %12815 = vmatprep.subr.bf16.mxu0 %v14017_v33 }
  0x47   : > { %v469_v61 = vrot.slane %v467_v52, 7  ;;  %311 = vst [vmem:[#allocation2 + $0x5c] sm:$0x1] %v310_v57  ;;  %v479_v62 = vshll.u32 %v351_v39, 16  ;;  %v484_v63 = vshrl.u32 %v14484_v47, 16  ;;  %v984_v2 = vrot.slane %v982_v46, 5 }
  0x48   : > { %v464_v3 = vor.u32 %v462_v45, %v461_v56  ;;  %v465_v6 = vrot.slane %v461_v56, 4  ;;  %v730_v7 = vld [vmem:[#allocation2 + $0x48] sm:$0xf]  ;;  %v478_v51 = vrot.slane %v476_v59, 7  ;;  %v975_v8 = vsel %vm14364_vm10, %v970_v60, %v14462_v21  ;;  %v817_v22 = vld [vmem:[#allocation2 + $0x3c] sm:$0xf] }
  0x49   : > { %v472_v9 = vor.u32 %v470_v54, %v469_v61  ;;  %v474_v10 = vrot.slane %v469_v61, 4  ;;  %v486_v11 = vrot.slane %v484_v63, 7  ;;  %v985_v53 = vsel %vm14364_vm10, %v980_v41, %v984_v2  ;;  %v734_v13 = vld [vmem:[#allocation2 + $0x50] sm:$0x1]  ;;  %12816 = vmatpush3.bf16.msra.mxu0 %v14017_v33  ;;  %v312_v23 = vld [vmem:[#allocation2 + $0x68] sm:$0x1] }
  0x4a   : > { %v731_v12 = vsel %vm14371_vm11, %v464_v3, %v730_v7  ;;  %v481_v14 = vor.u32 %v479_v62, %v478_v51  ;;  %v482_v15 = vrot.slane %v478_v51, 4  ;;  %v11415_v17 = vcombine.low %v975_v8, %v985_v53  ;;  %v818_v18 = vld [vmem:[#allocation2 + $0x40] sm:$0xf]  ;;  %v353_v24 = vld [vmem:[%s14354_s9 + $0x38] sm:$0xf]  ;;  %12849 = vmatprep.subr.bf16.mxu0 %v14018_v0 }
  0x4b   : > { %v987_v19 = vshrl.u32 %v817_v22, 16  ;;  %v990_v20 = vshll.u32 %v817_v22, 16  ;;  %v473_v21 = vsel %vm14383_vm12, %v465_v6, %v472_v9  ;;  %732 = vst [vmem:[#allocation2 + $0x48] sm:$0xf] %v731_v12  ;;  %v852_v25 = vld [vmem:[#allocation2 + $0x44] sm:$0x1]  ;;  %v735_v43 = vsel %vm14317_vm4, %v474_v10, %v734_v13 }
  0x4c   : > { %v996_v26 = vshll.u32 %v818_v18, 16  ;;  %v1000_v27 = vshrl.u32 %v818_v18, 16  ;;  %733 = vst.msk [vmem:[#allocation2 + $0x4c] sm:$0xf] %vm228_vm0, %v473_v21  ;;  %v487_v1 = vshll.u32 %v14484_v47, 16  ;;  %12785 = vmatprep.mubr.msk.bf16.mxu0 %vm1331_vm8, %v11415_v17  ;;  %v1006_v30 = vshll.u32 %v852_v25, 16 }
  0x4d   : > { %v989_v28 = vrot.slane %v987_v19, 4  ;;  %v992_v29 = vrot.slane %v990_v20, 5  ;;  %736 = vst [vmem:[#allocation2 + $0x50] sm:$0x1] %v735_v43  ;;  %v491_v31 = vrot.slane %v486_v11, 4  ;;  %v263_v44 = vsel %vm14317_vm4, 0, %v262_v16 }
  0x4e   : > { %v737_v32 = vld [vmem:[#allocation2 + $0x54] sm:$0xf]  ;;  %v998_v33 = vrot.slane %v996_v26, 5  ;;  %v1002_v34 = vrot.slane %v1000_v27, 4  ;;  %v489_v35 = vor.u32 %v487_v1, %v486_v11  ;;  %v741_v37 = vld [vmem:[#allocation2 + $0x5c] sm:$0x1] }
  0x4f   : > { %v738_v36 = vsel %vm14371_vm11, %v481_v14, %v737_v32  ;;  %v354_v38 = vld [vmem:[%s14354_s9 + $0x3c] sm:$0xf]  ;;  %v993_v39 = vor.u32 %v992_v29, %v989_v28  ;;  %v1008_v41 = vrot.slane %v1006_v30, 5  ;;  %v742_v42 = vsel %vm14317_vm4, %v491_v31, %v741_v37  ;;  %v265_v45 = vld [vmem:[#allocation2 + $0x6c] sm:$0x1] }
  0x50   : > { %739 = vst [vmem:[#allocation2 + $0x54] sm:$0xf] %v738_v36  ;;  %v315_v47 = vld [vmem:[#allocation2 + $0x74] sm:$0x1]  ;;  %v1003_v48 = vor.u32 %v1002_v34, %v998_v33  ;;  %v490_v49 = vsel %vm14383_vm12, %v482_v15, %v489_v35  ;;  %743 = vst [vmem:[#allocation2 + $0x5c] sm:$0x1] %v742_v42 }
  0x51   : > { %264 = vst [vmem:[#allocation2 + $0x60] sm:$0x1] %v263_v44  ;;  %v313_v52 = vsel %vm14322_vm6, 0, %v312_v23  ;;  %v493_v54 = vshrl.u32 %v353_v24, 16  ;;  %v994_v55 = vrot.slane %v993_v39, 4  ;;  %v496_v46 = vshll.u32 %v353_v24, 16 }
  0x52   : > { %740 = vst.msk [vmem:[#allocation2 + $0x58] sm:$0xf] %vm228_vm0, %v490_v49  ;;  %314 = vst [vmem:[#allocation2 + $0x68] sm:$0x1] %v313_v52  ;;  %v501_v56 = vshrl.u32 %v354_v38, 16  ;;  %v504_v57 = vshll.u32 %v354_v38, 16 }
  0x53   : > { %v1004_v59 = vrot.slane %v1003_v48, 4  ;;  %v819_v60 = vld [vmem:[#allocation2 + $0x48] sm:$0xf]  ;;  %v495_v61 = vrot.slane %v493_v54, 7  ;;  %v266_v62 = vsel %vm14317_vm4, 0, %v265_v45  ;;  %v316_v63 = vsel %vm14322_vm6, 0, %v315_v47 }
  0x54   : > { %v999_v0 = vsel %vm14364_vm10, %v994_v55, %v998_v33  ;;  %v14528_v2 = vld [vmem:[#allocation2 + $0x4c] sm:$0xf]  ;;  %v1011_v3 = vshrl.u32 %v819_v60, 16  ;;  %v1014_v6 = vshll.u32 %v819_v60, 16  ;;  %v503_v7 = vrot.slane %v501_v56, 7 }
  0x55   : > { %267 = vst [vmem:[#allocation2 + $0x6c] sm:$0x1] %v266_v62  ;;  %317 = vst [vmem:[#allocation2 + $0x74] sm:$0x1] %v316_v63  ;;  %v1009_v51 = vsel %vm14364_vm10, %v1004_v59, %v1008_v41  ;;  %v853_v8 = vld [vmem:[#allocation2 + $0x50] sm:$0x1]  ;;  %v498_v11 = vor.u32 %v496_v46, %v495_v61 }
  0x56   : > { %v1020_v9 = vshll.u32 %v14528_v2, 16  ;;  %v1024_v10 = vshrl.u32 %v14528_v2, 16  ;;  %v11416_v53 = vcombine.low %v999_v0, %v1009_v51  ;;  %v1013_v22 = vrot.slane %v1011_v3, 4  ;;  %v355_v25 = vld [vmem:[%s14354_s9 + $0x40] sm:$0xf] }
  0x57   : > { %v1016_v12 = vrot.slane %v1014_v6, 5  ;;  %v1030_v13 = vshll.u32 %v853_v8, 16  ;;  %v821_v16 = vld [vmem:[#allocation2 + $0x54] sm:$0xf]  ;;  %v499_v17 = vrot.slane %v495_v61, 4  ;;  %v506_v18 = vor.u32 %v504_v57, %v503_v7 }
  0x58   : > { %v1022_v14 = vrot.slane %v1020_v9, 5  ;;  %v1026_v15 = vrot.slane %v1024_v10, 4  ;;  %12786 = vmatmul.mubr.msk.bf16.gmra.mrb[8].mxu0 %vm1331_vm8, %v11416_v53  ;;  %v854_v21 = vld [vmem:[#allocation2 + $0x5c] sm:$0x1]  ;;  %v1035_v23 = vshrl.u32 %v821_v16, 16  ;;  %v1038_v24 = vshll.u32 %v821_v16, 16 }
  0x59   : > { %v1017_v19 = vor.u32 %v1016_v12, %v1013_v22  ;;  %v1032_v20 = vrot.slane %v1030_v13, 5  ;;  %v14536_v27 = vld [vmem:[#allocation2 + $0x58] sm:$0xf]  ;;  %v1054_v43 = vshll.u32 %v854_v21, 16  ;;  %v507_v1 = vsel %vm14383_vm12, %v499_v17, %v506_v18  ;;  %v744_v29 = vld [vmem:[#allocation2 + $0x60] sm:$0xf] }
  0x5a   : > { %v1027_v26 = vor.u32 %v1026_v15, %v1022_v14  ;;  %v508_v28 = vrot.slane %v503_v7, 4  ;;  %v356_v30 = vld [vmem:[%s14354_s9 + $0x44] sm:$0xf]  ;;  %v1037_v32 = vrot.slane %v1035_v23, 4  ;;  %v1040_v33 = vrot.slane %v1038_v24, 5 }
  0x5b   : > { %v1018_v31 = vrot.slane %v1017_v19, 4  ;;  %v1044_v34 = vshll.u32 %v14536_v27, 16  ;;  %747 = vst.msk [vmem:[#allocation2 + $0x64] sm:$0xf] %vm228_vm0, %v507_v1  ;;  %v748_v35 = vld [vmem:[#allocation2 + $0x68] sm:$0x1]  ;;  %v745_v39 = vsel %vm14371_vm11, %v498_v11, %v744_v29 }
  0x5c   : > { %v1028_v36 = vrot.slane %v1027_v26, 4  ;;  %v1048_v37 = vshrl.u32 %v14536_v27, 16  ;;  %v1056_v38 = vrot.slane %v1054_v43, 5  ;;  %v268_v41 = vld [vmem:[#allocation2 + $0x78] sm:$0x1]  ;;  %v1041_v44 = vor.u32 %v1040_v33, %v1037_v32 }
  0x5d   : > { %v1023_v42 = vsel %vm14364_vm10, %v1018_v31, %v1022_v14  ;;  %v1046_v45 = vrot.slane %v1044_v34, 5  ;;  %746 = vst [vmem:[#allocation2 + $0x60] sm:$0xf] %v745_v39  ;;  %v749_v47 = vsel %vm14317_vm4, %v508_v28, %v748_v35  ;;  %v318_v48 = vld [vmem:[#allocation2 + $0x80] sm:$0x1]  ;;  %v510_v54 = vshrl.u32 %v355_v25, 16 }
  0x5e   : > { %v1033_v49 = vsel %vm14364_vm10, %v1028_v36, %v1032_v20  ;;  %v1050_v52 = vrot.slane %v1048_v37, 4  ;;  %750 = vst [vmem:[#allocation2 + $0x68] sm:$0x1] %v749_v47  ;;  %v513_v55 = vshll.u32 %v355_v25, 16  ;;  %v357_v46 = vld [vmem:[%s14354_s9 + $0x48] sm:$0xf] }
  0x5f   : > { %v11417_v56 = vcombine.low %v1023_v42, %v1033_v49  ;;  %v1042_v57 = vrot.slane %v1041_v44, 4  ;;  %v518_v59 = vshrl.u32 %v356_v30, 16  ;;  %v521_v60 = vshll.u32 %v356_v30, 16  ;;  %v358_v61 = vld [vmem:[%s14354_s9 + $0x4c] sm:$0xf] }
  0x60   : > { %v1051_v62 = vor.u32 %v1050_v52, %v1046_v45  ;;  %v512_v63 = vrot.slane %v510_v54, 7  ;;  %v269_v0 = vsel %vm14317_vm4, 0, %v268_v41  ;;  %v319_v3 = vsel %vm14322_vm6, 0, %v318_v48  ;;  %v751_v51 = vld [vmem:[#allocation2 + $0x6c] sm:$0xf] }
  0x61   : > { %12789 = vmatprep.mubr.msk.bf16.mxu0 %vm1331_vm8, %v11417_v56  ;;  %v1047_v6 = vsel %vm14364_vm10, %v1042_v57, %v1046_v45  ;;  %v520_v7 = vrot.slane %v518_v59, 7  ;;  %270 = vst [vmem:[#allocation2 + $0x78] sm:$0x1] %v269_v0  ;;  %320 = vst [vmem:[#allocation2 + $0x80] sm:$0x1] %v319_v3  ;;  %v527_v8 = vshrl.u32 %v357_v46, 16 }
  0x62   : > { %v530_v9 = vshll.u32 %v357_v46, 16  ;;  %v1052_v10 = vrot.slane %v1051_v62, 4  ;;  %v14561_v11 = vld [vmem:[#allocation2 + $0x64] sm:$0xf]  ;;  %v515_v53 = vor.u32 %v513_v55, %v512_v63  ;;  %v516_v22 = vrot.slane %v512_v63, 4 }
  0x63   : > { %v535_v12 = vshrl.u32 %v358_v61, 16  ;;  %v1068_v13 = vshll.u32 %v14561_v11, 16  ;;  %v1072_v14 = vshrl.u32 %v14561_v11, 16  ;;  %v523_v15 = vor.u32 %v521_v60, %v520_v7  ;;  %v755_v17 = vld [vmem:[#allocation2 + $0x74] sm:$0x1] }
  0x64   : > { %v525_v16 = vrot.slane %v520_v7, 4  ;;  %v1057_v18 = vsel %vm14364_vm10, %v1052_v10, %v1056_v38  ;;  %v14567_v19 = vld [vmem:[#allocation2 + $0x60] sm:$0xf]  ;;  %v752_v20 = vsel %vm14371_vm11, %v515_v53, %v751_v51  ;;  %v529_v21 = vrot.slane %v527_v8, 7  ;;  %v271_v24 = vld [vmem:[#allocation2 + $0x84] sm:$0x1] }
  0x65   : > { %v537_v23 = vrot.slane %v535_v12, 7  ;;  %v11418_v25 = vcombine.low %v1047_v6, %v1057_v18  ;;  %v855_v26 = vld [vmem:[#allocation2 + $0x68] sm:$0x1]  ;;  %v1059_v43 = vshrl.u32 %v14567_v19, 16  ;;  %v1062_v1 = vshll.u32 %v14567_v19, 16 }
  0x66   : > { %v1070_v28 = vrot.slane %v1068_v13, 5  ;;  %753 = vst [vmem:[#allocation2 + $0x6c] sm:$0xf] %v752_v20  ;;  %v1074_v29 = vrot.slane %v1072_v14, 4  ;;  %v1078_v30 = vshll.u32 %v855_v26, 16  ;;  %v524_v31 = vsel %vm14383_vm12, %v516_v22, %v523_v15 }
  0x67   : > { %v756_v32 = vsel %vm14317_vm4, %v525_v16, %v755_v17  ;;  %v321_v33 = vld [vmem:[#allocation2 + $0x8c] sm:$0x1]  ;;  %v359_v34 = vld [vmem:[%s14354_s9 + $0x50] sm:$0xf]  ;;  %12790 = vmatmul.mubr.msk.bf16.gmra.mrb[12].mxu0 %vm1331_vm8, %v11418_v25  ;;  %v1061_v35 = vrot.slane %v1059_v43, 4  ;;  %v1064_v36 = vrot.slane %v1062_v1, 5  ;;  %v532_v37 = vor.u32 %v530_v9, %v529_v21 }
  0x68   : > { %754 = vst.msk [vmem:[#allocation2 + $0x70] sm:$0xf] %vm228_vm0, %v524_v31  ;;  %757 = vst [vmem:[#allocation2 + $0x74] sm:$0x1] %v756_v32  ;;  %v533_v38 = vrot.slane %v529_v21, 4  ;;  %v1075_v41 = vor.u32 %v1074_v29, %v1070_v28  ;;  %v1080_v42 = vrot.slane %v1078_v30, 5 }
  0x69   : > { %v360_v39 = vld [vmem:[%s14354_s9 + $0x54] sm:$0xf]  ;;  %v538_v44 = vshll.u32 %v358_v61, 16  ;;  %v542_v45 = vrot.slane %v537_v23, 4  ;;  %v758_v47 = vld [vmem:[#allocation2 + $0x78] sm:$0xf]  ;;  %v1065_v48 = vor.u32 %v1064_v36, %v1061_v35 }
  0x6a   : > { %v759_v49 = vsel %vm14371_vm11, %v532_v37, %v758_v47  ;;  %v762_v52 = vld [vmem:[#allocation2 + $0x80] sm:$0x1]  ;;  %v272_v54 = vsel %vm14317_vm4, 0, %v271_v24  ;;  %v322_v55 = vsel %vm14322_vm6, 0, %v321_v33  ;;  %v274_v46 = vld [vmem:[#allocation2 + $0x90] sm:$0x1] }
  0x6b   : > { %v1076_v56 = vrot.slane %v1075_v41, 4  ;;  %v540_v57 = vor.u32 %v538_v44, %v537_v23  ;;  %760 = vst [vmem:[#allocation2 + $0x78] sm:$0xf] %v759_v49  ;;  %v763_v59 = vsel %vm14317_vm4, %v542_v45, %v762_v52  ;;  %273 = vst [vmem:[#allocation2 + $0x84] sm:$0x1] %v272_v54  ;;  %v544_v60 = vshrl.u32 %v359_v34, 16 }
  0x6c   : > { %323 = vst [vmem:[#allocation2 + $0x8c] sm:$0x1] %v322_v55  ;;  %v324_v61 = vld [vmem:[#allocation2 + $0x98] sm:$0x1]  ;;  %v1066_v62 = vrot.slane %v1065_v48, 4  ;;  %v547_v63 = vshll.u32 %v359_v34, 16 }
  0x6d   : > { %764 = vst [vmem:[#allocation2 + $0x80] sm:$0x1] %v763_v59  ;;  %v552_v0 = vshrl.u32 %v360_v39, 16  ;;  %v555_v3 = vshll.u32 %v360_v39, 16  ;;  %v14590_v6 = vld [vmem:[%s14354_s9 + $0x58] sm:$0xf]  ;;  %v1081_v7 = vsel %vm14364_vm10, %v1076_v56, %v1080_v42  ;;  %v541_v8 = vsel %vm14383_vm12, %v533_v38, %v540_v57 }
  0x6e   : > { %v14594_v51 = vld [vmem:[#allocation2 + $0x6c] sm:$0xf]  ;;  %v546_v9 = vrot.slane %v544_v60, 7  ;;  %v275_v10 = vsel %vm14317_vm4, 0, %v274_v46  ;;  %v1071_v53 = vsel %vm14364_vm10, %v1066_v62, %v1070_v28  ;;  %761 = vst.msk [vmem:[#allocation2 + $0x7c] sm:$0xf] %vm228_vm0, %v541_v8 }
  0x6f   : > { %v1083_v22 = vshrl.u32 %v14594_v51, 16  ;;  %v1086_v12 = vshll.u32 %v14594_v51, 16  ;;  %v554_v13 = vrot.slane %v552_v0, 7  ;;  %276 = vst [vmem:[#allocation2 + $0x90] sm:$0x1] %v275_v10  ;;  %v11419_v14 = vcombine.low %v1071_v53, %v1081_v7 }
  0x70   : > { %v14605_v15 = vld [vmem:[#allocation2 + $0x70] sm:$0xf]  ;;  %v856_v16 = vld [vmem:[#allocation2 + $0x74] sm:$0x1]  ;;  %v549_v17 = vor.u32 %v547_v63, %v546_v9  ;;  %v550_v18 = vrot.slane %v546_v9, 4  ;;  %v325_v20 = vsel %vm14322_vm6, 0, %v324_v61 }
  0x71   : > { %v1085_v21 = vrot.slane %v1083_v22, 4  ;;  %v1088_v23 = vrot.slane %v1086_v12, 5  ;;  %v1092_v24 = vshll.u32 %v14605_v15, 16  ;;  %v1096_v25 = vshrl.u32 %v14605_v15, 16  ;;  %326 = vst [vmem:[#allocation2 + $0x98] sm:$0x1] %v325_v20  ;;  %12793 = vmatprep.mubr.msk.bf16.mxu0 %vm1331_vm8, %v11419_v14 }
  0x72   : > { %v1102_v26 = vshll.u32 %v856_v16, 16  ;;  %v557_v43 = vor.u32 %v555_v3, %v554_v13  ;;  %v559_v1 = vrot.slane %v554_v13, 4  ;;  %v561_v28 = vshrl.u32 %v14590_v6, 16  ;;  %v14613_v32 = vld [vmem:[#allocation2 + $0x78] sm:$0xf] }
  0x73   : > { %v1089_v29 = vor.u32 %v1088_v23, %v1085_v21  ;;  %v1094_v30 = vrot.slane %v1092_v24, 5  ;;  %v1098_v31 = vrot.slane %v1096_v25, 4  ;;  %v765_v33 = vld [vmem:[#allocation2 + $0x84] sm:$0xf]  ;;  %v1107_v36 = vshrl.u32 %v14613_v32, 16 }
  0x74   : > { %v1104_v34 = vrot.slane %v1102_v26, 5  ;;  %v857_v35 = vld [vmem:[#allocation2 + $0x80] sm:$0x1]  ;;  %v1110_v37 = vshll.u32 %v14613_v32, 16  ;;  %v558_v38 = vsel %vm14383_vm12, %v550_v18, %v557_v43  ;;  %v362_v39 = vld [vmem:[%s14354_s9 + $0x5c] sm:$0xf]  ;;  %v766_v45 = vsel %vm14371_vm11, %v549_v17, %v765_v33 }
  0x75   : > { %v1090_v41 = vrot.slane %v1089_v29, 4  ;;  %v1099_v42 = vor.u32 %v1098_v31, %v1094_v30  ;;  %v1126_v44 = vshll.u32 %v857_v35, 16  ;;  %768 = vst.msk [vmem:[#allocation2 + $0x88] sm:$0xf] %vm228_vm0, %v558_v38  ;;  %v769_v47 = vld [vmem:[#allocation2 + $0x8c] sm:$0x1] }
  0x76   : > { %v14623_v48 = vld [vmem:[#allocation2 + $0x7c] sm:$0xf]  ;;  %v1109_v49 = vrot.slane %v1107_v36, 4  ;;  %v1112_v52 = vrot.slane %v1110_v37, 5  ;;  %767 = vst [vmem:[#allocation2 + $0x84] sm:$0xf] %v766_v45  ;;  %v770_v54 = vsel %vm14317_vm4, %v559_v1, %v769_v47 }
  0x77   : > { %v563_v55 = vrot.slane %v561_v28, 7  ;;  %v277_v46 = vld [vmem:[#allocation2 + $0x9c] sm:$0x1]  ;;  %v327_v56 = vld [vmem:[#allocation2 + $0xa4] sm:$0x1]  ;;  %v1095_v57 = vsel %vm14364_vm10, %v1090_v41, %v1094_v30  ;;  %v1100_v59 = vrot.slane %v1099_v42, 4 }
  0x78   : > { %v1116_v60 = vshll.u32 %v14623_v48, 16  ;;  %v1120_v61 = vshrl.u32 %v14623_v48, 16  ;;  %771 = vst [vmem:[#allocation2 + $0x8c] sm:$0x1] %v770_v54  ;;  %v363_v62 = vld [vmem:[%s14354_s9 + $0x60] sm:$0xf]  ;;  %v1113_v63 = vor.u32 %v1112_v52, %v1109_v49 }
  0x79   : > { %v1128_v0 = vrot.slane %v1126_v44, 5  ;;  %v564_v3 = vshll.u32 %v14590_v6, 16  ;;  %v567_v7 = vrot.slane %v563_v55, 4  ;;  %v772_v8 = vld [vmem:[#allocation2 + $0x90] sm:$0xf]  ;;  %v1105_v9 = vsel %vm14364_vm10, %v1100_v59, %v1104_v34 }
  0x7a   : > { %v1118_v10 = vrot.slane %v1116_v60, 5  ;;  %v1122_v53 = vrot.slane %v1120_v61, 4  ;;  %v569_v22 = vshrl.u32 %v362_v39, 16  ;;  %v11420_v12 = vcombine.low %v1095_v57, %v1105_v9  ;;  %v776_v25 = vld [vmem:[#allocation2 + $0x98] sm:$0x1] }
  0x7b   : > { %v1114_v13 = vrot.slane %v1113_v63, 4  ;;  %v566_v14 = vor.u32 %v564_v3, %v563_v55  ;;  %v572_v16 = vshll.u32 %v362_v39, 16  ;;  %v278_v20 = vsel %vm14317_vm4, 0, %v277_v46  ;;  %v364_v44 = vld [vmem:[%s14354_s9 + $0x64] sm:$0xf] }
  0x7c   : > { %v1123_v17 = vor.u32 %v1122_v53, %v1118_v10  ;;  %v571_v18 = vrot.slane %v569_v22, 7  ;;  %v328_v6 = vsel %vm14322_vm6, 0, %v327_v56  ;;  %12794 = vmatmul.mubr.msk.bf16.gmra.mrb[16].mxu0 %vm1331_vm8, %v11420_v12  ;;  %v14642_v23 = vld [vmem:[#allocation2 + $0x88] sm:$0xf]  ;;  %279 = vst [vmem:[#allocation2 + $0x9c] sm:$0x1] %v278_v20 }
  0x7d   : > { %v1119_v21 = vsel %vm14364_vm10, %v1114_v13, %v1118_v10  ;;  %v773_v24 = vsel %vm14371_vm11, %v566_v14, %v772_v8  ;;  %329 = vst [vmem:[#allocation2 + $0xa4] sm:$0x1] %v328_v6  ;;  %v578_v26 = vshrl.u32 %v363_v62, 16  ;;  %v581_v43 = vshll.u32 %v363_v62, 16  ;;  %v14646_v28 = vld [vmem:[#allocation2 + $0x84] sm:$0xf] }
  0x7e   : > { %v1124_v1 = vrot.slane %v1123_v17, 4  ;;  %v1140_v29 = vshll.u32 %v14642_v23, 16  ;;  %v1144_v30 = vshrl.u32 %v14642_v23, 16  ;;  %v574_v31 = vor.u32 %v572_v16, %v571_v18  ;;  %774 = vst [vmem:[#allocation2 + $0x90] sm:$0xf] %v773_v24 }
  0x7f   : > { %v858_v33 = vld [vmem:[#allocation2 + $0x8c] sm:$0x1]  ;;  %v1131_v34 = vshrl.u32 %v14646_v28, 16  ;;  %v1134_v35 = vshll.u32 %v14646_v28, 16  ;;  %v576_v36 = vrot.slane %v571_v18, 4  ;;  %v580_v37 = vrot.slane %v578_v26, 7 }
  0x80   : > { %v1129_v38 = vsel %vm14364_vm10, %v1124_v1, %v1128_v0  ;;  %v1142_v39 = vrot.slane %v1140_v29, 5  ;;  %v1146_v41 = vrot.slane %v1144_v30, 4  ;;  %v1150_v42 = vshll.u32 %v858_v33, 16  ;;  %v280_v54 = vld [vmem:[#allocation2 + $0xa8] sm:$0x1] }
  0x81   : > { %v11421_v45 = vcombine.low %v1119_v21, %v1129_v38  ;;  %v1133_v47 = vrot.slane %v1131_v34, 4  ;;  %v1136_v49 = vrot.slane %v1134_v35, 5  ;;  %v575_v52 = vsel %vm14383_vm12, %v567_v7, %v574_v31  ;;  %v330_v59 = vld [vmem:[#allocation2 + $0xb0] sm:$0x1]  ;;  %v365_v63 = vld [vmem:[%s14354_s9 + $0x68] sm:$0xf] }
  0x82   : > { %v1147_v55 = vor.u32 %v1146_v41, %v1142_v39  ;;  %v1152_v46 = vrot.slane %v1150_v42, 5  ;;  %775 = vst.msk [vmem:[#allocation2 + $0x94] sm:$0xf] %vm228_vm0, %v575_v52  ;;  %v777_v56 = vsel %vm14317_vm4, %v576_v36, %v776_v25  ;;  %v583_v57 = vor.u32 %v581_v43, %v580_v37  ;;  %v366_v9 = vld [vmem:[%s14354_s9 + $0x6c] sm:$0xf] }
  0x83   : > { %12797 = vmatprep.mubr.msk.bf16.mxu0 %vm1331_vm8, %v11421_v45  ;;  %v1137_v60 = vor.u32 %v1136_v49, %v1133_v47  ;;  %778 = vst [vmem:[#allocation2 + $0x98] sm:$0x1] %v777_v56  ;;  %v586_v61 = vshrl.u32 %v364_v44, 16  ;;  %v589_v62 = vshll.u32 %v364_v44, 16  ;;  %v584_v3 = vrot.slane %v580_v37, 4 }
  0x84   : > { %v1148_v0 = vrot.slane %v1147_v55, 4  ;;  %v779_v7 = vld [vmem:[#allocation2 + $0x9c] sm:$0xf]  ;;  %v281_v8 = vsel %vm14317_vm4, 0, %v280_v54  ;;  %v331_v13 = vsel %vm14322_vm6, 0, %v330_v59  ;;  %v595_v20 = vshrl.u32 %v365_v63, 16 }
  0x85   : > { %v1138_v10 = vrot.slane %v1137_v60, 4  ;;  %v14665_v53 = vld [vmem:[#allocation2 + $0x90] sm:$0xf]  ;;  %v588_v22 = vrot.slane %v586_v61, 7  ;;  %v780_v12 = vsel %vm14371_vm11, %v583_v57, %v779_v7  ;;  %282 = vst [vmem:[#allocation2 + $0xa8] sm:$0x1] %v281_v8 }
  0x86   : > { %v1153_v14 = vsel %vm14364_vm10, %v1148_v0, %v1152_v46  ;;  %v1155_v16 = vshrl.u32 %v14665_v53, 16  ;;  %v1158_v17 = vshll.u32 %v14665_v53, 16  ;;  %781 = vst [vmem:[#allocation2 + $0x9c] sm:$0xf] %v780_v12  ;;  %v783_v18 = vld [vmem:[#allocation2 + $0xa4] sm:$0x1] }
  0x87   : > { %332 = vst [vmem:[#allocation2 + $0xb0] sm:$0x1] %v331_v13  ;;  %v1143_v6 = vsel %vm14364_vm10, %v1138_v10, %v1142_v39  ;;  %v591_v21 = vor.u32 %v589_v62, %v588_v22  ;;  %v593_v24 = vrot.slane %v588_v22, 4  ;;  %v598_v25 = vshll.u32 %v365_v63, 16  ;;  %v283_v26 = vld [vmem:[#allocation2 + $0xb4] sm:$0x1] }
  0x88   : > { %v333_v43 = vld [vmem:[#allocation2 + $0xbc] sm:$0x1]  ;;  %v11422_v1 = vcombine.low %v1143_v6, %v1153_v14  ;;  %v1157_v29 = vrot.slane %v1155_v16, 4  ;;  %v1160_v30 = vrot.slane %v1158_v17, 5  ;;  %v597_v31 = vrot.slane %v595_v20, 7 }
  0x89   : > { %v14677_v33 = vld [vmem:[#allocation2 + $0x94] sm:$0xf]  ;;  %v592_v34 = vsel %vm14383_vm12, %v584_v3, %v591_v21  ;;  %v784_v35 = vsel %vm14317_vm4, %v593_v24, %v783_v18  ;;  %v603_v36 = vshrl.u32 %v366_v9, 16  ;;  %v606_v37 = vshll.u32 %v366_v9, 16  ;;  %v367_v45 = vld [vmem:[%s14354_s9 + $0x70] sm:$0xf] }
  0x8a   : > { %12798 = vmatmul.mubr.msk.bf16.gmra.mrb[20].mxu0 %vm1331_vm8, %v11422_v1  ;;  %v14684_v38 = vld [vmem:[#allocation2 + $0x98] sm:$0x1]  ;;  %v1161_v39 = vor.u32 %v1160_v30, %v1157_v29  ;;  %v1164_v41 = vshll.u32 %v14677_v33, 16  ;;  %v1168_v42 = vshrl.u32 %v14677_v33, 16  ;;  %782 = vst.msk [vmem:[#allocation2 + $0xa0] sm:$0xf] %vm228_vm0, %v592_v34  ;;  %v600_v44 = vor.u32 %v598_v25, %v597_v31 }
  0x8b   : > { %785 = vst [vmem:[#allocation2 + $0xa4] sm:$0x1] %v784_v35  ;;  %v1174_v47 = vshll.u32 %v14684_v38, 16  ;;  %v601_v49 = vrot.slane %v597_v31, 4  ;;  %v605_v52 = vrot.slane %v603_v36, 7  ;;  %v284_v54 = vsel %vm14317_vm4, 0, %v283_v26 }
  0x8c   : > { %v368_v55 = vld [vmem:[%s14354_s9 + $0x74] sm:$0xf]  ;;  %v1162_v46 = vrot.slane %v1161_v39, 4  ;;  %v1166_v56 = vrot.slane %v1164_v41, 5  ;;  %v1170_v57 = vrot.slane %v1168_v42, 4  ;;  %v334_v60 = vsel %vm14322_vm6, 0, %v333_v43 }
  0x8d   : > { %v786_v59 = vld [vmem:[#allocation2 + $0xa8] sm:$0xf]  ;;  %285 = vst [vmem:[#allocation2 + $0xb4] sm:$0x1] %v284_v54  ;;  %v1176_v61 = vrot.slane %v1174_v47, 5  ;;  %v608_v63 = vor.u32 %v606_v37, %v605_v52  ;;  %v610_v0 = vrot.slane %v605_v52, 4 }
  0x8e   : > { %v14696_v62 = vld [vmem:[#allocation2 + $0x9c] sm:$0xf]  ;;  %v787_v3 = vsel %vm14371_vm11, %v600_v44, %v786_v59  ;;  %v790_v7 = vld [vmem:[#allocation2 + $0xb0] sm:$0x1]  ;;  %335 = vst [vmem:[#allocation2 + $0xbc] sm:$0x1] %v334_v60  ;;  %v1167_v8 = vsel %vm14364_vm10, %v1162_v46, %v1166_v56  ;;  %v1171_v9 = vor.u32 %v1170_v57, %v1166_v56 }
  0x8f   : > { %v1179_v10 = vshrl.u32 %v14696_v62, 16  ;;  %v1182_v22 = vshll.u32 %v14696_v62, 16  ;;  %788 = vst [vmem:[#allocation2 + $0xa8] sm:$0xf] %v787_v3  ;;  %v609_v12 = vsel %vm14383_vm12, %v601_v49, %v608_v63  ;;  %v791_v13 = vsel %vm14317_vm4, %v610_v0, %v790_v7 }
  0x90   : > { %v612_v14 = vshrl.u32 %v367_v45, 16  ;;  %v615_v16 = vshll.u32 %v367_v45, 16  ;;  %v1172_v17 = vrot.slane %v1171_v9, 4  ;;  %789 = vst.msk [vmem:[#allocation2 + $0xac] sm:$0xf] %vm228_vm0, %v609_v12  ;;  %v620_v6 = vshrl.u32 %v368_v55, 16 }
  0x91   : > { %v1181_v18 = vrot.slane %v1179_v10, 4  ;;  %v1184_v20 = vrot.slane %v1182_v22, 5  ;;  %792 = vst [vmem:[#allocation2 + $0xb0] sm:$0x1] %v791_v13  ;;  %v14709_v21 = vld [vmem:[#allocation2 + $0xa0] sm:$0xf] }
  0x92   : > { %v14711_v24 = vld [vmem:[#allocation2 + $0xa4] sm:$0x1]  ;;  %v614_v25 = vrot.slane %v612_v14, 7  ;;  %v1177_v26 = vsel %vm14364_vm10, %v1172_v17, %v1176_v61  ;;  %v1188_v1 = vshll.u32 %v14709_v21, 16  ;;  %v1192_v29 = vshrl.u32 %v14709_v21, 16 }
  0x93   : > { %v1185_v43 = vor.u32 %v1184_v20, %v1181_v18  ;;  %v11423_v30 = vcombine.low %v1167_v8, %v1177_v26  ;;  %v1198_v31 = vshll.u32 %v14711_v24, 16  ;;  %v623_v35 = vshll.u32 %v368_v55, 16 }
  0x94   : > { %v617_v34 = vor.u32 %v615_v16, %v614_v25  ;;  %v793_v36 = vld [vmem:[#allocation2 + $0xb4] sm:$0xf]  ;;  %v1190_v39 = vrot.slane %v1188_v1, 5  ;;  %v1194_v41 = vrot.slane %v1192_v29, 4  ;;  %v622_v42 = vrot.slane %v620_v6, 7 }
  0x95   : > { %v1186_v37 = vrot.slane %v1185_v43, 4  ;;  %12801 = vmatprep.mubr.msk.bf16.mxu0 %vm1331_vm8, %v11423_v30  ;;  %v618_v45 = vrot.slane %v614_v25, 4  ;;  %v797_v49 = vld [vmem:[#allocation2 + $0xbc] sm:$0x1]  ;;  %v1200_v54 = vrot.slane %v1198_v31, 5  ;;  %vm1902_vm13 = vcmask 1042432  }
  0x96   : > { %v14719_v44 = vld [vmem:[#allocation2 + $0xa8] sm:$0xf]  ;;  %v794_v47 = vsel %vm14371_vm11, %v617_v34, %v793_v36  ;;  %v1195_v52 = vor.u32 %v1194_v41, %v1190_v39  ;;  %v625_v60 = vor.u32 %v623_v35, %v622_v42  ;;  %v627_v61 = vrot.slane %v622_v42, 4 }
  0x97   : > { %v1203_v46 = vshrl.u32 %v14719_v44, 16  ;;  %v1206_v55 = vshll.u32 %v14719_v44, 16  ;;  %795 = vst [vmem:[#allocation2 + $0xb4] sm:$0xf] %v794_v47  ;;  %v1191_v56 = vsel %vm14364_vm10, %v1186_v37, %v1190_v39  ;;  %v14727_v57 = vld [vmem:[#allocation2 + $0xac] sm:$0xf] }
  0x98   : > { %v14729_v59 = vld [vmem:[#allocation2 + $0xb0] sm:$0x1]  ;;  %v1196_v63 = vrot.slane %v1195_v52, 4  ;;  %v1212_v7 = vshll.u32 %v14727_v57, 16  ;;  %v1216_v8 = vshrl.u32 %v14727_v57, 16  ;;  %v626_v10 = vsel %vm14383_vm12, %v618_v45, %v625_v60 }
  0x99   : > { %v1205_v0 = vrot.slane %v1203_v46, 4  ;;  %v1208_v3 = vrot.slane %v1206_v55, 5  ;;  %v1222_v9 = vshll.u32 %v14729_v59, 16  ;;  %v798_v22 = vsel %vm14317_vm4, %v627_v61, %v797_v49  ;;  %796 = vst.msk [vmem:[#allocation2 + $0xb8] sm:$0xf] %vm228_vm0, %v626_v10 }
  0x9a   : > { %v1201_v12 = vsel %vm14364_vm10, %v1196_v63, %v1200_v54  ;;  %v1214_v14 = vrot.slane %v1212_v7, 5  ;;  %799 = vst [vmem:[#allocation2 + $0xbc] sm:$0x1] %v798_v22  ;;  %v1218_v17 = vrot.slane %v1216_v8, 4  ;;  %v14156_v61 = vld [vmem:[#allocation2] sm:$0xf] }
  0x9b   : > { %v1209_v13 = vor.u32 %v1208_v3, %v1205_v0  ;;  %v11424_v16 = vcombine.low %v1191_v56, %v1201_v12  ;;  %v1224_v6 = vrot.slane %v1222_v9, 5  ;;  %v14762_v63 = vld [vmem:[#allocation2 + $0x4] sm:$0xf]  ;;  %v14158_v7 = vld [vmem:[#allocation2 + $0xc] sm:$0xf]  ;;  %vm1903_vm14 = vcmask 1046532  }
  0x9c   : > { %v1219_v20 = vor.u32 %v1218_v17, %v1214_v14  ;;  %v11447_v0 = vcombine.low %v14156_v61, %v14762_v63  ;;  %v14767_v8 = vld [vmem:[#allocation2 + $0x10] sm:$0xf]  ;;  %v14160_v10 = vld [vmem:[#allocation2 + $0x18] sm:$0xf]  ;;  %v14770_v22 = vld [vmem:[#allocation2 + $0x1c] sm:$0xf]  ;;  %v11460_v61 = vcombine.low %v14696_v62, %v14709_v21 }
  0x9d   : > { %v1210_v18 = vrot.slane %v1209_v13, 4  ;;  %12802 = vmatmul.mubr.msk.bf16.gmra.mrb[24].mxu0 %vm1331_vm8, %v11424_v16  ;;  %v11448_v9 = vcombine.low %v14158_v7, %v14767_v8  ;;  %v11449_v12 = vcombine.low %v14160_v10, %v14770_v22  ;;  %v14019_v13 = vld [vmem:[%s17867_s1 + $0x48] sm:$0xff]   ;;  %v14020_v16 = vld [vmem:[%s17867_s1 + $0x50] sm:$0xff]   ;;  %v14163_v17 = vld [vmem:[#allocation2 + $0x24] sm:$0xf]  ;;  %v11461_v10 = vcombine.low %v14719_v44, %v14727_v57 }
  0x9e   : > { %v14742_v25 = vld [vmem:[#allocation2 + $0xb4] sm:$0xf]  ;;  %v1220_v29 = vrot.slane %v1219_v20, 4  ;;  %vm14833_vm15 = vmor %vm1902_vm13, %vm1903_vm14  ;;  %v1855_v62 = vld [vmem:[#allocation2 + $0xc] sm:$0xe]  ;;  %v1921_v44 = vrot.slane %v14770_v22, 5 }
  0x9f   : > { %v1227_v26 = vshrl.u32 %v14742_v25, 16  ;;  %v1230_v43 = vshll.u32 %v14742_v25, 16  ;;  %v1215_v1 = vsel %vm14364_vm10, %v1210_v18, %v1214_v14  ;;  %v14162_v14 = vld [vmem:[%s17867_s1 + $0x40] sm:$0xff]   ;;  %v14784_v18 = vld [vmem:[#allocation2 + $0x28] sm:$0xf] }
  0xa0   : > { %v1225_v34 = vsel %vm14364_vm10, %v1220_v29, %v1224_v6  ;;  %v14750_v35 = vld [vmem:[#allocation2 + $0xb8] sm:$0xf]  ;;  %v11450_v20 = vcombine.low %v14163_v17, %v14784_v18  ;;  %v14787_v6 = vld [vmem:[#allocation2 + $0x34] sm:$0xf]  ;;  %v14798_v29 = vld [vmem:[%s17867_s1 + $0x60] sm:$0xff]   ;;  %v1914_v17 = vrot.slane %v14767_v8, 5 }
  0xa1   : > { %v1229_v30 = vrot.slane %v1227_v26, 4  ;;  %v1232_v31 = vrot.slane %v1230_v43, 5  ;;  %v14752_v36 = vld [vmem:[#allocation2 + $0xbc] sm:$0x1]  ;;  %v11425_v37 = vcombine.low %v1215_v1, %v1225_v34  ;;  %v1236_v41 = vshll.u32 %v14750_v35, 16 }
  0xa2   : > { %v1240_v42 = vshrl.u32 %v14750_v35, 16  ;;  %v1246_v45 = vshll.u32 %v14752_v36, 16  ;;  %v14166_v26 = vld [vmem:[#allocation2 + $0x30] sm:$0xf]  ;;  %v14021_v1 = vld [vmem:[%s17867_s1 + $0x58] sm:$0xff]  }
  0xa3   : > { %v1233_v39 = vor.u32 %v1232_v31, %v1229_v30  ;;  %12805 = vmatprep.mubr.msk.bf16.mxu0 %vm1331_vm8, %v11425_v37  ;;  %v1238_v49 = vrot.slane %v1236_v41, 5  ;;  %v11451_v43 = vcombine.low %v14166_v26, %v14787_v6  ;;  %v14167_v30 = vld [vmem:[#allocation2 + $0x3c] sm:$0xf]  ;;  %v14800_v31 = vld [vmem:[#allocation2 + $0x40] sm:$0xf] }
  0xa4   : > { %v1242_v52 = vrot.slane %v1240_v42, 4  ;;  %v1248_v46 = vrot.slane %v1246_v45, 5  ;;  %v11452_v34 = vcombine.low %v14167_v30, %v14800_v31  ;;  %v14169_v37 = vld [vmem:[#allocation2 + $0x48] sm:$0xf]  ;;  %v14170_v41 = vld [vmem:[#allocation2 + $0x54] sm:$0xf]  ;;  %v11455_v45 = vcombine.low %v14567_v19, %v14561_v11 }
  0xa5   : > { %v1234_v47 = vrot.slane %v1233_v39, 4  ;;  %v11453_v39 = vcombine.low %v14169_v37, %v14528_v2  ;;  %v11454_v42 = vcombine.low %v14170_v41, %v14536_v27  ;;  %v11456_v2 = vcombine.low %v14594_v51, %v14605_v15  ;;  %v369_v51 = vld [vmem:[%s14354_s9 + $0x78] sm:$0xf]  ;;  %v370_v15 = vld [vmem:[%s14354_s9 + $0x7c] sm:$0xf] }
  0xa6   : > { %v1243_v54 = vor.u32 %v1242_v52, %v1238_v49  ;;  %v11458_v27 = vcombine.low %v14646_v28, %v14642_v23  ;;  %v286_v52 = vld [vmem:[#allocation2 + $0xc0] sm:$0x1]  ;;  %v11459_v11 = vcombine.low %v14665_v53, %v14677_v33  ;;  %v632_v53 = vshll.u32 %v369_v51, 16  ;;  %v1857_v22 = vld [vmem:[#allocation2 + $0x24] sm:$0xe] }
  0xa7   : > { %v1239_v55 = vsel %vm14364_vm10, %v1234_v47, %v1238_v49  ;;  %v11457_v47 = vcombine.low %v14613_v32, %v14623_v48  ;;  %v1854_v49 = vld [vmem:[#allocation2] sm:$0xe]  ;;  %v287_v19 = vsel %vm14317_vm4, 0, %v286_v52  ;;  %v1907_v32 = vrot.slane %v14762_v63, 5  ;;  %v1858_v52 = vld [vmem:[#allocation2 + $0x30] sm:$0xe] }
  0xa8   : > { %v1244_v56 = vrot.slane %v1243_v54, 4  ;;  %288 = vst [vmem:[#allocation2 + $0xc0] sm:$0x1] %v287_v19  ;;  %v629_v48 = vshrl.u32 %v369_v51, 16  ;;  %v637_v54 = vshrl.u32 %v370_v15, 16  ;;  %v11483_v23 = vrot.slane %v1854_v49, 9 }
  0xa9   : > { %v1909_v63 = vrot.slane %v1907_v32, 4  ;;  %v11462_v30 = vcombine.low %v14742_v25, %v14750_v35  ;;  %v11484_v37 = vrot.slane %v1855_v62, 9  ;;  %v1928_v25 = vrot.slane %v14784_v18, 5  ;;  %v14024_v18 = vld [vmem:[%s17867_s1 + $0x68] sm:$0xff]  }
  0xaa   : > { %v1249_v60 = vsel %vm14364_vm10, %v1244_v56, %v1248_v46  ;;  %v14171_v46 = vld [vmem:[#allocation2 + $0x8] sm:$0x1]  ;;  %v631_v28 = vrot.slane %v629_v48, 7  ;;  %v14829_v56 = vrot.slane %v637_v54, 7  ;;  %v11486_v51 = vrot.slane %v1857_v22, 9  ;;  %v14901_v22 = vld [vmem:[%s17867_s1 + $0x80] sm:$0xff]  }
  0xab   : > { %v11426_v3 = vcombine.low %v1239_v55, %v1249_v60  ;;  %v1910_v55 = vrot.slane %v14171_v46, 5  ;;  %v640_v60 = vshll.u32 %v370_v15, 16  ;;  %v14174_v48 = vld [vmem:[#allocation2 + $0x2c] sm:$0x1]  ;;  %v11487_v46 = vrot.slane %v1858_v52, 9 }
  0xac   : > { %v635_v7 = vrot.slane %v631_v28, 4  ;;  %v1931_v54 = vrot.slane %v14174_v48, 5  ;;  %v14181_v52 = vld [vmem:[#allocation2 + $0x5c] sm:$0x1] }
  0xad   : > { %12806 = vmatmul.mubr.msk.bf16.gmra.mrb[28].mxu0 %vm1331_vm8, %v11426_v3  ;;  %v634_v3 = vor.u32 %v632_v53, %v631_v28  ;;  %v1911_v26 = vsel %vm14833_vm15, %v1909_v63, %v1910_v55  ;;  %v1859_v53 = vld [vmem:[#allocation2 + $0x3c] sm:$0xe] }
  0xae   : > { %12817 = vmatprep.mubr.msk.bf16.mxu0 %vm1331_vm8, %v11447_v0 }
  0xb5   : > { %12818 = vmatmul.mubr.msk.bf16.vlgmr.msra.gmra.mrb[0].mxu0 %vm1331_vm8, %v11448_v9  ;;  %v642_v9 = vor.u32 %v640_v60, %v14829_v56 }
  0xb6   : > { %12850 = vmatpush3.bf16.msra.mxu0 %v14162_v14  ;;  %12821 = vmatprep.mubr.msk.bf16.mxu0 %vm1331_vm8, %v11449_v12  ;;  %v800_v12 = vld [vmem:[#allocation2 + $0xc0] sm:$0xf] }
  0xb7   : > { %12851 = vmatprep.subr.bf16.mxu0 %v14019_v13  ;;  %v801_v14 = vsel %vm14371_vm11, %v634_v3, %v800_v12 }
  0xb8   : > { %802 = vst [vmem:[#allocation2 + $0xc0] sm:$0xf] %v801_v14 }
  0xba   : > { %12852 = vmatpush3.bf16.msra.mxu0 %v14019_v13  ;;  %v643_v13 = vsel %vm14383_vm12, %v635_v7, %v642_v9  ;;  %v1860_v7 = vld [vmem:[#allocation2 + $0x48] sm:$0xe]  ;;  %v14176_v9 = vld [vmem:[#allocation2 + $0x4c] sm:$0xf] }
  0xbb   : > { %12853 = vmatprep.subr.bf16.mxu0 %v14020_v16  ;;  %803 = vst.msk [vmem:[#allocation2 + $0xc4] sm:$0xf] %vm228_vm0, %v643_v13  ;;  %v11488_v13 = vrot.slane %v1859_v53, 9  ;;  %v14184_v53 = vld [vmem:[#allocation2 + $0x7c] sm:$0xf] }
  0xbd   : > { %12822 = vmatmul.mubr.msk.bf16.gmra.mrb[4].mxu0 %vm1331_vm8, %v11450_v20  ;;  %v1908_v20 = vsel %vm14833_vm15, %v11483_v23, %v1907_v32  ;;  %v1930_v32 = vrot.slane %v1928_v25, 4  ;;  %v14175_v23 = vld [vmem:[#allocation2 + $0x38] sm:$0x1] }
  0xbe   : > { %12825 = vmatprep.mubr.msk.bf16.mxu0 %vm1331_vm8, %v11451_v43  ;;  %12854 = vmatpush3.bf16.msra.mxu0 %v14020_v16  ;;  %v1856_v16 = vld [vmem:[#allocation2 + $0x18] sm:$0xe]  ;;  %v14172_v43 = vld [vmem:[#allocation2 + $0x14] sm:$0x1]  ;;  %v1938_v28 = vrot.slane %v14175_v23, 5 }
  0xbf   : > { %12855 = vmatprep.subr.bf16.mxu0 %v14021_v1  ;;  %v11485_v41 = vrot.slane %v1856_v16, 9  ;;  %v1932_v60 = vsel %vm14833_vm15, %v1930_v32, %v1931_v54  ;;  %v14177_v16 = vld [vmem:[#allocation2 + $0x44] sm:$0x1] }
  0xc2   : > { %12856 = vmatpush3.bf16.msra.mxu0 %v14021_v1  ;;  %v1917_v1 = vrot.slane %v14172_v43, 5 }
  0xc3   : > { %12889 = vmatprep.subr.bf16.mxu0 %v14798_v29 }
  0xc5   : > { %12826 = vmatmul.mubr.msk.bf16.gmra.mrb[8].mxu0 %vm1331_vm8, %v11452_v34  ;;  %v11507_v34 = vcombine.low %v1908_v20, %v1911_v26  ;;  %v14178_v26 = vld [vmem:[#allocation2 + $0x50] sm:$0x1] }
  0xc6   : > { %12829 = vmatprep.mubr.msk.bf16.mxu0 %vm1331_vm8, %v11453_v39  ;;  %v1916_v39 = vrot.slane %v1914_v17, 4  ;;  %v1952_v43 = vrot.slane %v14178_v26, 5  ;;  %v1865_v26 = vld [vmem:[#allocation2 + $0x84] sm:$0xe] }
  0xcd   : > { %12830 = vmatmul.mubr.msk.bf16.gmra.mrb[12].mxu0 %vm1331_vm8, %v11454_v42  ;;  %v1923_v42 = vrot.slane %v1921_v44, 4 }
  0xce   : > { %12833 = vmatprep.mubr.msk.bf16.mxu0 %vm1331_vm8, %v11455_v45  ;;  %v14173_v45 = vld [vmem:[#allocation2 + $0x20] sm:$0x1] }
  0xcf   : > { %v1924_v8 = vrot.slane %v14173_v45, 5  ;;  %v14180_v45 = vld [vmem:[#allocation2 + $0x64] sm:$0xf] }
  0xd1   : > { %v1925_v49 = vsel %vm14833_vm15, %v1923_v42, %v1924_v8  ;;  %v1861_v42 = vld [vmem:[#allocation2 + $0x54] sm:$0xe]  ;;  %v1963_v8 = vrot.slane %v14180_v45, 5 }
  0xd5   : > { %12834 = vmatmul.mubr.msk.bf16.gmra.mrb[16].mxu0 %vm1331_vm8, %v11456_v2  ;;  %v1915_v2 = vsel %vm14833_vm15, %v11484_v37, %v1914_v17  ;;  %v11489_v17 = vrot.slane %v1860_v7, 9 }
  0xd6   : > { %12837 = vmatprep.mubr.msk.bf16.mxu0 %vm1331_vm8, %v11457_v47  ;;  %v1918_v47 = vsel %vm14833_vm15, %v1916_v39, %v1917_v1 }
  0xd7   : > { %v11508_v19 = vcombine.low %v1915_v2, %v1918_v47  ;;  %v1862_v2 = vld [vmem:[#allocation2 + $0x60] sm:$0xe] }
  0xdd   : > { %12838 = vmatmul.mubr.msk.bf16.gmra.mrb[20].mxu0 %vm1331_vm8, %v11458_v27  ;;  %v1922_v27 = vsel %vm14833_vm15, %v11485_v41, %v1921_v44  ;;  %v14026_v44 = vld [vmem:[%s17867_s1 + $0x78] sm:$0xff]  }
  0xde   : > { %12841 = vmatprep.mubr.msk.bf16.mxu0 %vm1331_vm8, %v11459_v11  ;;  %v1935_v11 = vrot.slane %v14787_v6, 5  ;;  %v11509_v15 = vcombine.low %v1922_v27, %v1925_v49  ;;  %v1929_v6 = vsel %vm14833_vm15, %v11486_v51, %v1928_v25  ;;  %v11490_v27 = vrot.slane %v1861_v42, 9 }
  0xdf   : > { %v11510_v12 = vcombine.low %v1929_v6, %v1932_v60  ;;  %v1965_v51 = vrot.slane %v1963_v8, 4  ;;  %v1977_v6 = vrot.slane %v14184_v53, 5  ;;  %v1864_v60 = vld [vmem:[#allocation2 + $0x78] sm:$0xe] }
  0xe0   : > { %v1937_v55 = vrot.slane %v1935_v11, 4  ;;  %v1936_v63 = vsel %vm14833_vm15, %v11487_v46, %v1935_v11  ;;  %v1959_v11 = vrot.slane %v14181_v52, 5  ;;  %v14183_v46 = vld [vmem:[#allocation2 + $0x70] sm:$0xf]  ;;  %v1867_v52 = vld [vmem:[#allocation2 + $0x9c] sm:$0xe] }
  0xe2   : > { %v1939_v3 = vsel %vm14833_vm15, %v1937_v55, %v1938_v28  ;;  %v1863_v28 = vld [vmem:[#allocation2 + $0x6c] sm:$0xe] }
  0xe3   : > { %v11511_v14 = vcombine.low %v1936_v63, %v1939_v3  ;;  %v11492_v3 = vrot.slane %v1863_v28, 9  ;;  %v1869_v28 = vld [vmem:[#allocation2 + $0xb4] sm:$0xe] }
  0xe5   : > { %12842 = vmatmul.mubr.msk.bf16.gmra.mrb[24].mxu0 %vm1331_vm8, %v11460_v61  ;;  %v1942_v61 = vrot.slane %v14800_v31, 5  ;;  %v1945_v31 = vrot.slane %v14177_v16, 5 }
  0xe6   : > { %12845 = vmatprep.mubr.msk.bf16.mxu0 %vm1331_vm8, %v11461_v10  ;;  %v14025_v10 = vld [vmem:[%s17867_s1 + $0x70] sm:$0xff]  }
  0xe7   : > { %v1944_v62 = vrot.slane %v1942_v61, 4  ;;  %v1943_v1 = vsel %vm14833_vm15, %v11488_v13, %v1942_v61  ;;  %v14186_v13 = vld [vmem:[#allocation2 + $0x80] sm:$0x1] }
  0xed   : > { %12846 = vmatmul.mubr.msk.bf16.gmra.mrb[28].mxu0 %vm1331_vm8, %v11462_v30  ;;  %v1946_v30 = vsel %vm14833_vm15, %v1944_v62, %v1945_v31  ;;  %v14187_v31 = vld [vmem:[#allocation2 + $0x88] sm:$0xf] }
  0xee   : > { %12857 = vmatprep.mubr.msk.bf16.mxu0 %vm1331_vm8, %v11507_v34  ;;  %v14179_v34 = vld [vmem:[#allocation2 + $0x58] sm:$0xf]  ;;  %v11512_v47 = vcombine.low %v1943_v1, %v1946_v30  ;;  %v1866_v1 = vld [vmem:[#allocation2 + $0x90] sm:$0xe] }
  0xef   : > { %v1956_v37 = vrot.slane %v14179_v34, 5  ;;  %v11495_v45 = vrot.slane %v1866_v1, 9  ;;  %v14989_v1 = vld [vmem:[#allocation2 + $0x10] sm:$0xf] }
  0xf1   : > { %v1958_v49 = vrot.slane %v1956_v37, 4  ;;  %v1957_v48 = vsel %vm14833_vm15, %v11490_v27, %v1956_v37  ;;  %v11494_v37 = vrot.slane %v1865_v26, 9  ;;  %v14037_v26 = vld [vmem:[#allocation2 + $0x6c] sm:$0xff]  }
  0xf3   : > { %v1960_v54 = vsel %vm14833_vm15, %v1958_v49, %v1959_v11  ;;  %v1868_v11 = vld [vmem:[#allocation2 + $0xa8] sm:$0xe] }
  0xf4   : > { %v11514_v61 = vcombine.low %v1957_v48, %v1960_v54  ;;  %v2001_v48 = vrot.slane %v14711_v24, 5  ;;  %v11497_v54 = vrot.slane %v1868_v11, 9  ;;  %v15001_v11 = vld [vmem:[#allocation2 + $0x14] sm:$0x1] }
  0xf5   : > { %12858 = vmatmul.mubr.msk.bf16.vlgmr.msra.gmra.mrb[0].mxu0 %vm1331_vm8, %v11508_v19  ;;  %v11491_v19 = vrot.slane %v1862_v2, 9  ;;  %v1994_v2 = vrot.slane %v14684_v38, 5  ;;  %v2005_v38 = vrot.slane %v14727_v57, 5 }
  0xf6   : > { %12890 = vmatpush3.bf16.msra.mxu0 %v14798_v29  ;;  %12861 = vmatprep.mubr.msk.bf16.mxu0 %vm1331_vm8, %v11509_v15  ;;  %v1949_v29 = vrot.slane %v14176_v9, 5  ;;  %v14182_v15 = vld [vmem:[#allocation2 + $0x68] sm:$0x1]  ;;  %v14185_v9 = vld [vmem:[#allocation2 + $0x74] sm:$0x1] }
  0xf7   : > { %12891 = vmatprep.subr.bf16.mxu0 %v14024_v18  ;;  %v1966_v32 = vrot.slane %v14182_v15, 5  ;;  %v1964_v55 = vsel %vm14833_vm15, %v11491_v19, %v1963_v8  ;;  %v11496_v15 = vrot.slane %v1867_v52, 9 }
  0xf8   : > { %v1951_v20 = vrot.slane %v1949_v29, 4  ;;  %v1950_v39 = vsel %vm14833_vm15, %v11489_v17, %v1949_v29  ;;  %v1973_v29 = vrot.slane %v14185_v9, 5  ;;  %v1984_v17 = vrot.slane %v14187_v31, 5  ;;  %v14043_v31 = vld [vmem:[%s17867_s1 + $0x98] sm:$0xff]  }
  0xf9   : > { %v1967_v23 = vsel %vm14833_vm15, %v1965_v51, %v1966_v32 }
  0xfa   : > { %12892 = vmatpush3.bf16.msra.mxu0 %v14024_v18  ;;  %v1953_v41 = vsel %vm14833_vm15, %v1951_v20, %v1952_v43  ;;  %v1970_v18 = vrot.slane %v14183_v46, 5  ;;  %v11515_v63 = vcombine.low %v1964_v55, %v1967_v23  ;;  %v1991_v43 = vrot.slane %v14677_v33, 5 }
  0xfb   : > { %12893 = vmatprep.subr.bf16.mxu0 %v14025_v10  ;;  %v11513_v25 = vcombine.low %v1950_v39, %v1953_v41  ;;  %v1986_v39 = vrot.slane %v1984_v17, 4  ;;  %v14188_v41 = vld [vmem:[#allocation2 + $0x8c] sm:$0x1]  ;;  %v2007_v46 = vrot.slane %v2005_v38, 4  ;;  %v2012_v55 = vrot.slane %v14750_v35, 5 }
  0xfc   : > { %v1972_v7 = vrot.slane %v1970_v18, 4  ;;  %v1971_v62 = vsel %vm14833_vm15, %v11492_v3, %v1970_v18  ;;  %v1987_v42 = vrot.slane %v14188_v41, 5  ;;  %v1993_v8 = vrot.slane %v1991_v43, 4 }
  0xfd   : > { %12862 = vmatmul.mubr.msk.bf16.gmra.mrb[4].mxu0 %vm1331_vm8, %v11510_v12  ;;  %v1979_v12 = vrot.slane %v1977_v6, 4  ;;  %v1992_v27 = vsel %vm14833_vm15, %v11495_v45, %v1991_v43  ;;  %v2006_v23 = vsel %vm14833_vm15, %v11497_v54, %v2005_v38  ;;  %v2725_v43 = vld [vmem:[#allocation2 + $0xc] sm:$0xf]  ;;  %v2783_v41 = vshll.u32 %v14989_v1, 16  ;;  %v2728_v45 = vld [vmem:[#allocation2 + $0x18] sm:$0xf] }
  0xfe   : > { %12865 = vmatprep.mubr.msk.bf16.mxu0 %vm1331_vm8, %v11511_v14  ;;  %12894 = vmatpush3.bf16.msra.mxu0 %v14025_v10  ;;  %v11493_v10 = vrot.slane %v1864_v60, 9  ;;  %v1980_v14 = vrot.slane %v14186_v13, 5  ;;  %v1974_v16 = vsel %vm14833_vm15, %v1972_v7, %v1973_v29  ;;  %v1988_v33 = vsel %vm14833_vm15, %v1986_v39, %v1987_v42  ;;  %v14027_v29 = vld [vmem:[#allocation2 + $0xc] sm:$0xff]  }
  0xff   : > { %12895 = vmatprep.subr.bf16.mxu0 %v14026_v44  ;;  %v11516_v30 = vcombine.low %v1971_v62, %v1974_v16  ;;  %v1995_v49 = vsel %vm14833_vm15, %v1993_v8, %v1994_v2  ;;  %v2014_v60 = vrot.slane %v2012_v55, 4  ;;  %v14031_v62 = vld [vmem:[#allocation2 + $0x30] sm:$0xff]   ;;  %v14032_v16 = vld [vmem:[#allocation2 + $0x3c] sm:$0xff]   ;;  %v2777_v39 = vshll.u32 %v2725_v43, 16  ;;  %v2731_v2 = vld [vmem:[#allocation2 + $0x24] sm:$0xf] }
 0x100   : > { %v1981_v20 = vsel %vm14833_vm15, %v1979_v12, %v1980_v14  ;;  %v11519_v51 = vcombine.low %v1992_v27, %v1995_v49  ;;  %v14029_v12 = vld [vmem:[#allocation2 + $0x18] sm:$0xff]   ;;  %v14030_v14 = vld [vmem:[#allocation2 + $0x24] sm:$0xff]   ;;  %v2787_v42 = vshrl.u32 %v14989_v1, 16  ;;  %v14999_v52 = vrot.slane %v2783_v41, 5 }
 0x101   : > { %v14994_v8 = vld [vmem:[#allocation2 + $0x1c] sm:$0xf]  ;;  %v2779_v49 = vrot.slane %v2777_v39, 5 }
 0x102   : > { %12896 = vmatpush3.bf16.msra.mxu0 %v14026_v44  ;;  %v1978_v44 = vsel %vm14833_vm15, %v11493_v10, %v1977_v6  ;;  %v11498_v6 = vrot.slane %v1869_v28, 9  ;;  %v2789_v38 = vrot.slane %v2787_v42, 4 }
 0x103   : > { %12929 = vmatprep.subr.bf16.mxu0 %v14901_v22  ;;  %v11517_v34 = vcombine.low %v1978_v44, %v1981_v20  ;;  %v14035_v44 = vld [vmem:[#allocation2 + $0x54] sm:$0xff]   ;;  %v14036_v20 = vld [vmem:[#allocation2 + $0x60] sm:$0xff]  }
 0x104   : > { %v2013_v35 = vsel %vm14833_vm15, %v11498_v6, %v2012_v55 }
 0x105   : > { %12866 = vmatmul.mubr.msk.bf16.gmra.mrb[8].mxu0 %vm1331_vm8, %v11512_v47  ;;  %v1985_v47 = vsel %vm14833_vm15, %v11494_v37, %v1984_v17  ;;  %v14034_v17 = vld [vmem:[#allocation2 + $0x48] sm:$0xff]   ;;  %v2774_v37 = vshrl.u32 %v2725_v43, 16 }
 0x106   : > { %12869 = vmatprep.mubr.msk.bf16.mxu0 %vm1331_vm8, %v11513_v25  ;;  %v1998_v25 = vrot.slane %v14709_v21, 5  ;;  %v11518_v19 = vcombine.low %v1985_v47, %v1988_v33  ;;  %v2008_v21 = vrot.slane %v14729_v59, 5  ;;  %v2798_v47 = vshrl.u32 %v2728_v45, 16 }
 0x107   : > { %v2801_v33 = vshll.u32 %v2728_v45, 16  ;;  %v2776_v27 = vrot.slane %v2774_v37, 4  ;;  %v15029_v37 = vld [vmem:[#allocation2 + $0x38] sm:$0x1] }
 0x108   : > { %v2000_v32 = vrot.slane %v1998_v25, 4  ;;  %v1999_v18 = vsel %vm14833_vm15, %v11496_v15, %v1998_v25  ;;  %v2009_v24 = vsel %vm14833_vm15, %v2007_v46, %v2008_v21  ;;  %v14997_v25 = vld [vmem:[#allocation2 + $0x28] sm:$0xf]  ;;  %v2822_v15 = vshrl.u32 %v2731_v2, 16  ;;  %v14042_v21 = vld [vmem:[#allocation2 + $0x9c] sm:$0xff]  }
 0x109   : > { %v11521_v53 = vcombine.low %v2006_v23, %v2009_v24  ;;  %v2831_v54 = vshll.u32 %v14997_v25, 16  ;;  %v2835_v46 = vshrl.u32 %v14997_v25, 16  ;;  %v2780_v55 = vor.u32 %v2779_v49, %v2776_v27 }
 0x10a   : > { %v2002_v57 = vsel %vm14833_vm15, %v2000_v32, %v2001_v48  ;;  %v2825_v32 = vshll.u32 %v2731_v2, 16  ;;  %v14041_v48 = vld [vmem:[#allocation2 + $0x90] sm:$0xff]   ;;  %v2790_v23 = vor.u32 %v2789_v38, %v14999_v52  ;;  %v2793_v24 = vshll.u32 %v15001_v11, 16 }
 0x10b   : > { %v11520_v59 = vcombine.low %v1999_v18, %v2002_v57  ;;  %v2800_v18 = vrot.slane %v2798_v47, 4  ;;  %v2734_v57 = vld [vmem:[#allocation2 + $0x30] sm:$0xf]  ;;  %v2803_v28 = vrot.slane %v2801_v33, 5 }
 0x10d   : > { %12870 = vmatmul.mubr.msk.bf16.gmra.mrb[12].mxu0 %vm1331_vm8, %v11514_v61  ;;  %v2015_v61 = vrot.slane %v14752_v36, 5  ;;  %v644_v36 = vrot.slane %v14829_v56, 4  ;;  %v14038_v56 = vld [vmem:[%s17867_s1 + $0x90] sm:$0xff]  }
 0x10e   : > { %12873 = vmatprep.mubr.msk.bf16.mxu0 %vm1331_vm8, %v11515_v63  ;;  %v336_v63 = vld [vmem:[#allocation2 + $0xc8] sm:$0x1] }
 0x10f   : > { %v2016_v3 = vsel %vm14833_vm15, %v2014_v60, %v2015_v61  ;;  %v337_v7 = vsel %vm14322_vm6, 0, %v336_v63  ;;  %v2824_v61 = vrot.slane %v2822_v15, 4  ;;  %v2827_v63 = vrot.slane %v2825_v32, 5 }
 0x110   : > { %v11522_v9 = vcombine.low %v2013_v35, %v2016_v3  ;;  %338 = vst [vmem:[#allocation2 + $0xc8] sm:$0x1] %v337_v7  ;;  %v15016_v35 = vld [vmem:[#allocation2 + $0x2c] sm:$0x1]  ;;  %v15018_v3 = vrot.slane %v2831_v54, 5  ;;  %v2837_v7 = vrot.slane %v2835_v46, 4 }
 0x111   : > { %v2865_v54 = vshll.u32 %v15029_v37, 16 }
 0x112   : > { %v2838_v43 = vor.u32 %v2837_v7, %v15018_v3 }
 0x114   : > { %v2839_v32 = vrot.slane %v2838_v43, 4 }
 0x115   : > { %12874 = vmatmul.mubr.msk.bf16.gmra.mrb[16].mxu0 %vm1331_vm8, %v11516_v30  ;;  %v14039_v30 = vld [vmem:[#allocation2 + $0x78] sm:$0xff]  }
 0x116   : > { %12877 = vmatprep.mubr.msk.bf16.mxu0 %vm1331_vm8, %v11517_v34  ;;  %v14040_v34 = vld [vmem:[#allocation2 + $0x84] sm:$0xff]  }
 0x117   : > { %v804_v10 = vld [vmem:[#allocation2 + $0xc8] sm:$0x1] }
 0x118   : > { %v805_v13 = vsel %vm14317_vm4, %v644_v36, %v804_v10 }
 0x119   : > { %806 = vst [vmem:[#allocation2 + $0xc8] sm:$0x1] %v805_v13  ;;  %v2804_v13 = vor.u32 %v2803_v28, %v2800_v18 }
 0x11b   : > { %v2805_v38 = vrot.slane %v2804_v13, 4  ;;  %v2743_v13 = vld [vmem:[#allocation2 + $0x54] sm:$0xf] }
 0x11c   : > { %v2921_v43 = vshll.u32 %v2743_v13, 16 }
 0x11d   : > { %12878 = vmatmul.mubr.msk.bf16.gmra.mrb[20].mxu0 %vm1331_vm8, %v11518_v19  ;;  %v2807_v19 = vshll.u32 %v14994_v8, 16 }
 0x11e   : > { %12881 = vmatprep.mubr.msk.bf16.mxu0 %vm1331_vm8, %v11519_v51  ;;  %v2811_v51 = vshrl.u32 %v14994_v8, 16 }
 0x11f   : > { %v15013_v6 = vrot.slane %v2807_v19, 5 }
 0x120   : > { %v2813_v60 = vrot.slane %v2811_v51, 4  ;;  %v2740_v51 = vld [vmem:[#allocation2 + $0x48] sm:$0xf] }
 0x121   : > { %v2894_v28 = vshrl.u32 %v2740_v51, 16  ;;  %v2810_v7 = vsel %vm14364_vm10, %v2805_v38, %v15013_v6  ;;  %v2746_v38 = vld [vmem:[#allocation2 + $0x60] sm:$0xf] }
 0x125   : > { %12882 = vmatmul.mubr.msk.bf16.gmra.mrb[24].mxu0 %vm1331_vm8, %v11520_v59  ;;  %v15009_v59 = vld [vmem:[#allocation2 + $0x34] sm:$0xf] }
 0x126   : > { %12885 = vmatprep.mubr.msk.bf16.mxu0 %vm1331_vm8, %v11521_v53  ;;  %v15011_v53 = vld [vmem:[#allocation2 + $0x20] sm:$0x1]  ;;  %v2855_v36 = vshll.u32 %v15009_v59, 16  ;;  %v2859_v10 = vshrl.u32 %v15009_v59, 16 }
 0x128   : > { %v15031_v39 = vrot.slane %v2855_v36, 5  ;;  %v2861_v41 = vrot.slane %v2859_v10, 4 }
 0x12d   : > { %12886 = vmatmul.mubr.msk.bf16.gmra.mrb[28].mxu0 %vm1331_vm8, %v11522_v9  ;;  %v2846_v9 = vshrl.u32 %v2734_v57, 16 }
 0x12e   : > { %12897 = vmatprep.mubr.msk.bf16.mxu0 %vm1331_vm8, %v14027_v29  ;;  %v2849_v29 = vshll.u32 %v2734_v57, 16  ;;  %v15044_v57 = vld [vmem:[#allocation2 + $0x4c] sm:$0xf] }
 0x12f   : > { %v2903_v10 = vshll.u32 %v15044_v57, 16 }
 0x135   : > { %12898 = vmatmul.mubr.msk.bf16.vlgmr.msra.gmra.mrb[0].mxu0 %vm1331_vm8, %v14029_v12  ;;  %v2795_v12 = vrot.slane %v2793_v24, 5 }
 0x136   : > { %12930 = vmatpush3.bf16.msra.mxu0 %v14901_v22  ;;  %12901 = vmatprep.mubr.msk.bf16.mxu0 %vm1331_vm8, %v14030_v14  ;;  %v14982_v22 = vld [vmem:[%s17867_s1 + $0xa0] sm:$0xff]   ;;  %v2817_v14 = vshll.u32 %v15011_v53, 16 }
 0x137   : > { %12931 = vmatprep.subr.bf16.mxu0 %v14033_v5 }
 0x138   : > { %v2819_v2 = vrot.slane %v2817_v14, 5  ;;  %v15062_v14 = vld [vmem:[#allocation2 + $0x58] sm:$0xf] }
 0x13a   : > { %12932 = vmatpush3.bf16.msra.mxu0 %v14033_v5  ;;  %v2737_v5 = vld [vmem:[#allocation2 + $0x3c] sm:$0xf] }
 0x13b   : > { %12933 = vmatprep.subr.bf16.mxu0 %v14038_v56  ;;  %v2870_v42 = vshrl.u32 %v2737_v5, 16  ;;  %v2873_v45 = vshll.u32 %v2737_v5, 16 }
 0x13d   : > { %12902 = vmatmul.mubr.msk.bf16.gmra.mrb[4].mxu0 %vm1331_vm8, %v14031_v62  ;;  %v2791_v62 = vrot.slane %v2790_v23, 4  ;;  %v2872_v18 = vrot.slane %v2870_v42, 4  ;;  %v15077_v42 = vrot.slane %v2903_v10, 5  ;;  %v14048_v10 = vld [vmem:[%s17867_s1 + $0xa8] sm:$0xff]  }
 0x13e   : > { %12905 = vmatprep.mubr.msk.bf16.mxu0 %vm1331_vm8, %v14032_v16  ;;  %12934 = vmatpush3.bf16.msra.mxu0 %v14038_v56  ;;  %v2781_v56 = vrot.slane %v2780_v55, 4  ;;  %v2814_v16 = vor.u32 %v2813_v60, %v15013_v6  ;;  %v15046_v55 = vld [vmem:[#allocation2 + $0x44] sm:$0x1]  ;;  %v2897_v60 = vshll.u32 %v2740_v51, 16  ;;  %v15066_v6 = vrot.slane %v2865_v54, 5 }
 0x13f   : > { %12935 = vmatprep.subr.bf16.mxu0 %v14043_v31  ;;  %v2796_v49 = vsel %vm14364_vm10, %v2791_v62, %v2795_v12  ;;  %v2907_v12 = vshrl.u32 %v15044_v57, 16  ;;  %v2889_v62 = vshll.u32 %v15046_v55, 16  ;;  %v2749_v54 = vld [vmem:[#allocation2 + $0x6c] sm:$0xf] }
 0x140   : > { %v2786_v27 = vsel %vm14364_vm10, %v2781_v56, %v14999_v52  ;;  %v2815_v19 = vrot.slane %v2814_v16, 4  ;;  %v2875_v52 = vrot.slane %v2873_v45, 5 }
 0x141   : > { %v2909_v45 = vrot.slane %v2907_v12, 4 }
 0x142   : > { %12936 = vmatpush3.bf16.msra.mxu0 %v14043_v31  ;;  %v2841_v31 = vshll.u32 %v15016_v35, 16  ;;  %v2876_v56 = vor.u32 %v2875_v52, %v2872_v18  ;;  %v15095_v52 = vld [vmem:[#allocation2 + $0x70] sm:$0xf] }
 0x143   : > { %12969 = vmatprep.subr.bf16.mxu0 %v14982_v22 }
 0x145   : > { %12906 = vmatmul.mubr.msk.bf16.gmra.mrb[8].mxu0 %vm1331_vm8, %v14034_v17  ;;  %v15026_v17 = vld [vmem:[#allocation2 + $0x40] sm:$0xf] }
 0x146   : > { %12909 = vmatprep.mubr.msk.bf16.mxu0 %vm1331_vm8, %v14035_v44  ;;  %v14044_v44 = vld [vmem:[#allocation2 + $0xa8] sm:$0xff]   ;;  %v2879_v47 = vshll.u32 %v15026_v17, 16  ;;  %v2883_v33 = vshrl.u32 %v15026_v17, 16 }
 0x148   : > { %v15048_v23 = vrot.slane %v2879_v47, 5  ;;  %v2885_v24 = vrot.slane %v2883_v33, 4  ;;  %v2877_v33 = vrot.slane %v2876_v56, 4 }
 0x14d   : > { %12910 = vmatmul.mubr.msk.bf16.gmra.mrb[12].mxu0 %vm1331_vm8, %v14036_v20  ;;  %v14045_v20 = vld [vmem:[#allocation2 + $0xb4] sm:$0xff]  }
 0x14e   : > { %12913 = vmatprep.mubr.msk.bf16.mxu0 %vm1331_vm8, %v14037_v26  ;;  %v2828_v26 = vor.u32 %v2827_v63, %v2824_v61  ;;  %v14046_v61 = vld [vmem:[#allocation2 + $0xc0] sm:$0xff]   ;;  %v11595_v63 = vcombine.low %v2786_v27, %v2796_v49  ;;  %v2891_v27 = vrot.slane %v2889_v62, 5  ;;  %v15084_v49 = vld [vmem:[#allocation2 + $0x5c] sm:$0x1] }
 0x150   : > { %v2829_v15 = vrot.slane %v2828_v26, 4  ;;  %v2918_v26 = vshrl.u32 %v2743_v13, 16  ;;  %v2975_v13 = vshll.u32 %v15095_v52, 16 }
 0x155   : > { %12914 = vmatmul.mubr.msk.bf16.gmra.mrb[16].mxu0 %vm1331_vm8, %v14039_v30  ;;  %v2848_v30 = vrot.slane %v2846_v9, 4  ;;  %v2820_v9 = vsel %vm14364_vm10, %v2815_v19, %v2819_v2 }
 0x156   : > { %12917 = vmatprep.mubr.msk.bf16.mxu0 %vm1331_vm8, %v14040_v34  ;;  %v2851_v34 = vrot.slane %v2849_v29, 5  ;;  %v2834_v29 = vsel %vm14364_vm10, %v2829_v15, %v15018_v3  ;;  %v2886_v3 = vor.u32 %v2885_v24, %v15048_v23  ;;  %v2910_v24 = vor.u32 %v2909_v45, %v15077_v42 }
 0x158   : > { %v2852_v46 = vor.u32 %v2851_v34, %v2848_v30  ;;  %v2927_v30 = vshll.u32 %v15062_v14, 16  ;;  %v2931_v34 = vshrl.u32 %v15062_v14, 16  ;;  %v2887_v51 = vrot.slane %v2886_v3, 4  ;;  %v2752_v3 = vld [vmem:[#allocation2 + $0x78] sm:$0xf] }
 0x15a   : > { %v15064_v5 = vrot.slane %v2852_v46, 4  ;;  %v2920_v46 = vrot.slane %v2918_v26, 4  ;;  %v2933_v18 = vrot.slane %v2931_v34, 4 }
 0x15c   : > { %v2858_v47 = vsel %vm14364_vm10, %v15064_v5, %v15031_v39  ;;  %v2979_v5 = vshrl.u32 %v15095_v52, 16 }
 0x15d   : > { %12918 = vmatmul.mubr.msk.bf16.gmra.mrb[20].mxu0 %vm1331_vm8, %v14041_v48  ;;  %v2843_v48 = vrot.slane %v2841_v31, 5  ;;  %v2896_v31 = vrot.slane %v2894_v28, 4  ;;  %v2937_v28 = vshll.u32 %v15084_v49, 16 }
 0x15e   : > { %12921 = vmatprep.mubr.msk.bf16.mxu0 %vm1331_vm8, %v14042_v21  ;;  %v2862_v21 = vor.u32 %v2861_v41, %v15031_v39  ;;  %v11596_v41 = vcombine.low %v2810_v7, %v2820_v9  ;;  %v15093_v39 = vrot.slane %v2927_v30, 5  ;;  %v2966_v9 = vshrl.u32 %v2749_v54, 16  ;;  %v15125_v30 = vld [vmem:[#allocation2 + $0x68] sm:$0x1] }
 0x15f   : > { %v2844_v36 = vsel %vm14364_vm10, %v2839_v32, %v2843_v48  ;;  %v15091_v48 = vld [vmem:[#allocation2 + $0x64] sm:$0xf] }
 0x160   : > { %v15069_v16 = vrot.slane %v2862_v21, 4  ;;  %v11597_v2 = vcombine.low %v2834_v29, %v2844_v36  ;;  %v2923_v21 = vrot.slane %v2921_v43, 5  ;;  %v2955_v7 = vshrl.u32 %v15091_v48, 16  ;;  %v15121_v43 = vld [vmem:[#allocation2 + $0x7c] sm:$0xf] }
 0x161   : > { %v2969_v29 = vshll.u32 %v2749_v54, 16  ;;  %v2882_v36 = vsel %vm14364_vm10, %v2877_v33, %v15048_v23  ;;  %v15117_v23 = vrot.slane %v2910_v24, 4  ;;  %v2968_v33 = vrot.slane %v2966_v9, 4 }
 0x162   : > { %v2868_v19 = vsel %vm14364_vm10, %v15069_v16, %v15066_v6  ;;  %v2892_v6 = vsel %vm14364_vm10, %v2887_v51, %v2891_v27  ;;  %v2924_v62 = vor.u32 %v2923_v21, %v2920_v46  ;;  %v2934_v16 = vor.u32 %v2933_v18, %v15093_v39  ;;  %v14049_v51 = vld [vmem:[%s17867_s1 + $0xb0] sm:$0xff]  }
 0x163   : > { %v2957_v45 = vrot.slane %v2955_v7, 4  ;;  %v2971_v27 = vrot.slane %v2969_v29, 5  ;;  %v2999_v46 = vshll.u32 %v15121_v43, 16  ;;  %v3003_v21 = vshrl.u32 %v15121_v43, 16  ;;  %v2755_v29 = vld [vmem:[#allocation2 + $0x84] sm:$0xf] }
 0x164   : > { %v2935_v54 = vrot.slane %v2934_v16, 4  ;;  %v11598_v18 = vcombine.low %v2858_v47, %v2868_v19  ;;  %v11599_v24 = vcombine.low %v2882_v36, %v2892_v6  ;;  %v2961_v7 = vshll.u32 %v15125_v30, 16  ;;  %v15148_v47 = vld [vmem:[#allocation2 + $0x88] sm:$0xf]  ;;  %v15161_v6 = vld [vmem:[#allocation2 + $0x80] sm:$0x1] }
 0x165   : > { %12922 = vmatmul.mubr.msk.bf16.gmra.mrb[24].mxu0 %vm1331_vm8, %v14044_v44  ;;  %v2899_v44 = vrot.slane %v2897_v60, 5  ;;  %v2942_v60 = vshrl.u32 %v2746_v38, 16  ;;  %v2972_v9 = vor.u32 %v2971_v27, %v2968_v33  ;;  %v3014_v16 = vshrl.u32 %v2755_v29, 16 }
 0x166   : > { %12925 = vmatprep.mubr.msk.bf16.mxu0 %vm1331_vm8, %v14045_v20  ;;  %v15072_v20 = vld [vmem:[#allocation2 + $0x50] sm:$0x1] }
 0x167   : > { %v2900_v15 = vor.u32 %v2899_v44, %v2896_v31  ;;  %v2913_v32 = vshll.u32 %v15072_v20, 16  ;;  %v15119_v31 = vrot.slane %v2937_v28, 5  ;;  %v2944_v44 = vrot.slane %v2942_v60, 4 }
 0x168   : > { %v2973_v33 = vrot.slane %v2972_v9, 4 }
 0x169   : > { %v15107_v12 = vrot.slane %v2900_v15, 4  ;;  %v15113_v56 = vrot.slane %v2913_v32, 5  ;;  %v2990_v15 = vshrl.u32 %v2752_v3, 16  ;;  %v2993_v32 = vshll.u32 %v2752_v3, 16 }
 0x16a   : > { %v3017_v3 = vshll.u32 %v2755_v29, 16 }
 0x16b   : > { %v2906_v28 = vsel %vm14364_vm10, %v15107_v12, %v15077_v42  ;;  %v2916_v60 = vsel %vm14364_vm10, %v15117_v23, %v15113_v56  ;;  %v2992_v42 = vrot.slane %v2990_v15, 4  ;;  %v2995_v12 = vrot.slane %v2993_v32, 5  ;;  %v2758_v32 = vld [vmem:[#allocation2 + $0x90] sm:$0xf] }
 0x16c   : > { %v15163_v56 = vrot.slane %v2999_v46, 5  ;;  %v3023_v23 = vshll.u32 %v15148_v47, 16  ;;  %v3009_v15 = vshll.u32 %v15161_v6, 16 }
 0x16d   : > { %12926 = vmatmul.mubr.msk.bf16.gmra.mrb[28].mxu0 %vm1331_vm8, %v14046_v61  ;;  %v2945_v61 = vshll.u32 %v2746_v38, 16  ;;  %v2981_v38 = vrot.slane %v2979_v5, 4  ;;  %v2940_v5 = vsel %vm14364_vm10, %v2935_v54, %v15119_v31  ;;  %v11600_v54 = vcombine.low %v2906_v28, %v2916_v60 }
 0x16e   : > { %12937 = vmatprep.mubr.msk.bf16.mxu0 %vm1331_vm8, %v11595_v63  ;;  %v2951_v63 = vshll.u32 %v15091_v48, 16  ;;  %v3038_v28 = vshrl.u32 %v2758_v32, 16  ;;  %v3041_v60 = vshll.u32 %v2758_v32, 16 }
 0x16f   : > { %v2947_v26 = vrot.slane %v2945_v61, 5 }
 0x170   : > { %v15127_v34 = vrot.slane %v2951_v63, 5 }
 0x171   : > { %v2948_v61 = vor.u32 %v2947_v26, %v2944_v44  ;;  %v3027_v44 = vshrl.u32 %v15148_v47, 16 }
 0x172   : > { %v2958_v63 = vor.u32 %v2957_v45, %v15127_v34  ;;  %v2963_v45 = vrot.slane %v2961_v7, 5 }
 0x173   : > { %v3029_v7 = vrot.slane %v3027_v44, 4 }
 0x174   : > { %v2959_v26 = vrot.slane %v2958_v63, 4  ;;  %v15180_v63 = vrot.slane %v3023_v23, 5 }
 0x175   : > { %12938 = vmatmul.mubr.msk.bf16.vlgmr.msra.gmra.mrb[0].mxu0 %vm1331_vm8, %v11596_v41  ;;  %v15129_v41 = vrot.slane %v2975_v13, 5 }
 0x176   : > { %12970 = vmatpush3.bf16.msra.mxu0 %v14982_v22  ;;  %12941 = vmatprep.mubr.msk.bf16.mxu0 %vm1331_vm8, %v11597_v2  ;;  %v2925_v22 = vrot.slane %v2924_v62, 4  ;;  %v15134_v2 = vld [vmem:[#allocation2 + $0x74] sm:$0x1]  ;;  %v3005_v62 = vrot.slane %v3003_v21, 4  ;;  %v2964_v29 = vsel %vm14364_vm10, %v2959_v26, %v2963_v45  ;;  %v3030_v26 = vor.u32 %v3029_v7, %v15180_v63 }
 0x177   : > { %12971 = vmatprep.subr.bf16.mxu0 %v14048_v10  ;;  %v2982_v19 = vor.u32 %v2981_v38, %v15129_v41  ;;  %v2985_v36 = vshll.u32 %v15134_v2, 16  ;;  %v2996_v38 = vor.u32 %v2995_v12, %v2992_v42  ;;  %v2978_v42 = vsel %vm14364_vm10, %v2973_v33, %v15129_v41 }
 0x178   : > { %v2930_v13 = vsel %vm14364_vm10, %v2925_v22, %v15093_v39  ;;  %v2949_v39 = vrot.slane %v2948_v61, 4  ;;  %v15173_v22 = vld [vmem:[%s17867_s1 + $0xc0] sm:$0xff]   ;;  %v3006_v21 = vor.u32 %v3005_v62, %v15163_v56  ;;  %v3019_v61 = vrot.slane %v3017_v3, 5 }
 0x179   : > { %v2983_v31 = vrot.slane %v2982_v19, 4  ;;  %v2987_v27 = vrot.slane %v2985_v36, 5  ;;  %v11601_v46 = vcombine.low %v2930_v13, %v2940_v5  ;;  %v2761_v19 = vld [vmem:[#allocation2 + $0x9c] sm:$0xf]  ;;  %v15187_v36 = vld [vmem:[#allocation2 + $0xa0] sm:$0xf] }
 0x17a   : > { %12972 = vmatpush3.bf16.msra.mxu0 %v14048_v10  ;;  %v14050_v10 = vld [vmem:[%s17867_s1 + $0xb8] sm:$0xff]   ;;  %v2954_v9 = vsel %vm14364_vm10, %v2949_v39, %v15127_v34  ;;  %v2997_v13 = vrot.slane %v2996_v38, 4  ;;  %v3011_v5 = vrot.slane %v3009_v15, 5  ;;  %v3007_v34 = vrot.slane %v3006_v21, 4 }
 0x17b   : > { %12973 = vmatprep.subr.bf16.mxu0 %v14049_v51  ;;  %v2988_v12 = vsel %vm14364_vm10, %v2983_v31, %v2987_v27  ;;  %v3065_v23 = vshll.u32 %v2761_v19, 16  ;;  %v3071_v41 = vshll.u32 %v15187_v36, 16  ;;  %v3075_v44 = vshrl.u32 %v15187_v36, 16  ;;  %v15206_v15 = vld [vmem:[#allocation2 + $0x98] sm:$0x1] }
 0x17c   : > { %v3040_v45 = vrot.slane %v3038_v28, 4  ;;  %v3043_v33 = vrot.slane %v3041_v60, 5  ;;  %v11602_v31 = vcombine.low %v2954_v9, %v2964_v29  ;;  %v11603_v27 = vcombine.low %v2978_v42, %v2988_v12  ;;  %v2764_v29 = vld [vmem:[#allocation2 + $0xa8] sm:$0xf]  ;;  %v15217_v12 = vld [vmem:[#allocation2 + $0xac] sm:$0xf] }
 0x17d   : > { %12942 = vmatmul.mubr.msk.bf16.gmra.mrb[4].mxu0 %vm1331_vm8, %v11598_v18  ;;  %v15176_v18 = vld [vmem:[#allocation2 + $0x94] sm:$0xf]  ;;  %v3002_v38 = vsel %vm14364_vm10, %v2997_v13, %v15163_v56  ;;  %v3012_v32 = vsel %vm14364_vm10, %v3007_v34, %v3011_v5  ;;  %v3067_v7 = vrot.slane %v3065_v23, 5  ;;  %v15214_v28 = vrot.slane %v3071_v41, 5  ;;  %17973 = vst [vmem:[#allocation8_spill] sm:$0xff] %v15217_v12 }
 0x17e   : > { %12945 = vmatprep.mubr.msk.bf16.mxu0 %vm1331_vm8, %v11599_v24  ;;  %12974 = vmatpush3.bf16.msra.mxu0 %v14049_v51  ;;  %v15178_v24 = vld [vmem:[#allocation2 + $0x8c] sm:$0x1]  ;;  %v3016_v51 = vrot.slane %v3014_v16, 4  ;;  %v3047_v16 = vshll.u32 %v15176_v18, 16  ;;  %v3051_v3 = vshrl.u32 %v15176_v18, 16  ;;  %v3077_v9 = vrot.slane %v3075_v44, 4 }
 0x17f   : > { %12975 = vmatprep.subr.bf16.mxu0 %v14050_v10  ;;  %v3033_v62 = vshll.u32 %v15178_v24, 16  ;;  %v3044_v56 = vor.u32 %v3043_v33, %v3040_v45  ;;  %v3057_v42 = vshll.u32 %v15206_v15, 16  ;;  %v11604_v5 = vcombine.low %v3002_v38, %v3012_v32 }
 0x180   : > { %v3020_v39 = vor.u32 %v3019_v61, %v3016_v51  ;;  %v15210_v21 = vrot.slane %v3047_v16, 5  ;;  %v15212_v51 = vld [vmem:[#allocation2 + $0xa4] sm:$0x1]  ;;  %v3089_v16 = vshll.u32 %v2764_v29, 16  ;;  %v3078_v41 = vor.u32 %v3077_v9, %v15214_v28 }
 0x181   : > { %17972 = vst [vmem:[#allocation7_spill] sm:$0xff] %v15212_v51  ;;  %v3081_v13 = vshll.u32 %v15212_v51, 16  ;;  %v3095_v44 = vshll.u32 %v15217_v12, 16  ;;  %v3045_v33 = vrot.slane %v3044_v56, 4  ;;  %v3059_v38 = vrot.slane %v3057_v42, 5 }
 0x182   : > { %12976 = vmatpush3.bf16.msra.mxu0 %v14050_v10  ;;  %v3062_v10 = vshrl.u32 %v2761_v19, 16  ;;  %v3021_v60 = vrot.slane %v3020_v39, 4  ;;  %v3031_v19 = vrot.slane %v3030_v26, 4  ;;  %v3099_v39 = vshrl.u32 %v15217_v12, 16  ;;  %v15237_v51 = vld [vmem:[#allocation2 + $0xc4] sm:$0xf] }
 0x183   : > { %13009 = vmatprep.subr.bf16.mxu0 %v15173_v22  ;;  %v3083_v9 = vrot.slane %v3081_v13, 5  ;;  %v3091_v4 = vrot.slane %v3089_v16, 5  ;;  %v3079_v58 = vrot.slane %v3078_v41, 4  ;;  %v3097_v50 = vrot.slane %v3095_v44, 5  ;;  %v15244_v16 = vld [vmem:[#allocation2 + $0xbc] sm:$0x1] }
 0x184   : > { %v3064_v61 = vrot.slane %v3062_v10, 4  ;;  %v15221_v10 = vld [vmem:[#allocation2 + $0xb8] sm:$0xf]  ;;  %v3026_v26 = vsel %vm14364_vm10, %v3021_v60, %v15180_v63  ;;  %v3101_v12 = vrot.slane %v3099_v39, 4  ;;  %v15235_v60 = vld [vmem:[#allocation2 + $0xb0] sm:$0x1]  ;;  %v3050_v13 = vsel %vm14364_vm10, %v3045_v33, %v15210_v21 }
 0x185   : > { %12946 = vmatmul.mubr.msk.bf16.gmra.mrb[8].mxu0 %vm1331_vm8, %v11600_v54  ;;  %v3035_v54 = vrot.slane %v3033_v62, 5  ;;  %v3086_v62 = vshrl.u32 %v2764_v29, 16  ;;  %v3084_v41 = vsel %vm14364_vm10, %v3079_v58, %v3083_v9  ;;  %v3105_v39 = vshll.u32 %v15235_v60, 16 }
 0x186   : > { %12949 = vmatprep.mubr.msk.bf16.mxu0 %vm1331_vm8, %v11601_v46  ;;  %v3053_v46 = vrot.slane %v3051_v3, 4  ;;  %v2767_v3 = vld [vmem:[#allocation2 + $0xb4] sm:$0xf]  ;;  %v3068_v23 = vor.u32 %v3067_v7, %v3064_v61  ;;  %v3123_v61 = vshrl.u32 %v15221_v10, 16  ;;  %v3102_v44 = vor.u32 %v3101_v12, %v3097_v50 }
 0x187   : > { %v3036_v45 = vsel %vm14364_vm10, %v3031_v19, %v3035_v54  ;;  %v3110_v32 = vshrl.u32 %v2767_v3, 16  ;;  %v3088_v29 = vrot.slane %v3086_v62, 4  ;;  %v2770_v54 = vld [vmem:[#allocation2 + $0xc0] sm:$0xf]  ;;  %v3107_v58 = vrot.slane %v3105_v39, 5 }
 0x188   : > { %v3054_v34 = vor.u32 %v3053_v46, %v15210_v21  ;;  %v3119_v46 = vshll.u32 %v15221_v10, 16  ;;  %v11605_v63 = vcombine.low %v3026_v26, %v3036_v45  ;;  %v3134_v21 = vshrl.u32 %v2770_v54, 16 }
 0x189   : > { %v3112_v19 = vrot.slane %v3110_v32, 4  ;;  %v3092_v62 = vor.u32 %v3091_v4, %v3088_v29  ;;  %v3137_v26 = vshll.u32 %v2770_v54, 16  ;;  %v3143_v4 = vshll.u32 %v15237_v51, 16  ;;  %v15257_v54 = vld [vmem:[#allocation2 + $0xc8] sm:$0x1] }
 0x18a   : > { %v3055_v7 = vrot.slane %v3054_v34, 4  ;;  %v3121_v42 = vrot.slane %v3119_v46, 5  ;;  %v3147_v45 = vshrl.u32 %v15237_v51, 16  ;;  %v3103_v46 = vrot.slane %v3102_v44, 4  ;;  %v3479_v44 = vld [vmem:[#allocation2 + $0xc] sm:$0xe] }
 0x18b   : > { %v3136_v12 = vrot.slane %v3134_v21, 4 }
 0x18c   : > { %v3060_v34 = vsel %vm14364_vm10, %v3055_v7, %v3059_v38  ;;  %v3129_v38 = vshll.u32 %v15244_v16, 16  ;;  %v3145_v7 = vrot.slane %v3143_v4, 5  ;;  %v3149_v9 = vrot.slane %v3147_v45, 4 }
 0x18d   : > { %12950 = vmatmul.mubr.msk.bf16.gmra.mrb[12].mxu0 %vm1331_vm8, %v11602_v31  ;;  %v3113_v31 = vshll.u32 %v2767_v3, 16  ;;  %v3125_v3 = vrot.slane %v3123_v61, 4  ;;  %v11606_v32 = vcombine.low %v3050_v13, %v3060_v34  ;;  %v3139_v61 = vrot.slane %v3137_v26, 5 }
 0x18e   : > { %12953 = vmatprep.mubr.msk.bf16.mxu0 %vm1331_vm8, %v11603_v27  ;;  %v3069_v27 = vrot.slane %v3068_v23, 4  ;;  %v3150_v13 = vor.u32 %v3149_v9, %v3145_v7  ;;  %v3153_v34 = vshll.u32 %v15257_v54, 16  ;;  %v11631_v45 = vrot.slane %v3479_v44, 9 }
 0x18f   : > { %v3115_v56 = vrot.slane %v3113_v31, 5  ;;  %v3093_v31 = vrot.slane %v3092_v62, 4  ;;  %v3569_v44 = vrot.slane %v15029_v37, 5 }
 0x190   : > { %v3074_v23 = vsel %vm14364_vm10, %v3069_v27, %v15214_v28  ;;  %v3151_v26 = vrot.slane %v3150_v13, 4  ;;  %v3155_v4 = vrot.slane %v3153_v34, 5  ;;  %v3483_v13 = vld [vmem:[#allocation2 + $0x3c] sm:$0xe] }
 0x191   : > { %v3116_v33 = vor.u32 %v3115_v56, %v3112_v19  ;;  %v11607_v28 = vcombine.low %v3074_v23, %v3084_v41  ;;  %v3098_v19 = vsel %vm14364_vm10, %v3093_v31, %v3097_v50  ;;  %v3108_v56 = vsel %vm14364_vm10, %v3103_v46, %v3107_v58  ;;  %v3480_v31 = vld [vmem:[#allocation2 + $0x18] sm:$0xe]  ;;  %v3481_v46 = vld [vmem:[#allocation2 + $0x24] sm:$0xe] }
 0x192   : > { %v3545_v41 = vrot.slane %v14989_v1, 5  ;;  %v11608_v39 = vcombine.low %v3098_v19, %v3108_v56  ;;  %v3156_v1 = vsel %vm14364_vm10, %v3151_v26, %v3155_v4  ;;  %v3566_v19 = vrot.slane %v15009_v59, 5 }
 0x193   : > { %v3117_v29 = vrot.slane %v3116_v33, 4  ;;  %v3576_v59 = vrot.slane %v15046_v55, 5  ;;  %v3580_v26 = vrot.slane %v15044_v57, 5  ;;  %v3583_v57 = vrot.slane %v15072_v20, 5 }
 0x194   : > { %v3547_v33 = vrot.slane %v3545_v41, 4 }
 0x195   : > { %12954 = vmatmul.mubr.msk.bf16.gmra.mrb[16].mxu0 %vm1331_vm8, %v11604_v5  ;;  %v3126_v5 = vor.u32 %v3125_v3, %v3121_v42  ;;  %v3140_v3 = vor.u32 %v3139_v61, %v3136_v12  ;;  %v3122_v62 = vsel %vm14364_vm10, %v3117_v29, %v3121_v42  ;;  %v11632_v61 = vrot.slane %v3480_v31, 9 }
 0x196   : > { %12957 = vmatprep.mubr.msk.bf16.mxu0 %vm1331_vm8, %v11605_v63  ;;  %v3131_v63 = vrot.slane %v3129_v38, 5  ;;  %v3552_v38 = vrot.slane %v14994_v8, 5  ;;  %v11633_v29 = vrot.slane %v3481_v46, 9  ;;  %v3562_v8 = vrot.slane %v15016_v35, 5 }
 0x197   : > { %v3127_v27 = vrot.slane %v3126_v5, 4  ;;  %v3141_v21 = vrot.slane %v3140_v3, 4  ;;  %v3548_v5 = vrot.slane %v15001_v11, 5  ;;  %v3559_v11 = vrot.slane %v14997_v25, 5  ;;  %v3482_v3 = vld [vmem:[#allocation2 + $0x30] sm:$0xe] }
 0x198   : > { %v3554_v9 = vrot.slane %v3552_v38, 4  ;;  %v3573_v35 = vrot.slane %v15026_v17, 5 }
 0x199   : > { %v3132_v23 = vsel %vm14364_vm10, %v3127_v27, %v3131_v63  ;;  %v3146_v42 = vsel %vm14364_vm10, %v3141_v21, %v3145_v7  ;;  %v3555_v7 = vrot.slane %v15011_v53, 5  ;;  %v3561_v27 = vrot.slane %v3559_v11, 4  ;;  %v14052_v21 = vld [vmem:[%s17867_s1 + $0xc8] sm:$0xff]  }
 0x19a   : > { %v11609_v50 = vcombine.low %v3122_v62, %v3132_v23  ;;  %v11610_v58 = vcombine.low %v3146_v42, %v3156_v1  ;;  %v3553_v63 = vsel %vm14833_vm15, %v11632_v61, %v3552_v38  ;;  %v3560_v56 = vsel %vm14833_vm15, %v11633_v29, %v3559_v11  ;;  %v3486_v61 = vld [vmem:[#allocation2 + $0x60] sm:$0xe]  ;;  %v3487_v29 = vld [vmem:[#allocation2 + $0x6c] sm:$0xe] }
 0x19b   : > { %v3556_v25 = vsel %vm14833_vm15, %v3554_v9, %v3555_v7  ;;  %v3563_v53 = vsel %vm14833_vm15, %v3561_v27, %v3562_v8  ;;  %v11634_v23 = vrot.slane %v3482_v3, 9  ;;  %v3590_v11 = vrot.slane %v15084_v49, 5  ;;  %v15339_v7 = vld [vmem:[%s17867_s1 + $0xe0] sm:$0xff]  }
 0x19c   : > { %v11656_v34 = vcombine.low %v3553_v63, %v3556_v25  ;;  %v11657_v62 = vcombine.low %v3560_v56, %v3563_v53  ;;  %v3601_v9 = vrot.slane %v15095_v52, 5  ;;  %v3597_v25 = vrot.slane %v15125_v30, 5 }
 0x19d   : > { %12958 = vmatmul.mubr.msk.bf16.gmra.mrb[20].mxu0 %vm1331_vm8, %v11606_v32  ;;  %v3546_v32 = vsel %vm14833_vm15, %v11631_v45, %v3545_v41  ;;  %v3568_v41 = vrot.slane %v3566_v19, 4  ;;  %v3567_v17 = vsel %vm14833_vm15, %v11634_v23, %v3566_v19  ;;  %v3484_v45 = vld [vmem:[#allocation2 + $0x48] sm:$0xe]  ;;  %v11639_v19 = vrot.slane %v3487_v29, 9 }
 0x19e   : > { %12961 = vmatprep.mubr.msk.bf16.mxu0 %vm1331_vm8, %v11607_v28  ;;  %v3549_v28 = vsel %vm14833_vm15, %v3547_v33, %v3548_v5  ;;  %v14053_v33 = vld [vmem:[%s17867_s1 + $0xd0] sm:$0xff]   ;;  %v11636_v38 = vrot.slane %v3484_v45, 9  ;;  %v3603_v56 = vrot.slane %v3601_v9, 4  ;;  %v3604_v53 = vrot.slane %v15134_v2, 5 }
 0x19f   : > { %v11655_v12 = vcombine.low %v3546_v32, %v3549_v28  ;;  %v3570_v37 = vsel %vm14833_vm15, %v3568_v41, %v3569_v44  ;;  %v3485_v5 = vld [vmem:[#allocation2 + $0x54] sm:$0xe]  ;;  %v3582_v32 = vrot.slane %v3580_v26, 4  ;;  %v3602_v30 = vsel %vm14833_vm15, %v11639_v19, %v3601_v9  ;;  %v3494_v19 = vld [vmem:[#allocation2 + $0xc0] sm:$0xe] }
 0x1a0   : > { %v11658_v42 = vcombine.low %v3567_v17, %v3570_v37  ;;  %v11637_v28 = vrot.slane %v3485_v5, 9  ;;  %v3581_v46 = vsel %vm14833_vm15, %v11636_v38, %v3580_v26  ;;  %v3605_v2 = vsel %vm14833_vm15, %v3603_v56, %v3604_v53 }
 0x1a1   : > { %v3584_v20 = vsel %vm14833_vm15, %v3582_v32, %v3583_v57  ;;  %v11663_v41 = vcombine.low %v3602_v30, %v3605_v2  ;;  %v3622_v37 = vrot.slane %v15176_v18, 5  ;;  %v17974_v32 = vld [vmem:[#allocation7_spill] sm:$0xff]  ;;  %v3639_v9 = vrot.slane %v15235_v60, 5  ;;  %v14055_v2 = vld [vmem:[#allocation2 + $0x18] sm:$0xff]  }
 0x1a2   : > { %v11660_v27 = vcombine.low %v3581_v46, %v3584_v20  ;;  %v3632_v18 = vrot.slane %v17974_v32, 5  ;;  %v3643_v46 = vrot.slane %v15221_v10, 5  ;;  %v3493_v20 = vld [vmem:[#allocation2 + $0xb4] sm:$0xe]  ;;  %v11646_v53 = vrot.slane %v3494_v19, 9 }
 0x1a3   : > { %v3624_v5 = vrot.slane %v3622_v37, 4  ;;  %v11645_v29 = vrot.slane %v3493_v20, 9  ;;  %v14069_v20 = vld [vmem:[#allocation2 + $0x9c] sm:$0xff]  }
 0x1a5   : > { %12962 = vmatmul.mubr.msk.bf16.gmra.mrb[24].mxu0 %vm1331_vm8, %v11608_v39  ;;  %v11635_v39 = vrot.slane %v3483_v13, 9  ;;  %v3488_v13 = vld [vmem:[#allocation2 + $0x78] sm:$0xe] }
 0x1a6   : > { %12965 = vmatprep.mubr.msk.bf16.mxu0 %vm1331_vm8, %v11609_v50  ;;  %v3575_v50 = vrot.slane %v3573_v35, 4  ;;  %v11640_v44 = vrot.slane %v3488_v13, 9  ;;  %v14057_v13 = vld [vmem:[#allocation2 + $0x24] sm:$0xff]  }
 0x1a7   : > { %v3574_v55 = vsel %vm14833_vm15, %v11635_v39, %v3573_v35  ;;  %v3608_v35 = vrot.slane %v15121_v43, 5  ;;  %v3618_v43 = vrot.slane %v15178_v24, 5  ;;  %v3629_v24 = vrot.slane %v15187_v36, 5 }
 0x1a8   : > { %v3577_v4 = vsel %vm14833_vm15, %v3575_v50, %v3576_v59  ;;  %v3611_v50 = vrot.slane %v15161_v6, 5 }
 0x1a9   : > { %v11659_v1 = vcombine.low %v3574_v55, %v3577_v4  ;;  %v3610_v39 = vrot.slane %v3608_v35, 4  ;;  %v3609_v17 = vsel %vm14833_vm15, %v11640_v44, %v3608_v35  ;;  %v3490_v55 = vld [vmem:[#allocation2 + $0x90] sm:$0xe]  ;;  %v3491_v4 = vld [vmem:[#allocation2 + $0x9c] sm:$0xe]  ;;  %v3631_v38 = vrot.slane %v3629_v24, 4 }
 0x1aa   : > { %v14071_v44 = vld [vmem:[%s17867_s1 + $0xf8] sm:$0xff]  }
 0x1ad   : > { %12966 = vmatmul.mubr.msk.bf16.gmra.mrb[28].mxu0 %vm1331_vm8, %v11610_v58  ;;  %v3594_v58 = vrot.slane %v15091_v48, 5  ;;  %v11638_v48 = vrot.slane %v3486_v61, 9 }
 0x1ae   : > { %12977 = vmatprep.mubr.msk.bf16.mxu0 %vm1331_vm8, %v11655_v12 }
 0x1af   : > { %v3596_v63 = vrot.slane %v3594_v58, 4  ;;  %v3595_v52 = vsel %vm14833_vm15, %v11638_v48, %v3594_v58 }
 0x1b1   : > { %v3598_v3 = vsel %vm14833_vm15, %v3596_v63, %v3597_v25  ;;  %v3650_v63 = vrot.slane %v15237_v51, 5  ;;  %v3644_v25 = vsel %vm14833_vm15, %v11645_v29, %v3643_v46  ;;  %v14070_v29 = vld [vmem:[#allocation2 + $0xa8] sm:$0xff]  }
 0x1b2   : > { %v11662_v23 = vcombine.low %v3595_v52, %v3598_v3  ;;  %v3653_v3 = vrot.slane %v15257_v54, 5  ;;  %v14061_v54 = vld [vmem:[%s17867_s1 + $0xe8] sm:$0xff]  }
 0x1b3   : > { %v3652_v52 = vrot.slane %v3650_v63, 4  ;;  %v3651_v51 = vsel %vm14833_vm15, %v11646_v53, %v3650_v63 }
 0x1b5   : > { %12978 = vmatmul.mubr.msk.bf16.vlgmr.msra.gmra.mrb[0].mxu0 %vm1331_vm8, %v11656_v34  ;;  %v3615_v34 = vrot.slane %v15148_v47, 5  ;;  %v3612_v47 = vsel %vm14833_vm15, %v3610_v39, %v3611_v50  ;;  %v3654_v35 = vsel %vm14833_vm15, %v3652_v52, %v3653_v3  ;;  %v14062_v39 = vld [vmem:[#allocation2 + $0x54] sm:$0xff]   ;;  %v14063_v50 = vld [vmem:[#allocation2 + $0x60] sm:$0xff]  }
 0x1b6   : > { %13010 = vmatpush3.bf16.msra.mxu0 %v15173_v22  ;;  %12981 = vmatprep.mubr.msk.bf16.mxu0 %vm1331_vm8, %v11657_v62  ;;  %v3587_v22 = vrot.slane %v15062_v14, 5  ;;  %v14054_v14 = vld [vmem:[%s17867_s1 + $0xd8] sm:$0xff]   ;;  %v3489_v62 = vld [vmem:[#allocation2 + $0x84] sm:$0xe]  ;;  %v11664_v45 = vcombine.low %v3609_v17, %v3612_v47  ;;  %v11670_v30 = vcombine.low %v3651_v51, %v3654_v35  ;;  %v4376_v51 = vld [vmem:[#allocation2 + $0x48] sm:$0xf] }
 0x1b7   : > { %13011 = vmatprep.subr.bf16.mxu0 %v14052_v21  ;;  %v11641_v59 = vrot.slane %v3489_v62, 9  ;;  %v14066_v62 = vld [vmem:[%s17867_s1 + $0xf0] sm:$0xff]   ;;  %v15430_v17 = vld [vmem:[#allocation2 + $0x1c] sm:$0xf]  ;;  %v15461_v35 = vld [vmem:[#allocation2 + $0x4c] sm:$0xf] }
 0x1b8   : > { %v3589_v31 = vrot.slane %v3587_v22, 4  ;;  %v3588_v49 = vsel %vm14833_vm15, %v11637_v28, %v3587_v22  ;;  %v17975_v28 = vld [vmem:[#allocation8_spill] sm:$0xff] }
 0x1b9   : > { %v3616_v26 = vsel %vm14833_vm15, %v11641_v59, %v3615_v34  ;;  %v14064_v59 = vld [vmem:[#allocation2 + $0x6c] sm:$0xff]  }
 0x1ba   : > { %13012 = vmatpush3.bf16.msra.mxu0 %v14052_v21  ;;  %v3591_v12 = vsel %vm14833_vm15, %v3589_v31, %v3590_v11  ;;  %v3617_v21 = vrot.slane %v3615_v34, 4  ;;  %v3636_v31 = vrot.slane %v17975_v28, 5  ;;  %v14058_v34 = vld [vmem:[#allocation2 + $0x30] sm:$0xff]  }
 0x1bb   : > { %13013 = vmatprep.subr.bf16.mxu0 %v14053_v33  ;;  %v11661_v8 = vcombine.low %v3588_v49, %v3591_v12  ;;  %v15444_v28 = vld [vmem:[#allocation2 + $0x34] sm:$0xf] }
 0x1bc   : > { %v3619_v6 = vsel %vm14833_vm15, %v3617_v21, %v3618_v43  ;;  %v3638_v61 = vrot.slane %v3636_v31, 4  ;;  %v14065_v21 = vld [vmem:[#allocation2 + $0x78] sm:$0xff]   ;;  %v4474_v63 = vshrl.u32 %v15444_v28, 16 }
 0x1bd   : > { %12982 = vmatmul.mubr.msk.bf16.gmra.mrb[4].mxu0 %vm1331_vm8, %v11658_v42  ;;  %v11665_v22 = vcombine.low %v3616_v26, %v3619_v6  ;;  %v3625_v42 = vrot.slane %v15206_v15, 5  ;;  %v3633_v15 = vsel %vm14833_vm15, %v3631_v38, %v3632_v18  ;;  %v4364_v43 = vld [vmem:[#allocation2 + $0x18] sm:$0xf]  ;;  %v14067_v26 = vld [vmem:[#allocation2 + $0x84] sm:$0xff]   ;;  %v4422_v6 = vshll.u32 %v15430_v17, 16 }
 0x1be   : > { %12985 = vmatprep.mubr.msk.bf16.mxu0 %vm1331_vm8, %v11659_v1  ;;  %13014 = vmatpush3.bf16.msra.mxu0 %v14053_v33  ;;  %v11642_v33 = vrot.slane %v3490_v55, 9  ;;  %v11643_v1 = vrot.slane %v3491_v4, 9  ;;  %v3640_v10 = vsel %vm14833_vm15, %v3638_v61, %v3639_v9  ;;  %v4413_v47 = vshrl.u32 %v4364_v43, 16  ;;  %v14068_v4 = vld [vmem:[#allocation2 + $0x90] sm:$0xff]  }
 0x1bf   : > { %13015 = vmatprep.subr.bf16.mxu0 %v14054_v14  ;;  %v3626_v36 = vsel %vm14833_vm15, %v3624_v5, %v3625_v42  ;;  %v4426_v55 = vshrl.u32 %v15430_v17, 16  ;;  %v15437_v38 = vrot.slane %v4422_v6, 5  ;;  %v4522_v6 = vshrl.u32 %v15461_v35, 16 }
 0x1c0   : > { %v3623_v57 = vsel %vm14833_vm15, %v11642_v33, %v3622_v37  ;;  %v3630_v11 = vsel %vm14833_vm15, %v11643_v1, %v3629_v24  ;;  %v4416_v37 = vshll.u32 %v4364_v43, 16  ;;  %v4367_v24 = vld [vmem:[#allocation2 + $0x24] sm:$0xf]  ;;  %v4370_v1 = vld [vmem:[#allocation2 + $0x30] sm:$0xf] }
 0x1c1   : > { %v11666_v58 = vcombine.low %v3623_v57, %v3626_v36  ;;  %v11667_v49 = vcombine.low %v3630_v11, %v3633_v15  ;;  %v4437_v5 = vshrl.u32 %v4367_v24, 16  ;;  %v4440_v42 = vshll.u32 %v4367_v24, 16  ;;  %v15442_v36 = vld [vmem:[#allocation2 + $0x20] sm:$0x1] }
 0x1c2   : > { %13016 = vmatpush3.bf16.msra.mxu0 %v14054_v14  ;;  %v3492_v14 = vld [vmem:[#allocation2 + $0xa8] sm:$0xe]  ;;  %v4418_v33 = vrot.slane %v4416_v37, 5  ;;  %v4428_v32 = vrot.slane %v4426_v55, 4  ;;  %v4464_v11 = vshll.u32 %v4370_v1, 16  ;;  %v14073_v43 = vld [vmem:[#allocation2 + $0xc0] sm:$0xff]  }
 0x1c3   : > { %13049 = vmatprep.subr.bf16.mxu0 %v15339_v7  ;;  %v11644_v12 = vrot.slane %v3492_v14, 9  ;;  %v4439_v14 = vrot.slane %v4437_v5, 4  ;;  %v4379_v55 = vld [vmem:[#allocation2 + $0x54] sm:$0xf] }
 0x1c5   : > { %12986 = vmatmul.mubr.msk.bf16.gmra.mrb[8].mxu0 %vm1331_vm8, %v11660_v27  ;;  %v3645_v27 = vrot.slane %v3643_v46, 4  ;;  %v3637_v48 = vsel %vm14833_vm15, %v11644_v12, %v3636_v31  ;;  %v4461_v31 = vshrl.u32 %v4370_v1, 16  ;;  %v4442_v46 = vrot.slane %v4440_v42, 5  ;;  %v15448_v12 = vld [vmem:[#allocation2 + $0x2c] sm:$0x1] }
 0x1c6   : > { %12989 = vmatprep.mubr.msk.bf16.mxu0 %vm1331_vm8, %v11661_v8  ;;  %v3646_v8 = vrot.slane %v15244_v16, 5  ;;  %v11668_v16 = vcombine.low %v3637_v48, %v3640_v10  ;;  %v4466_v10 = vrot.slane %v4464_v11, 5 }
 0x1c7   : > { %v4463_v48 = vrot.slane %v4461_v31, 4  ;;  %v4443_v19 = vor.u32 %v4442_v46, %v4439_v14  ;;  %v4533_v14 = vshrl.u32 %v4379_v55, 16 }
 0x1c8   : > { %v3647_v60 = vsel %vm14833_vm15, %v3645_v27, %v3646_v8  ;;  %v4470_v27 = vshll.u32 %v15444_v28, 16  ;;  %v4373_v8 = vld [vmem:[#allocation2 + $0x3c] sm:$0xf] }
 0x1c9   : > { %v11669_v56 = vcombine.low %v3644_v25, %v3647_v60  ;;  %v15454_v25 = vld [vmem:[#allocation2 + $0x40] sm:$0xf] }
 0x1cd   : > { %12990 = vmatmul.mubr.msk.bf16.gmra.mrb[12].mxu0 %vm1331_vm8, %v11662_v23  ;;  %v14059_v23 = vld [vmem:[#allocation2 + $0x3c] sm:$0xff]  }
 0x1ce   : > { %12993 = vmatprep.mubr.msk.bf16.mxu0 %vm1331_vm8, %v11663_v41  ;;  %v14060_v41 = vld [vmem:[#allocation2 + $0x48] sm:$0xff]  }
 0x1d5   : > { %12994 = vmatmul.mubr.msk.bf16.gmra.mrb[16].mxu0 %vm1331_vm8, %v11664_v45  ;;  %v15434_v45 = vld [vmem:[#allocation2 + $0x28] sm:$0xf] }
 0x1d6   : > { %12997 = vmatprep.mubr.msk.bf16.mxu0 %vm1331_vm8, %v11665_v22  ;;  %v4415_v22 = vrot.slane %v4413_v47, 4  ;;  %v4446_v18 = vshll.u32 %v15434_v45, 16  ;;  %v4450_v57 = vshrl.u32 %v15434_v45, 16 }
 0x1d8   : > { %v4419_v15 = vor.u32 %v4418_v33, %v4415_v22  ;;  %v15450_v61 = vrot.slane %v4446_v18, 5  ;;  %v4452_v9 = vrot.slane %v4450_v57, 4  ;;  %v15491_v18 = vld [vmem:[#allocation2 + $0x58] sm:$0xf]  ;;  %v15493_v57 = vld [vmem:[#allocation2 + $0x50] sm:$0x1] }
 0x1da   : > { %v4420_v60 = vrot.slane %v4419_v15, 4  ;;  %v4453_v3 = vor.u32 %v4452_v9, %v15450_v61  ;;  %v15502_v9 = vld [vmem:[#allocation2 + $0xd0] sm:$0xf] }
 0x1dc   : > { %v4425_v47 = vsel %vm14364_vm10, %v4420_v60, %v15437_v38  ;;  %v15480_v24 = vrot.slane %v4453_v3, 4  ;;  %v4528_v3 = vshll.u32 %v15493_v57, 16 }
 0x1dd   : > { %12998 = vmatmul.mubr.msk.bf16.gmra.mrb[20].mxu0 %vm1331_vm8, %v11666_v58  ;;  %v4429_v58 = vor.u32 %v4428_v32, %v15437_v38 }
 0x1de   : > { %13001 = vmatprep.mubr.msk.bf16.mxu0 %vm1331_vm8, %v11667_v49  ;;  %v4432_v49 = vshll.u32 %v15442_v36, 16 }
 0x1df   : > { %v4430_v53 = vrot.slane %v4429_v58, 4  ;;  %v4524_v58 = vrot.slane %v4522_v6, 4  ;;  %v4403_v6 = vld [vmem:[#allocation2 + $0xb4] sm:$0xf] }
 0x1e0   : > { %v4434_v52 = vrot.slane %v4432_v49, 5  ;;  %v4536_v49 = vshll.u32 %v4379_v55, 16 }
 0x1e2   : > { %v4435_v37 = vsel %vm14364_vm10, %v4430_v53, %v4434_v52 }
 0x1e3   : > { %v11743_v46 = vcombine.low %v4425_v47, %v4435_v37 }
 0x1e5   : > { %13002 = vmatmul.mubr.msk.bf16.gmra.mrb[24].mxu0 %vm1331_vm8, %v11668_v16  ;;  %v4456_v16 = vshll.u32 %v15448_v12, 16 }
 0x1e6   : > { %13005 = vmatprep.mubr.msk.bf16.mxu0 %vm1331_vm8, %v11669_v56  ;;  %v15457_v56 = vld [vmem:[#allocation2 + $0x38] sm:$0x1] }
 0x1ed   : > { %13006 = vmatmul.mubr.msk.bf16.gmra.mrb[28].mxu0 %vm1331_vm8, %v11670_v30  ;;  %v15464_v30 = vrot.slane %v4470_v27, 5 }
 0x1ee   : > { %13017 = vmatprep.mubr.msk.bf16.mxu0 %vm1331_vm8, %v14055_v2  ;;  %v4485_v2 = vshrl.u32 %v4373_v8, 16 }
 0x1f0   : > { %v4487_v22 = vrot.slane %v4485_v2, 4  ;;  %v15514_v2 = vld [vmem:[#allocation2 + $0x64] sm:$0xf] }
 0x1f1   : > { %v4566_v47 = vshll.u32 %v15514_v2, 16  ;;  %v4570_v37 = vshrl.u32 %v15514_v2, 16 }
 0x1f5   : > { %13018 = vmatmul.mubr.msk.bf16.vlgmr.msra.gmra.mrb[0].mxu0 %vm1331_vm8, %v14057_v13  ;;  %v4488_v13 = vshll.u32 %v4373_v8, 16  ;;  %v4542_v8 = vshll.u32 %v15491_v18, 16 }
 0x1f6   : > { %13050 = vmatpush3.bf16.msra.mxu0 %v15339_v7  ;;  %13021 = vmatprep.mubr.msk.bf16.mxu0 %vm1331_vm8, %v14058_v34  ;;  %v15423_v7 = vld [vmem:[%s17867_s1 + $0x100] sm:$0xff]   ;;  %v4494_v34 = vshll.u32 %v15454_v25, 16 }
 0x1f7   : > { %13051 = vmatprep.subr.bf16.mxu0 %v14061_v54  ;;  %v4490_v33 = vrot.slane %v4488_v13, 5 }
 0x1f8   : > { %v15484_v5 = vrot.slane %v4494_v34, 5  ;;  %v14074_v34 = vld [vmem:[#allocation2 + $0xcc] sm:$0xff]  }
 0x1fa   : > { %13052 = vmatpush3.bf16.msra.mxu0 %v14061_v54  ;;  %v4467_v54 = vor.u32 %v4466_v10, %v4463_v48  ;;  %v5133_v48 = vld [vmem:[#allocation2 + $0xcc] sm:$0xe]  ;;  %v5289_v10 = vrot.slane %v15502_v9, 5 }
 0x1fb   : > { %13053 = vmatprep.subr.bf16.mxu0 %v14066_v62  ;;  %v11794_v53 = vrot.slane %v5133_v48, 9  ;;  %v15558_v48 = vld [vmem:[#allocation2 + $0x68] sm:$0x1] }
 0x1fc   : > { %v15486_v42 = vrot.slane %v4467_v54, 4  ;;  %v5291_v13 = vrot.slane %v5289_v10, 4 }
 0x1fd   : > { %13022 = vmatmul.mubr.msk.bf16.gmra.mrb[4].mxu0 %vm1331_vm8, %v14059_v23  ;;  %v4480_v23 = vshll.u32 %v15457_v56, 16 }
 0x1fe   : > { %13025 = vmatprep.mubr.msk.bf16.mxu0 %vm1331_vm8, %v14060_v41  ;;  %13054 = vmatpush3.bf16.msra.mxu0 %v14066_v62  ;;  %v4476_v62 = vrot.slane %v4474_v63, 4  ;;  %v4498_v41 = vshrl.u32 %v15454_v25, 16 }
 0x1ff   : > { %13055 = vmatprep.subr.bf16.mxu0 %v14071_v44  ;;  %v15489_v38 = vrot.slane %v4480_v23, 5  ;;  %v4538_v23 = vrot.slane %v4536_v49, 5  ;;  %v15555_v49 = vld [vmem:[#allocation2 + $0x70] sm:$0xf] }
 0x200   : > { %v4477_v1 = vor.u32 %v4476_v62, %v15464_v30  ;;  %v4500_v32 = vrot.slane %v4498_v41, 4  ;;  %v15519_v41 = vsel %vm14833_vm15, %v11794_v53, %v5289_v10  ;;  %v4572_v10 = vrot.slane %v4570_v37, 4 }
 0x201   : > { %17976 = vst [vmem:[#allocation7_spill] sm:$0xff] %v15519_v41  ;;  %v4590_v53 = vshll.u32 %v15555_v49, 16  ;;  %v15704_v41 = vld [vmem:[#allocation2 + $0xbc] sm:$0x1] }
 0x202   : > { %13056 = vmatpush3.bf16.msra.mxu0 %v14071_v44  ;;  %v15469_v44 = vrot.slane %v4443_v19, 4  ;;  %v4478_v60 = vrot.slane %v4477_v1, 4  ;;  %v4491_v19 = vor.u32 %v4490_v33, %v4487_v22  ;;  %v4501_v52 = vor.u32 %v4500_v32, %v15484_v5 }
 0x203   : > { %13089 = vmatprep.subr.bf16.mxu0 %v15423_v7  ;;  %v4473_v22 = vsel %vm14364_vm10, %v15486_v42, %v15464_v30 }
 0x204   : > { %v15541_v33 = vrot.slane %v4491_v19, 4  ;;  %v4483_v32 = vsel %vm14364_vm10, %v4478_v60, %v15489_v38  ;;  %v15560_v38 = vrot.slane %v4566_v47, 5 }
 0x205   : > { %13026 = vmatmul.mubr.msk.bf16.gmra.mrb[8].mxu0 %vm1331_vm8, %v14062_v39  ;;  %v4509_v39 = vshrl.u32 %v4376_v51, 16  ;;  %v11745_v60 = vcombine.low %v4473_v22, %v4483_v32 }
 0x206   : > { %13029 = vmatprep.mubr.msk.bf16.mxu0 %vm1331_vm8, %v14063_v50  ;;  %v4512_v50 = vshll.u32 %v4376_v51, 16  ;;  %v4535_v51 = vrot.slane %v4533_v14, 4 }
 0x207   : > { %v4511_v31 = vrot.slane %v4509_v39, 4 }
 0x208   : > { %v4514_v11 = vrot.slane %v4512_v50, 5 }
 0x20a   : > { %v4515_v54 = vor.u32 %v4514_v11, %v4511_v31  ;;  %v15549_v31 = vrot.slane %v4501_v52, 4  ;;  %v4594_v52 = vshrl.u32 %v15555_v49, 16 }
 0x20c   : > { %v15551_v11 = vrot.slane %v4515_v54, 4  ;;  %v4576_v54 = vshll.u32 %v15558_v48, 16 }
 0x20d   : > { %13030 = vmatmul.mubr.msk.bf16.gmra.mrb[12].mxu0 %vm1331_vm8, %v14064_v59  ;;  %v4518_v59 = vshll.u32 %v15461_v35, 16 }
 0x20e   : > { %13033 = vmatprep.mubr.msk.bf16.mxu0 %vm1331_vm8, %v14065_v21  ;;  %v14072_v21 = vld [vmem:[#allocation2 + $0xb4] sm:$0xff]  }
 0x20f   : > { %v15495_v15 = vrot.slane %v4518_v59, 5 }
 0x211   : > { %v4525_v62 = vor.u32 %v4524_v58, %v15495_v15 }
 0x213   : > { %v4526_v14 = vrot.slane %v4525_v62, 4 }
 0x215   : > { %13034 = vmatmul.mubr.msk.bf16.gmra.mrb[16].mxu0 %vm1331_vm8, %v14067_v26  ;;  %v15477_v26 = vrot.slane %v4456_v16, 5  ;;  %v4382_v16 = vld [vmem:[#allocation2 + $0x60] sm:$0xf] }
 0x216   : > { %13037 = vmatprep.mubr.msk.bf16.mxu0 %vm1331_vm8, %v14068_v4  ;;  %v15482_v4 = vld [vmem:[#allocation2 + $0x44] sm:$0x1]  ;;  %v4557_v39 = vshrl.u32 %v4382_v16, 16  ;;  %v4560_v50 = vshll.u32 %v4382_v16, 16 }
 0x217   : > { %v4504_v27 = vshll.u32 %v15482_v4, 16  ;;  %v4459_v55 = vsel %vm14364_vm10, %v15480_v24, %v15477_v26  ;;  %v4530_v26 = vrot.slane %v4528_v3, 5  ;;  %v4385_v24 = vld [vmem:[#allocation2 + $0x6c] sm:$0xf]  ;;  %v4388_v3 = vld [vmem:[#allocation2 + $0x78] sm:$0xf] }
 0x218   : > { %v4559_v42 = vrot.slane %v4557_v39, 4  ;;  %v4562_v58 = vrot.slane %v4560_v50, 5  ;;  %v4581_v19 = vshrl.u32 %v4385_v24, 16  ;;  %v4573_v50 = vor.u32 %v4572_v10, %v15560_v38 }
 0x219   : > { %v15543_v1 = vrot.slane %v4504_v27, 5  ;;  %v4539_v27 = vor.u32 %v4538_v23, %v4535_v51  ;;  %v15572_v51 = vld [vmem:[#allocation2 + $0x7c] sm:$0xf]  ;;  %v4531_v62 = vsel %vm14364_vm10, %v4526_v14, %v4530_v26  ;;  %v4605_v47 = vshrl.u32 %v4388_v3, 16 }
 0x21a   : > { %v4608_v37 = vshll.u32 %v4388_v3, 16  ;;  %v4618_v22 = vshrl.u32 %v15572_v51, 16 }
 0x21b   : > { %v4507_v16 = vsel %vm14364_vm10, %v15549_v31, %v15543_v1  ;;  %v15586_v23 = vrot.slane %v4539_v27, 4  ;;  %v4583_v1 = vrot.slane %v4581_v19, 4  ;;  %v15598_v31 = vrot.slane %v4590_v53, 5 }
 0x21d   : > { %13038 = vmatmul.mubr.msk.bf16.gmra.mrb[20].mxu0 %vm1331_vm8, %v14069_v20  ;;  %v4449_v20 = vsel %vm14364_vm10, %v15469_v44, %v15450_v61  ;;  %v4546_v61 = vshrl.u32 %v15491_v18, 16  ;;  %v15521_v44 = vrot.slane %v4542_v8, 5 }
 0x21e   : > { %13041 = vmatprep.mubr.msk.bf16.mxu0 %vm1331_vm8, %v14070_v29  ;;  %v15504_v29 = vld [vmem:[#allocation2 + $0xd4] sm:$0x1] }
 0x21f   : > { %v5292_v63 = vrot.slane %v15504_v29, 5 }
 0x221   : > { %v15525_v59 = vsel %vm14833_vm15, %v5291_v13, %v5292_v63  ;;  %v11744_v63 = vcombine.low %v4449_v20, %v4459_v55  ;;  %v4521_v20 = vsel %vm14364_vm10, %v15551_v11, %v15495_v15  ;;  %v4391_v15 = vld [vmem:[#allocation2 + $0x84] sm:$0xf]  ;;  %v4614_v55 = vshll.u32 %v15572_v51, 16 }
 0x222   : > { %17977 = vst [vmem:[#allocation8_spill] sm:$0xff] %v15525_v59  ;;  %v4596_v11 = vrot.slane %v4594_v52, 4  ;;  %v4632_v27 = vshll.u32 %v4391_v15, 16  ;;  %v11747_v53 = vcombine.low %v4521_v20, %v4531_v62 }
 0x223   : > { %v15608_v19 = vrot.slane %v4614_v55, 5 }
 0x224   : > { %v4597_v3 = vor.u32 %v4596_v11, %v15598_v31  ;;  %v4634_v62 = vrot.slane %v4632_v27, 5 }
 0x225   : > { %13042 = vmatmul.mubr.msk.bf16.gmra.mrb[24].mxu0 %vm1331_vm8, %v14072_v21  ;;  %v15527_v21 = vld [vmem:[#allocation2 + $0x5c] sm:$0x1] }
 0x226   : > { %13045 = vmatprep.mubr.msk.bf16.mxu0 %vm1331_vm8, %v14073_v43  ;;  %v4548_v43 = vrot.slane %v4546_v61, 4  ;;  %v4552_v30 = vshll.u32 %v15527_v21, 16  ;;  %v4584_v61 = vshll.u32 %v4385_v24, 16  ;;  %v4578_v24 = vrot.slane %v4576_v54, 5 }
 0x227   : > { %v4545_v54 = vsel %vm14364_vm10, %v15586_v23, %v15521_v44 }
 0x228   : > { %v4549_v8 = vor.u32 %v4548_v43, %v15521_v44  ;;  %v15581_v13 = vrot.slane %v4552_v30, 5  ;;  %v15591_v43 = vld [vmem:[#allocation2 + $0x74] sm:$0x1]  ;;  %v4586_v32 = vrot.slane %v4584_v61, 5  ;;  %v4629_v30 = vshrl.u32 %v4391_v15, 16 }
 0x229   : > { %v4600_v14 = vshll.u32 %v15591_v43, 16  ;;  %v15628_v44 = vld [vmem:[#allocation2 + $0x94] sm:$0xf] }
 0x22a   : > { %v15588_v39 = vrot.slane %v4549_v8, 4  ;;  %v4587_v52 = vor.u32 %v4586_v32, %v4583_v1  ;;  %v4598_v1 = vrot.slane %v4597_v3, 4 }
 0x22b   : > { %v15621_v15 = vrot.slane %v4600_v14, 5 }
 0x22d   : > { %13046 = vmatmul.mubr.msk.bf16.gmra.mrb[28].mxu0 %vm1331_vm8, %v14074_v34  ;;  %v4563_v34 = vor.u32 %v4562_v58, %v4559_v42  ;;  %v4574_v42 = vrot.slane %v4573_v50, 4  ;;  %v14077_v58 = vld [vmem:[%s17867_s1 + $0x110] sm:$0xff]   ;;  %v4555_v50 = vsel %vm14364_vm10, %v15588_v39, %v15581_v13  ;;  %v14078_v13 = vld [vmem:[%s17867_s1 + $0x118] sm:$0xff]  }
 0x22e   : > { %13057 = vmatprep.mubr.msk.bf16.mxu0 %vm1331_vm8, %v11743_v46  ;;  %v4497_v46 = vsel %vm14364_vm10, %v15541_v33, %v15484_v5  ;;  %v14076_v5 = vld [vmem:[%s17867_s1 + $0x108] sm:$0xff]   ;;  %v11748_v14 = vcombine.low %v4545_v54, %v4555_v50  ;;  %v15653_v54 = vld [vmem:[#allocation2 + $0xa0] sm:$0xf] }
 0x22f   : > { %v15595_v33 = vld [vmem:[#allocation2 + $0x88] sm:$0xf]  ;;  %v4564_v26 = vrot.slane %v4563_v34, 4  ;;  %v11746_v61 = vcombine.low %v4497_v46, %v4507_v16  ;;  %v15611_v34 = vld [vmem:[#allocation2 + $0x80] sm:$0x1]  ;;  %v4631_v46 = vrot.slane %v4629_v30, 4 }
 0x230   : > { %v4638_v8 = vshll.u32 %v15595_v33, 16  ;;  %v4642_v10 = vshrl.u32 %v15595_v33, 16  ;;  %v4394_v16 = vld [vmem:[#allocation2 + $0x90] sm:$0xf]  ;;  %v4624_v55 = vshll.u32 %v15611_v34, 16 }
 0x231   : > { %v4569_v20 = vsel %vm14364_vm10, %v4564_v26, %v15560_v38  ;;  %v15637_v38 = vld [vmem:[#allocation2 + $0x8c] sm:$0x1]  ;;  %v4653_v32 = vshrl.u32 %v4394_v16, 16  ;;  %v4656_v11 = vshll.u32 %v4394_v16, 16  ;;  %v4662_v26 = vshll.u32 %v15628_v44, 16 }
 0x232   : > { %v4635_v30 = vor.u32 %v4634_v62, %v4631_v46  ;;  %v4648_v27 = vshll.u32 %v15637_v38, 16  ;;  %v4400_v50 = vld [vmem:[#allocation2 + $0xa8] sm:$0xf] }
 0x233   : > { %v4658_v3 = vrot.slane %v4656_v11, 5  ;;  %v15655_v46 = vrot.slane %v4662_v26, 5 }
 0x235   : > { %13058 = vmatmul.mubr.msk.bf16.vlgmr.msra.gmra.mrb[0].mxu0 %vm1331_vm8, %v11744_v63  ;;  %v4607_v63 = vrot.slane %v4605_v47, 4  ;;  %v15626_v47 = vrot.slane %v4638_v8, 5  ;;  %v4397_v8 = vld [vmem:[#allocation2 + $0x9c] sm:$0xf] }
 0x236   : > { %13090 = vmatpush3.bf16.msra.mxu0 %v15423_v7  ;;  %13061 = vmatprep.mubr.msk.bf16.mxu0 %vm1331_vm8, %v11745_v60  ;;  %v4610_v7 = vrot.slane %v4608_v37, 5  ;;  %v4620_v60 = vrot.slane %v4618_v22, 4  ;;  %v4644_v37 = vrot.slane %v4642_v10, 4  ;;  %v4588_v22 = vrot.slane %v4587_v52, 4 }
 0x237   : > { %13091 = vmatprep.subr.bf16.mxu0 %v14076_v5  ;;  %v4655_v52 = vrot.slane %v4653_v32, 4  ;;  %v4680_v62 = vshll.u32 %v4397_v8, 16 }
 0x238   : > { %v4611_v23 = vor.u32 %v4610_v7, %v4607_v63  ;;  %v4621_v39 = vor.u32 %v4620_v60, %v15608_v19  ;;  %v4626_v60 = vrot.slane %v4624_v55, 5  ;;  %v4690_v55 = vshrl.u32 %v15653_v54, 16 }
 0x23a   : > { %13092 = vmatpush3.bf16.msra.mxu0 %v14076_v5  ;;  %v4579_v5 = vsel %vm14364_vm10, %v4574_v42, %v4578_v24  ;;  %v4666_v24 = vshrl.u32 %v15628_v44, 16  ;;  %v4645_v42 = vor.u32 %v4644_v37, %v15626_v47  ;;  %v4612_v63 = vrot.slane %v4611_v23, 4  ;;  %v15657_v37 = vld [vmem:[#allocation2 + $0xac] sm:$0xf] }
 0x23b   : > { %13093 = vmatprep.subr.bf16.mxu0 %v14077_v58  ;;  %v11749_v10 = vcombine.low %v4569_v20, %v4579_v5  ;;  %v4622_v7 = vrot.slane %v4621_v39, 4  ;;  %v4677_v20 = vshrl.u32 %v4397_v8, 16  ;;  %v4636_v5 = vrot.slane %v4635_v30, 4 }
 0x23c   : > { %v4668_v16 = vrot.slane %v4666_v24, 4  ;;  %v4646_v23 = vrot.slane %v4645_v42, 4  ;;  %v4617_v32 = vsel %vm14364_vm10, %v4612_v63, %v15608_v19  ;;  %v4710_v11 = vshll.u32 %v15657_v37, 16  ;;  %v15677_v63 = vld [vmem:[#allocation2 + $0xa4] sm:$0x1] }
 0x23d   : > { %13062 = vmatmul.mubr.msk.bf16.gmra.mrb[4].mxu0 %vm1331_vm8, %v11746_v61  ;;  %v15645_v61 = vld [vmem:[#allocation2 + $0x98] sm:$0x1]  ;;  %v4714_v26 = vshrl.u32 %v15657_v37, 16  ;;  %v4659_v24 = vor.u32 %v4658_v3, %v4655_v52  ;;  %v4679_v42 = vrot.slane %v4677_v20, 4 }
 0x23e   : > { %13065 = vmatprep.mubr.msk.bf16.mxu0 %vm1331_vm8, %v11747_v53  ;;  %13094 = vmatpush3.bf16.msra.mxu0 %v14077_v58  ;;  %v4593_v58 = vsel %vm14364_vm10, %v4588_v22, %v15598_v31  ;;  %v4603_v53 = vsel %vm14364_vm10, %v4598_v1, %v15621_v15  ;;  %v4650_v31 = vrot.slane %v4648_v27, 5  ;;  %v4672_v39 = vshll.u32 %v15645_v61, 16 }
 0x23f   : > { %13095 = vmatprep.subr.bf16.mxu0 %v14078_v13  ;;  %v4686_v15 = vshll.u32 %v15653_v54, 16  ;;  %v4701_v22 = vshrl.u32 %v4400_v50, 16  ;;  %v4704_v1 = vshll.u32 %v4400_v50, 16  ;;  %v4669_v30 = vor.u32 %v4668_v16, %v15655_v46  ;;  %v15681_v16 = vld [vmem:[#allocation2 + $0xb0] sm:$0x1] }
 0x240   : > { %v4682_v27 = vrot.slane %v4680_v62, 5  ;;  %v4651_v19 = vsel %vm14364_vm10, %v4646_v23, %v4650_v31  ;;  %v4674_v8 = vrot.slane %v4672_v39, 5  ;;  %v11750_v52 = vcombine.low %v4593_v58, %v4603_v53  ;;  %17978 = vst [vmem:[#allocation9_spill] sm:$0xff] %v15681_v16  ;;  %v15686_v31 = vld [vmem:[#allocation2 + $0xb8] sm:$0xf] }
 0x241   : > { %v4703_v50 = vrot.slane %v4701_v22, 4  ;;  %v15683_v20 = vrot.slane %v4710_v11, 5  ;;  %v4716_v62 = vrot.slane %v4714_v26, 4  ;;  %v4696_v23 = vshll.u32 %v15677_v63, 16  ;;  %17979 = vst [vmem:[#allocation10_spill] sm:$0xff] %v15686_v31 }
 0x242   : > { %13096 = vmatpush3.bf16.msra.mxu0 %v14078_v13  ;;  %v4627_v13 = vsel %vm14364_vm10, %v4622_v7, %v4626_v60  ;;  %v15679_v7 = vrot.slane %v4686_v15, 5  ;;  %v4692_v60 = vrot.slane %v4690_v55, 4  ;;  %v4683_v59 = vor.u32 %v4682_v27, %v4679_v42  ;;  %v4406_v22 = vld [vmem:[#allocation2 + $0xc0] sm:$0xf] }
 0x243   : > { %v11751_v3 = vcombine.low %v4617_v32, %v4627_v13  ;;  %v4720_v58 = vshll.u32 %v15681_v16, 16  ;;  %v4725_v53 = vshrl.u32 %v4403_v6, 16  ;;  %v4717_v32 = vor.u32 %v4716_v62, %v15683_v20 }
 0x244   : > { %v4693_v15 = vor.u32 %v4692_v60, %v15679_v7  ;;  %v4728_v13 = vshll.u32 %v4403_v6, 16  ;;  %v4734_v11 = vshll.u32 %v15686_v31, 16  ;;  %v4738_v26 = vshrl.u32 %v15686_v31, 16 }
 0x245   : > { %13066 = vmatmul.mubr.msk.bf16.gmra.mrb[8].mxu0 %vm1331_vm8, %v11748_v14  ;;  %v4641_v14 = vsel %vm14364_vm10, %v4636_v5, %v15626_v47  ;;  %v4660_v47 = vrot.slane %v4659_v24, 4  ;;  %v4670_v5 = vrot.slane %v4669_v30, 4  ;;  %v4684_v42 = vrot.slane %v4683_v59, 4 }
 0x246   : > { %13069 = vmatprep.mubr.msk.bf16.mxu0 %vm1331_vm8, %v11749_v10  ;;  %v4706_v10 = vrot.slane %v4704_v1, 5  ;;  %v11752_v39 = vcombine.low %v4641_v14, %v4651_v19  ;;  %v15690_v1 = vld [vmem:[#allocation2 + $0xc4] sm:$0xf]  ;;  %v4698_v27 = vrot.slane %v4696_v23, 5  ;;  %v4749_v14 = vshrl.u32 %v4406_v22, 16 }
 0x247   : > { %17980 = vst [vmem:[#allocation11_spill] sm:$0xff] %v15690_v1  ;;  %v4665_v24 = vsel %vm14364_vm10, %v4660_v47, %v15655_v46  ;;  %v4675_v30 = vsel %vm14364_vm10, %v4670_v5, %v4674_v8  ;;  %v4752_v19 = vshll.u32 %v4406_v22, 16  ;;  %v4758_v60 = vshll.u32 %v15690_v1, 16  ;;  %v4409_v22 = vld [vmem:[#allocation2 + $0xcc] sm:$0xf] }
 0x248   : > { %v4707_v55 = vor.u32 %v4706_v10, %v4703_v50  ;;  %v4762_v6 = vshrl.u32 %v15690_v1, 16  ;;  %v4694_v50 = vrot.slane %v4693_v15, 4  ;;  %v4727_v62 = vrot.slane %v4725_v53, 4 }
 0x249   : > { %v4730_v31 = vrot.slane %v4728_v13, 5  ;;  %v4736_v46 = vrot.slane %v4734_v11, 5  ;;  %v4740_v47 = vrot.slane %v4738_v26, 4  ;;  %v11753_v16 = vcombine.low %v4665_v24, %v4675_v30 }
 0x24a   : > { %v4708_v10 = vrot.slane %v4707_v55, 4  ;;  %v4751_v8 = vrot.slane %v4749_v14, 4  ;;  %v4754_v59 = vrot.slane %v4752_v19, 5  ;;  %v4760_v5 = vrot.slane %v4758_v60, 5 }
 0x24b   : > { %v4764_v23 = vrot.slane %v4762_v6, 4  ;;  %v4689_v1 = vsel %vm14364_vm10, %v4684_v42, %v15679_v7  ;;  %v4699_v15 = vsel %vm14364_vm10, %v4694_v50, %v4698_v27  ;;  %v4744_v55 = vshll.u32 %v15704_v41, 16 }
 0x24c   : > { %v4713_v53 = vsel %vm14364_vm10, %v4708_v10, %v15683_v20  ;;  %v4731_v13 = vor.u32 %v4730_v31, %v4727_v62  ;;  %v4741_v11 = vor.u32 %v4740_v47, %v4736_v46  ;;  %v4773_v7 = vshrl.u32 %v4409_v22, 16 }
 0x24d   : > { %13070 = vmatmul.mubr.msk.bf16.gmra.mrb[12].mxu0 %vm1331_vm8, %v11750_v52  ;;  %v4722_v52 = vrot.slane %v4720_v58, 5  ;;  %v15712_v58 = vld [vmem:[#allocation2 + $0xc8] sm:$0x1]  ;;  %v4776_v26 = vshll.u32 %v4409_v22, 16  ;;  %v4782_v24 = vshll.u32 %v15502_v9, 16  ;;  %v4786_v30 = vshrl.u32 %v15502_v9, 16 }
 0x24e   : > { %13073 = vmatprep.mubr.msk.bf16.mxu0 %vm1331_vm8, %v11751_v3  ;;  %v4718_v3 = vrot.slane %v4717_v32, 4  ;;  %v4755_v42 = vor.u32 %v4754_v59, %v4751_v8  ;;  %v4765_v27 = vor.u32 %v4764_v23, %v4760_v5  ;;  %v11754_v14 = vcombine.low %v4689_v1, %v4699_v15 }
 0x24f   : > { %v4732_v20 = vrot.slane %v4731_v13, 4  ;;  %v4742_v60 = vrot.slane %v4741_v11, 4  ;;  %v4746_v6 = vrot.slane %v4744_v55, 5  ;;  %v4775_v50 = vrot.slane %v4773_v7, 4  ;;  %v5118_v55 = vld [vmem:[#allocation2 + $0x18] sm:$0xe] }
 0x250   : > { %v4723_v32 = vsel %vm14364_vm10, %v4718_v3, %v4722_v52  ;;  %v4778_v31 = vrot.slane %v4776_v26, 5  ;;  %v4784_v10 = vrot.slane %v4782_v24, 5  ;;  %v4788_v52 = vrot.slane %v4786_v30, 4 }
 0x251   : > { %v11755_v19 = vcombine.low %v4713_v53, %v4723_v32  ;;  %v4766_v62 = vrot.slane %v4765_v27, 4  ;;  %v4737_v9 = vsel %vm14364_vm10, %v4732_v20, %v4736_v46  ;;  %v4747_v1 = vsel %vm14364_vm10, %v4742_v60, %v4746_v6  ;;  %v5119_v27 = vld [vmem:[#allocation2 + $0x24] sm:$0xe] }
 0x252   : > { %v4779_v47 = vor.u32 %v4778_v31, %v4775_v50  ;;  %v4789_v8 = vor.u32 %v4788_v52, %v4784_v10  ;;  %v4792_v59 = vshll.u32 %v15504_v29, 16  ;;  %v5184_v15 = vrot.slane %v15430_v17, 5 }
 0x253   : > { %v11756_v53 = vcombine.low %v4737_v9, %v4747_v1  ;;  %v11779_v7 = vrot.slane %v5118_v55, 9  ;;  %v5187_v24 = vrot.slane %v15442_v36, 5  ;;  %v5198_v36 = vrot.slane %v15444_v28, 5 }
 0x254   : > { %v4780_v32 = vrot.slane %v4779_v47, 4  ;;  %v4790_v13 = vrot.slane %v4789_v8, 4  ;;  %v4794_v11 = vrot.slane %v4792_v59, 5  ;;  %v5186_v26 = vrot.slane %v5184_v15, 4 }
 0x255   : > { %13074 = vmatmul.mubr.msk.bf16.gmra.mrb[16].mxu0 %vm1331_vm8, %v11752_v39  ;;  %v4768_v39 = vshll.u32 %v15712_v58, 16  ;;  %v5185_v30 = vsel %vm14833_vm15, %v11779_v7, %v5184_v15  ;;  %v11780_v20 = vrot.slane %v5119_v27, 9  ;;  %v5194_v6 = vrot.slane %v15448_v12, 5  ;;  %v5125_v27 = vld [vmem:[#allocation2 + $0x6c] sm:$0xe] }
 0x256   : > { %13077 = vmatprep.mubr.msk.bf16.mxu0 %vm1331_vm8, %v11753_v16  ;;  %v4756_v16 = vrot.slane %v4755_v42, 4  ;;  %v4785_v29 = vsel %vm14364_vm10, %v4780_v32, %v4784_v10  ;;  %v4795_v17 = vsel %vm14364_vm10, %v4790_v13, %v4794_v11  ;;  %v5188_v42 = vsel %vm14833_vm15, %v5186_v26, %v5187_v24  ;;  %v5124_v32 = vld [vmem:[#allocation2 + $0x60] sm:$0xe] }
 0x257   : > { %v4770_v3 = vrot.slane %v4768_v39, 5  ;;  %v5120_v39 = vld [vmem:[#allocation2 + $0x30] sm:$0xe]  ;;  %v5200_v31 = vrot.slane %v5198_v36, 4  ;;  %v5205_v52 = vrot.slane %v15454_v25, 5  ;;  %v5208_v59 = vrot.slane %v15482_v4, 5 }
 0x258   : > { %v4761_v23 = vsel %vm14364_vm10, %v4756_v16, %v4760_v5  ;;  %v5191_v5 = vrot.slane %v15434_v45, 5  ;;  %v11781_v50 = vrot.slane %v5120_v39, 9  ;;  %v5201_v45 = vrot.slane %v15457_v56, 5 }
 0x259   : > { %v4771_v22 = vsel %vm14364_vm10, %v4766_v62, %v4770_v3  ;;  %v5121_v62 = vld [vmem:[#allocation2 + $0x3c] sm:$0xe]  ;;  %v5212_v56 = vrot.slane %v15461_v35, 5  ;;  %v5122_v3 = vld [vmem:[#allocation2 + $0x48] sm:$0xe]  ;;  %v5207_v8 = vrot.slane %v5205_v52, 4 }
 0x25a   : > { %v11757_v46 = vcombine.low %v4761_v23, %v4771_v22  ;;  %v5193_v60 = vrot.slane %v5191_v5, 4  ;;  %v5192_v10 = vsel %vm14833_vm15, %v11780_v20, %v5191_v5  ;;  %v5199_v16 = vsel %vm14833_vm15, %v11781_v50, %v5198_v36  ;;  %v5126_v36 = vld [vmem:[#allocation2 + $0x78] sm:$0xe] }
 0x25b   : > { %v5202_v12 = vsel %vm14833_vm15, %v5200_v31, %v5201_v45  ;;  %v11782_v47 = vrot.slane %v5121_v62, 9  ;;  %v11783_v23 = vrot.slane %v5122_v3, 9  ;;  %v5214_v22 = vrot.slane %v5212_v56, 4 }
 0x25c   : > { %v5195_v28 = vsel %vm14833_vm15, %v5193_v60, %v5194_v6  ;;  %v11805_v1 = vcombine.low %v5199_v16, %v5202_v12  ;;  %v5215_v25 = vrot.slane %v15493_v57, 5  ;;  %v5209_v35 = vsel %vm14833_vm15, %v5207_v8, %v5208_v59 }
 0x25d   : > { %13078 = vmatmul.mubr.msk.bf16.gmra.mrb[20].mxu0 %vm1331_vm8, %v11754_v14  ;;  %v11758_v14 = vcombine.low %v4785_v29, %v4795_v17  ;;  %v11804_v9 = vcombine.low %v5192_v10, %v5195_v28  ;;  %v5206_v15 = vsel %vm14833_vm15, %v11782_v47, %v5205_v52  ;;  %v5219_v55 = vrot.slane %v15491_v18, 5  ;;  %v5127_v28 = vld [vmem:[#allocation2 + $0x84] sm:$0xe]  ;;  %v5128_v52 = vld [vmem:[#allocation2 + $0x90] sm:$0xe] }
 0x25e   : > { %13081 = vmatprep.mubr.msk.bf16.mxu0 %vm1331_vm8, %v11755_v19  ;;  %v11803_v19 = vcombine.low %v5185_v30, %v5188_v42  ;;  %v5216_v4 = vsel %vm14833_vm15, %v5214_v22, %v5215_v25  ;;  %v5226_v57 = vrot.slane %v15514_v2, 5  ;;  %v11806_v13 = vcombine.low %v5206_v15, %v5209_v35  ;;  %v5130_v22 = vld [vmem:[#allocation2 + $0xa8] sm:$0xe] }
 0x25f   : > { %v5221_v26 = vrot.slane %v5219_v55, 4  ;;  %v5222_v24 = vrot.slane %v15527_v21, 5  ;;  %v11785_v29 = vrot.slane %v5124_v32, 9  ;;  %v5229_v18 = vrot.slane %v15558_v48, 5 }
 0x260   : > { %v5228_v17 = vrot.slane %v5226_v57, 4  ;;  %v5233_v30 = vrot.slane %v15555_v49, 5  ;;  %v5240_v48 = vrot.slane %v15572_v51, 5  ;;  %v5236_v60 = vrot.slane %v15591_v43, 5 }
 0x261   : > { %v5223_v2 = vsel %vm14833_vm15, %v5221_v26, %v5222_v24  ;;  %v5227_v42 = vsel %vm14833_vm15, %v11785_v29, %v5226_v57  ;;  %v11787_v6 = vrot.slane %v5126_v36, 9  ;;  %v5243_v49 = vrot.slane %v15611_v34, 5  ;;  %v17981_v57 = vld [vmem:[#allocation9_spill] sm:$0xff]  ;;  %v5131_v26 = vld [vmem:[#allocation2 + $0xb4] sm:$0xe] }
 0x262   : > { %v5230_v21 = vsel %vm14833_vm15, %v5228_v17, %v5229_v18  ;;  %v5235_v20 = vrot.slane %v5233_v30, 4  ;;  %v5242_v50 = vrot.slane %v5240_v48, 4  ;;  %v5247_v45 = vrot.slane %v15595_v33, 5  ;;  %v17983_v24 = vld [vmem:[#allocation11_spill] sm:$0xff]  ;;  %v5132_v17 = vld [vmem:[#allocation2 + $0xc0] sm:$0xe] }
 0x263   : > { %v5241_v10 = vsel %vm14833_vm15, %v11787_v6, %v5240_v48  ;;  %v5254_v34 = vrot.slane %v15628_v44, 5  ;;  %v11788_v62 = vrot.slane %v5127_v28, 9  ;;  %v5250_v3 = vrot.slane %v15637_v38, 5 }
 0x264   : > { %v5237_v51 = vsel %vm14833_vm15, %v5235_v20, %v5236_v60  ;;  %v5244_v43 = vsel %vm14833_vm15, %v5242_v50, %v5243_v49  ;;  %v5257_v33 = vrot.slane %v15645_v61, 5  ;;  %v5261_v8 = vrot.slane %v15653_v54, 5  ;;  %v17985_v60 = vld [vmem:[#allocation8_spill] sm:$0xff]  ;;  %v14079_v50 = vld [vmem:[%s17868_s2 + $0x20] sm:$0xff]   ;;  %v14080_v49 = vld [vmem:[%s17868_s2 + $0x28] sm:$0xff]  }
 0x265   : > { %13082 = vmatmul.mubr.msk.bf16.gmra.mrb[24].mxu0 %vm1331_vm8, %v11756_v53  ;;  %v5213_v53 = vsel %vm14833_vm15, %v11783_v23, %v5212_v56  ;;  %v11811_v12 = vcombine.low %v5241_v10, %v5244_v43  ;;  %v5249_v56 = vrot.slane %v5247_v45, 4  ;;  %v5248_v47 = vsel %vm14833_vm15, %v11788_v62, %v5247_v45  ;;  %v5129_v23 = vld [vmem:[#allocation2 + $0x9c] sm:$0xe]  ;;  %13129 = vmatprep.subr.bf16.mxu1 %v14079_v50  ;;  %v6278_v45 = vld [vmem:[#allocation2 + $0x4] sm:$0xf] }
 0x266   : > { %13085 = vmatprep.mubr.msk.bf16.mxu0 %vm1331_vm8, %v11757_v46  ;;  %v5123_v46 = vld [vmem:[#allocation2 + $0x54] sm:$0xe]  ;;  %v11807_v11 = vcombine.low %v5213_v53, %v5216_v4  ;;  %v5268_v61 = vrot.slane %v15657_v37, 5  ;;  %v11790_v35 = vrot.slane %v5129_v23, 9  ;;  %v5264_v53 = vrot.slane %v15677_v63, 5  ;;  %13130 = vmatpush3.bf16.msra.mxu1 %v14079_v50  ;;  %v14082_v10 = vld [vmem:[%s17868_s2 + $0x38] sm:$0xff]  }
 0x267   : > { %v11784_v7 = vrot.slane %v5123_v46, 9  ;;  %v5251_v44 = vsel %vm14833_vm15, %v5249_v56, %v5250_v3  ;;  %v11791_v4 = vrot.slane %v5130_v22, 9  ;;  %v5271_v54 = vrot.slane %v17981_v57, 5  ;;  %13131 = vmatprep.subr.bf16.mxu1 %v14080_v49  ;;  %v6317_v3 = vld [vmem:[#allocation2 + $0x8] sm:$0x1] }
 0x268   : > { %v11812_v25 = vcombine.low %v5248_v47, %v5251_v44  ;;  %v5270_v46 = vrot.slane %v5268_v61, 4  ;;  %v5262_v32 = vsel %vm14833_vm15, %v11790_v35, %v5261_v8  ;;  %v5282_v29 = vrot.slane %v17983_v24, 5  ;;  %v15877_v22 = vld [vmem:[%s17869_s3] ss:$0 sm:$0xff] }
 0x269   : > { %v5220_v5 = vsel %vm14833_vm15, %v11784_v7, %v5219_v55  ;;  %v5263_v55 = vrot.slane %v5261_v8, 4  ;;  %v5269_v7 = vsel %vm14833_vm15, %v11791_v4, %v5268_v61  ;;  %v5285_v48 = vrot.slane %v15712_v58, 5  ;;  %v17984_v58 = vld [vmem:[#allocation7_spill] sm:$0xff]  ;;  %v15871_v61 = vld [vmem:[%s17868_s2] sm:$0xff]  }
 0x26a   : > { %v11808_v39 = vcombine.low %v5220_v5, %v5223_v2  ;;  %v5272_v63 = vsel %vm14833_vm15, %v5270_v46, %v5271_v54  ;;  %v11792_v2 = vrot.slane %v5131_v26, 9  ;;  %v17986_v6 = vcombine.low %v17984_v58, %v17985_v60  ;;  %13132 = vmatpush3.bf16.msra.mxu1 %v14080_v49 }
 0x26b   : > { %v5265_v37 = vsel %vm14833_vm15, %v5263_v55, %v5264_v53  ;;  %v11815_v5 = vcombine.low %v5269_v7, %v5272_v63 }
 0x26c   : > { %v11814_v18 = vcombine.low %v5262_v32, %v5265_v37 }
 0x26d   : > { %13086 = vmatmul.mubr.msk.bf16.gmra.mrb[28].mxu0 %vm1331_vm8, %v11758_v14  ;;  %v11809_v14 = vcombine.low %v5227_v42, %v5230_v21  ;;  %v5278_v42 = vrot.slane %v15704_v41, 5  ;;  %v11793_v21 = vrot.slane %v5132_v17, 9 }
 0x26e   : > { %13097 = vmatprep.mubr.msk.bf16.mxu0 %vm1331_vm8, %v11803_v19  ;;  %v11786_v19 = vrot.slane %v5125_v27, 9  ;;  %v5284_v27 = vrot.slane %v5282_v29, 4 }
 0x270   : > { %v5234_v31 = vsel %vm14833_vm15, %v11786_v19, %v5233_v30  ;;  %v5286_v41 = vsel %vm14833_vm15, %v5284_v27, %v5285_v48 }
 0x271   : > { %v11810_v16 = vcombine.low %v5234_v31, %v5237_v51  ;;  %v14081_v31 = vld [vmem:[%s17868_s2 + $0x30] sm:$0xff]   ;;  %v6277_v51 = vld [vmem:[#allocation2] sm:$0xf] }
 0x272   : > { %13133 = vmatprep.subr.bf16.mxu1 %v14081_v31  ;;  %v6334_v43 = vshrl.u32 %v6277_v51, 16  ;;  %v6337_v28 = vshll.u32 %v6277_v51, 16 }
 0x273   : > { %13134 = vmatpush3.bf16.msra.mxu1 %v14081_v31 }
 0x274   : > { %13135 = vmatprep.subr.bf16.mxu1 %v14082_v10 }
 0x275   : > { %13098 = vmatmul.mubr.msk.bf16.vlgmr.msra.gmra.mrb[0].mxu0 %vm1331_vm8, %v11804_v9  ;;  %v11789_v9 = vrot.slane %v5128_v52, 9  ;;  %v6347_v52 = vshrl.u32 %v6278_v45, 16 }
 0x276   : > { %13101 = vmatprep.mubr.msk.bf16.mxu0 %vm1331_vm8, %v11805_v1  ;;  %v5256_v1 = vrot.slane %v5254_v34, 4 }
 0x277   : > { %v5255_v59 = vsel %vm14833_vm15, %v11789_v9, %v5254_v34  ;;  %v6343_v34 = vshll.u32 %v6278_v45, 16  ;;  %v6349_v56 = vrot.slane %v6347_v52, 4  ;;  %13136 = vmatpush3.bf16.msra.mxu1 %v14082_v10 }
 0x278   : > { %v5258_v38 = vsel %vm14833_vm15, %v5256_v1, %v5257_v33  ;;  %v6353_v33 = vshll.u32 %v6317_v3, 16  ;;  %13169 = vmatprep.subr.bf16.mxu1 %v15871_v61  ;;  %v6169_v3 = vld [vmem:[#allocation2 + $0x14] sm:$0x1] }
 0x279   : > { %v11813_v15 = vcombine.low %v5255_v59, %v5258_v38  ;;  %v6345_v62 = vrot.slane %v6343_v34, 5  ;;  %v6176_v34 = vld [vmem:[#allocation2 + $0x20] sm:$0x1] }
 0x27a   : > { %v6355_v8 = vrot.slane %v6353_v33, 5 }
 0x27b   : > { %v6350_v1 = vor.u32 %v6349_v56, %v6345_v62 }
 0x27d   : > { %13102 = vmatmul.mubr.msk.bf16.gmra.mrb[4].mxu0 %vm1331_vm8, %v11806_v13  ;;  %v17982_v13 = vld [vmem:[#allocation10_spill] sm:$0xff]  ;;  %v6351_v44 = vrot.slane %v6350_v1, 4 }
 0x27e   : > { %13105 = vmatprep.mubr.msk.bf16.mxu0 %vm1331_vm8, %v11807_v11  ;;  %v5275_v11 = vrot.slane %v17982_v13, 5  ;;  %v14189_v1 = vld [vmem:[#allocation2 + $0xc] sm:$0xf] }
 0x27f   : > { %v6356_v38 = vsel %vm14364_vm10, %v6351_v44, %v6355_v8 }
 0x280   : > { %v5277_v30 = vrot.slane %v5275_v11, 4  ;;  %v5276_v36 = vsel %vm14833_vm15, %v11792_v2, %v5275_v11 }
 0x285   : > { %13106 = vmatmul.mubr.msk.bf16.gmra.mrb[8].mxu0 %vm1331_vm8, %v11808_v39  ;;  %v5279_v39 = vsel %vm14833_vm15, %v5277_v30, %v5278_v42 }
 0x286   : > { %13109 = vmatprep.mubr.msk.bf16.mxu0 %vm1331_vm8, %v11809_v14  ;;  %v5283_v14 = vsel %vm14833_vm15, %v11793_v21, %v5282_v29  ;;  %v11816_v19 = vcombine.low %v5276_v36, %v5279_v39 }
 0x287   : > { %v11817_v20 = vcombine.low %v5283_v14, %v5286_v41  ;;  %v6172_v14 = vld [vmem:[#allocation2 + $0x18] sm:$0xf] }
 0x28d   : > { %13110 = vmatmul.mubr.msk.bf16.gmra.mrb[12].mxu0 %vm1331_vm8, %v11810_v16  ;;  %v6336_v16 = vrot.slane %v6334_v43, 4 }
 0x28e   : > { %13113 = vmatprep.mubr.msk.bf16.mxu0 %vm1331_vm8, %v11811_v12  ;;  %v6339_v12 = vrot.slane %v6337_v28, 5 }
 0x290   : > { %v6340_v9 = vor.u32 %v6339_v12, %v6336_v16 }
 0x292   : > { %v6341_v47 = vrot.slane %v6340_v9, 4 }
 0x294   : > { %v6346_v59 = vsel %vm14364_vm10, %v6341_v47, %v6345_v62 }
 0x295   : > { %13114 = vmatmul.mubr.msk.bf16.gmra.mrb[16].mxu0 %vm1331_vm8, %v11812_v25  ;;  %v11880_v23 = vcombine.low %v6346_v59, %v6356_v38 }
 0x296   : > { %13117 = vmatprep.mubr.msk.bf16.mxu0 %vm1331_vm8, %v11813_v15  ;;  %v15879_v15 = vstv %s227_s18 }
 0x297   : > { %13137 = vmatprep.mubr.msk.bf16.mxu1 %vm1331_vm8, %v11880_v23 }
 0x29d   : > { %13118 = vmatmul.mubr.msk.bf16.gmra.mrb[20].mxu0 %vm1331_vm8, %v11814_v18 }
 0x29e   : > { %13121 = vmatprep.mubr.msk.bf16.mxu0 %vm1331_vm8, %v11815_v5 }
 0x2a5   : > { %13122 = vmatmul.mubr.msk.bf16.gmra.mrb[24].mxu0 %vm1331_vm8, %v11816_v19 }
 0x2a6   : > { %13125 = vmatprep.mubr.msk.bf16.mxu0 %vm1331_vm8, %v11817_v20 }
 0x2ad   : > { %13126 = vmatmul.mubr.msk.bf16.gmra.mrb[28].mxu0 %vm1331_vm8, %v17986_v6 }
 0x348   : > { %v13099_v25 = vpop.f32.mrb[0].mxu0 }
 0x349   : > { %v5623_v35 = vadd.f32 %v13099_v25, %v15877_v22  ;;  %v5457_v55 = vpop.f32.mrb[1].mxu0 }
 0x34a   : > { %v5621_v53 = vadd.f32 %v15877_v22, %v5457_v55  ;;  %v13100_v4 = vpop.f32.mrb[2].mxu0 }
 0x34b   : > { %vm5655_vm1 = vcmp.gt.f32.partialorder %v5623_v35, 0.0  ;;  %v5688_v46 = vmul.f32 %v15879_v15, %v5623_v35  ;;  %v5624_v57 = vadd.f32 %v13100_v4, %v15877_v22  ;;  %v5460_v54 = vpop.f32.mrb[3].mxu0 }
 0x34c   : > { %vm5653_vm2 = vcmp.gt.f32.partialorder %v5621_v53, 0.0  ;;  %v5686_v32 = vmul.f32 %v15879_v15, %v5621_v53  ;;  %v5622_v37 = vadd.f32 %v15877_v22, %v5460_v54 }
 0x34d   : > { %v5720_v13 = vsel %vm5655_vm1, %v5623_v35, %v5688_v46  ;;  %vm5656_vm3 = vcmp.gt.f32.partialorder %v5624_v57, 0.0  ;;  %v5689_v11 = vmul.f32 %v15879_v15, %v5624_v57 }
 0x34e   : > { %v12347_v7 = vpack.c.bf16 %v5720_v13, %v5720_v13  ;;  %v5718_v63 = vsel %vm5653_vm2, %v5621_v53, %v5686_v32  ;;  %vm5654_vm5 = vcmp.gt.f32.partialorder %v5622_v37, 0.0  ;;  %v5687_v26 = vmul.f32 %v15879_v15, %v5622_v37 }
 0x34f   : > { %v12345_v24 = vpack.c.bf16 %v5718_v63, %v5718_v63  ;;  %v5721_v29 = vsel %vm5656_vm3, %v5624_v57, %v5689_v11 }
 0x350   : > { %v5864_v17 = vshrl.u32 %v12347_v7, 16  ;;  %v5867_v18 = vshll.u32 %v12347_v7, 16  ;;  %v12348_v5 = vpack.c.bf16 %v5721_v29, %v5721_v29  ;;  %v5719_v2 = vsel %vm5654_vm5, %v5622_v37, %v5687_v26  ;;  %v13103_v30 = vpop.f32.mrb[4].mxu0 }
 0x351   : > { %v5847_v42 = vshrl.u32 %v12345_v24, 16  ;;  %v5850_v21 = vshll.u32 %v12345_v24, 16  ;;  %v12346_v27 = vpack.c.bf16 %v5719_v2, %v5719_v2  ;;  %v5627_v48 = vadd.f32 %v13103_v30, %v15877_v22  ;;  %v5473_v36 = vpop.f32.mrb[5].mxu0 }
 0x352   : > { %v5866_v39 = vrot.slane %v5864_v17, 7  ;;  %v5872_v41 = vshrl.u32 %v12348_v5, 16  ;;  %v5875_v19 = vshll.u32 %v12348_v5, 16  ;;  %v5625_v20 = vadd.f32 %v15877_v22, %v5473_v36  ;;  %v13104_v58 = vpop.f32.mrb[6].mxu0 }
 0x353   : > { %v5849_v60 = vrot.slane %v5847_v42, 7  ;;  %v5855_v6 = vshrl.u32 %v12346_v27, 16  ;;  %v5858_v50 = vshll.u32 %v12346_v27, 16  ;;  %vm5659_vm6 = vcmp.gt.f32.partialorder %v5627_v48, 0.0  ;;  %v5476_v49 = vpop.f32.mrb[7].mxu0 }
 0x354   : > { %v5869_v31 = vor.u32 %v5867_v18, %v5866_v39  ;;  %v5870_v51 = vrot.slane %v5866_v39, 4  ;;  %v5874_v45 = vrot.slane %v5872_v41, 7  ;;  %v5692_v10 = vmul.f32 %v15879_v15, %v5627_v48  ;;  %v6186_v18 = vld [vmem:[#allocation2 + $0x30] sm:$0xf] }
 0x355   : > { %v5852_v43 = vor.u32 %v5850_v21, %v5849_v60  ;;  %v5853_v28 = vrot.slane %v5849_v60, 4  ;;  %v5857_v52 = vrot.slane %v5855_v6, 7  ;;  %vm5657_vm7 = vcmp.gt.f32.partialorder %v5625_v20, 0.0 }
 0x356   : > { %v6173_v12 = vsel %vm14371_vm11, %v5869_v31, %v6172_v14  ;;  %v5877_v62 = vor.u32 %v5875_v19, %v5874_v45  ;;  %v5879_v56 = vrot.slane %v5874_v45, 4  ;;  %v5724_v9 = vsel %vm5659_vm6, %v5627_v48, %v5692_v10 }
 0x357   : > { %6174 = vst [vmem:[#allocation2 + $0x18] sm:$0xf] %v6173_v12  ;;  %v6166_v33 = vsel %vm14371_vm11, %v5852_v43, %v14189_v1  ;;  %v5860_v47 = vor.u32 %v5858_v50, %v5857_v52  ;;  %v5862_v44 = vrot.slane %v5857_v52, 4  ;;  %v12351_v8 = vpack.c.bf16 %v5724_v9, %v5724_v9 }
 0x358   : > { %6167 = vst [vmem:[#allocation2 + $0xc] sm:$0xf] %v6166_v33  ;;  %v5878_v38 = vsel %vm14383_vm12, %v5870_v51, %v5877_v62  ;;  %v6177_v25 = vsel %vm14317_vm4, %v5879_v56, %v6176_v34  ;;  %v5690_v35 = vmul.f32 %v15879_v15, %v5625_v20  ;;  %v5628_v55 = vadd.f32 %v13104_v58, %v15877_v22  ;;  %v13107_v53 = vpop.f32.mrb[8].mxu0  ;;  %v6179_v58 = vld [vmem:[#allocation2 + $0x24] sm:$0xf] }
 0x359   : > { %6175 = vst.msk [vmem:[#allocation2 + $0x1c] sm:$0xf] %vm228_vm0, %v5878_v38  ;;  %6178 = vst [vmem:[#allocation2 + $0x20] sm:$0x1] %v6177_v25  ;;  %v5861_v4 = vsel %vm14383_vm12, %v5853_v28, %v5860_v47  ;;  %v6170_v46 = vsel %vm14317_vm4, %v5862_v44, %v6169_v3  ;;  %v5898_v57 = vshrl.u32 %v12351_v8, 16  ;;  %v5901_v54 = vshll.u32 %v12351_v8, 16 }
 0x35a   : > { %v5489_v32 = vpop.f32.mrb[9].mxu0  ;;  %6168 = vst.msk [vmem:[#allocation2 + $0x10] sm:$0xf] %vm228_vm0, %v5861_v4  ;;  %6171 = vst [vmem:[#allocation2 + $0x14] sm:$0x1] %v6170_v46  ;;  %v5722_v37 = vsel %vm5657_vm7, %v5625_v20, %v5690_v35  ;;  %vm5660_vm9 = vcmp.gt.f32.partialorder %v5628_v55, 0.0  ;;  %v5693_v13 = vmul.f32 %v15879_v15, %v5628_v55  ;;  %v5626_v11 = vadd.f32 %v15877_v22, %v5476_v49 }
 0x35b   : > { %v13108_v7 = vpop.f32.mrb[10].mxu0  ;;  %v5900_v63 = vrot.slane %v5898_v57, 7  ;;  %v12349_v26 = vpack.c.bf16 %v5722_v37, %v5722_v37  ;;  %v5631_v24 = vadd.f32 %v13107_v53, %v15877_v22  ;;  %v5629_v29 = vadd.f32 %v15877_v22, %v5489_v32  ;;  %v6190_v3 = vld [vmem:[#allocation2 + $0x38] sm:$0x1]  ;;  %v6183_v38 = vld [vmem:[#allocation2 + $0x2c] sm:$0x1] }
 0x35c   : > { %v15913_v17 = vpop.f32.mrb[11].mxu0  ;;  %v5725_v5 = vsel %vm5660_vm9, %v5628_v55, %v5693_v13  ;;  %vm5658_vm13 = vcmp.gt.f32.partialorder %v5626_v11, 0.0  ;;  %v5691_v2 = vmul.f32 %v15879_v15, %v5626_v11  ;;  %v5632_v30 = vadd.f32 %v13108_v7, %v15877_v22  ;;  %v6200_v7 = vld [vmem:[#allocation2 + $0x48] sm:$0xf] }
 0x35d   : > { %v5903_v42 = vor.u32 %v5901_v54, %v5900_v63  ;;  %v5904_v21 = vrot.slane %v5900_v63, 4  ;;  %v5881_v27 = vshrl.u32 %v12349_v26, 16  ;;  %v5884_v48 = vshll.u32 %v12349_v26, 16 }
 0x35e   : > { %v12352_v36 = vpack.c.bf16 %v5725_v5, %v5725_v5  ;;  %v5723_v39 = vsel %vm5658_vm13, %v5626_v11, %v5691_v2  ;;  %vm5663_vm14 = vcmp.gt.f32.partialorder %v5631_v24, 0.0  ;;  %v5696_v14 = vmul.f32 %v15879_v15, %v5631_v24 }
 0x35f   : > { %v6187_v41 = vsel %vm14371_vm11, %v5903_v42, %v6186_v18  ;;  %v5883_v19 = vrot.slane %v5881_v27, 7  ;;  %v12350_v20 = vpack.c.bf16 %v5723_v39, %v5723_v39  ;;  %vm5661_vm1 = vcmp.gt.f32.partialorder %v5629_v29, 0.0  ;;  %v6193_v18 = vld [vmem:[#allocation2 + $0x3c] sm:$0xf] }
 0x360   : > { %6188 = vst [vmem:[#allocation2 + $0x30] sm:$0xf] %v6187_v41  ;;  %v5906_v60 = vshrl.u32 %v12352_v36, 16  ;;  %v5909_v6 = vshll.u32 %v12352_v36, 16  ;;  %v5728_v50 = vsel %vm5663_vm14, %v5631_v24, %v5696_v14  ;;  %v5694_v49 = vmul.f32 %v15879_v15, %v5629_v29  ;;  %v13111_v31 = vpop.f32.mrb[12].mxu0 }
 0x361   : > { %v5886_v51 = vor.u32 %v5884_v48, %v5883_v19  ;;  %v5887_v45 = vrot.slane %v5883_v19, 4  ;;  %v5889_v10 = vshrl.u32 %v12350_v20, 16  ;;  %v5892_v43 = vshll.u32 %v12350_v20, 16  ;;  %v5505_v28 = vpop.f32.mrb[13].mxu0 }
 0x362   : > { %v5908_v34 = vrot.slane %v5906_v60, 7  ;;  %v12355_v52 = vpack.c.bf16 %v5728_v50, %v5728_v50  ;;  %v5726_v12 = vsel %vm5661_vm1, %v5629_v29, %v5694_v49  ;;  %vm5664_vm2 = vcmp.gt.f32.partialorder %v5632_v30, 0.0  ;;  %v13112_v62 = vpop.f32.mrb[14].mxu0 }
 0x363   : > { %v6180_v56 = vsel %vm14371_vm11, %v5886_v51, %v6179_v58  ;;  %v5891_v9 = vrot.slane %v5889_v10, 7  ;;  %v12353_v1 = vpack.c.bf16 %v5726_v12, %v5726_v12  ;;  %v5697_v33 = vmul.f32 %v15879_v15, %v5632_v30  ;;  %v5508_v47 = vpop.f32.mrb[15].mxu0 }
 0x364   : > { %6181 = vst [vmem:[#allocation2 + $0x24] sm:$0xf] %v6180_v56  ;;  %v5911_v44 = vor.u32 %v5909_v6, %v5908_v34  ;;  %v5913_v8 = vrot.slane %v5908_v34, 4  ;;  %v5932_v25 = vshrl.u32 %v12355_v52, 16  ;;  %v5935_v35 = vshll.u32 %v12355_v52, 16 }
 0x365   : > { %v5894_v55 = vor.u32 %v5892_v43, %v5891_v9  ;;  %v5896_v53 = vrot.slane %v5891_v9, 4  ;;  %v5915_v4 = vshrl.u32 %v12353_v1, 16  ;;  %v5918_v46 = vshll.u32 %v12353_v1, 16  ;;  %v6204_v6 = vld [vmem:[#allocation2 + $0x50] sm:$0x1] }
 0x366   : > { %v5912_v57 = vsel %vm14383_vm12, %v5904_v21, %v5911_v44  ;;  %v6191_v54 = vsel %vm14317_vm4, %v5913_v8, %v6190_v3  ;;  %v5934_v32 = vrot.slane %v5932_v25, 7  ;;  %v5729_v37 = vsel %vm5664_vm2, %v5632_v30, %v5697_v33 }
 0x367   : > { %6189 = vst.msk [vmem:[#allocation2 + $0x34] sm:$0xf] %vm228_vm0, %v5912_v57  ;;  %6192 = vst [vmem:[#allocation2 + $0x38] sm:$0x1] %v6191_v54  ;;  %v5895_v13 = vsel %vm14383_vm12, %v5887_v45, %v5894_v55  ;;  %v6184_v11 = vsel %vm14317_vm4, %v5896_v53, %v6183_v38  ;;  %v15934_v63 = vrot.slane %v5915_v4, 7  ;;  %v12356_v26 = vpack.c.bf16 %v5729_v37, %v5729_v37 }
 0x368   : > { %6182 = vst.msk [vmem:[#allocation2 + $0x28] sm:$0xf] %vm228_vm0, %v5895_v13  ;;  %6185 = vst [vmem:[#allocation2 + $0x2c] sm:$0x1] %v6184_v11  ;;  %v5937_v24 = vor.u32 %v5935_v35, %v5934_v32  ;;  %v5938_v29 = vrot.slane %v5934_v32, 4  ;;  %v5630_v5 = vadd.f32 %v15877_v22, %v15913_v17  ;;  %v5635_v2 = vadd.f32 %v13111_v31, %v15877_v22  ;;  %v13115_v30 = vpop.f32.mrb[16].mxu0 }
 0x369   : > { %v5920_v42 = vor.u32 %v5918_v46, %v15934_v63  ;;  %v5921_v21 = vrot.slane %v15934_v63, 4  ;;  %v5940_v27 = vshrl.u32 %v12356_v26, 16  ;;  %v5943_v48 = vshll.u32 %v12356_v26, 16  ;;  %v15942_v36 = vpop.f32.mrb[17].mxu0  ;;  %v6197_v55 = vld [vmem:[#allocation2 + $0x44] sm:$0x1] }
 0x36a   : > { %v6201_v39 = vsel %vm14371_vm11, %v5937_v24, %v6200_v7  ;;  %vm5662_vm3 = vcmp.gt.f32.partialorder %v5630_v5, 0.0  ;;  %v5695_v14 = vmul.f32 %v15879_v15, %v5630_v5  ;;  %vm5667_vm5 = vcmp.gt.f32.partialorder %v5635_v2, 0.0  ;;  %v15947_v41 = vpop.f32.mrb[18].mxu0  ;;  %v6214_v37 = vld [vmem:[#allocation2 + $0x60] sm:$0xf] }
 0x36b   : > { %6202 = vst [vmem:[#allocation2 + $0x48] sm:$0xf] %v6201_v39  ;;  %v6194_v17 = vsel %vm14371_vm11, %v5920_v42, %v6193_v18  ;;  %v5942_v19 = vrot.slane %v5940_v27, 7  ;;  %v5700_v20 = vmul.f32 %v15879_v15, %v5635_v2  ;;  %v5633_v58 = vadd.f32 %v15877_v22, %v5505_v28  ;;  %v15953_v60 = vpop.f32.mrb[19].mxu0 }
 0x36c   : > { %6195 = vst [vmem:[#allocation2 + $0x3c] sm:$0xf] %v6194_v17  ;;  %v5727_v50 = vsel %vm5662_vm3, %v5630_v5, %v5695_v14  ;;  %v5636_v49 = vadd.f32 %v13112_v62, %v15877_v22  ;;  %v5634_v31 = vadd.f32 %v15877_v22, %v5508_v47  ;;  %v5639_v51 = vadd.f32 %v13115_v30, %v15877_v22  ;;  %v6207_v30 = vld [vmem:[#allocation2 + $0x54] sm:$0xf]  ;;  %v6279_v17 = vld [vmem:[#allocation2 + $0xc] sm:$0xf] }
 0x36d   : > { %v5945_v45 = vor.u32 %v5943_v48, %v5942_v19  ;;  %v5947_v10 = vrot.slane %v5942_v19, 4  ;;  %v12354_v43 = vpack.c.bf16 %v5727_v50, %v5727_v50  ;;  %v5732_v34 = vsel %vm5667_vm5, %v5635_v2, %v5700_v20 }
 0x36e   : > { %v12359_v52 = vpack.c.bf16 %v5732_v34, %v5732_v34  ;;  %vm5665_vm6 = vcmp.gt.f32.partialorder %v5633_v58, 0.0  ;;  %v5698_v28 = vmul.f32 %v15879_v15, %v5633_v58  ;;  %vm5668_vm7 = vcmp.gt.f32.partialorder %v5636_v49, 0.0 }
 0x36f   : > { %v5946_v12 = vsel %vm14383_vm12, %v5938_v29, %v5945_v45  ;;  %v6205_v62 = vsel %vm14317_vm4, %v5947_v10, %v6204_v6  ;;  %v5923_v56 = vshrl.u32 %v12354_v43, 16  ;;  %v5926_v3 = vshll.u32 %v12354_v43, 16 }
 0x370   : > { %6203 = vst.msk [vmem:[#allocation2 + $0x4c] sm:$0xf] %vm228_vm0, %v5946_v12  ;;  %6206 = vst [vmem:[#allocation2 + $0x50] sm:$0x1] %v6205_v62  ;;  %v5966_v9 = vshrl.u32 %v12359_v52, 16  ;;  %v5969_v1 = vshll.u32 %v12359_v52, 16  ;;  %v5730_v33 = vsel %vm5665_vm6, %v5633_v58, %v5698_v28  ;;  %v5701_v47 = vmul.f32 %v15879_v15, %v5636_v49 }
 0x371   : > { %v15966_v44 = vpop.f32.mrb[20].mxu0  ;;  %v5925_v8 = vrot.slane %v5923_v56, 7  ;;  %v12357_v38 = vpack.c.bf16 %v5730_v33, %v5730_v33  ;;  %vm5666_vm9 = vcmp.gt.f32.partialorder %v5634_v31, 0.0  ;;  %v5699_v25 = vmul.f32 %v15879_v15, %v5634_v31 }
 0x372   : > { %v15969_v35 = vpop.f32.mrb[21].mxu0  ;;  %v5968_v53 = vrot.slane %v5966_v9, 7  ;;  %v5733_v4 = vsel %vm5668_vm7, %v5636_v49, %v5701_v47  ;;  %vm5671_vm13 = vcmp.gt.f32.partialorder %v5639_v51, 0.0  ;;  %v5704_v46 = vmul.f32 %v15879_v15, %v5639_v51 }
 0x373   : > { %v15973_v57 = vpop.f32.mrb[22].mxu0  ;;  %v5928_v54 = vor.u32 %v5926_v3, %v5925_v8  ;;  %v5930_v32 = vrot.slane %v5925_v8, 4  ;;  %v5949_v13 = vshrl.u32 %v12357_v38, 16  ;;  %v5952_v11 = vshll.u32 %v12357_v38, 16 }
 0x374   : > { %v15975_v7 = vpop.f32.mrb[23].mxu0  ;;  %v5971_v63 = vor.u32 %v5969_v1, %v5968_v53  ;;  %v5972_v26 = vrot.slane %v5968_v53, 4  ;;  %v12360_v24 = vpack.c.bf16 %v5733_v4, %v5733_v4  ;;  %v5731_v29 = vsel %vm5666_vm9, %v5634_v31, %v5699_v25  ;;  %v6228_v53 = vld [vmem:[#allocation2 + $0x78] sm:$0xf] }
 0x375   : > { %v5929_v18 = vsel %vm14383_vm12, %v5921_v21, %v5928_v54  ;;  %v6198_v5 = vsel %vm14317_vm4, %v5930_v32, %v6197_v55  ;;  %v5951_v2 = vrot.slane %v5949_v13, 7  ;;  %v12358_v42 = vpack.c.bf16 %v5731_v29, %v5731_v29 }
 0x376   : > { %6196 = vst.msk [vmem:[#allocation2 + $0x40] sm:$0xf] %vm228_vm0, %v5929_v18  ;;  %6199 = vst [vmem:[#allocation2 + $0x44] sm:$0x1] %v6198_v5  ;;  %v6215_v27 = vsel %vm14371_vm11, %v5971_v63, %v6214_v37  ;;  %v5974_v48 = vshrl.u32 %v12360_v24, 16  ;;  %v5977_v39 = vshll.u32 %v12360_v24, 16  ;;  %v5736_v14 = vsel %vm5671_vm13, %v5639_v51, %v5704_v46 }
 0x377   : > { %6216 = vst [vmem:[#allocation2 + $0x60] sm:$0xf] %v6215_v27  ;;  %v5954_v19 = vor.u32 %v5952_v11, %v5951_v2  ;;  %v5955_v21 = vrot.slane %v5951_v2, 4  ;;  %v5957_v20 = vshrl.u32 %v12358_v42, 16  ;;  %v5960_v58 = vshll.u32 %v12358_v42, 16 }
 0x378   : > { %v5976_v6 = vrot.slane %v5974_v48, 7  ;;  %v12363_v50 = vpack.c.bf16 %v5736_v14, %v5736_v14  ;;  %v5637_v49 = vadd.f32 %v15877_v22, %v15942_v36  ;;  %v5640_v31 = vadd.f32 %v15947_v41, %v15877_v22  ;;  %v15990_v45 = vpop.f32.mrb[24].mxu0  ;;  %v6218_v51 = vld [vmem:[#allocation2 + $0x68] sm:$0x1]  ;;  %v6211_v36 = vld [vmem:[#allocation2 + $0x5c] sm:$0x1] }
 0x379   : > { %v6208_v10 = vsel %vm14371_vm11, %v5954_v19, %v6207_v30  ;;  %v5959_v43 = vrot.slane %v5957_v20, 7  ;;  %v5638_v34 = vadd.f32 %v15877_v22, %v15953_v60  ;;  %v6358_v52 = vshrl.u32 %v6279_v17, 16  ;;  %v15996_v28 = vpop.f32.mrb[25].mxu0  ;;  %v6280_v37 = vld [vmem:[#allocation2 + $0x10] sm:$0xf] }
 0x37a   : > { %6209 = vst [vmem:[#allocation2 + $0x54] sm:$0xf] %v6208_v10  ;;  %v5979_v12 = vor.u32 %v5977_v39, %v5976_v6  ;;  %v5981_v62 = vrot.slane %v5976_v6, 4  ;;  %v6000_v56 = vshrl.u32 %v12363_v50, 16  ;;  %v6003_v3 = vshll.u32 %v12363_v50, 16  ;;  %v15998_v41 = vpop.f32.mrb[26].mxu0 }
 0x37b   : > { %v5962_v9 = vor.u32 %v5960_v58, %v5959_v43  ;;  %v5964_v1 = vrot.slane %v5959_v43, 4  ;;  %vm5669_vm14 = vcmp.gt.f32.partialorder %v5637_v49, 0.0  ;;  %v5702_v33 = vmul.f32 %v15879_v15, %v5637_v49  ;;  %v16001_v47 = vpop.f32.mrb[27].mxu0  ;;  %v6318_v5 = vld [vmem:[#allocation2 + $0x14] sm:$0x1] }
 0x37c   : > { %v5980_v60 = vsel %vm14383_vm12, %v5972_v26, %v5979_v12  ;;  %v6219_v8 = vsel %vm14317_vm4, %v5981_v62, %v6218_v51  ;;  %v16007_v38 = vrot.slane %v6000_v56, 7  ;;  %vm5672_vm1 = vcmp.gt.f32.partialorder %v5640_v31, 0.0  ;;  %v6221_v30 = vld [vmem:[#allocation2 + $0x6c] sm:$0xf]  ;;  %v6232_v62 = vld [vmem:[#allocation2 + $0x80] sm:$0x1] }
 0x37d   : > { %6217 = vst.msk [vmem:[#allocation2 + $0x64] sm:$0xf] %vm228_vm0, %v5980_v60  ;;  %6220 = vst [vmem:[#allocation2 + $0x68] sm:$0x1] %v6219_v8  ;;  %v5963_v25 = vsel %vm14383_vm12, %v5955_v21, %v5962_v9  ;;  %v6212_v55 = vsel %vm14317_vm4, %v5964_v1, %v6211_v36  ;;  %v5734_v4 = vsel %vm5669_vm14, %v5637_v49, %v5702_v33  ;;  %vm5670_vm2 = vcmp.gt.f32.partialorder %v5638_v34, 0.0 }
 0x37e   : > { %v5705_v46 = vmul.f32 %v15879_v15, %v5640_v31  ;;  %6210 = vst.msk [vmem:[#allocation2 + $0x58] sm:$0xf] %vm228_vm0, %v5963_v25  ;;  %6213 = vst [vmem:[#allocation2 + $0x5c] sm:$0x1] %v6212_v55  ;;  %v6005_v54 = vor.u32 %v6003_v3, %v16007_v38  ;;  %v12361_v32 = vpack.c.bf16 %v5734_v4, %v5734_v4  ;;  %v6360_v63 = vrot.slane %v6358_v52, 4 }
 0x37f   : > { %v5703_v11 = vmul.f32 %v15879_v15, %v5638_v34  ;;  %v6361_v26 = vshll.u32 %v6279_v17, 16  ;;  %v6367_v48 = vshll.u32 %v6280_v37, 16  ;;  %v6371_v39 = vshrl.u32 %v6280_v37, 16  ;;  %v6281_v8 = vld [vmem:[#allocation2 + $0x18] sm:$0xf] }
 0x380   : > { %v5737_v13 = vsel %vm5672_vm1, %v5640_v31, %v5705_v46  ;;  %v6229_v24 = vsel %vm14371_vm11, %v6005_v54, %v6228_v53  ;;  %v5983_v29 = vshrl.u32 %v12361_v32, 16  ;;  %v16020_v2 = vpop.f32.mrb[28].mxu0  ;;  %v5986_v21 = vshll.u32 %v12361_v32, 16  ;;  %v6282_v25 = vld [vmem:[#allocation2 + $0x1c] sm:$0xf] }
 0x381   : > { %v12364_v18 = vpack.c.bf16 %v5737_v13, %v5737_v13  ;;  %6230 = vst [vmem:[#allocation2 + $0x78] sm:$0xf] %v6229_v24  ;;  %v5735_v42 = vsel %vm5670_vm2, %v5638_v34, %v5703_v11  ;;  %v6363_v27 = vrot.slane %v6361_v26, 5  ;;  %v16022_v14 = vpop.f32.mrb[29].mxu0  ;;  %v6369_v50 = vrot.slane %v6367_v48, 5  ;;  %v14084_v48 = vld [vmem:[%s17868_s2 + $0x8] sm:$0xff]  }
 0x382   : > { %v5985_v19 = vrot.slane %v5983_v29, 7  ;;  %v12362_v17 = vpack.c.bf16 %v5735_v42, %v5735_v42  ;;  %v16024_v58 = vpop.f32.mrb[30].mxu0  ;;  %v6373_v49 = vrot.slane %v6371_v39, 4  ;;  %v6377_v31 = vshll.u32 %v6318_v5, 16  ;;  %v6225_v53 = vld [vmem:[#allocation2 + $0x74] sm:$0x1] }
 0x383   : > { %v6008_v20 = vshrl.u32 %v12364_v18, 16  ;;  %v6364_v6 = vor.u32 %v6363_v27, %v6360_v63  ;;  %v16026_v10 = vpop.f32.mrb[31].mxu0  ;;  %v6011_v34 = vshll.u32 %v12364_v18, 16  ;;  %v6006_v12 = vrot.slane %v16007_v38, 4  ;;  %v6319_v11 = vld [vmem:[#allocation2 + $0x20] sm:$0x1] }
 0x384   : > { %v5988_v51 = vor.u32 %v5986_v21, %v5985_v19  ;;  %v5991_v52 = vshrl.u32 %v12362_v17, 16  ;;  %v5994_v36 = vshll.u32 %v12362_v17, 16  ;;  %v6374_v3 = vor.u32 %v6373_v49, %v6369_v50  ;;  %v16037_v63 = vld [vmem:[#allocation2 + $0x24] sm:$0xf]  ;;  %v9844_v0 = vld [vmem:[#allocation2 + $0x60] sm:$0xf] }
 0x385   : > { %v6010_v43 = vrot.slane %v6008_v20, 7  ;;  %v6365_v56 = vrot.slane %v6364_v6, 4  ;;  %v5989_v55 = vrot.slane %v5985_v19, 4  ;;  %v6379_v38 = vrot.slane %v6377_v31, 5 }
 0x386   : > { %v6222_v9 = vsel %vm14371_vm11, %v5988_v51, %v6221_v30  ;;  %v5993_v60 = vrot.slane %v5991_v52, 7  ;;  %v6375_v46 = vrot.slane %v6374_v3, 4  ;;  %v6382_v24 = vshrl.u32 %v6281_v8, 16 }
 0x387   : > { %v6013_v1 = vor.u32 %v6011_v34, %v6010_v43  ;;  %v6015_v33 = vrot.slane %v6010_v43, 4  ;;  %6223 = vst [vmem:[#allocation2 + $0x6c] sm:$0xf] %v6222_v9  ;;  %v6370_v4 = vsel %vm14364_vm10, %v6365_v56, %v6369_v50  ;;  %v6385_v29 = vshll.u32 %v6281_v8, 16 }
 0x388   : > { %v5996_v37 = vor.u32 %v5994_v36, %v5993_v60  ;;  %v5998_v13 = vrot.slane %v5993_v60, 4  ;;  %v6380_v26 = vsel %vm14364_vm10, %v6375_v46, %v6379_v38  ;;  %v6391_v18 = vshll.u32 %v6282_v25, 16  ;;  %v16237_v59 = vld [vmem:[#allocation2 + $0x78] sm:$0xf] }
 0x389   : > { %v6014_v54 = vsel %vm14383_vm12, %v6006_v12, %v6013_v1  ;;  %v6233_v32 = vsel %vm14317_vm4, %v6015_v33, %v6232_v62  ;;  %v11881_v42 = vcombine.low %v6370_v4, %v6380_v26  ;;  %v6395_v27 = vshrl.u32 %v6282_v25, 16 }
 0x38a   : > { %6231 = vst.msk [vmem:[#allocation2 + $0x7c] sm:$0xf] %vm228_vm0, %v6014_v54  ;;  %6234 = vst [vmem:[#allocation2 + $0x80] sm:$0x1] %v6233_v32  ;;  %v5997_v5 = vsel %vm14383_vm12, %v5989_v55, %v5996_v37  ;;  %v6226_v30 = vsel %vm14317_vm4, %v5998_v13, %v6225_v53  ;;  %v6384_v39 = vrot.slane %v6382_v24, 4  ;;  %v6387_v19 = vrot.slane %v6385_v29, 5 }
 0x38b   : > { %6224 = vst.msk [vmem:[#allocation2 + $0x70] sm:$0xf] %vm228_vm0, %v5997_v5  ;;  %6227 = vst [vmem:[#allocation2 + $0x74] sm:$0x1] %v6226_v30  ;;  %v6393_v21 = vrot.slane %v6391_v18, 5  ;;  %v6401_v20 = vshll.u32 %v6319_v11, 16  ;;  %13138 = vmatmul.mubr.msk.bf16.vlgmr.msra.gmra.mrb[0].mxu1 %vm1331_vm8, %v11881_v42  ;;  %v5643_v6 = vadd.f32 %v15966_v44, %v15877_v22  ;;  %v5641_v50 = vadd.f32 %v15877_v22, %v15969_v35 }
 0x38c   : > { %v6397_v17 = vrot.slane %v6395_v27, 4  ;;  %v5644_v49 = vadd.f32 %v15973_v57, %v15877_v22  ;;  %13170 = vmatpush3.bf16.msra.mxu1 %v15871_v61  ;;  %v6388_v31 = vor.u32 %v6387_v19, %v6384_v39  ;;  %v5642_v43 = vadd.f32 %v15877_v22, %v15975_v7  ;;  %v14085_v44 = vld [vmem:[%s17868_s2 + $0x10] sm:$0xff]   ;;  %v14086_v55 = vld [vmem:[%s17868_s2 + $0x18] sm:$0xff]   ;;  %v16075_v54 = vld [vmem:[#allocation2 + $0x28] sm:$0xf] }
 0x38d   : > { %v6403_v51 = vrot.slane %v6401_v20, 5  ;;  %v6406_v34 = vshrl.u32 %v16037_v63, 16  ;;  %vm5675_vm3 = vcmp.gt.f32.partialorder %v5643_v6, 0.0  ;;  %v5708_v12 = vmul.f32 %v15879_v15, %v5643_v6  ;;  %13171 = vmatprep.subr.bf16.mxu1 %v14084_v48  ;;  %v6242_v32 = vld [vmem:[#allocation2 + $0x90] sm:$0xf]  ;;  %v16083_v20 = vld [vmem:[%s17868_s2 + $0x40] sm:$0xff]  }
 0x38e   : > { %v6398_v52 = vor.u32 %v6397_v17, %v6393_v21  ;;  %vm5673_vm5 = vcmp.gt.f32.partialorder %v5641_v50, 0.0  ;;  %v6389_v35 = vrot.slane %v6388_v31, 4  ;;  %v5706_v61 = vmul.f32 %v15879_v15, %v5641_v50  ;;  %v6235_v29 = vld [vmem:[#allocation2 + $0x84] sm:$0xf]  ;;  %v6246_v18 = vld [vmem:[#allocation2 + $0x98] sm:$0x1] }
 0x38f   : > { %vm5676_vm6 = vcmp.gt.f32.partialorder %v5644_v49, 0.0  ;;  %v5709_v57 = vmul.f32 %v15879_v15, %v5644_v49  ;;  %v5740_v7 = vsel %vm5675_vm3, %v5643_v6, %v5708_v12  ;;  %vm5674_vm7 = vcmp.gt.f32.partialorder %v5642_v43, 0.0  ;;  %v6239_v39 = vld [vmem:[#allocation2 + $0x8c] sm:$0x1]  ;;  %v16086_v31 = vld [vmem:[#allocation2 + $0x30] sm:$0xf] }
 0x390   : > { %v6399_v62 = vrot.slane %v6398_v52, 4  ;;  %v5707_v36 = vmul.f32 %v15879_v15, %v5642_v43  ;;  %v6394_v56 = vsel %vm14364_vm10, %v6389_v35, %v6393_v21  ;;  %v12367_v3 = vpack.c.bf16 %v5740_v7, %v5740_v7  ;;  %13172 = vmatpush3.bf16.msra.mxu1 %v14084_v48 }
 0x391   : > { %v5738_v9 = vsel %vm5673_vm5, %v5641_v50, %v5706_v61  ;;  %v5741_v1 = vsel %vm5676_vm6, %v5644_v49, %v5709_v57  ;;  %13173 = vmatprep.subr.bf16.mxu1 %v14085_v44  ;;  %v6408_v42 = vrot.slane %v6406_v34, 4  ;;  %v6409_v19 = vshll.u32 %v16037_v63, 16  ;;  %v16088_v63 = vld [vmem:[#allocation2 + $0x34] sm:$0xf]  ;;  %v6320_v61 = vld [vmem:[#allocation2 + $0x2c] sm:$0x1] }
 0x392   : > { %v6404_v33 = vsel %vm14364_vm10, %v6399_v62, %v6403_v51  ;;  %v12365_v60 = vpack.c.bf16 %v5738_v9, %v5738_v9  ;;  %v12368_v8 = vpack.c.bf16 %v5741_v1, %v5741_v1  ;;  %v5739_v25 = vsel %vm5674_vm7, %v5642_v43, %v5707_v36 }
 0x393   : > { %v11882_v53 = vcombine.low %v6394_v56, %v6404_v33  ;;  %v6034_v4 = vshrl.u32 %v12367_v3, 16  ;;  %v6037_v46 = vshll.u32 %v12367_v3, 16  ;;  %v12366_v38 = vpack.c.bf16 %v5739_v25, %v5739_v25  ;;  %v6321_v3 = vld [vmem:[#allocation2 + $0x38] sm:$0x1] }
 0x394   : > { %v6017_v37 = vshrl.u32 %v12365_v60, 16  ;;  %v6020_v13 = vshll.u32 %v12365_v60, 16  ;;  %v6042_v11 = vshrl.u32 %v12368_v8, 16  ;;  %v6045_v26 = vshll.u32 %v12368_v8, 16  ;;  %13174 = vmatpush3.bf16.msra.mxu1 %v14085_v44 }
 0x395   : > { %13141 = vmatprep.mubr.msk.bf16.mxu1 %vm1331_vm8, %v11882_v53  ;;  %v6036_v24 = vrot.slane %v6034_v4, 7  ;;  %v6025_v5 = vshrl.u32 %v12366_v38, 16  ;;  %v6028_v30 = vshll.u32 %v12366_v38, 16  ;;  %v6415_v21 = vshll.u32 %v16075_v54, 16  ;;  %13175 = vmatprep.subr.bf16.mxu1 %v14086_v55 }
 0x396   : > { %v6019_v27 = vrot.slane %v6017_v37, 7  ;;  %v6044_v48 = vrot.slane %v6042_v11, 7  ;;  %v6419_v49 = vshrl.u32 %v16075_v54, 16  ;;  %v6411_v57 = vrot.slane %v6409_v19, 5 }
 0x397   : > { %v6039_v17 = vor.u32 %v6037_v46, %v6036_v24  ;;  %v6040_v6 = vrot.slane %v6036_v24, 4  ;;  %v6027_v50 = vrot.slane %v6025_v5, 7  ;;  %v6417_v56 = vrot.slane %v6415_v21, 5  ;;  %v16109_v24 = vld [vmem:[#allocation2 + $0x3c] sm:$0xf] }
 0x398   : > { %v6022_v51 = vor.u32 %v6020_v13, %v6019_v27  ;;  %v6023_v43 = vrot.slane %v6019_v27, 4  ;;  %v6047_v34 = vor.u32 %v6045_v26, %v6044_v48  ;;  %v6049_v52 = vrot.slane %v6044_v48, 4  ;;  %13176 = vmatpush3.bf16.msra.mxu1 %v14086_v55 }
 0x399   : > { %v6243_v12 = vsel %vm14371_vm11, %v6039_v17, %v6242_v32  ;;  %v6030_v44 = vor.u32 %v6028_v30, %v6027_v50  ;;  %v6032_v35 = vrot.slane %v6027_v50, 4  ;;  %13209 = vmatprep.subr.bf16.mxu1 %v16083_v20  ;;  %v6412_v33 = vor.u32 %v6411_v57, %v6408_v42 }
 0x39a   : > { %6244 = vst [vmem:[#allocation2 + $0x90] sm:$0xf] %v6243_v12  ;;  %v6236_v62 = vsel %vm14371_vm11, %v6022_v51, %v6235_v29  ;;  %v6048_v7 = vsel %vm14383_vm12, %v6040_v6, %v6047_v34  ;;  %v6247_v36 = vsel %vm14317_vm4, %v6049_v52, %v6246_v18  ;;  %v6421_v60 = vrot.slane %v6419_v49, 4 }
 0x39b   : > { %6237 = vst [vmem:[#allocation2 + $0x84] sm:$0xf] %v6236_v62  ;;  %6245 = vst.msk [vmem:[#allocation2 + $0x94] sm:$0xf] %vm228_vm0, %v6048_v7  ;;  %v6031_v9 = vsel %vm14383_vm12, %v6023_v43, %v6030_v44  ;;  %v6240_v1 = vsel %vm14317_vm4, %v6032_v35, %v6239_v39  ;;  %v6425_v8 = vshll.u32 %v6320_v61, 16  ;;  %v6430_v25 = vshrl.u32 %v16086_v31, 16 }
 0x39c   : > { %6248 = vst [vmem:[#allocation2 + $0x98] sm:$0x1] %v6247_v36  ;;  %6238 = vst.msk [vmem:[#allocation2 + $0x88] sm:$0xf] %vm228_vm0, %v6031_v9  ;;  %v6433_v55 = vshll.u32 %v16086_v31, 16  ;;  %v6439_v53 = vshll.u32 %v16088_v63, 16  ;;  %v6422_v46 = vor.u32 %v6421_v60, %v6417_v56  ;;  %v5647_v27 = vadd.f32 %v15990_v45, %v15877_v22 }
 0x39d   : > { %6241 = vst [vmem:[#allocation2 + $0x8c] sm:$0x1] %v6240_v1  ;;  %v6413_v4 = vrot.slane %v6412_v33, 4  ;;  %v6443_v38 = vshrl.u32 %v16088_v63, 16  ;;  %v6449_v32 = vshll.u32 %v6321_v3, 16  ;;  %v6427_v37 = vrot.slane %v6425_v8, 5 }
 0x39e   : > { %v6432_v13 = vrot.slane %v6430_v25, 4  ;;  %v6435_v11 = vrot.slane %v6433_v55, 5  ;;  %v6441_v26 = vrot.slane %v6439_v53, 5  ;;  %v6423_v18 = vrot.slane %v6422_v46, 4  ;;  %v16133_v44 = vld [vmem:[#allocation2 + $0x40] sm:$0xf] }
 0x39f   : > { %v6418_v29 = vsel %vm14364_vm10, %v6413_v4, %v6417_v56  ;;  %v6445_v5 = vrot.slane %v6443_v38, 4  ;;  %v6451_v30 = vrot.slane %v6449_v32, 5  ;;  %v5645_v48 = vadd.f32 %v15877_v22, %v15996_v28  ;;  %v6256_v4 = vld [vmem:[#allocation2 + $0xa8] sm:$0xf] }
 0x3a0   : > { %v6436_v42 = vor.u32 %v6435_v11, %v6432_v13  ;;  %v5648_v39 = vadd.f32 %v15998_v41, %v15877_v22  ;;  %v6428_v19 = vsel %vm14364_vm10, %v6423_v18, %v6427_v37  ;;  %v5646_v17 = vadd.f32 %v15877_v22, %v16001_v47 }
 0x3a1   : > { %v6446_v21 = vor.u32 %v6445_v5, %v6441_v26  ;;  %v6454_v6 = vshrl.u32 %v16109_v24, 16  ;;  %v11883_v50 = vcombine.low %v6418_v29, %v6428_v19  ;;  %vm5679_vm9 = vcmp.gt.f32.partialorder %v5647_v27, 0.0 }
 0x3a2   : > { %v6437_v49 = vrot.slane %v6436_v42, 4  ;;  %v5712_v45 = vmul.f32 %v15879_v15, %v5647_v27  ;;  %vm5677_vm13 = vcmp.gt.f32.partialorder %v5645_v48, 0.0  ;;  %v5710_v28 = vmul.f32 %v15879_v15, %v5645_v48  ;;  %v6260_v42 = vld [vmem:[#allocation2 + $0xb0] sm:$0x1] }
 0x3a3   : > { %v6447_v51 = vrot.slane %v6446_v21, 4  ;;  %vm5680_vm14 = vcmp.gt.f32.partialorder %v5648_v39, 0.0  ;;  %13142 = vmatmul.mubr.msk.bf16.gmra.mrb[4].mxu1 %vm1331_vm8, %v11883_v50  ;;  %v5713_v22 = vmul.f32 %v15879_v15, %v5648_v39  ;;  %vm5678_vm1 = vcmp.gt.f32.partialorder %v5646_v17, 0.0 }
 0x3a4   : > { %v6442_v41 = vsel %vm14364_vm10, %v6437_v49, %v6441_v26  ;;  %v5744_v43 = vsel %vm5679_vm9, %v5647_v27, %v5712_v45  ;;  %v5742_v52 = vsel %vm5677_vm13, %v5645_v48, %v5710_v28  ;;  %v5711_v12 = vmul.f32 %v15879_v15, %v5646_v17  ;;  %v6249_v26 = vld [vmem:[#allocation2 + $0x9c] sm:$0xf]  ;;  %v16138_v48 = vld [vmem:[#allocation2 + $0x44] sm:$0x1]  ;;  %v16143_v49 = vld [vmem:[#allocation2 + $0x48] sm:$0xf] }
 0x3a5   : > { %v6452_v47 = vsel %vm14364_vm10, %v6447_v51, %v6451_v30  ;;  %v12371_v34 = vpack.c.bf16 %v5744_v43, %v5744_v43  ;;  %v12369_v61 = vpack.c.bf16 %v5742_v52, %v5742_v52  ;;  %v5745_v57 = vsel %vm5680_vm14, %v5648_v39, %v5713_v22  ;;  %v16147_v43 = vld [vmem:[#allocation2 + $0x4c] sm:$0xf] }
 0x3a6   : > { %v11884_v35 = vcombine.low %v6442_v41, %v6452_v47  ;;  %v6456_v62 = vrot.slane %v6454_v6, 4  ;;  %v12372_v56 = vpack.c.bf16 %v5745_v57, %v5745_v57  ;;  %v5743_v3 = vsel %vm5678_vm1, %v5646_v17, %v5711_v12  ;;  %v6253_v6 = vld [vmem:[#allocation2 + $0xa4] sm:$0x1]  ;;  %v16154_v12 = vld [vmem:[#allocation2 + $0x50] sm:$0x1] }
 0x3a7   : > { %v6068_v7 = vshrl.u32 %v12371_v34, 16  ;;  %v6071_v36 = vshll.u32 %v12371_v34, 16  ;;  %v6051_v9 = vshrl.u32 %v12369_v61, 16  ;;  %v6054_v1 = vshll.u32 %v12369_v61, 16 }
 0x3a8   : > { %13145 = vmatprep.mubr.msk.bf16.mxu1 %vm1331_vm8, %v11884_v35  ;;  %v12370_v33 = vpack.c.bf16 %v5743_v3, %v5743_v3  ;;  %v6457_v60 = vshll.u32 %v16109_v24, 16  ;;  %v6076_v25 = vshrl.u32 %v12372_v56, 16  ;;  %v6079_v55 = vshll.u32 %v12372_v56, 16 }
 0x3a9   : > { %v6070_v8 = vrot.slane %v6068_v7, 7  ;;  %v6463_v53 = vshll.u32 %v16133_v44, 16  ;;  %v6053_v46 = vrot.slane %v6051_v9, 7  ;;  %v6467_v50 = vshrl.u32 %v16133_v44, 16 }
 0x3aa   : > { %v6059_v38 = vshrl.u32 %v12370_v33, 16  ;;  %v6062_v32 = vshll.u32 %v12370_v33, 16  ;;  %v6459_v37 = vrot.slane %v6457_v60, 5  ;;  %v6078_v29 = vrot.slane %v6076_v25, 7  ;;  %v14190_v60 = vld [vmem:[%s17869_s3] ss:$0 sm:$0xff] }
 0x3ab   : > { %v6073_v13 = vor.u32 %v6071_v36, %v6070_v8  ;;  %v6074_v11 = vrot.slane %v6070_v8, 4  ;;  %v6465_v18 = vrot.slane %v6463_v53, 5  ;;  %v6056_v5 = vor.u32 %v6054_v1, %v6053_v46 }
 0x3ac   : > { %v6057_v30 = vrot.slane %v6053_v46, 4  ;;  %v6061_v27 = vrot.slane %v6059_v38, 7  ;;  %v6460_v39 = vor.u32 %v6459_v37, %v6456_v62  ;;  %v6081_v21 = vor.u32 %v6079_v55, %v6078_v29 }
 0x3ad   : > { %v6257_v19 = vsel %vm14371_vm11, %v6073_v13, %v6256_v4  ;;  %v6083_v17 = vrot.slane %v6078_v29, 4  ;;  %v6250_v45 = vsel %vm14371_vm11, %v6056_v5, %v6249_v26  ;;  %v6469_v34 = vrot.slane %v6467_v50, 4 }
 0x3ae   : > { %6258 = vst [vmem:[#allocation2 + $0xa8] sm:$0xf] %v6257_v19  ;;  %v6064_v51 = vor.u32 %v6062_v32, %v6061_v27  ;;  %v6066_v28 = vrot.slane %v6061_v27, 4  ;;  %v6461_v41 = vrot.slane %v6460_v39, 4  ;;  %6251 = vst [vmem:[#allocation2 + $0x9c] sm:$0xf] %v6250_v45  ;;  %v6082_v22 = vsel %vm14383_vm12, %v6074_v11, %v6081_v21 }
 0x3af   : > { %v6261_v47 = vsel %vm14317_vm4, %v6083_v17, %v6260_v42  ;;  %v6473_v52 = vshll.u32 %v16138_v48, 16  ;;  %6259 = vst.msk [vmem:[#allocation2 + $0xac] sm:$0xf] %vm228_vm0, %v6082_v22  ;;  %v6478_v62 = vshrl.u32 %v16143_v49, 16  ;;  %v6470_v7 = vor.u32 %v6469_v34, %v6465_v18  ;;  %v16182_v21 = vld [vmem:[#allocation2 + $0x54] sm:$0xf] }
 0x3b0   : > { %6262 = vst [vmem:[#allocation2 + $0xb0] sm:$0x1] %v6261_v47  ;;  %v6065_v35 = vsel %vm14383_vm12, %v6057_v30, %v6064_v51  ;;  %v6254_v61 = vsel %vm14317_vm4, %v6066_v28, %v6253_v6  ;;  %v6466_v57 = vsel %vm14364_vm10, %v6461_v41, %v6465_v18  ;;  %v6481_v56 = vshll.u32 %v16143_v49, 16  ;;  %v16184_v17 = vld [vmem:[#allocation2 + $0x58] sm:$0xf] }
 0x3b1   : > { %6252 = vst.msk [vmem:[#allocation2 + $0xa0] sm:$0xf] %vm228_vm0, %v6065_v35  ;;  %6255 = vst [vmem:[#allocation2 + $0xa4] sm:$0x1] %v6254_v61  ;;  %v6475_v36 = vrot.slane %v6473_v52, 5  ;;  %v6487_v3 = vshll.u32 %v16147_v43, 16  ;;  %v5651_v8 = vadd.f32 %v14190_v60, %v16020_v2  ;;  %v5649_v4 = vadd.f32 %v14190_v60, %v16022_v14 }
 0x3b2   : > { %v6480_v9 = vrot.slane %v6478_v62, 4  ;;  %v6491_v1 = vshrl.u32 %v16147_v43, 16  ;;  %v6497_v33 = vshll.u32 %v16154_v12, 16  ;;  %v6471_v25 = vrot.slane %v6470_v7, 4  ;;  %v6270_v47 = vld [vmem:[#allocation2 + $0xc0] sm:$0xf] }
 0x3b3   : > { %v6483_v55 = vrot.slane %v6481_v56, 5  ;;  %v6489_v53 = vrot.slane %v6487_v3, 5  ;;  %vm5683_vm2 = vcmp.gt.f32.partialorder %v5651_v8, 0.0  ;;  %v5716_v32 = vmul.f32 %v15879_v15, %v5651_v8  ;;  %v6263_v61 = vld [vmem:[#allocation2 + $0xb4] sm:$0xf] }
 0x3b4   : > { %v6493_v46 = vrot.slane %v6491_v1, 4  ;;  %v6499_v38 = vrot.slane %v6497_v33, 5  ;;  %v6476_v37 = vsel %vm14364_vm10, %v6471_v25, %v6475_v36  ;;  %vm5681_vm3 = vcmp.gt.f32.partialorder %v5649_v4, 0.0  ;;  %v16195_v1 = vld [vmem:[#allocation2 + $0x5c] sm:$0x1] }
 0x3b5   : > { %v6484_v13 = vor.u32 %v6483_v55, %v6480_v9  ;;  %v5714_v11 = vmul.f32 %v15879_v15, %v5649_v4  ;;  %v11885_v26 = vcombine.low %v6466_v57, %v6476_v37  ;;  %v5748_v2 = vsel %vm5683_vm2, %v5651_v8, %v5716_v32  ;;  %v6274_v32 = vld [vmem:[#allocation2 + $0xc8] sm:$0x1] }
 0x3b6   : > { %v6494_v29 = vor.u32 %v6493_v46, %v6489_v53  ;;  %v5652_v18 = vadd.f32 %v14190_v60, %v16024_v58  ;;  %v12375_v30 = vpack.c.bf16 %v5748_v2, %v5748_v2  ;;  %v5650_v42 = vadd.f32 %v14190_v60, %v16026_v10  ;;  %v16200_v46 = vld [vmem:[#allocation2 + $0x60] sm:$0xf] }
 0x3b7   : > { %v6485_v5 = vrot.slane %v6484_v13, 4  ;;  %v5746_v14 = vsel %vm5681_vm3, %v5649_v4, %v5714_v11  ;;  %13146 = vmatmul.mubr.msk.bf16.gmra.mrb[8].mxu1 %vm1331_vm8, %v11885_v26  ;;  %v6502_v57 = vshrl.u32 %v16182_v21, 16  ;;  %v6505_v62 = vshll.u32 %v16182_v21, 16 }
 0x3b8   : > { %v6495_v27 = vrot.slane %v6494_v29, 4  ;;  %v12373_v39 = vpack.c.bf16 %v5746_v14, %v5746_v14  ;;  %vm5684_vm5 = vcmp.gt.f32.partialorder %v5652_v18, 0.0  ;;  %v5717_v19 = vmul.f32 %v15879_v15, %v5652_v18 }
 0x3b9   : > { %v6490_v6 = vsel %vm14364_vm10, %v6485_v5, %v6489_v53  ;;  %v6102_v58 = vshrl.u32 %v12375_v30, 16  ;;  %v6105_v50 = vshll.u32 %v12375_v30, 16  ;;  %vm5682_vm6 = vcmp.gt.f32.partialorder %v5650_v42, 0.0  ;;  %v16206_v5 = vld [vmem:[#allocation2 + $0x64] sm:$0xf] }
 0x3ba   : > { %v6500_v10 = vsel %vm14364_vm10, %v6495_v27, %v6499_v38  ;;  %v6085_v45 = vshrl.u32 %v12373_v39, 16  ;;  %v6088_v51 = vshll.u32 %v12373_v39, 16  ;;  %v5749_v28 = vsel %vm5684_vm5, %v5652_v18, %v5717_v19  ;;  %v6267_v30 = vld [vmem:[#allocation2 + $0xbc] sm:$0x1]  ;;  %v16208_v39 = vld [vmem:[#allocation2 + $0x68] sm:$0x1] }
 0x3bb   : > { %v11886_v41 = vcombine.low %v6490_v6, %v6500_v10  ;;  %v6104_v22 = vrot.slane %v6102_v58, 7  ;;  %v12376_v34 = vpack.c.bf16 %v5749_v28, %v5749_v28  ;;  %v5715_v52 = vmul.f32 %v15879_v15, %v5650_v42  ;;  %v16216_v10 = vld [vmem:[#allocation2 + $0x6c] sm:$0xf] }
 0x3bc   : > { %v6087_v35 = vrot.slane %v6085_v45, 7  ;;  %v6511_v7 = vshll.u32 %v16184_v17, 16  ;;  %v6504_v8 = vrot.slane %v6502_v57, 4  ;;  %v6507_v4 = vrot.slane %v6505_v62, 5 }
 0x3bd   : > { %13149 = vmatprep.mubr.msk.bf16.mxu1 %vm1331_vm8, %v11886_v41  ;;  %v6107_v36 = vor.u32 %v6105_v50, %v6104_v22  ;;  %v6108_v56 = vrot.slane %v6104_v22, 4  ;;  %v6110_v3 = vshrl.u32 %v12376_v34, 16  ;;  %v6113_v9 = vshll.u32 %v12376_v34, 16 }
 0x3be   : > { %v6090_v33 = vor.u32 %v6088_v51, %v6087_v35  ;;  %v6091_v60 = vrot.slane %v6087_v35, 4  ;;  %v5747_v15 = vsel %vm5682_vm6, %v5650_v42, %v5715_v52  ;;  %v6513_v37 = vrot.slane %v6511_v7, 5  ;;  %v16224_v7 = vld [vmem:[#allocation2 + $0x70] sm:$0xf] }
 0x3bf   : > { %v6271_v25 = vsel %vm14371_vm11, %v6107_v36, %v6270_v47  ;;  %v6112_v55 = vrot.slane %v6110_v3, 7  ;;  %v12374_v53 = vpack.c.bf16 %v5747_v15, %v5747_v15  ;;  %v6515_v13 = vshrl.u32 %v16184_v17, 16 }
 0x3c0   : > { %6272 = vst [vmem:[#allocation2 + $0xc0] sm:$0xf] %v6271_v25  ;;  %v6264_v38 = vsel %vm14371_vm11, %v6090_v33, %v6263_v61  ;;  %v6521_v11 = vshll.u32 %v16195_v1, 16  ;;  %v6508_v14 = vor.u32 %v6507_v4, %v6504_v8  ;;  %v6526_v16 = vshrl.u32 %v16200_v46, 16  ;;  %v16230_v33 = vld [vmem:[#allocation2 + $0x74] sm:$0x1] }
 0x3c1   : > { %6265 = vst [vmem:[#allocation2 + $0xb4] sm:$0xf] %v6264_v38  ;;  %v6115_v26 = vor.u32 %v6113_v9, %v6112_v55  ;;  %v6117_v29 = vrot.slane %v6112_v55, 4  ;;  %v6093_v2 = vshrl.u32 %v12374_v53, 16  ;;  %v6096_v18 = vshll.u32 %v12374_v53, 16 }
 0x3c2   : > { %v6517_v42 = vrot.slane %v6515_v13, 4  ;;  %v6523_v27 = vrot.slane %v6521_v11, 5  ;;  %v6529_v50 = vshll.u32 %v16200_v46, 16  ;;  %v6509_v45 = vrot.slane %v6508_v14, 4  ;;  %v16240_v38 = vld [vmem:[#allocation2 + $0x7c] sm:$0xf] }
 0x3c3   : > { %v6116_v19 = vsel %vm14383_vm12, %v6108_v56, %v6115_v26  ;;  %v6275_v6 = vsel %vm14317_vm4, %v6117_v29, %v6274_v32  ;;  %v6095_v58 = vrot.slane %v6093_v2, 7  ;;  %v6528_v28 = vrot.slane %v6526_v16, 4  ;;  %v16244_v26 = vld [vmem:[#allocation2 + $0x80] sm:$0x1] }
 0x3c4   : > { %6273 = vst.msk [vmem:[#allocation2 + $0xc4] sm:$0xf] %vm228_vm0, %v6116_v19  ;;  %6276 = vst [vmem:[#allocation2 + $0xc8] sm:$0x1] %v6275_v6  ;;  %v6518_v51 = vor.u32 %v6517_v42, %v6513_v37  ;;  %v6535_v41 = vshll.u32 %v16206_v5, 16  ;;  %v6531_v34 = vrot.slane %v6529_v50, 5  ;;  %v6514_v35 = vsel %vm14364_vm10, %v6509_v45, %v6513_v37 }
 0x3c5   : > { %v6098_v22 = vor.u32 %v6096_v18, %v6095_v58  ;;  %v6100_v47 = vrot.slane %v6095_v58, 4  ;;  %v6539_v52 = vshrl.u32 %v16206_v5, 16  ;;  %v6545_v62 = vshll.u32 %v16208_v39, 16  ;;  %v16251_v19 = vld [vmem:[#allocation2 + $0x84] sm:$0xf] }
 0x3c6   : > { %v6519_v61 = vrot.slane %v6518_v51, 4  ;;  %v6537_v57 = vrot.slane %v6535_v41, 5  ;;  %v6532_v3 = vor.u32 %v6531_v34, %v6528_v28  ;;  %v6550_v25 = vshrl.u32 %v16216_v10, 16 }
 0x3c7   : > { %v6099_v36 = vsel %vm14383_vm12, %v6091_v60, %v6098_v22  ;;  %v6268_v56 = vsel %vm14317_vm4, %v6100_v47, %v6267_v30  ;;  %v6541_v9 = vrot.slane %v6539_v52, 4  ;;  %v6547_v8 = vrot.slane %v6545_v62, 5  ;;  %v16257_v47 = vld [vmem:[#allocation2 + $0x88] sm:$0xf] }
 0x3c8   : > { %6266 = vst.msk [vmem:[#allocation2 + $0xb8] sm:$0xf] %vm228_vm0, %v6099_v36  ;;  %6269 = vst [vmem:[#allocation2 + $0xbc] sm:$0x1] %v6268_v56  ;;  %v6524_v15 = vsel %vm14364_vm10, %v6519_v61, %v6523_v27  ;;  %v6553_v55 = vshll.u32 %v16216_v10, 16  ;;  %v6533_v23 = vrot.slane %v6532_v3, 4 }
 0x3c9   : > { %v11887_v60 = vcombine.low %v6514_v35, %v6524_v15  ;;  %v6542_v53 = vor.u32 %v6541_v9, %v6537_v57  ;;  %v6559_v4 = vshll.u32 %v16224_v7, 16  ;;  %v6552_v32 = vrot.slane %v6550_v25, 4  ;;  %v16264_v56 = vld [vmem:[#allocation2 + $0x8c] sm:$0x1] }
 0x3ca   : > { %v6555_v37 = vrot.slane %v6553_v55, 5  ;;  %v6563_v13 = vshrl.u32 %v16224_v7, 16  ;;  %v6569_v11 = vshll.u32 %v16230_v33, 16  ;;  %v6538_v29 = vsel %vm14364_vm10, %v6533_v23, %v6537_v57  ;;  %v16268_v55 = vld [vmem:[#allocation2 + $0x90] sm:$0xf] }
 0x3cb   : > { %13150 = vmatmul.mubr.msk.bf16.gmra.mrb[12].mxu1 %vm1331_vm8, %v11887_v60  ;;  %v6543_v2 = vrot.slane %v6542_v53, 4  ;;  %v6561_v18 = vrot.slane %v6559_v4, 5  ;;  %v6574_v30 = vshrl.u32 %v16237_v59, 16  ;;  %v6577_v16 = vshll.u32 %v16237_v59, 16 }
 0x3cc   : > { %v6556_v14 = vor.u32 %v6555_v37, %v6552_v32  ;;  %v6565_v42 = vrot.slane %v6563_v13, 4  ;;  %v6571_v27 = vrot.slane %v6569_v11, 5  ;;  %v6583_v50 = vshll.u32 %v16240_v38, 16  ;;  %v16273_v32 = vld [vmem:[#allocation2 + $0x94] sm:$0xf] }
 0x3cd   : > { %v6548_v6 = vsel %vm14364_vm10, %v6543_v2, %v6547_v8  ;;  %v6576_v58 = vrot.slane %v6574_v30, 4  ;;  %v6587_v45 = vshrl.u32 %v16240_v38, 16  ;;  %v6579_v22 = vrot.slane %v6577_v16, 5  ;;  %v16276_v30 = vld [vmem:[#allocation2 + $0x98] sm:$0x1] }
 0x3ce   : > { %v11888_v51 = vcombine.low %v6538_v29, %v6548_v6  ;;  %v6557_v28 = vrot.slane %v6556_v14, 4  ;;  %v6566_v41 = vor.u32 %v6565_v42, %v6561_v18  ;;  %v6585_v34 = vrot.slane %v6583_v50, 5  ;;  %v16279_v42 = vld [vmem:[#allocation2 + $0x9c] sm:$0xf]  ;;  %v16288_v50 = vld [vmem:[#allocation2 + $0xa0] sm:$0xf] }
 0x3cf   : > { %v6589_v52 = vrot.slane %v6587_v45, 4  ;;  %v6593_v35 = vshll.u32 %v16244_v26, 16  ;;  %v6598_v61 = vshrl.u32 %v16251_v19, 16  ;;  %v6580_v36 = vor.u32 %v6579_v22, %v6576_v58 }
 0x3d0   : > { %13153 = vmatprep.mubr.msk.bf16.mxu1 %vm1331_vm8, %v11888_v51  ;;  %v6562_v57 = vsel %vm14364_vm10, %v6557_v28, %v6561_v18  ;;  %v6567_v62 = vrot.slane %v6566_v41, 4  ;;  %v6601_v3 = vshll.u32 %v16251_v19, 16  ;;  %v6607_v25 = vshll.u32 %v16257_v47, 16 }
 0x3d1   : > { %v6590_v9 = vor.u32 %v6589_v52, %v6585_v34  ;;  %v6595_v15 = vrot.slane %v6593_v35, 5  ;;  %v6600_v8 = vrot.slane %v6598_v61, 4  ;;  %v6581_v23 = vrot.slane %v6580_v36, 4 }
 0x3d2   : > { %v6572_v60 = vsel %vm14364_vm10, %v6567_v62, %v6571_v27  ;;  %v6603_v53 = vrot.slane %v6601_v3, 5  ;;  %v6611_v4 = vshrl.u32 %v16257_v47, 16  ;;  %v6609_v11 = vrot.slane %v6607_v25, 5  ;;  %v16299_v25 = vld [vmem:[#allocation2 + $0xa4] sm:$0x1] }
 0x3d3   : > { %v11889_v37 = vcombine.low %v6562_v57, %v6572_v60  ;;  %v6591_v13 = vrot.slane %v6590_v9, 4  ;;  %v6617_v29 = vshll.u32 %v16264_v56, 16  ;;  %v6622_v14 = vshrl.u32 %v16268_v55, 16  ;;  %v16291_v57 = vld [vmem:[#allocation2 + $0xa8] sm:$0xf] }
 0x3d4   : > { %v6604_v2 = vor.u32 %v6603_v53, %v6600_v8  ;;  %v6613_v18 = vrot.slane %v6611_v4, 4  ;;  %v6586_v27 = vsel %vm14364_vm10, %v6581_v23, %v6585_v34  ;;  %v6625_v6 = vshll.u32 %v16268_v55, 16 }
 0x3d5   : > { %13154 = vmatmul.mubr.msk.bf16.gmra.mrb[16].mxu1 %vm1331_vm8, %v11889_v37  ;;  %v6596_v16 = vsel %vm14364_vm10, %v6591_v13, %v6595_v15  ;;  %v6631_v58 = vshll.u32 %v16273_v32, 16  ;;  %v6624_v41 = vrot.slane %v6622_v14, 4  ;;  %v6619_v22 = vrot.slane %v6617_v29, 5  ;;  %v16305_v13 = vld [vmem:[#allocation2 + $0xac] sm:$0xf] }
 0x3d6   : > { %v11890_v45 = vcombine.low %v6586_v27, %v6596_v16  ;;  %v6605_v51 = vrot.slane %v6604_v2, 4  ;;  %v6614_v28 = vor.u32 %v6613_v18, %v6609_v11  ;;  %v6627_v52 = vrot.slane %v6625_v6, 5 }
 0x3d7   : > { %v6633_v35 = vrot.slane %v6631_v58, 5  ;;  %v6635_v61 = vshrl.u32 %v16273_v32, 16  ;;  %v6641_v62 = vshll.u32 %v16276_v30, 16  ;;  %v6646_v36 = vshrl.u32 %v16279_v42, 16 }
 0x3d8   : > { %13157 = vmatprep.mubr.msk.bf16.mxu1 %vm1331_vm8, %v11890_v45  ;;  %v6615_v34 = vrot.slane %v6614_v28, 4  ;;  %v6649_v3 = vshll.u32 %v16279_v42, 16  ;;  %v6610_v9 = vsel %vm14364_vm10, %v6605_v51, %v6609_v11  ;;  %v6628_v15 = vor.u32 %v6627_v52, %v6624_v41  ;;  %v16310_v51 = vld [vmem:[#allocation2 + $0xb0] sm:$0x1] }
 0x3d9   : > { %v6637_v8 = vrot.slane %v6635_v61, 4  ;;  %v6655_v60 = vshll.u32 %v16288_v50, 16  ;;  %v6648_v53 = vrot.slane %v6646_v36, 4  ;;  %v6659_v37 = vshrl.u32 %v16288_v50, 16  ;;  %v16316_v36 = vld [vmem:[#allocation2 + $0xb4] sm:$0xf] }
 0x3da   : > { %v6620_v23 = vsel %vm14364_vm10, %v6615_v34, %v6619_v22  ;;  %v6651_v4 = vrot.slane %v6649_v3, 5  ;;  %v6629_v2 = vrot.slane %v6628_v15, 4  ;;  %v6665_v16 = vshll.u32 %v16299_v25, 16 }
 0x3db   : > { %v11891_v29 = vcombine.low %v6610_v9, %v6620_v23  ;;  %v6638_v18 = vor.u32 %v6637_v8, %v6633_v35  ;;  %v6657_v14 = vrot.slane %v6655_v60, 5  ;;  %v6661_v27 = vrot.slane %v6659_v37, 4  ;;  %v16321_v8 = vld [vmem:[#allocation2 + $0xb8] sm:$0xf] }
 0x3dc   : > { %v6652_v11 = vor.u32 %v6651_v4, %v6648_v53  ;;  %v6670_v6 = vshrl.u32 %v16291_v57, 16  ;;  %v6643_v45 = vrot.slane %v6641_v62, 5  ;;  %v6673_v28 = vshll.u32 %v16291_v57, 16 }
 0x3dd   : > { %13158 = vmatmul.mubr.msk.bf16.gmra.mrb[20].mxu1 %vm1331_vm8, %v11891_v29  ;;  %v6639_v58 = vrot.slane %v6638_v18, 4  ;;  %v6679_v41 = vshll.u32 %v16305_v13, 16  ;;  %v6634_v22 = vsel %vm14364_vm10, %v6629_v2, %v6633_v35  ;;  %v6662_v61 = vor.u32 %v6661_v27, %v6657_v14  ;;  %v16324_v29 = vld [vmem:[#allocation2 + $0xbc] sm:$0x1] }
 0x3de   : > { %v6653_v52 = vrot.slane %v6652_v11, 4  ;;  %v6672_v34 = vrot.slane %v6670_v6, 4  ;;  %v6675_v9 = vrot.slane %v6673_v28, 5  ;;  %v6683_v62 = vshrl.u32 %v16305_v13, 16 }
 0x3df   : > { %v6644_v3 = vsel %vm14364_vm10, %v6639_v58, %v6643_v45  ;;  %v6681_v15 = vrot.slane %v6679_v41, 5  ;;  %v6663_v23 = vrot.slane %v6662_v61, 4  ;;  %v6667_v53 = vrot.slane %v6665_v16, 5 }
 0x3e0   : > { %v11892_v60 = vcombine.low %v6634_v22, %v6644_v3  ;;  %v6689_v4 = vshll.u32 %v16310_v51, 16  ;;  %v6676_v35 = vor.u32 %v6675_v9, %v6672_v34  ;;  %v6685_v37 = vrot.slane %v6683_v62, 4 }
 0x3e1   : > { %v6694_v2 = vshrl.u32 %v16316_v36, 16  ;;  %v6697_v18 = vshll.u32 %v16316_v36, 16  ;;  %v6658_v11 = vsel %vm14364_vm10, %v6653_v52, %v6657_v14  ;;  %v6668_v27 = vsel %vm14364_vm10, %v6663_v23, %v6667_v53  ;;  %v14191_v53 = vld [vmem:[#allocation2] sm:$0xf] }
 0x3e2   : > { %13161 = vmatprep.mubr.msk.bf16.mxu1 %vm1331_vm8, %v11892_v60  ;;  %v6703_v16 = vshll.u32 %v16321_v8, 16  ;;  %v6707_v6 = vshrl.u32 %v16321_v8, 16  ;;  %v11893_v58 = vcombine.low %v6658_v11, %v6668_v27  ;;  %v6677_v45 = vrot.slane %v6676_v35, 4  ;;  %v16341_v35 = vld [vmem:[#allocation2 + $0x4] sm:$0xf] }
 0x3e3   : > { %v6686_v28 = vor.u32 %v6685_v37, %v6681_v15  ;;  %v6696_v41 = vrot.slane %v6694_v2, 4  ;;  %v6699_v22 = vrot.slane %v6697_v18, 5  ;;  %v6713_v3 = vshll.u32 %v16324_v29, 16 }
 0x3e4   : > { %v6705_v61 = vrot.slane %v6703_v16, 5  ;;  %v6709_v34 = vrot.slane %v6707_v6, 4  ;;  %v6691_v14 = vrot.slane %v6689_v4, 5  ;;  %v6682_v60 = vsel %vm14364_vm10, %v6677_v45, %v6681_v15 }
 0x3e5   : > { %13162 = vmatmul.mubr.msk.bf16.gmra.mrb[24].mxu1 %vm1331_vm8, %v11893_v58  ;;  %v6687_v9 = vrot.slane %v6686_v28, 4  ;;  %v6700_v52 = vor.u32 %v6699_v22, %v6696_v41  ;;  %v11916_v37 = vcombine.low %v14191_v53, %v16341_v35  ;;  %v6715_v27 = vrot.slane %v6713_v3, 5 }
 0x3e6   : > { %v6710_v62 = vor.u32 %v6709_v34, %v6705_v61  ;;  %v11923_v4 = vcombine.low %v16182_v21, %v16184_v17  ;;  %v11924_v16 = vcombine.low %v16200_v46, %v16206_v5  ;;  %v11925_v15 = vcombine.low %v16216_v10, %v16224_v7  ;;  %v7320_v46 = vld [vmem:[#allocation2] sm:$0xe] }
 0x3e7   : > { %v6692_v23 = vsel %vm14364_vm10, %v6687_v9, %v6691_v14  ;;  %v6701_v18 = vrot.slane %v6700_v52, 4  ;;  %v11926_v6 = vcombine.low %v16237_v59, %v16240_v38  ;;  %v11927_v28 = vcombine.low %v16251_v19, %v16257_v47  ;;  %v16369_v14 = vld [vmem:[#allocation2 + $0x10] sm:$0xf]  ;;  %v7330_v9 = vld [vmem:[#allocation2 + $0x78] sm:$0xe] }
 0x3e8   : > { %v11894_v2 = vcombine.low %v6682_v60, %v6692_v23  ;;  %v6711_v11 = vrot.slane %v6710_v62, 4  ;;  %v14088_v62 = vld [vmem:[%s17868_s2 + $0x48] sm:$0xff]   ;;  %v14195_v60 = vld [vmem:[#allocation2 + $0x18] sm:$0xf]  ;;  %v16375_v23 = vld [vmem:[#allocation2 + $0x1c] sm:$0xf]  ;;  %v17990_v21 = vcombine.low %v16268_v55, %v16273_v32  ;;  %v17991_v59 = vcombine.low %v16279_v42, %v16288_v50 }
 0x3e9   : > { %v6706_v58 = vsel %vm14364_vm10, %v6701_v18, %v6705_v61  ;;  %v14193_v61 = vld [vmem:[#allocation2 + $0xc] sm:$0xf]  ;;  %v11918_v53 = vcombine.low %v14195_v60, %v16375_v23  ;;  %v7328_v18 = vld [vmem:[#allocation2 + $0x60] sm:$0xe]  ;;  %v7422_v60 = vrot.slane %v16195_v1, 5  ;;  %v7377_v55 = vrot.slane %v16369_v14, 5 }
 0x3ea   : > { %13165 = vmatprep.mubr.msk.bf16.mxu1 %vm1331_vm8, %v11894_v2  ;;  %v6716_v45 = vsel %vm14364_vm10, %v6711_v11, %v6715_v27  ;;  %v11917_v52 = vcombine.low %v14193_v61, %v16369_v14  ;;  %v7327_v2 = vld [vmem:[#allocation2 + $0x54] sm:$0xe]  ;;  %v17993_v42 = vcombine.low %v16316_v36, %v16321_v8 }
 0x3eb   : > { %v11895_v22 = vcombine.low %v6706_v58, %v6716_v45  ;;  %v14091_v11 = vld [vmem:[%s17868_s2 + $0x50] sm:$0xff]   ;;  %v11959_v27 = vrot.slane %v7327_v2, 9  ;;  %v7426_v58 = vrot.slane %v16206_v5, 5  ;;  %v7329_v45 = vld [vmem:[#allocation2 + $0x6c] sm:$0xe]  ;;  %v7429_v2 = vrot.slane %v16208_v39, 5 }
 0x3ec   : > { %v11961_v1 = vrot.slane %v7329_v45, 9  ;;  %v14198_v5 = vld [vmem:[#allocation2 + $0x8] sm:$0x1] }
 0x3ed   : > { %13166 = vmatmul.mubr.msk.bf16.gmra.mrb[28].mxu1 %vm1331_vm8, %v11895_v22  ;;  %v14197_v22 = vld [vmem:[#allocation2 + $0x24] sm:$0xf]  ;;  %v7428_v34 = vrot.slane %v7426_v58, 4  ;;  %v7373_v10 = vrot.slane %v14198_v5, 5  ;;  %v14203_v5 = vld [vmem:[#allocation2 + $0x2c] sm:$0x1] }
 0x3ee   : > { %13177 = vmatprep.mubr.msk.bf16.mxu1 %vm1331_vm8, %v11916_v37  ;;  %v7419_v37 = vrot.slane %v16184_v17, 5  ;;  %v11919_v61 = vcombine.low %v14197_v22, %v16075_v54  ;;  %v7370_v17 = vrot.slane %v16341_v35, 5 }
 0x3ef   : > { %v16411_v39 = vsel %vm14833_vm15, %v7428_v34, %v7429_v2  ;;  %v7447_v2 = vrot.slane %v16257_v47, 5 }
 0x3f0   : > { %v16392_v3 = vsel %vm14833_vm15, %v11959_v27, %v7419_v37  ;;  %v7331_v27 = vld [vmem:[#allocation2 + $0x84] sm:$0xe] }
 0x3f5   : > { %13178 = vmatmul.mubr.msk.bf16.vlgmr.msra.gmra.mrb[0].mxu1 %vm1331_vm8, %v11917_v52  ;;  %v7421_v52 = vrot.slane %v7419_v37, 4  ;;  %v7440_v37 = vrot.slane %v16240_v38, 5  ;;  %v17992_v38 = vcombine.low %v16291_v57, %v16305_v13 }
 0x3f6   : > { %13210 = vmatpush3.bf16.msra.mxu1 %v16083_v20  ;;  %13181 = vmatprep.mubr.msk.bf16.mxu1 %vm1331_vm8, %v11918_v53  ;;  %v11960_v20 = vrot.slane %v7328_v18, 9  ;;  %v11920_v53 = vcombine.low %v16086_v31, %v16088_v63  ;;  %v7433_v18 = vrot.slane %v16224_v7, 5  ;;  %v14096_v31 = vld [vmem:[%s17868_s2 + $0x58] sm:$0xff]   ;;  %v7334_v63 = vld [vmem:[#allocation2 + $0xa8] sm:$0xe]  ;;  %v11952_v7 = vrot.slane %v7320_v46, 9 }
 0x3f7   : > { %13211 = vmatprep.subr.bf16.mxu1 %v14088_v62  ;;  %v16397_v41 = vsel %vm14833_vm15, %v7421_v52, %v7422_v60  ;;  %v7436_v52 = vrot.slane %v16230_v33, 5  ;;  %v7332_v60 = vld [vmem:[#allocation2 + $0x90] sm:$0xe]  ;;  %v11963_v33 = vrot.slane %v7331_v27, 9  ;;  %v7333_v27 = vld [vmem:[#allocation2 + $0x9c] sm:$0xe] }
 0x3f8   : > { %v16401_v54 = vsel %vm14833_vm15, %v11960_v20, %v7426_v58  ;;  %v16418_v45 = vsel %vm14833_vm15, %v11961_v1, %v7433_v18  ;;  %v7435_v22 = vrot.slane %v7433_v18, 4  ;;  %v7443_v20 = vrot.slane %v16244_v26, 5 }
 0x3f9   : > { %v7450_v18 = vrot.slane %v16264_v56, 5  ;;  %v11921_v56 = vcombine.low %v16109_v24, %v16133_v44  ;;  %v7457_v58 = vrot.slane %v16276_v30, 5  ;;  %v16453_v26 = vsel %vm14833_vm15, %v11963_v33, %v7447_v2  ;;  %v7335_v33 = vld [vmem:[#allocation2 + $0xb4] sm:$0xe] }
 0x3fa   : > { %13212 = vmatpush3.bf16.msra.mxu1 %v14088_v62  ;;  %v11962_v62 = vrot.slane %v7330_v9, 9  ;;  %v7442_v9 = vrot.slane %v7440_v37, 4  ;;  %v16431_v1 = vsel %vm14833_vm15, %v7435_v22, %v7436_v52  ;;  %v7461_v24 = vrot.slane %v16288_v50, 5  ;;  %v7321_v50 = vld [vmem:[#allocation2 + $0xc] sm:$0xe] }
 0x3fb   : > { %13213 = vmatprep.subr.bf16.mxu1 %v14091_v11  ;;  %v7371_v19 = vsel %vm14833_vm15, %v11952_v7, %v7370_v17  ;;  %v7324_v7 = vld [vmem:[#allocation2 + $0x30] sm:$0xe] }
 0x3fc   : > { %v16424_v34 = vsel %vm14833_vm15, %v11962_v62, %v7440_v37  ;;  %v16438_v62 = vld [vmem:[%s17868_s2 + $0x60] sm:$0xff]   ;;  %v11964_v37 = vrot.slane %v7332_v60, 9 }
 0x3fd   : > { %13182 = vmatmul.mubr.msk.bf16.gmra.mrb[4].mxu1 %vm1331_vm8, %v11919_v61  ;;  %v7454_v61 = vrot.slane %v16273_v32, 5  ;;  %v7384_v32 = vrot.slane %v16375_v23, 5  ;;  %v14201_v23 = vld [vmem:[#allocation2 + $0x28] sm:$0xf] }
 0x3fe   : > { %13185 = vmatprep.mubr.msk.bf16.mxu1 %vm1331_vm8, %v11920_v53  ;;  %13214 = vmatpush3.bf16.msra.mxu1 %v14091_v11  ;;  %v16444_v11 = vsel %vm14833_vm15, %v7442_v9, %v7443_v20  ;;  %v7449_v53 = vrot.slane %v7447_v2, 4  ;;  %v11965_v20 = vrot.slane %v7333_v27, 9  ;;  %v7468_v2 = vrot.slane %v16305_v13, 5  ;;  %v14199_v13 = vld [vmem:[#allocation2 + $0x14] sm:$0x1] }
 0x3ff   : > { %13215 = vmatprep.subr.bf16.mxu1 %v14096_v31  ;;  %v11986_v22 = vcombine.low %v16424_v34, %v16444_v11  ;;  %v7456_v52 = vrot.slane %v7454_v61, 4  ;;  %v16461_v60 = vsel %vm14833_vm15, %v11964_v37, %v7454_v61  ;;  %v7463_v61 = vrot.slane %v7461_v24, 4 }
 0x400   : > { %v16457_v9 = vsel %vm14833_vm15, %v7449_v53, %v7450_v18  ;;  %v7464_v53 = vrot.slane %v16299_v25, 5  ;;  %v11922_v37 = vcombine.low %v16143_v49, %v16147_v43  ;;  %v7470_v44 = vrot.slane %v7468_v2, 4 }
 0x401   : > { %v16468_v30 = vsel %vm14833_vm15, %v7456_v52, %v7457_v58  ;;  %v7471_v58 = vrot.slane %v16310_v51, 5  ;;  %v7475_v27 = vrot.slane %v16321_v8, 5  ;;  %v16482_v52 = vsel %vm14833_vm15, %v11965_v20, %v7461_v24  ;;  %v14202_v8 = vld [vmem:[#allocation2 + $0x34] sm:$0xf]  ;;  %v16738_v20 = vld [vmem:[#allocation2 + $0xa0] sm:$0xf] }
 0x402   : > { %13216 = vmatpush3.bf16.msra.mxu1 %v14096_v31  ;;  %v11966_v31 = vrot.slane %v7334_v63, 9  ;;  %v16486_v18 = vsel %vm14833_vm15, %v7463_v61, %v7464_v53  ;;  %v11967_v49 = vrot.slane %v7335_v33, 9  ;;  %v7478_v24 = vrot.slane %v16324_v29, 5  ;;  %v8953_v61 = vld [vmem:[#allocation2 + $0x90] sm:$0xe] }
 0x403   : > { %13249 = vmatprep.subr.bf16.mxu1 %v16438_v62  ;;  %v16497_v63 = vsel %vm14833_vm15, %v7470_v44, %v7471_v58  ;;  %v7372_v29 = vrot.slane %v7370_v17, 4  ;;  %v7386_v57 = vrot.slane %v7384_v32, 4  ;;  %v11953_v44 = vrot.slane %v7321_v50, 9  ;;  %v7323_v17 = vld [vmem:[#allocation2 + $0x24] sm:$0xe] }
 0x404   : > { %v16490_v25 = vsel %vm14833_vm15, %v11966_v31, %v7468_v2  ;;  %v16504_v2 = vsel %vm14833_vm15, %v11967_v49, %v7475_v27  ;;  %v7391_v53 = vrot.slane %v14201_v23, 5  ;;  %v16592_v23 = vld [vmem:[%s17868_s2 + $0x80] sm:$0xff]   ;;  %v16756_v51 = vld [vmem:[#allocation2 + $0xac] sm:$0xf] }
 0x405   : > { %13186 = vmatmul.mubr.msk.bf16.gmra.mrb[8].mxu1 %vm1331_vm8, %v11921_v56  ;;  %v7477_v56 = vrot.slane %v7475_v27, 4  ;;  %v7374_v47 = vsel %vm14833_vm15, %v7372_v29, %v7373_v10  ;;  %v7378_v58 = vsel %vm14833_vm15, %v11953_v44, %v7377_v55  ;;  %v7394_v10 = vrot.slane %v14203_v5, 5  ;;  %v14204_v29 = vld [vmem:[#allocation2 + $0x38] sm:$0x1]  ;;  %v7326_v44 = vld [vmem:[#allocation2 + $0x48] sm:$0xe] }
 0x406   : > { %13189 = vmatprep.mubr.msk.bf16.mxu1 %vm1331_vm8, %v11922_v37  ;;  %v11976_v35 = vcombine.low %v7371_v19, %v7374_v47  ;;  %v7398_v37 = vrot.slane %v14202_v8, 5  ;;  %v11955_v19 = vrot.slane %v7323_v17, 9  ;;  %v17994_v17 = vcombine.low %v16392_v3, %v16397_v41 }
 0x407   : > { %v16508_v33 = vsel %vm14833_vm15, %v7477_v56, %v7478_v24  ;;  %v14101_v56 = vld [vmem:[%s17868_s2 + $0x68] sm:$0xff]  }
 0x408   : > { %v7400_v46 = vrot.slane %v7398_v37, 4 }
 0x40d   : > { %13190 = vmatmul.mubr.msk.bf16.gmra.mrb[12].mxu1 %vm1331_vm8, %v11923_v4  ;;  %v7379_v4 = vrot.slane %v7377_v55, 4  ;;  %v14205_v55 = vld [vmem:[#allocation2 + $0x40] sm:$0xf] }
 0x40e   : > { %13193 = vmatprep.mubr.msk.bf16.mxu1 %vm1331_vm8, %v11924_v16  ;;  %v7380_v16 = vrot.slane %v14199_v13, 5  ;;  %v14103_v13 = vld [vmem:[%s17868_s2 + $0x78] sm:$0xff]  }
 0x410   : > { %v7381_v14 = vsel %vm14833_vm15, %v7379_v4, %v7380_v16  ;;  %v7412_v4 = vrot.slane %v16147_v43, 5  ;;  %v7408_v43 = vrot.slane %v16138_v48, 5 }
 0x411   : > { %v11977_v27 = vcombine.low %v7378_v58, %v7381_v14  ;;  %v7415_v14 = vrot.slane %v16154_v12, 5 }
 0x415   : > { %13194 = vmatmul.mubr.msk.bf16.gmra.mrb[16].mxu1 %vm1331_vm8, %v11925_v15  ;;  %v7322_v15 = vld [vmem:[#allocation2 + $0x18] sm:$0xe] }
 0x416   : > { %13197 = vmatprep.mubr.msk.bf16.mxu1 %vm1331_vm8, %v11926_v6  ;;  %v14200_v6 = vld [vmem:[#allocation2 + $0x20] sm:$0x1]  ;;  %v11954_v31 = vrot.slane %v7322_v15, 9 }
 0x418   : > { %v7385_v49 = vsel %vm14833_vm15, %v11954_v31, %v7384_v32  ;;  %v7405_v32 = vrot.slane %v14205_v55, 5  ;;  %v16631_v55 = vld [vmem:[#allocation2 + $0x58] sm:$0xf] }
 0x41a   : > { %v7407_v15 = vrot.slane %v7405_v32, 4 }
 0x41c   : > { %v7409_v31 = vsel %vm14833_vm15, %v7407_v15, %v7408_v43  ;;  %v8948_v43 = vld [vmem:[#allocation2 + $0x54] sm:$0xe] }
 0x41d   : > { %13198 = vmatmul.mubr.msk.bf16.gmra.mrb[20].mxu1 %vm1331_vm8, %v11927_v28  ;;  %v7387_v28 = vrot.slane %v14200_v6, 5  ;;  %v7325_v6 = vld [vmem:[#allocation2 + $0x3c] sm:$0xe] }
 0x41e   : > { %13201 = vmatprep.mubr.msk.bf16.mxu1 %vm1331_vm8, %v17990_v21  ;;  %v7393_v21 = vrot.slane %v7391_v53, 4 }
 0x41f   : > { %v7388_v36 = vsel %vm14833_vm15, %v7386_v57, %v7387_v28  ;;  %v7414_v28 = vrot.slane %v7412_v4, 4 }
 0x420   : > { %v11978_v24 = vcombine.low %v7385_v49, %v7388_v36  ;;  %v7395_v47 = vsel %vm14833_vm15, %v7393_v21, %v7394_v10  ;;  %v11958_v36 = vrot.slane %v7326_v44, 9  ;;  %v8944_v49 = vld [vmem:[#allocation2 + $0x24] sm:$0xe]  ;;  %v16611_v21 = vld [vmem:[#allocation2 + $0x38] sm:$0x1] }
 0x421   : > { %v7416_v8 = vsel %vm14833_vm15, %v7414_v28, %v7415_v14  ;;  %v8945_v10 = vld [vmem:[#allocation2 + $0x30] sm:$0xe]  ;;  %v16652_v44 = vld [vmem:[#allocation2 + $0x68] sm:$0x1] }
 0x422   : > { %v7413_v12 = vsel %vm14833_vm15, %v11958_v36, %v7412_v4  ;;  %v16654_v14 = vld [vmem:[#allocation2 + $0x70] sm:$0xf] }
 0x423   : > { %v11982_v58 = vcombine.low %v7413_v12, %v7416_v8 }
 0x425   : > { %13202 = vmatmul.mubr.msk.bf16.gmra.mrb[24].mxu1 %vm1331_vm8, %v17991_v59  ;;  %v7401_v59 = vrot.slane %v14204_v29, 5  ;;  %v16624_v29 = vld [vmem:[#allocation2 + $0x40] sm:$0xf] }
 0x426   : > { %13205 = vmatprep.mubr.msk.bf16.mxu1 %vm1331_vm8, %v17992_v38  ;;  %v14102_v38 = vld [vmem:[%s17868_s2 + $0x70] sm:$0xff]  }
 0x42d   : > { %13206 = vmatmul.mubr.msk.bf16.gmra.mrb[28].mxu1 %vm1331_vm8, %v17993_v42  ;;  %v7392_v42 = vsel %vm14833_vm15, %v11955_v19, %v7391_v53  ;;  %v11957_v53 = vrot.slane %v7325_v6, 9  ;;  %v16626_v19 = vld [vmem:[#allocation2 + $0x44] sm:$0x1] }
 0x42e   : > { %13217 = vmatprep.mubr.msk.bf16.mxu1 %vm1331_vm8, %v11976_v35  ;;  %v11956_v35 = vrot.slane %v7324_v7, 9  ;;  %v11979_v50 = vcombine.low %v7392_v42, %v7395_v47  ;;  %v17995_v7 = vcombine.low %v16401_v54, %v16411_v39  ;;  %v16628_v47 = vld [vmem:[#allocation2 + $0x50] sm:$0x1]  ;;  %v12103_v54 = vrot.slane %v8945_v10, 9 }
 0x42f   : > { %v7406_v48 = vsel %vm14833_vm15, %v11957_v53, %v7405_v32  ;;  %v9032_v42 = vrot.slane %v16611_v21, 5  ;;  %v9039_v6 = vrot.slane %v16626_v19, 5  ;;  %v9046_v12 = vrot.slane %v16628_v47, 5 }
 0x430   : > { %v7399_v57 = vsel %vm14833_vm15, %v11956_v35, %v7398_v37  ;;  %v11981_v37 = vcombine.low %v7406_v48, %v7409_v31  ;;  %v8947_v35 = vld [vmem:[#allocation2 + $0x48] sm:$0xe] }
 0x431   : > { %v12105_v8 = vrot.slane %v8947_v35, 9 }
 0x435   : > { %13218 = vmatmul.mubr.msk.bf16.vlgmr.msra.gmra.mrb[0].mxu1 %vm1331_vm8, %v11977_v27  ;;  %v16605_v27 = vld [vmem:[#allocation2 + $0x28] sm:$0xf] }
 0x436   : > { %13250 = vmatpush3.bf16.msra.mxu1 %v16438_v62  ;;  %13221 = vmatprep.mubr.msk.bf16.mxu1 %vm1331_vm8, %v11978_v24  ;;  %v7402_v62 = vsel %vm14833_vm15, %v7400_v46, %v7401_v59  ;;  %v16609_v24 = vld [vmem:[#allocation2 + $0x34] sm:$0xf]  ;;  %v16617_v46 = vld [vmem:[#allocation2 + $0x4c] sm:$0xf]  ;;  %v9022_v5 = vrot.slane %v16605_v27, 5  ;;  %v12102_v59 = vrot.slane %v8944_v49, 9 }
 0x437   : > { %13251 = vmatprep.subr.bf16.mxu1 %v14101_v56  ;;  %v11980_v16 = vcombine.low %v7399_v57, %v7402_v62  ;;  %v9029_v39 = vrot.slane %v16609_v24, 5  ;;  %v16638_v62 = vld [vmem:[#allocation2 + $0x5c] sm:$0x1]  ;;  %v9036_v57 = vrot.slane %v16624_v29, 5  ;;  %v9043_v28 = vrot.slane %v16617_v46, 5 }
 0x438   : > { %v9024_v41 = vrot.slane %v9022_v5, 4  ;;  %v16635_v32 = vsel %vm14833_vm15, %v12102_v59, %v9022_v5  ;;  %v8949_v49 = vld [vmem:[#allocation2 + $0x60] sm:$0xe]  ;;  %v16674_v5 = vld [vmem:[#allocation2 + $0x74] sm:$0x1]  ;;  %v9053_v35 = vrot.slane %v16638_v62, 5 }
 0x439   : > { %17996 = vst [vmem:[#allocation9_spill] sm:$0xff] %v16635_v32  ;;  %v9031_v15 = vrot.slane %v9029_v39, 4  ;;  %v16658_v53 = vsel %vm14833_vm15, %v12103_v54, %v9029_v39  ;;  %v9038_v36 = vrot.slane %v9036_v57, 4  ;;  %v16684_v59 = vsel %vm14833_vm15, %v12105_v8, %v9043_v28  ;;  %v10586_v32 = vld [vmem:[#allocation2 + $0x60] sm:$0xe] }
 0x43a   : > { %13252 = vmatpush3.bf16.msra.mxu1 %v14101_v56  ;;  %v16607_v56 = vld [vmem:[#allocation2 + $0x2c] sm:$0x1]  ;;  %17998 = vst [vmem:[#allocation11_spill] sm:$0xff] %v16658_v53  ;;  %18003 = vst [vmem:[#allocation6_spill] sm:$0xff] %v16684_v59  ;;  %v14113_v59 = vld [vmem:[#allocation2 + $0x60] sm:$0xff]  }
 0x43b   : > { %13253 = vmatprep.subr.bf16.mxu1 %v14102_v38  ;;  %v9025_v3 = vrot.slane %v16607_v56, 5  ;;  %v16666_v48 = vsel %vm14833_vm15, %v9031_v15, %v9032_v42  ;;  %v16701_v42 = vld [vmem:[#allocation2 + $0x88] sm:$0xf]  ;;  %v16710_v15 = vld [vmem:[#allocation2 + $0x8c] sm:$0x1]  ;;  %v14123_v53 = vld [vmem:[#allocation2 + $0xc0] sm:$0xff]  }
 0x43c   : > { %18000 = vst [vmem:[#allocation8_spill] sm:$0xff] %v16666_v48  ;;  %v14119_v48 = vld [vmem:[#allocation2 + $0x9c] sm:$0xff]  }
 0x43d   : > { %13222 = vmatmul.mubr.msk.bf16.gmra.mrb[4].mxu1 %vm1331_vm8, %v11979_v50  ;;  %v16642_v4 = vsel %vm14833_vm15, %v9024_v41, %v9025_v3  ;;  %v8950_v41 = vld [vmem:[#allocation2 + $0x6c] sm:$0xe] }
 0x43e   : > { %13225 = vmatprep.mubr.msk.bf16.mxu1 %vm1331_vm8, %v11980_v16  ;;  %13254 = vmatpush3.bf16.msra.mxu1 %v14102_v38  ;;  %v8946_v38 = vld [vmem:[#allocation2 + $0x3c] sm:$0xe]  ;;  %17997 = vst [vmem:[#allocation10_spill] sm:$0xff] %v16642_v4  ;;  %v9078_v16 = vrot.slane %v16701_v42, 5  ;;  %v17086_v4 = vld [vmem:[#allocation2 + $0x70] sm:$0xf] }
 0x43f   : > { %13255 = vmatprep.subr.bf16.mxu1 %v14103_v13  ;;  %v12104_v50 = vrot.slane %v8946_v38, 9  ;;  %v12106_v38 = vrot.slane %v8948_v43, 9  ;;  %v12108_v43 = vrot.slane %v8950_v41, 9  ;;  %18048 = vst [vmem:[#allocation50_spill] sm:$0xff] %v17086_v4 }
 0x441   : > { %v16662_v31 = vsel %vm14833_vm15, %v12104_v50, %v9036_v57  ;;  %v8951_v57 = vld [vmem:[#allocation2 + $0x78] sm:$0xe] }
 0x442   : > { %13256 = vmatpush3.bf16.msra.mxu1 %v14103_v13  ;;  %v16646_v13 = vld [vmem:[#allocation2 + $0x64] sm:$0xf]  ;;  %17999 = vst [vmem:[#allocation7_spill] sm:$0xff] %v16662_v31  ;;  %v12109_v34 = vrot.slane %v8951_v57, 9 }
 0x443   : > { %13289 = vmatprep.subr.bf16.mxu1 %v16592_v23  ;;  %v9057_v50 = vrot.slane %v16646_v13, 5 }
 0x445   : > { %13226 = vmatmul.mubr.msk.bf16.gmra.mrb[8].mxu1 %vm1331_vm8, %v11981_v37  ;;  %v9045_v37 = vrot.slane %v9043_v28, 4  ;;  %v9060_v28 = vrot.slane %v16652_v44, 5 }
 0x446   : > { %13229 = vmatprep.mubr.msk.bf16.mxu1 %vm1331_vm8, %v11982_v58  ;;  %v9050_v58 = vrot.slane %v16631_v55, 5 }
 0x447   : > { %v16698_v54 = vsel %vm14833_vm15, %v9045_v37, %v9046_v12  ;;  %v9059_v37 = vrot.slane %v9057_v50, 4  ;;  %v9067_v12 = vrot.slane %v16674_v5, 5 }
 0x448   : > { %18004 = vst [vmem:[#allocation4_spill] sm:$0xff] %v16698_v54  ;;  %v9052_v39 = vrot.slane %v9050_v58, 4  ;;  %v16707_v11 = vsel %vm14833_vm15, %v12106_v38, %v9050_v58  ;;  %v8223_v38 = vld [vmem:[#allocation2 + $0x98] sm:$0x1] }
 0x449   : > { %18005 = vst [vmem:[#allocation12_spill] sm:$0xff] %v16707_v11  ;;  %v16734_v8 = vsel %vm14833_vm15, %v9059_v37, %v9060_v28  ;;  %v16754_v37 = vld [vmem:[#allocation2 + $0xa4] sm:$0x1] }
 0x44a   : > { %18009 = vst [vmem:[#allocation16_spill] sm:$0xff] %v16734_v8 }
 0x44d   : > { %13230 = vmatmul.mubr.msk.bf16.gmra.mrb[12].mxu1 %vm1331_vm8, %v17994_v17  ;;  %v18001_v17 = vcombine.low %v16418_v45, %v16431_v1  ;;  %v16690_v45 = vld [vmem:[#allocation2 + $0x7c] sm:$0xf]  ;;  %v16692_v1 = vld [vmem:[#allocation2 + $0x80] sm:$0x1] }
 0x44e   : > { %13233 = vmatprep.mubr.msk.bf16.mxu1 %vm1331_vm8, %v17995_v7  ;;  %v16680_v7 = vsel %vm14833_vm15, %v9038_v36, %v9039_v6  ;;  %v16714_v6 = vsel %vm14833_vm15, %v9052_v39, %v9053_v35  ;;  %v9064_v36 = vrot.slane %v16654_v14, 5  ;;  %v9071_v58 = vrot.slane %v16690_v45, 5 }
 0x44f   : > { %18002 = vst [vmem:[#allocation5_spill] sm:$0xff] %v16680_v7  ;;  %18006 = vst [vmem:[#allocation13_spill] sm:$0xff] %v16714_v6  ;;  %v9074_v10 = vrot.slane %v16692_v1, 5 }
 0x450   : > { %v16730_v41 = vsel %vm14833_vm15, %v12108_v43, %v9064_v36  ;;  %v9066_v35 = vrot.slane %v9064_v36, 4  ;;  %v9073_v3 = vrot.slane %v9071_v58, 4  ;;  %v16748_v57 = vsel %vm14833_vm15, %v12109_v34, %v9071_v58  ;;  %v8954_v43 = vld [vmem:[#allocation2 + $0x9c] sm:$0xe] }
 0x451   : > { %18008 = vst [vmem:[#allocation15_spill] sm:$0xff] %v16730_v41  ;;  %18011 = vst [vmem:[#allocation18_spill] sm:$0xff] %v16748_v57  ;;  %v18012_v36 = vcombine.low %v16453_v26, %v16457_v9  ;;  %v9080_v34 = vrot.slane %v9078_v16, 4  ;;  %v9081_v58 = vrot.slane %v16710_v15, 5  ;;  %v8229_v26 = vld [vmem:[#allocation2 + $0xb0] sm:$0x1] }
 0x452   : > { %v8232_v57 = vld [vmem:[#allocation2 + $0xbc] sm:$0x1] }
 0x455   : > { %13234 = vmatmul.mubr.msk.bf16.gmra.mrb[16].mxu1 %vm1331_vm8, %v18001_v17  ;;  %v16722_v17 = vld [vmem:[#allocation2 + $0x94] sm:$0xf] }
 0x456   : > { %13237 = vmatprep.mubr.msk.bf16.mxu1 %vm1331_vm8, %v11986_v22  ;;  %v12107_v22 = vrot.slane %v8949_v49, 9  ;;  %v8952_v49 = vld [vmem:[#allocation2 + $0x84] sm:$0xe] }
 0x457   : > { %v12110_v28 = vrot.slane %v8952_v49, 9  ;;  %v18014_v49 = vcombine.low %v16461_v60, %v16468_v30  ;;  %v9088_v60 = vrot.slane %v8223_v38, 5  ;;  %v12112_v30 = vrot.slane %v8954_v43, 9 }
 0x458   : > { %v16726_v39 = vsel %vm14833_vm15, %v12107_v22, %v9057_v50  ;;  %v16744_v50 = vsel %vm14833_vm15, %v9066_v35, %v9067_v12  ;;  %v16762_v12 = vsel %vm14833_vm15, %v9073_v3, %v9074_v10  ;;  %v9085_v10 = vrot.slane %v16722_v17, 5  ;;  %v8955_v3 = vld [vmem:[#allocation2 + $0xa8] sm:$0xe]  ;;  %v16776_v22 = vld [vmem:[#allocation2 + $0xb8] sm:$0xf] }
 0x459   : > { %18007 = vst [vmem:[#allocation14_spill] sm:$0xff] %v16726_v39  ;;  %18010 = vst [vmem:[#allocation17_spill] sm:$0xff] %v16744_v50  ;;  %v16773_v35 = vsel %vm14833_vm15, %v12110_v28, %v9078_v16  ;;  %v16780_v50 = vsel %vm14833_vm15, %v9080_v34, %v9081_v58  ;;  %v9095_v16 = vrot.slane %v16754_v37, 5  ;;  %v8956_v28 = vld [vmem:[#allocation2 + $0xb4] sm:$0xe]  ;;  %v12113_v34 = vrot.slane %v8955_v3, 9 }
 0x45a   : > { %18013 = vst [vmem:[#allocation19_spill] sm:$0xff] %v16762_v12  ;;  %18015 = vst [vmem:[#allocation20_spill] sm:$0xff] %v16773_v35  ;;  %v9087_v12 = vrot.slane %v9085_v10, 4  ;;  %v16795_v58 = vld [vmem:[#allocation2 + $0xc4] sm:$0xf]  ;;  %v9102_v35 = vrot.slane %v8229_v26, 5 }
 0x45b   : > { %18016 = vst [vmem:[#allocation21_spill] sm:$0xff] %v16780_v50  ;;  %v9106_v8 = vrot.slane %v16776_v22, 5  ;;  %v9109_v39 = vrot.slane %v8232_v57, 5 }
 0x45c   : > { %v16799_v9 = vsel %vm14833_vm15, %v9087_v12, %v9088_v60  ;;  %v8194_v12 = vld [vmem:[#allocation2 + $0x24] sm:$0xf] }
 0x45d   : > { %13238 = vmatmul.mubr.msk.bf16.gmra.mrb[20].mxu1 %vm1331_vm8, %v18012_v36  ;;  %v12111_v36 = vrot.slane %v8953_v61, 9  ;;  %v9099_v61 = vrot.slane %v16756_v51, 5  ;;  %18019 = vst [vmem:[#allocation24_spill] sm:$0xff] %v16799_v9  ;;  %v9108_v60 = vrot.slane %v9106_v8, 4 }
 0x45e   : > { %13241 = vmatprep.mubr.msk.bf16.mxu1 %vm1331_vm8, %v18014_v49  ;;  %v9092_v49 = vrot.slane %v16738_v20, 5 }
 0x45f   : > { %v16789_v41 = vsel %vm14833_vm15, %v12111_v36, %v9085_v10  ;;  %v9101_v50 = vrot.slane %v9099_v61, 4  ;;  %v16810_v3 = vsel %vm14833_vm15, %v12113_v34, %v9099_v61  ;;  %v8957_v36 = vld [vmem:[#allocation2 + $0xc0] sm:$0xe]  ;;  %v16835_v57 = vsel %vm14833_vm15, %v9108_v60, %v9109_v39  ;;  %v8188_v60 = vld [vmem:[#allocation2 + $0xc] sm:$0xf] }
 0x460   : > { %18017 = vst [vmem:[#allocation22_spill] sm:$0xff] %v16789_v41  ;;  %v16793_v38 = vsel %vm14833_vm15, %v12112_v30, %v9092_v49  ;;  %v9094_v43 = vrot.slane %v9092_v49, 4  ;;  %18021 = vst [vmem:[#allocation26_spill] sm:$0xff] %v16810_v3  ;;  %v12114_v30 = vrot.slane %v8956_v28, 9  ;;  %v8235_v49 = vld [vmem:[#allocation2 + $0xc8] sm:$0x1]  ;;  %v18029_v39 = vcombine.low %v16504_v2, %v16508_v33 }
 0x461   : > { %18018 = vst [vmem:[#allocation23_spill] sm:$0xff] %v16793_v38  ;;  %v16816_v26 = vsel %vm14833_vm15, %v9101_v50, %v9102_v35  ;;  %v9113_v28 = vrot.slane %v16795_v58, 5  ;;  %18026 = vst [vmem:[#allocation29_spill] sm:$0xff] %v16835_v57  ;;  %v9116_v34 = vrot.slane %v8235_v49, 5  ;;  %v14107_v49 = vld [vmem:[#allocation2 + $0x24] sm:$0xff]   ;;  %v14115_v2 = vld [vmem:[%s17868_s2 + $0x90] sm:$0xff]  }
 0x462   : > { %v16806_v10 = vsel %vm14833_vm15, %v9094_v43, %v9095_v16  ;;  %18022 = vst [vmem:[#allocation27_spill] sm:$0xff] %v16816_v26  ;;  %v18023_v16 = vcombine.low %v16482_v52, %v16486_v18  ;;  %v18024_v43 = vcombine.low %v16490_v25, %v16497_v63  ;;  %v16831_v50 = vsel %vm14833_vm15, %v12114_v30, %v9106_v8  ;;  %v14104_v8 = vld [vmem:[#allocation2 + $0xc] sm:$0xff]   ;;  %v16877_v61 = vld [vmem:[%s17868_s2 + $0xa0] sm:$0xff]   ;;  %v16881_v57 = vld [vmem:[#allocation2 + $0x14] sm:$0x1] }
 0x463   : > { %18020 = vst [vmem:[#allocation25_spill] sm:$0xff] %v16806_v10  ;;  %18025 = vst [vmem:[#allocation28_spill] sm:$0xff] %v16831_v50  ;;  %v12115_v52 = vrot.slane %v8957_v36, 9  ;;  %v9115_v35 = vrot.slane %v9113_v28, 4  ;;  %v14106_v36 = vld [vmem:[#allocation2 + $0x18] sm:$0xff]   ;;  %v14110_v30 = vld [vmem:[%s17868_s2 + $0x88] sm:$0xff]  }
 0x464   : > { %v16863_v33 = vld [vmem:[#allocation2 + $0x10] sm:$0xf]  ;;  %v14111_v50 = vld [vmem:[#allocation2 + $0x48] sm:$0xff]   ;;  %v14112_v26 = vld [vmem:[#allocation2 + $0x54] sm:$0xff]  }
 0x465   : > { %13242 = vmatmul.mubr.msk.bf16.gmra.mrb[24].mxu1 %vm1331_vm8, %v18023_v16  ;;  %v16841_v16 = vsel %vm14833_vm15, %v12115_v52, %v9113_v28  ;;  %v16845_v25 = vsel %vm14833_vm15, %v9115_v35, %v9116_v34  ;;  %v8246_v28 = vshll.u32 %v16863_v33, 16  ;;  %v8191_v52 = vld [vmem:[#allocation2 + $0x18] sm:$0xf]  ;;  %v14108_v35 = vld [vmem:[#allocation2 + $0x30] sm:$0xff]   ;;  %v14109_v34 = vld [vmem:[#allocation2 + $0x3c] sm:$0xff]  }
 0x466   : > { %13245 = vmatprep.mubr.msk.bf16.mxu1 %vm1331_vm8, %v18024_v43  ;;  %18027 = vst [vmem:[#allocation30_spill] sm:$0xff] %v16841_v16  ;;  %18028 = vst [vmem:[#allocation31_spill] sm:$0xff] %v16845_v25  ;;  %v8250_v43 = vshrl.u32 %v16863_v33, 16  ;;  %v8264_v18 = vshll.u32 %v8191_v52, 16  ;;  %v16886_v38 = vld [vmem:[#allocation2 + $0x20] sm:$0x1] }
 0x468   : > { %v8252_v63 = vrot.slane %v8250_v43, 4  ;;  %v8285_v43 = vshrl.u32 %v8194_v12, 16 }
 0x46d   : > { %13246 = vmatmul.mubr.msk.bf16.gmra.mrb[28].mxu1 %vm1331_vm8, %v18029_v39  ;;  %v8240_v39 = vshll.u32 %v8188_v60, 16 }
 0x46e   : > { %13257 = vmatprep.mubr.msk.bf16.mxu1 %vm1331_vm8, %v14104_v8  ;;  %v8237_v8 = vshrl.u32 %v8188_v60, 16 }
 0x46f   : > { %v8242_v60 = vrot.slane %v8240_v39, 5 }
 0x470   : > { %v8239_v25 = vrot.slane %v8237_v8, 4  ;;  %v8256_v8 = vshll.u32 %v16881_v57, 16 }
 0x472   : > { %v8243_v3 = vor.u32 %v8242_v60, %v8239_v25  ;;  %v8258_v25 = vrot.slane %v8256_v8, 5 }
 0x474   : > { %v8244_v41 = vrot.slane %v8243_v3, 4 }
 0x475   : > { %13258 = vmatmul.mubr.msk.bf16.vlgmr.msra.gmra.mrb[0].mxu1 %vm1331_vm8, %v14106_v36  ;;  %v16871_v36 = vld [vmem:[#allocation2 + $0x1c] sm:$0xf] }
 0x476   : > { %13290 = vmatpush3.bf16.msra.mxu1 %v16592_v23  ;;  %13261 = vmatprep.mubr.msk.bf16.mxu1 %vm1331_vm8, %v14107_v49  ;;  %v14120_v23 = vld [vmem:[%s17868_s2 + $0x98] sm:$0xff]   ;;  %v8261_v49 = vshrl.u32 %v8191_v52, 16  ;;  %v8274_v16 = vshrl.u32 %v16871_v36, 16  ;;  %v8288_v52 = vshll.u32 %v8194_v12, 16 }
 0x477   : > { %13291 = vmatprep.subr.bf16.mxu1 %v14110_v30 }
 0x478   : > { %v8276_v10 = vrot.slane %v8274_v16, 4  ;;  %v8290_v9 = vrot.slane %v8288_v52, 5  ;;  %v8197_v16 = vld [vmem:[#allocation2 + $0x30] sm:$0xf] }
 0x479   : > { %v8312_v52 = vshll.u32 %v8197_v16, 16 }
 0x47a   : > { %13292 = vmatpush3.bf16.msra.mxu1 %v14110_v30  ;;  %v8248_v30 = vrot.slane %v8246_v28, 5  ;;  %v8266_v28 = vrot.slane %v8264_v18, 5 }
 0x47b   : > { %13293 = vmatprep.subr.bf16.mxu1 %v14115_v2 }
 0x47d   : > { %13262 = vmatmul.mubr.msk.bf16.gmra.mrb[4].mxu1 %vm1331_vm8, %v14108_v35  ;;  %v8270_v35 = vshll.u32 %v16871_v36, 16 }
 0x47e   : > { %13265 = vmatprep.mubr.msk.bf16.mxu1 %vm1331_vm8, %v14109_v34  ;;  %13294 = vmatpush3.bf16.msra.mxu1 %v14115_v2  ;;  %v8263_v34 = vrot.slane %v8261_v49, 4  ;;  %v8253_v2 = vor.u32 %v8252_v63, %v8248_v30  ;;  %v8294_v49 = vshll.u32 %v16605_v27, 16  ;;  %v8298_v63 = vshrl.u32 %v16605_v27, 16 }
 0x47f   : > { %13295 = vmatprep.subr.bf16.mxu1 %v14120_v23  ;;  %v8272_v39 = vrot.slane %v8270_v35, 5  ;;  %v8280_v35 = vshll.u32 %v16886_v38, 16 }
 0x480   : > { %v8254_v12 = vrot.slane %v8253_v2, 4  ;;  %v8267_v18 = vor.u32 %v8266_v28, %v8263_v34  ;;  %v16892_v6 = vrot.slane %v8294_v49, 5  ;;  %v8309_v34 = vshrl.u32 %v8197_v16, 16  ;;  %v8200_v2 = vld [vmem:[#allocation2 + $0x3c] sm:$0xf]  ;;  %v14114_v28 = vld [vmem:[#allocation2 + $0x6c] sm:$0xff]  }
 0x481   : > { %v8277_v60 = vor.u32 %v8276_v10, %v8272_v39  ;;  %v8249_v10 = vsel %vm14364_vm10, %v8244_v41, %v8248_v30  ;;  %v8333_v41 = vshrl.u32 %v8200_v2, 16  ;;  %v8336_v30 = vshll.u32 %v8200_v2, 16 }
 0x482   : > { %13296 = vmatpush3.bf16.msra.mxu1 %v14120_v23  ;;  %v8287_v23 = vrot.slane %v8285_v43, 4  ;;  %v8259_v11 = vsel %vm14364_vm10, %v8254_v12, %v8258_v25  ;;  %v8268_v54 = vrot.slane %v8267_v18, 4  ;;  %v8282_v43 = vrot.slane %v8280_v35, 5  ;;  %v8203_v25 = vld [vmem:[#allocation2 + $0x48] sm:$0xf] }
 0x483   : > { %13329 = vmatprep.subr.bf16.mxu1 %v16877_v61  ;;  %v8278_v3 = vrot.slane %v8277_v60, 4  ;;  %v16900_v8 = vcombine.low %v8249_v10, %v8259_v11  ;;  %v8346_v11 = vshrl.u32 %v16624_v29, 16  ;;  %v8314_v35 = vrot.slane %v8312_v52, 5  ;;  %v14117_v52 = vld [vmem:[#allocation2 + $0x84] sm:$0xff]  }
 0x484   : > { %v8291_v27 = vor.u32 %v8290_v9, %v8287_v23  ;;  %v8318_v9 = vshll.u32 %v16609_v24, 16  ;;  %v8311_v23 = vrot.slane %v8309_v34, 4  ;;  %v8370_v16 = vshrl.u32 %v16617_v46, 16 }
 0x485   : > { %13266 = vmatmul.mubr.msk.bf16.gmra.mrb[8].mxu1 %vm1331_vm8, %v14111_v50  ;;  %v8300_v50 = vrot.slane %v8298_v63, 4  ;;  %v8322_v63 = vshrl.u32 %v16609_v24, 16  ;;  %v8283_v60 = vsel %vm14364_vm10, %v8278_v3, %v8282_v43  ;;  %v8366_v24 = vshll.u32 %v16617_v46, 16 }
 0x486   : > { %13269 = vmatprep.mubr.msk.bf16.mxu1 %vm1331_vm8, %v14112_v26  ;;  %v8304_v26 = vshll.u32 %v16607_v56, 16  ;;  %v8273_v56 = vsel %vm14364_vm10, %v8268_v54, %v8272_v39  ;;  %v8292_v12 = vrot.slane %v8291_v27, 4  ;;  %v16914_v54 = vrot.slane %v8318_v9, 5  ;;  %v8206_v9 = vld [vmem:[#allocation2 + $0x54] sm:$0xf] }
 0x487   : > { %v8301_v49 = vor.u32 %v8300_v50, %v16892_v6  ;;  %v8324_v39 = vrot.slane %v8322_v63, 4  ;;  %v8328_v27 = vshll.u32 %v16611_v21, 16  ;;  %v8338_v34 = vrot.slane %v8336_v30, 5 }
 0x488   : > { %v8306_v18 = vrot.slane %v8304_v26, 5  ;;  %v8335_v26 = vrot.slane %v8333_v41, 4  ;;  %v8357_v2 = vshrl.u32 %v8203_v25, 16  ;;  %v16917_v10 = vcombine.low %v8273_v56, %v8283_v60 }
 0x489   : > { %v8302_v50 = vrot.slane %v8301_v49, 4  ;;  %v8348_v3 = vrot.slane %v8346_v11, 4  ;;  %v8390_v43 = vshll.u32 %v16631_v55, 16  ;;  %v8297_v46 = vsel %vm14364_vm10, %v8292_v12, %v16892_v6  ;;  %v8209_v11 = vld [vmem:[#allocation2 + $0x60] sm:$0xf] }
 0x48a   : > { %v16925_v49 = vrot.slane %v8366_v24, 5  ;;  %v8372_v21 = vrot.slane %v8370_v16, 4  ;;  %v8394_v63 = vshrl.u32 %v16631_v55, 16  ;;  %v8315_v41 = vor.u32 %v8314_v35, %v8311_v23 }
 0x48b   : > { %v8307_v56 = vsel %vm14364_vm10, %v8302_v50, %v8306_v18  ;;  %v8325_v30 = vor.u32 %v8324_v39, %v16914_v54  ;;  %v8339_v6 = vor.u32 %v8338_v34, %v8335_v26  ;;  %v8352_v12 = vshll.u32 %v16626_v19, 16 }
 0x48c   : > { %v8381_v24 = vshrl.u32 %v8206_v9, 16  ;;  %v8384_v16 = vshll.u32 %v8206_v9, 16  ;;  %v8373_v18 = vor.u32 %v8372_v21, %v16925_v49  ;;  %v8396_v23 = vrot.slane %v8394_v63, 4 }
 0x48d   : > { %13270 = vmatmul.mubr.msk.bf16.gmra.mrb[12].mxu1 %vm1331_vm8, %v14113_v59  ;;  %v8342_v59 = vshll.u32 %v16624_v29, 16  ;;  %v14116_v29 = vld [vmem:[#allocation2 + $0x78] sm:$0xff]   ;;  %v8405_v35 = vshrl.u32 %v8209_v11, 16  ;;  %v8408_v50 = vshll.u32 %v8209_v11, 16  ;;  %v16940_v39 = vcombine.low %v8297_v46, %v8307_v56 }
 0x48e   : > { %13273 = vmatprep.mubr.msk.bf16.mxu1 %vm1331_vm8, %v14114_v28  ;;  %v8360_v28 = vshll.u32 %v8203_v25, 16  ;;  %v8359_v25 = vrot.slane %v8357_v2, 4  ;;  %v8414_v26 = vshll.u32 %v16646_v13, 16  ;;  %v8418_v19 = vshrl.u32 %v16646_v13, 16 }
 0x48f   : > { %v16919_v7 = vrot.slane %v8342_v59, 5  ;;  %v16932_v59 = vrot.slane %v8328_v27, 5  ;;  %v8316_v27 = vrot.slane %v8315_v41, 4  ;;  %v8326_v34 = vrot.slane %v8325_v30, 4 }
 0x490   : > { %v8362_v60 = vrot.slane %v8360_v28, 5  ;;  %v8354_v2 = vrot.slane %v8352_v12, 5  ;;  %v8340_v9 = vrot.slane %v8339_v6, 4  ;;  %v8383_v21 = vrot.slane %v8381_v24, 4 }
 0x491   : > { %v8349_v55 = vor.u32 %v8348_v3, %v16919_v7  ;;  %v8376_v3 = vshll.u32 %v16628_v47, 16  ;;  %v8386_v63 = vrot.slane %v8384_v16, 5  ;;  %v8374_v11 = vrot.slane %v8373_v18, 4 }
 0x492   : > { %v8363_v28 = vor.u32 %v8362_v60, %v8359_v25  ;;  %v8407_v56 = vrot.slane %v8405_v35, 4  ;;  %v8410_v41 = vrot.slane %v8408_v50, 5  ;;  %v16947_v13 = vrot.slane %v8414_v26, 5 }
 0x493   : > { %v8350_v31 = vrot.slane %v8349_v55, 4  ;;  %v8420_v30 = vrot.slane %v8418_v19, 4  ;;  %v8321_v47 = vsel %vm14364_vm10, %v8316_v27, %v16914_v54  ;;  %v8378_v60 = vrot.slane %v8376_v3, 5  ;;  %v10580_v3 = vld [vmem:[#allocation2 + $0x18] sm:$0xe] }
 0x494   : > { %v8364_v6 = vrot.slane %v8363_v28, 4  ;;  %v8400_v55 = vshll.u32 %v16638_v62, 16  ;;  %v8331_v24 = vsel %vm14364_vm10, %v8326_v34, %v16932_v59  ;;  %v8345_v16 = vsel %vm14364_vm10, %v8340_v9, %v16919_v7  ;;  %v16984_v28 = vld [vmem:[#allocation2 + $0x20] sm:$0x1] }
 0x495   : > { %13274 = vmatmul.mubr.msk.bf16.gmra.mrb[16].mxu1 %vm1331_vm8, %v14116_v29  ;;  %v16937_v29 = vrot.slane %v8390_v43, 5  ;;  %v14118_v43 = vld [vmem:[#allocation2 + $0x90] sm:$0xff]   ;;  %v8355_v18 = vsel %vm14364_vm10, %v8350_v31, %v8354_v2  ;;  %v8379_v54 = vsel %vm14364_vm10, %v8374_v11, %v8378_v60  ;;  %v8411_v62 = vor.u32 %v8410_v41, %v8407_v56  ;;  %v16975_v31 = vld [vmem:[#allocation2 + $0x1c] sm:$0xf]  ;;  %18031 = vst [vmem:[#allocation33_spill] sm:$0xff] %v16984_v28 }
 0x496   : > { %13277 = vmatprep.mubr.msk.bf16.mxu1 %vm1331_vm8, %v14117_v52  ;;  %v8212_v52 = vld [vmem:[#allocation2 + $0x6c] sm:$0xf]  ;;  %v8424_v50 = vshll.u32 %v16652_v44, 16  ;;  %v8421_v59 = vor.u32 %v8420_v30, %v16947_v13  ;;  %v8438_v7 = vshll.u32 %v16654_v14, 16  ;;  %18030 = vst [vmem:[#allocation32_spill] sm:$0xff] %v16975_v31  ;;  %v8369_v19 = vsel %vm14364_vm10, %v8364_v6, %v16925_v49 }
 0x497   : > { %v8397_v46 = vor.u32 %v8396_v23, %v16937_v29  ;;  %v8429_v12 = vshrl.u32 %v8212_v52, 16  ;;  %v8432_v25 = vshll.u32 %v8212_v52, 16  ;;  %v16962_v23 = vld [vmem:[#allocation2 + $0x78] sm:$0xf]  ;;  %v16980_v34 = vrot.slane %v8400_v55, 5  ;;  %v14121_v52 = vld [vmem:[#allocation2 + $0xa8] sm:$0xff]  }
 0x498   : > { %v8442_v2 = vshrl.u32 %v16654_v14, 16  ;;  %v8453_v44 = vshrl.u32 %v16962_v23, 16  ;;  %v16988_v9 = vcombine.low %v8345_v16, %v8355_v18  ;;  %v16994_v11 = vld [vmem:[#allocation2 + $0x28] sm:$0xf]  ;;  %v16996_v49 = vld [vmem:[#allocation2 + $0x34] sm:$0xf] }
 0x499   : > { %v16966_v35 = vrot.slane %v8397_v46, 4  ;;  %v16970_v27 = vrot.slane %v8429_v12, 4  ;;  %v16972_v26 = vrot.slane %v8432_v25, 5  ;;  %18032 = vst [vmem:[#allocation34_spill] sm:$0xff] %v16994_v11  ;;  %18033 = vst [vmem:[#allocation35_spill] sm:$0xff] %v16996_v49  ;;  %v14122_v46 = vld [vmem:[#allocation2 + $0xb4] sm:$0xff]  }
 0x49a   : > { %v17002_v56 = vrot.slane %v8411_v62, 4  ;;  %v17004_v41 = vrot.slane %v8424_v50, 5  ;;  %v17007_v12 = vld [vmem:[#allocation2 + $0x2c] sm:$0x1]  ;;  %v17010_v25 = vrot.slane %v8421_v59, 4  ;;  %v17014_v6 = vrot.slane %v8438_v7, 5 }
 0x49b   : > { %18034 = vst [vmem:[#allocation36_spill] sm:$0xff] %v17007_v12  ;;  %v17016_v60 = vld [vmem:[#allocation2 + $0x38] sm:$0x1]  ;;  %v10646_v55 = vrot.slane %v16975_v31, 5  ;;  %v17020_v16 = vrot.slane %v8442_v2, 4  ;;  %v17022_v18 = vrot.slane %v8453_v44, 4 }
 0x49c   : > { %18035 = vst [vmem:[#allocation37_spill] sm:$0xff] %v17016_v60  ;;  %v10582_v62 = vld [vmem:[#allocation2 + $0x30] sm:$0xe]  ;;  %v17026_v59 = vld [vmem:[#allocation2 + $0x40] sm:$0xf]  ;;  %v10660_v30 = vrot.slane %v16996_v49, 5 }
 0x49d   : > { %13278 = vmatmul.mubr.msk.bf16.gmra.mrb[20].mxu1 %vm1331_vm8, %v14118_v43  ;;  %v16986_v43 = vcombine.low %v8321_v47, %v8331_v24  ;;  %v10581_v24 = vld [vmem:[#allocation2 + $0x24] sm:$0xe]  ;;  %18036 = vst [vmem:[#allocation38_spill] sm:$0xff] %v17026_v59  ;;  %v10648_v7 = vrot.slane %v10646_v55, 4  ;;  %v17033_v2 = vld [vmem:[#allocation2 + $0x4c] sm:$0xf] }
 0x49e   : > { %13281 = vmatprep.mubr.msk.bf16.mxu1 %vm1331_vm8, %v14119_v48  ;;  %v8387_v48 = vor.u32 %v8386_v63, %v8383_v21  ;;  %v16990_v21 = vcombine.low %v8369_v19, %v8379_v54  ;;  %v12248_v54 = vrot.slane %v10580_v3, 9  ;;  %v10649_v19 = vrot.slane %v16984_v28, 5  ;;  %v10583_v47 = vld [vmem:[#allocation2 + $0x3c] sm:$0xe]  ;;  %v17047_v31 = vld [vmem:[#allocation2 + $0x50] sm:$0x1] }
 0x49f   : > { %v12249_v3 = vrot.slane %v10581_v24, 9  ;;  %v10656_v50 = vrot.slane %v17007_v12, 5  ;;  %v12250_v28 = vrot.slane %v10582_v62, 9  ;;  %18040 = vst [vmem:[#allocation42_spill] sm:$0xff] %v17047_v31  ;;  %v10662_v24 = vrot.slane %v10660_v30, 4 }
 0x4a0   : > { %v16992_v63 = vrot.slane %v8387_v48, 4  ;;  %v17037_v44 = vsel %vm14833_vm15, %v12248_v54, %v10646_v55  ;;  %v17042_v14 = vsel %vm14833_vm15, %v10648_v7, %v10649_v19  ;;  %v10663_v54 = vrot.slane %v17016_v60, 5  ;;  %v10584_v49 = vld [vmem:[#allocation2 + $0x48] sm:$0xe]  ;;  %v17052_v7 = vld [vmem:[#allocation2 + $0x58] sm:$0xf] }
 0x4a1   : > { %18038 = vst [vmem:[#allocation40_spill] sm:$0xff] %v17037_v44  ;;  %18039 = vst [vmem:[#allocation41_spill] sm:$0xff] %v17042_v14  ;;  %v17054_v19 = vld [vmem:[#allocation2 + $0x64] sm:$0xf]  ;;  %v17066_v55 = vsel %vm14833_vm15, %v12250_v28, %v10660_v30  ;;  %v10667_v14 = vrot.slane %v17026_v59, 5  ;;  %v10674_v59 = vrot.slane %v17033_v2, 5 }
 0x4a2   : > { %18041 = vst [vmem:[#allocation43_spill] sm:$0xff] %v17052_v7  ;;  %18044 = vst [vmem:[#allocation46_spill] sm:$0xff] %v17066_v55  ;;  %v10585_v44 = vld [vmem:[#allocation2 + $0x54] sm:$0xe]  ;;  %v17069_v60 = vld [vmem:[#allocation2 + $0x5c] sm:$0x1] }
 0x4a3   : > { %18045 = vst [vmem:[#allocation47_spill] sm:$0xff] %v17069_v60  ;;  %v17071_v12 = vld [vmem:[#allocation2 + $0x68] sm:$0x1]  ;;  %v10669_v30 = vrot.slane %v10667_v14, 4  ;;  %v17094_v28 = vld [vmem:[#allocation2 + $0x7c] sm:$0xf] }
 0x4a4   : > { %18046 = vst [vmem:[#allocation48_spill] sm:$0xff] %v17071_v12  ;;  %18050 = vst [vmem:[#allocation52_spill] sm:$0xff] %v17094_v28  ;;  %v10684_v55 = vrot.slane %v17069_v60, 5  ;;  %v10588_v60 = vld [vmem:[#allocation2 + $0x78] sm:$0xe] }
 0x4a5   : > { %13282 = vmatmul.mubr.msk.bf16.gmra.mrb[24].mxu1 %vm1331_vm8, %v14121_v52  ;;  %v10653_v52 = vrot.slane %v16994_v11, 5 }
 0x4a6   : > { %13285 = vmatprep.mubr.msk.bf16.mxu1 %vm1331_vm8, %v14122_v46  ;;  %v17031_v46 = vld [vmem:[#allocation2 + $0x44] sm:$0x1] }
 0x4a7   : > { %18037 = vst [vmem:[#allocation39_spill] sm:$0xff] %v17031_v46  ;;  %v10655_v48 = vrot.slane %v10653_v52, 4  ;;  %v17058_v62 = vsel %vm14833_vm15, %v12249_v3, %v10653_v52  ;;  %v17077_v52 = vsel %vm14833_vm15, %v10662_v24, %v10663_v54  ;;  %v12252_v3 = vrot.slane %v10584_v49, 9 }
 0x4a8   : > { %18042 = vst [vmem:[#allocation44_spill] sm:$0xff] %v17058_v62  ;;  %18047 = vst [vmem:[#allocation49_spill] sm:$0xff] %v17077_v52  ;;  %v10677_v24 = vrot.slane %v17047_v31, 5  ;;  %v10681_v54 = vrot.slane %v17052_v7, 5  ;;  %v10676_v52 = vrot.slane %v10674_v59, 4  ;;  %v12254_v62 = vrot.slane %v10586_v32, 9 }
 0x4a9   : > { %v17062_v11 = vsel %vm14833_vm15, %v10655_v48, %v10656_v50  ;;  %v12251_v48 = vrot.slane %v10583_v47, 9  ;;  %v10670_v50 = vrot.slane %v17031_v46, 5  ;;  %v10688_v31 = vrot.slane %v17054_v19, 5  ;;  %v9852_v46 = vld [vmem:[#allocation2 + $0x80] sm:$0x1] }
 0x4aa   : > { %18043 = vst [vmem:[#allocation45_spill] sm:$0xff] %v17062_v11  ;;  %v10683_v11 = vrot.slane %v10681_v54, 4  ;;  %v17120_v7 = vld [vmem:[#allocation2 + $0x88] sm:$0xf] }
 0x4ab   : > { %v17090_v47 = vsel %vm14833_vm15, %v12251_v48, %v10667_v14  ;;  %v17098_v49 = vsel %vm14833_vm15, %v10669_v30, %v10670_v50  ;;  %v10587_v14 = vld [vmem:[#allocation2 + $0x6c] sm:$0xe]  ;;  %v17105_v48 = vld [vmem:[#allocation2 + $0x74] sm:$0x1]  ;;  %v17112_v50 = vsel %vm14833_vm15, %v10676_v52, %v10677_v24  ;;  %v10691_v30 = vrot.slane %v17071_v12, 5  ;;  %18056 = vst [vmem:[#allocation58_spill] sm:$0xff] %v17120_v7 }
 0x4ac   : > { %18049 = vst [vmem:[#allocation51_spill] sm:$0xff] %v17090_v47  ;;  %18051 = vst [vmem:[#allocation53_spill] sm:$0xff] %v17098_v49  ;;  %v10690_v52 = vrot.slane %v10688_v31, 4  ;;  %v12255_v24 = vrot.slane %v10587_v14, 9  ;;  %v10589_v49 = vld [vmem:[#allocation2 + $0x84] sm:$0xe]  ;;  %v17137_v12 = vsel %vm14833_vm15, %v12254_v62, %v10688_v31 }
 0x4ad   : > { %13286 = vmatmul.mubr.msk.bf16.gmra.mrb[28].mxu1 %vm1331_vm8, %v14123_v53  ;;  %v12253_v53 = vrot.slane %v10585_v44, 9  ;;  %18053 = vst [vmem:[#allocation55_spill] sm:$0xff] %v17105_v48  ;;  %18054 = vst [vmem:[#allocation56_spill] sm:$0xff] %v17112_v50  ;;  %v17126_v44 = vsel %vm14833_vm15, %v10683_v11, %v10684_v55  ;;  %v10698_v11 = vrot.slane %v17105_v48, 5  ;;  %v9855_v55 = vld [vmem:[#allocation2 + $0x8c] sm:$0x1] }
 0x4ae   : > { %13297 = vmatprep.mubr.msk.bf16.mxu1 %vm1331_vm8, %v16900_v8  ;;  %v17102_v8 = vsel %vm14833_vm15, %v12252_v3, %v10674_v59  ;;  %v10695_v3 = vrot.slane %v17086_v4, 5  ;;  %18057 = vst [vmem:[#allocation59_spill] sm:$0xff] %v17126_v44  ;;  %18059 = vst [vmem:[#allocation61_spill] sm:$0xff] %v17137_v12  ;;  %v9858_v50 = vld [vmem:[#allocation2 + $0x98] sm:$0x1]  ;;  %v17142_v14 = vsel %vm14833_vm15, %v10690_v52, %v10691_v30  ;;  %v12256_v4 = vrot.slane %v10588_v60, 9 }
 0x4af   : > { %18052 = vst [vmem:[#allocation54_spill] sm:$0xff] %v17102_v8  ;;  %v17116_v59 = vsel %vm14833_vm15, %v12253_v53, %v10681_v54  ;;  %v14125_v53 = vld [vmem:[%s17868_s2 + $0xa8] sm:$0xff]   ;;  %v17131_v54 = vld [vmem:[#allocation2 + $0x94] sm:$0xf]  ;;  %18060 = vst [vmem:[#allocation62_spill] sm:$0xff] %v17142_v14  ;;  %v10702_v47 = vrot.slane %v17094_v28, 5 }
 0x4b0   : > { %18055 = vst [vmem:[#allocation57_spill] sm:$0xff] %v17116_v59  ;;  %18058 = vst [vmem:[#allocation60_spill] sm:$0xff] %v17131_v54  ;;  %v10697_v32 = vrot.slane %v10695_v3, 4  ;;  %v17146_v8 = vsel %vm14833_vm15, %v12255_v24, %v10695_v3  ;;  %v9860_v31 = vld [vmem:[#allocation2 + $0xa0] sm:$0xf]  ;;  %v12257_v30 = vrot.slane %v10589_v49, 9 }
 0x4b1   : > { %18061 = vst [vmem:[#allocation63_spill] sm:$0xff] %v17146_v8  ;;  %v10709_v52 = vrot.slane %v17120_v7, 5  ;;  %v10590_v59 = vld [vmem:[#allocation2 + $0x90] sm:$0xe]  ;;  %v9863_v60 = vld [vmem:[#allocation2 + $0xac] sm:$0xf]  ;;  %v17165_v3 = vsel %vm14833_vm15, %v12256_v4, %v10702_v47 }
 0x4b2   : > { %v17155_v44 = vsel %vm14833_vm15, %v10697_v32, %v10698_v11  ;;  %v10704_v24 = vrot.slane %v10702_v47, 4  ;;  %v10705_v32 = vrot.slane %v9852_v46, 5  ;;  %v10591_v11 = vld [vmem:[#allocation2 + $0x9c] sm:$0xe]  ;;  %v14126_v49 = vld [vmem:[%s17868_s2 + $0xb0] sm:$0xff]   ;;  %v10712_v14 = vrot.slane %v9855_v55, 5 }
 0x4b3   : > { %18062 = vst [vmem:[#allocation64_spill] sm:$0xff] %v17155_v44  ;;  %v10711_v62 = vrot.slane %v10709_v52, 4  ;;  %v9864_v44 = vld [vmem:[#allocation2 + $0xb0] sm:$0x1]  ;;  %v12258_v46 = vrot.slane %v10590_v59, 9  ;;  %v10719_v47 = vrot.slane %v9858_v50, 5 }
 0x4b4   : > { %v17177_v4 = vsel %vm14833_vm15, %v10704_v24, %v10705_v32  ;;  %v10723_v8 = vrot.slane %v9860_v31, 5  ;;  %v9866_v12 = vld [vmem:[#allocation2 + $0xb8] sm:$0xf]  ;;  %v12259_v55 = vrot.slane %v10591_v11, 9  ;;  %v10592_v48 = vld [vmem:[#allocation2 + $0xa8] sm:$0xe] }
 0x4b5   : > { %13298 = vmatmul.mubr.msk.bf16.vlgmr.msra.gmra.mrb[0].mxu1 %vm1331_vm8, %v16917_v10  ;;  %v10716_v10 = vrot.slane %v17131_v54, 5  ;;  %v18065_v54 = vshll.u32 %v16690_v45, 16  ;;  %v10593_v24 = vld [vmem:[#allocation2 + $0xb4] sm:$0xe]  ;;  %v9869_v32 = vld [vmem:[#allocation2 + $0xc4] sm:$0xf] }
 0x4b6   : > { %13330 = vmatpush3.bf16.msra.mxu1 %v16877_v61  ;;  %13301 = vmatprep.mubr.msk.bf16.mxu1 %vm1331_vm8, %v16940_v39  ;;  %v9861_v61 = vld [vmem:[#allocation2 + $0xa4] sm:$0x1]  ;;  %v17172_v39 = vsel %vm14833_vm15, %v12257_v30, %v10709_v52  ;;  %v17183_v30 = vsel %vm14833_vm15, %v10711_v62, %v10712_v14  ;;  %v10725_v59 = vrot.slane %v10723_v8, 4  ;;  %v14127_v14 = vld [vmem:[%s17868_s2 + $0xb8] sm:$0xff]   ;;  %v17204_v11 = vsel %vm14833_vm15, %v12259_v55, %v10723_v8  ;;  %v18140_v40 = vld [vmem:[#allocation51_spill] sm:$0xff] }
 0x4b7   : > { %13331 = vmatprep.subr.bf16.mxu1 %v14125_v53  ;;  %18063 = vst [vmem:[#allocation65_spill] sm:$0xff] %v17172_v39  ;;  %18064 = vst [vmem:[#allocation66_spill] sm:$0xff] %v17183_v30  ;;  %v10718_v52 = vrot.slane %v10716_v10, 4  ;;  %v17187_v28 = vrot.slane %v18065_v54, 5  ;;  %v10726_v31 = vrot.slane %v9861_v61, 5  ;;  %v10730_v61 = vrot.slane %v9863_v60, 5 }
 0x4b8   : > { %v9867_v62 = vld [vmem:[#allocation2 + $0xbc] sm:$0x1]  ;;  %v12260_v30 = vrot.slane %v10592_v48, 9  ;;  %v10737_v39 = vrot.slane %v9866_v12, 5  ;;  %v12261_v60 = vrot.slane %v10593_v24, 9  ;;  %v18066_v55 = vshrl.u32 %v16690_v45, 16 }
 0x4b9   : > { %v17200_v54 = vsel %vm14833_vm15, %v10718_v52, %v10719_v47  ;;  %v17210_v7 = vsel %vm14833_vm15, %v10725_v59, %v10726_v31  ;;  %v10732_v8 = vrot.slane %v10730_v61, 4  ;;  %v10733_v52 = vrot.slane %v9864_v44, 5  ;;  %v8218_v50 = vld [vmem:[#allocation2 + $0x84] sm:$0xf] }
 0x4ba   : > { %13332 = vmatpush3.bf16.msra.mxu1 %v14125_v53  ;;  %v17196_v53 = vsel %vm14833_vm15, %v12258_v46, %v10716_v10  ;;  %v10594_v10 = vld [vmem:[#allocation2 + $0xc0] sm:$0xe]  ;;  %v9870_v46 = vld [vmem:[#allocation2 + $0xc8] sm:$0x1]  ;;  %v12283_v47 = vcombine.low %v17204_v11, %v17210_v7  ;;  %v8468_v59 = vrot.slane %v18066_v55, 4  ;;  %v10739_v48 = vrot.slane %v10737_v39, 4 }
 0x4bb   : > { %13333 = vmatprep.subr.bf16.mxu1 %v14126_v49  ;;  %v10740_v12 = vrot.slane %v9867_v62, 5  ;;  %v10744_v31 = vrot.slane %v9869_v32, 5  ;;  %v17227_v44 = vsel %vm14833_vm15, %v12260_v30, %v10730_v61  ;;  %v17235_v45 = vsel %vm14833_vm15, %v12261_v60, %v10737_v39  ;;  %v17726_v7 = vld [vmem:[%s17869_s3 + $0x1] ss:$0 sm:$0xff] }
 0x4bc   : > { %v10747_v55 = vrot.slane %v9870_v46, 5  ;;  %v18067_v30 = vshll.u32 %v16962_v23, 16  ;;  %v8480_v60 = vshll.u32 %v8218_v50, 16  ;;  %v8393_v23 = vsel %vm14364_vm10, %v16992_v63, %v16937_v29  ;;  %v14222_v11 = vld [vmem:[%s14354_s9] sm:$0xf] }
 0x4bd   : > { %13302 = vmatmul.mubr.msk.bf16.gmra.mrb[4].mxu1 %vm1331_vm8, %v16986_v43  ;;  %v17223_v43 = vld [vmem:[%s17868_s2 + $0xc0] sm:$0xff]   ;;  %v17241_v62 = vsel %vm14833_vm15, %v10739_v48, %v10740_v12  ;;  %v10746_v32 = vrot.slane %v10744_v31, 4  ;;  %v18069_v12 = vsel %vm14364_vm10, %v16966_v35, %v16980_v34  ;;  %v8417_v29 = vsel %vm14364_vm10, %v17002_v56, %v16947_v13 }
 0x4be   : > { %13305 = vmatprep.mubr.msk.bf16.mxu1 %vm1331_vm8, %v16988_v9  ;;  %13334 = vmatpush3.bf16.msra.mxu1 %v14126_v49  ;;  %v17231_v9 = vsel %vm14833_vm15, %v10732_v8, %v10733_v52  ;;  %v12262_v49 = vrot.slane %v10594_v10, 9  ;;  %v8458_v61 = vrot.slane %v18067_v30, 5  ;;  %v8486_v8 = vshll.u32 %v16701_v42, 16 }
 0x4bf   : > { %13335 = vmatprep.subr.bf16.mxu1 %v14127_v14  ;;  %v8490_v52 = vshrl.u32 %v16701_v42, 16  ;;  %v12285_v39 = vcombine.low %v17235_v45, %v17241_v62  ;;  %v8477_v10 = vshrl.u32 %v8218_v50, 16  ;;  %v17255_v46 = vsel %vm14833_vm15, %v10746_v32, %v10747_v55  ;;  %v8221_v32 = vld [vmem:[#allocation2 + $0x90] sm:$0xf]  ;;  %v14223_v45 = vld [vmem:[%s14354_s9 + $0xc] sm:$0xf] }
 0x4c0   : > { %v17251_v24 = vsel %vm14833_vm15, %v12262_v49, %v10744_v31  ;;  %v18068_v42 = vor.u32 %v17020_v16, %v17014_v6  ;;  %v8469_v50 = vor.u32 %v8468_v59, %v17187_v28  ;;  %v12070_v31 = vcombine.low %v8393_v23, %v18069_v12 }
 0x4c1   : > { %v8427_v63 = vsel %vm14364_vm10, %v17010_v25, %v17004_v41  ;;  %v18070_v16 = vshll.u32 %v16674_v5, 16  ;;  %v8472_v49 = vshll.u32 %v16692_v1, 16  ;;  %v17286_v35 = vrot.slane %v8486_v8, 5 }
 0x4c2   : > { %13336 = vmatpush3.bf16.msra.mxu1 %v14127_v14  ;;  %v8446_v48 = vrot.slane %v18068_v42, 4  ;;  %v12286_v14 = vcombine.low %v17251_v24, %v17255_v46  ;;  %v8492_v34 = vrot.slane %v8490_v52, 4  ;;  %v18071_v13 = vor.u32 %v16972_v26, %v16970_v27  ;;  %v8224_v42 = vld [vmem:[#allocation2 + $0x9c] sm:$0xf]  ;;  %v14224_v46 = vld [vmem:[%s14354_s9 + $0x4] sm:$0xf] }
 0x4c3   : > { %13369 = vmatprep.subr.bf16.mxu1 %v17223_v43  ;;  %v8450_v59 = vrot.slane %v18070_v16, 5  ;;  %v8459_v41 = vor.u32 %v8458_v61, %v17022_v18  ;;  %v8479_v25 = vrot.slane %v8477_v10, 4  ;;  %v8482_v55 = vrot.slane %v8480_v60, 5 }
 0x4c4   : > { %v8436_v56 = vrot.slane %v18071_v13, 4  ;;  %v8470_v30 = vrot.slane %v8469_v50, 4  ;;  %v8501_v1 = vshrl.u32 %v8221_v32, 16  ;;  %v8504_v8 = vshll.u32 %v8221_v32, 16 }
 0x4c5   : > { %13306 = vmatmul.mubr.msk.bf16.gmra.mrb[8].mxu1 %vm1331_vm8, %v16990_v21  ;;  %v12071_v21 = vcombine.low %v8417_v29, %v8427_v63  ;;  %v8451_v5 = vsel %vm14364_vm10, %v8446_v48, %v8450_v59  ;;  %v8510_v52 = vshll.u32 %v16722_v17, 16  ;;  %v8514_v23 = vshrl.u32 %v16722_v17, 16 }
 0x4c6   : > { %13309 = vmatprep.mubr.msk.bf16.mxu1 %vm1331_vm8, %v12070_v31  ;;  %v8474_v12 = vrot.slane %v8472_v49, 5  ;;  %v8493_v27 = vor.u32 %v8492_v34, %v17286_v35  ;;  %v8534_v26 = vshll.u32 %v16738_v20, 16  ;;  %v8538_v18 = vshrl.u32 %v16738_v20, 16 }
 0x4c7   : > { %v8441_v61 = vsel %vm14364_vm10, %v8436_v56, %v17014_v6  ;;  %v8460_v10 = vrot.slane %v8459_v41, 4  ;;  %v8483_v60 = vor.u32 %v8482_v55, %v8479_v25  ;;  %v8496_v48 = vshll.u32 %v16710_v15, 16  ;;  %v8227_v55 = vld [vmem:[#allocation2 + $0xa8] sm:$0xf] }
 0x4c8   : > { %v12072_v50 = vcombine.low %v8441_v61, %v8451_v5  ;;  %v8475_v17 = vsel %vm14364_vm10, %v8470_v30, %v8474_v12  ;;  %v8525_v31 = vshrl.u32 %v8224_v42, 16  ;;  %v8528_v29 = vshll.u32 %v8224_v42, 16 }
 0x4c9   : > { %v8503_v63 = vrot.slane %v8501_v1, 4  ;;  %v8506_v16 = vrot.slane %v8504_v8, 5  ;;  %v17306_v59 = vrot.slane %v8510_v52, 5  ;;  %v8516_v49 = vrot.slane %v8514_v23, 4  ;;  %v8230_v8 = vld [vmem:[#allocation2 + $0xb4] sm:$0xf] }
 0x4ca   : > { %v8494_v20 = vrot.slane %v8493_v27, 4  ;;  %v17309_v34 = vrot.slane %v8534_v26, 5  ;;  %v8540_v6 = vrot.slane %v8538_v18, 4  ;;  %v8465_v15 = vsel %vm14364_vm10, %v8460_v10, %v17187_v28  ;;  %v14206_v27 = vld [vmem:[#allocation2 + $0x98] sm:$0x1] }
 0x4cb   : > { %v8484_v32 = vrot.slane %v8483_v60, 4  ;;  %v12073_v13 = vcombine.low %v8465_v15, %v8475_v17  ;;  %v8498_v56 = vrot.slane %v8496_v48, 5  ;;  %v8527_v41 = vrot.slane %v8525_v31, 4 }
 0x4cc   : > { %v8530_v25 = vrot.slane %v8528_v29, 5  ;;  %v8507_v5 = vor.u32 %v8506_v16, %v8503_v63  ;;  %v8517_v30 = vor.u32 %v8516_v49, %v17306_v59  ;;  %v8562_v1 = vshrl.u32 %v16756_v51, 16 }
 0x4cd   : > { %13310 = vmatmul.mubr.msk.bf16.gmra.mrb[12].mxu1 %vm1331_vm8, %v12071_v21  ;;  %v8558_v21 = vshll.u32 %v16756_v51, 16  ;;  %v8499_v52 = vsel %vm14364_vm10, %v8494_v20, %v8498_v56  ;;  %v8541_v23 = vor.u32 %v8540_v6, %v17309_v34  ;;  %v8582_v28 = vshll.u32 %v16776_v22, 16 }
 0x4ce   : > { %13313 = vmatprep.mubr.msk.bf16.mxu1 %vm1331_vm8, %v12072_v50  ;;  %v8586_v42 = vshrl.u32 %v16776_v22, 16  ;;  %v8489_v12 = vsel %vm14364_vm10, %v8484_v32, %v17286_v35  ;;  %v8520_v26 = vshll.u32 %v14206_v27, 16  ;;  %v8549_v18 = vshrl.u32 %v8227_v55, 16 }
 0x4cf   : > { %v8552_v61 = vshll.u32 %v8227_v55, 16  ;;  %v8531_v10 = vor.u32 %v8530_v25, %v8527_v41  ;;  %v8544_v51 = vshll.u32 %v16754_v37, 16  ;;  %v8573_v60 = vshrl.u32 %v8230_v8, 16  ;;  %v8233_v41 = vld [vmem:[#allocation2 + $0xc0] sm:$0xf] }
 0x4d0   : > { %v8576_v48 = vshll.u32 %v8230_v8, 16  ;;  %v12074_v50 = vcombine.low %v8489_v12, %v8499_v52  ;;  %v8518_v17 = vrot.slane %v8517_v30, 4  ;;  %v8560_v31 = vrot.slane %v8558_v21, 5  ;;  %v14207_v52 = vld [vmem:[#allocation2 + $0xb0] sm:$0x1] }
 0x4d1   : > { %v8564_v29 = vrot.slane %v8562_v1, 4  ;;  %v8508_v22 = vrot.slane %v8507_v5, 4  ;;  %v8542_v63 = vrot.slane %v8541_v23, 4  ;;  %v8584_v16 = vrot.slane %v8582_v28, 5 }
 0x4d2   : > { %v8588_v49 = vrot.slane %v8586_v42, 4  ;;  %v8522_v35 = vrot.slane %v8520_v26, 5  ;;  %v8551_v20 = vrot.slane %v8549_v18, 4  ;;  %v8554_v6 = vrot.slane %v8552_v61, 5 }
 0x4d3   : > { %v8532_v15 = vrot.slane %v8531_v10, 4  ;;  %v8546_v32 = vrot.slane %v8544_v51, 5  ;;  %v8575_v37 = vrot.slane %v8573_v60, 4  ;;  %v8578_v56 = vrot.slane %v8576_v48, 5 }
 0x4d4   : > { %v8523_v25 = vsel %vm14364_vm10, %v8518_v17, %v8522_v35  ;;  %v8565_v55 = vor.u32 %v8564_v29, %v8560_v31  ;;  %v8610_v5 = vshrl.u32 %v16795_v58, 16  ;;  %v8513_v30 = vsel %vm14364_vm10, %v8508_v22, %v17306_v59 }
 0x4d5   : > { %13314 = vmatmul.mubr.msk.bf16.gmra.mrb[16].mxu1 %vm1331_vm8, %v12073_v13  ;;  %v8606_v13 = vshll.u32 %v16795_v58, 16  ;;  %v8547_v21 = vsel %vm14364_vm10, %v8542_v63, %v8546_v32  ;;  %v8589_v1 = vor.u32 %v8588_v49, %v8584_v16  ;;  %v8555_v8 = vor.u32 %v8554_v6, %v8551_v20  ;;  %v14208_v58 = vld [vmem:[#allocation2 + $0xbc] sm:$0x1]  ;;  %v14209_v32 = vld [vmem:[#allocation2 + $0xc8] sm:$0x1] }
 0x4d6   : > { %13317 = vmatprep.mubr.msk.bf16.mxu1 %vm1331_vm8, %v12074_v50  ;;  %v8568_v23 = vshll.u32 %v14207_v52, 16  ;;  %v8597_v28 = vshrl.u32 %v8233_v41, 16  ;;  %v8600_v42 = vshll.u32 %v8233_v41, 16  ;;  %v12075_v12 = vcombine.low %v8513_v30, %v8523_v25 }
 0x4d7   : > { %v8537_v27 = vsel %vm14364_vm10, %v8532_v15, %v17309_v34  ;;  %v8579_v26 = vor.u32 %v8578_v56, %v8575_v37  ;;  %v8592_v18 = vshll.u32 %v14208_v58, 16  ;;  %v8566_v10 = vrot.slane %v8565_v55, 4 }
 0x4d8   : > { %v12076_v61 = vcombine.low %v8537_v27, %v8547_v21  ;;  %v8608_v59 = vrot.slane %v8606_v13, 5  ;;  %v8612_v51 = vrot.slane %v8610_v5, 4  ;;  %v8590_v60 = vrot.slane %v8589_v1, 4 }
 0x4d9   : > { %v8556_v48 = vrot.slane %v8555_v8, 4  ;;  %v8570_v50 = vrot.slane %v8568_v23, 5  ;;  %v8599_v17 = vrot.slane %v8597_v28, 4  ;;  %v8602_v29 = vrot.slane %v8600_v42, 5 }
 0x4da   : > { %v8580_v22 = vrot.slane %v8579_v26, 4  ;;  %v8594_v63 = vrot.slane %v8592_v18, 5  ;;  %v8613_v49 = vor.u32 %v8612_v51, %v8608_v59  ;;  %v9008_v20 = vrot.slane %v16863_v33, 5  ;;  %v8942_v33 = vld [vmem:[#allocation2 + $0xc] sm:$0xe] }
 0x4db   : > { %v8571_v34 = vsel %vm14364_vm10, %v8566_v10, %v8570_v50  ;;  %v8561_v6 = vsel %vm14364_vm10, %v8556_v48, %v8560_v31  ;;  %v8603_v15 = vor.u32 %v8602_v29, %v8599_v17  ;;  %v8616_v37 = vshll.u32 %v14209_v32, 16  ;;  %v18072_v10 = vld [vmem:[#allocation9_spill] sm:$0xff]  ;;  %v18075_v48 = vld [vmem:[#allocation11_spill] sm:$0xff]  ;;  %v18076_v50 = vld [vmem:[#allocation8_spill] sm:$0xff] }
 0x4dc   : > { %v8595_v35 = vsel %vm14364_vm10, %v8590_v60, %v8594_v63  ;;  %v12077_v56 = vcombine.low %v8561_v6, %v8571_v34  ;;  %v8585_v41 = vsel %vm14364_vm10, %v8580_v22, %v8584_v16  ;;  %v8614_v55 = vrot.slane %v8613_v49, 4  ;;  %v14131_v60 = vld [vmem:[%s17868_s2 + $0xd8] sm:$0xff]   ;;  %v18079_v29 = vld [vmem:[#allocation5_spill] sm:$0xff]  ;;  %v18081_v34 = vld [vmem:[#allocation6_spill] sm:$0xff] }
 0x4dd   : > { %13318 = vmatmul.mubr.msk.bf16.gmra.mrb[20].mxu1 %vm1331_vm8, %v12075_v12  ;;  %v12078_v25 = vcombine.low %v8585_v41, %v8595_v35  ;;  %v9010_v13 = vrot.slane %v9008_v20, 4  ;;  %v8604_v5 = vrot.slane %v8603_v15, 4  ;;  %v8618_v30 = vrot.slane %v8616_v37, 5  ;;  %v14133_v63 = vld [vmem:[%s17868_s2 + $0xe0] sm:$0xff]   ;;  %v18082_v49 = vld [vmem:[#allocation4_spill] sm:$0xff]  ;;  %v18087_v32 = vld [vmem:[#allocation14_spill] sm:$0xff] }
 0x4de   : > { %13321 = vmatprep.mubr.msk.bf16.mxu1 %vm1331_vm8, %v12076_v61  ;;  %v9011_v21 = vrot.slane %v16881_v57, 5  ;;  %v9015_v1 = vrot.slane %v16871_v36, 5  ;;  %v12100_v8 = vrot.slane %v8942_v33, 9  ;;  %v8943_v57 = vld [vmem:[#allocation2 + $0x18] sm:$0xe]  ;;  %v9018_v36 = vrot.slane %v16886_v38, 5 }
 0x4df   : > { %v8619_v31 = vsel %vm14364_vm10, %v8614_v55, %v8618_v30  ;;  %v8609_v52 = vsel %vm14364_vm10, %v8604_v5, %v8608_v59  ;;  %v12101_v27 = vrot.slane %v8943_v57, 9  ;;  %v14129_v61 = vld [vmem:[%s17868_s2 + $0xc8] sm:$0xff]   ;;  %v14130_v38 = vld [vmem:[%s17868_s2 + $0xd0] sm:$0xff]   ;;  %v18077_v17 = vcombine.low %v18075_v48, %v18076_v50  ;;  %v18085_v6 = vld [vmem:[#allocation13_spill] sm:$0xff] }
 0x4e0   : > { %v9012_v16 = vsel %vm14833_vm15, %v9010_v13, %v9011_v21  ;;  %v12079_v23 = vcombine.low %v8609_v52, %v8619_v31  ;;  %v9009_v28 = vsel %vm14833_vm15, %v12100_v8, %v9008_v20  ;;  %v9017_v12 = vrot.slane %v9015_v1, 4  ;;  %v18073_v59 = vld [vmem:[#allocation10_spill] sm:$0xff]  ;;  %v18084_v20 = vld [vmem:[#allocation12_spill] sm:$0xff]  ;;  %v18090_v41 = vld [vmem:[#allocation15_spill] sm:$0xff] }
 0x4e1   : > { %v12124_v42 = vcombine.low %v9009_v28, %v9012_v16  ;;  %v9016_v58 = vsel %vm14833_vm15, %v12101_v27, %v9015_v1  ;;  %v18074_v51 = vcombine.low %v18072_v10, %v18073_v59  ;;  %v18083_v35 = vcombine.low %v18081_v34, %v18082_v49  ;;  %v18088_v37 = vld [vmem:[#allocation16_spill] sm:$0xff]  ;;  %v18093_v13 = vld [vmem:[#allocation18_spill] sm:$0xff]  ;;  %v18094_v5 = vld [vmem:[#allocation19_spill] sm:$0xff] }
 0x4e2   : > { %v9019_v26 = vsel %vm14833_vm15, %v9017_v12, %v9018_v36  ;;  %v18086_v15 = vcombine.low %v18084_v20, %v18085_v6  ;;  %v18095_v30 = vcombine.low %v18093_v13, %v18094_v5  ;;  %v18096_v33 = vld [vmem:[#allocation20_spill] sm:$0xff]  ;;  %v18097_v21 = vld [vmem:[#allocation21_spill] sm:$0xff]  ;;  %v18099_v1 = vld [vmem:[#allocation22_spill] sm:$0xff]  ;;  %v11118_v24 = vunpack.c.l.bf16 %v14223_v45 }
 0x4e3   : > { %v12125_v18 = vcombine.low %v9016_v58, %v9019_v26  ;;  %v18098_v31 = vcombine.low %v18096_v33, %v18097_v21  ;;  %v18100_v8 = vld [vmem:[#allocation24_spill] sm:$0xff]  ;;  %v18102_v52 = vld [vmem:[#allocation23_spill] sm:$0xff]  ;;  %v18109_v27 = vld [vmem:[#allocation29_spill] sm:$0xff] }
 0x4e4   : > { %v18101_v16 = vcombine.low %v18099_v1, %v18100_v8  ;;  %v18106_v12 = vld [vmem:[#allocation27_spill] sm:$0xff]  ;;  %v18108_v36 = vld [vmem:[#allocation28_spill] sm:$0xff]  ;;  %v14134_v59 = vld [vmem:[#allocation2 + $0x24] sm:$0xff]  }
 0x4e5   : > { %13322 = vmatmul.mubr.msk.bf16.gmra.mrb[24].mxu1 %vm1331_vm8, %v12077_v56  ;;  %v18089_v56 = vcombine.low %v18087_v32, %v18088_v37  ;;  %v18110_v26 = vcombine.low %v18108_v36, %v18109_v27  ;;  %v14132_v58 = vld [vmem:[#allocation2 + $0x18] sm:$0xff]   ;;  %v14144_v37 = vld [vmem:[#allocation2 + $0x84] sm:$0xff]  }
 0x4e6   : > { %13325 = vmatprep.mubr.msk.bf16.mxu1 %vm1331_vm8, %v12078_v25  ;;  %v18091_v25 = vld [vmem:[#allocation17_spill] sm:$0xff]  ;;  %v14148_v50 = vld [vmem:[%s17868_s2 + $0xf8] sm:$0xff]  }
 0x4e7   : > { %v18092_v55 = vcombine.low %v18090_v41, %v18091_v25  ;;  %v14136_v48 = vld [vmem:[#allocation2 + $0x3c] sm:$0xff]   ;;  %v9826_v49 = vld [vmem:[#allocation2 + $0x18] sm:$0xf] }
 0x4e8   : > { %v14142_v34 = vld [vmem:[#allocation2 + $0x78] sm:$0xff]   ;;  %v9878_v32 = vshll.u32 %v9826_v49, 16 }
 0x4ea   : > { %v9880_v5 = vrot.slane %v9878_v32, 5  ;;  %v14149_v32 = vld [vmem:[#allocation2 + $0xb4] sm:$0xff]  }
 0x4ed   : > { %13326 = vmatmul.mubr.msk.bf16.gmra.mrb[28].mxu1 %vm1331_vm8, %v12079_v23  ;;  %v18103_v23 = vld [vmem:[#allocation25_spill] sm:$0xff] }
 0x4ee   : > { %13337 = vmatprep.mubr.msk.bf16.mxu1 %vm1331_vm8, %v12124_v42  ;;  %v18104_v28 = vcombine.low %v18102_v52, %v18103_v23  ;;  %v18105_v42 = vld [vmem:[#allocation26_spill] sm:$0xff]  ;;  %v18116_v23 = vld [vmem:[#allocation33_spill] sm:$0xff] }
 0x4ef   : > { %v18107_v57 = vcombine.low %v18105_v42, %v18106_v12  ;;  %v14146_v42 = vld [vmem:[#allocation2 + $0x9c] sm:$0xff]  }
 0x4f5   : > { %13338 = vmatmul.mubr.msk.bf16.vlgmr.msra.gmra.mrb[0].mxu1 %vm1331_vm8, %v12125_v18  ;;  %v18111_v18 = vld [vmem:[#allocation30_spill] sm:$0xff] }
 0x4f6   : > { %13370 = vmatpush3.bf16.msra.mxu1 %v17223_v43  ;;  %13341 = vmatprep.mubr.msk.bf16.mxu1 %vm1331_vm8, %v18074_v51  ;;  %v18078_v43 = vld [vmem:[#allocation7_spill] sm:$0xff]  ;;  %v14138_v51 = vld [vmem:[%s17868_s2 + $0xe8] sm:$0xff]  }
 0x4f7   : > { %13371 = vmatprep.subr.bf16.mxu1 %v14129_v61  ;;  %v18080_v22 = vcombine.low %v18078_v43, %v18079_v29  ;;  %v17458_v43 = vld [vmem:[%s17868_s2 + $0x100] sm:$0xff]   ;;  %v14139_v29 = vld [vmem:[#allocation2 + $0x54] sm:$0xff]  }
 0x4fa   : > { %13372 = vmatpush3.bf16.msra.mxu1 %v14129_v61  ;;  %v18112_v61 = vld [vmem:[#allocation31_spill] sm:$0xff] }
 0x4fb   : > { %13373 = vmatprep.subr.bf16.mxu1 %v14130_v38  ;;  %v18113_v10 = vcombine.low %v18111_v18, %v18112_v61 }
 0x4fd   : > { %13342 = vmatmul.mubr.msk.bf16.gmra.mrb[4].mxu1 %vm1331_vm8, %v18077_v17  ;;  %v14137_v17 = vld [vmem:[#allocation2 + $0x48] sm:$0xff]  }
 0x4fe   : > { %13345 = vmatprep.mubr.msk.bf16.mxu1 %vm1331_vm8, %v18080_v22  ;;  %13374 = vmatpush3.bf16.msra.mxu1 %v14130_v38  ;;  %v14135_v38 = vld [vmem:[#allocation2 + $0x30] sm:$0xff]   ;;  %v14140_v22 = vld [vmem:[#allocation2 + $0x60] sm:$0xff]  }
 0x4ff   : > { %13375 = vmatprep.subr.bf16.mxu1 %v14131_v60 }
 0x502   : > { %13376 = vmatpush3.bf16.msra.mxu1 %v14131_v60  ;;  %v14143_v60 = vld [vmem:[%s17868_s2 + $0xf0] sm:$0xff]  }
 0x503   : > { %13409 = vmatprep.subr.bf16.mxu1 %v14133_v63 }
 0x505   : > { %13346 = vmatmul.mubr.msk.bf16.gmra.mrb[8].mxu1 %vm1331_vm8, %v18083_v35  ;;  %v18114_v35 = vld [vmem:[#allocation32_spill] sm:$0xff] }
 0x506   : > { %13349 = vmatprep.mubr.msk.bf16.mxu1 %vm1331_vm8, %v18086_v15  ;;  %v9884_v20 = vshll.u32 %v18114_v35, 16  ;;  %v9888_v6 = vshrl.u32 %v18114_v35, 16  ;;  %v9875_v15 = vshrl.u32 %v9826_v49, 16 }
 0x508   : > { %v9886_v41 = vrot.slane %v9884_v20, 5  ;;  %v9890_v25 = vrot.slane %v9888_v6, 4  ;;  %v9877_v13 = vrot.slane %v9875_v15, 4 }
 0x50a   : > { %v9891_v33 = vor.u32 %v9890_v25, %v9886_v41  ;;  %v9881_v52 = vor.u32 %v9880_v5, %v9877_v13  ;;  %v14150_v13 = vld [vmem:[#allocation2 + $0xc0] sm:$0xff]  }
 0x50c   : > { %v9892_v36 = vrot.slane %v9891_v33, 4 }
 0x50d   : > { %13350 = vmatmul.mubr.msk.bf16.gmra.mrb[12].mxu1 %vm1331_vm8, %v18089_v56  ;;  %v14145_v56 = vld [vmem:[#allocation2 + $0x90] sm:$0xff]  }
 0x50e   : > { %13353 = vmatprep.mubr.msk.bf16.mxu1 %vm1331_vm8, %v18092_v55  ;;  %v9829_v55 = vld [vmem:[#allocation2 + $0x24] sm:$0xf] }
 0x50f   : > { %v9902_v21 = vshll.u32 %v9829_v55, 16 }
 0x511   : > { %v9904_v27 = vrot.slane %v9902_v21, 5  ;;  %v18120_v21 = vld [vmem:[#allocation38_spill] sm:$0xff] }
 0x515   : > { %13354 = vmatmul.mubr.msk.bf16.gmra.mrb[16].mxu1 %vm1331_vm8, %v18095_v30  ;;  %v9899_v30 = vshrl.u32 %v9829_v55, 16  ;;  %v9838_v55 = vld [vmem:[#allocation2 + $0x48] sm:$0xf] }
 0x516   : > { %13357 = vmatprep.mubr.msk.bf16.mxu1 %vm1331_vm8, %v18098_v31  ;;  %v18115_v31 = vld [vmem:[#allocation34_spill] sm:$0xff] }
 0x517   : > { %v9908_v1 = vshll.u32 %v18115_v31, 16  ;;  %v9912_v8 = vshrl.u32 %v18115_v31, 16  ;;  %v9901_v12 = vrot.slane %v9899_v30, 4  ;;  %v18119_v30 = vld [vmem:[#allocation37_spill] sm:$0xff]  ;;  %v9956_v31 = vshll.u32 %v18120_v21, 16 }
 0x518   : > { %v9942_v33 = vshll.u32 %v18119_v30, 16 }
 0x519   : > { %v9914_v18 = vrot.slane %v9912_v8, 4 }
 0x51d   : > { %13358 = vmatmul.mubr.msk.bf16.gmra.mrb[20].mxu1 %vm1331_vm8, %v18101_v16  ;;  %v9832_v16 = vld [vmem:[#allocation2 + $0x30] sm:$0xf] }
 0x51e   : > { %13361 = vmatprep.mubr.msk.bf16.mxu1 %vm1331_vm8, %v18104_v28  ;;  %v9894_v28 = vshll.u32 %v18116_v23, 16  ;;  %v9926_v61 = vshll.u32 %v9832_v16, 16  ;;  %v17492_v23 = vld [vmem:[#allocation2 + $0xd0] sm:$0xf] }
 0x520   : > { %v9928_v49 = vrot.slane %v9926_v61, 5  ;;  %v18121_v61 = vld [vmem:[#allocation43_spill] sm:$0xff] }
 0x525   : > { %13362 = vmatmul.mubr.msk.bf16.gmra.mrb[24].mxu1 %vm1331_vm8, %v18107_v57  ;;  %v14147_v57 = vld [vmem:[#allocation2 + $0xa8] sm:$0xff]  }
 0x526   : > { %13365 = vmatprep.mubr.msk.bf16.mxu1 %vm1331_vm8, %v18110_v26  ;;  %v17472_v26 = vrot.slane %v9908_v1, 5  ;;  %v9960_v1 = vshrl.u32 %v18120_v21, 16 }
 0x52d   : > { %13366 = vmatmul.mubr.msk.bf16.gmra.mrb[28].mxu1 %vm1331_vm8, %v18113_v10  ;;  %v18117_v10 = vld [vmem:[#allocation35_spill] sm:$0xff] }
 0x52e   : > { %13377 = vmatprep.mubr.msk.bf16.mxu1 %vm1331_vm8, %v14132_v58  ;;  %v9923_v58 = vshrl.u32 %v9832_v16, 16 }
 0x535   : > { %13378 = vmatmul.mubr.msk.bf16.vlgmr.msra.gmra.mrb[0].mxu1 %vm1331_vm8, %v14134_v59  ;;  %v9932_v59 = vshll.u32 %v18117_v10, 16 }
 0x536   : > { %13410 = vmatpush3.bf16.msra.mxu1 %v14133_v63  ;;  %13381 = vmatprep.mubr.msk.bf16.mxu1 %vm1331_vm8, %v14135_v38  ;;  %v14141_v63 = vld [vmem:[#allocation2 + $0x6c] sm:$0xff]   ;;  %v9882_v38 = vrot.slane %v9881_v52, 4  ;;  %v9980_v52 = vshll.u32 %v17033_v2, 16 }
 0x537   : > { %13411 = vmatprep.subr.bf16.mxu1 %v14138_v51  ;;  %v17482_v35 = vrot.slane %v9932_v59, 5  ;;  %v10008_v59 = vshrl.u32 %v18121_v61, 16 }
 0x538   : > { %v9887_v6 = vsel %vm14364_vm10, %v9882_v38, %v9886_v41  ;;  %v17502_v38 = vrot.slane %v9956_v31, 5  ;;  %v18122_v31 = vld [vmem:[#allocation39_spill] sm:$0xff] }
 0x53a   : > { %13412 = vmatpush3.bf16.msra.mxu1 %v14138_v51  ;;  %v9936_v51 = vshrl.u32 %v18117_v10, 16  ;;  %v10004_v10 = vshll.u32 %v18121_v61, 16  ;;  %v10028_v61 = vshll.u32 %v17054_v19, 16 }
 0x53b   : > { %13413 = vmatprep.subr.bf16.mxu1 %v14143_v60 }
 0x53c   : > { %v9938_v20 = vrot.slane %v9936_v51, 4 }
 0x53d   : > { %13382 = vmatmul.mubr.msk.bf16.gmra.mrb[4].mxu1 %vm1331_vm8, %v14136_v48  ;;  %v18118_v48 = vld [vmem:[#allocation36_spill] sm:$0xff] }
 0x53e   : > { %13385 = vmatprep.mubr.msk.bf16.mxu1 %vm1331_vm8, %v14137_v17  ;;  %13414 = vmatpush3.bf16.msra.mxu1 %v14143_v60  ;;  %v9896_v60 = vrot.slane %v9894_v28, 5  ;;  %v9835_v17 = vld [vmem:[#allocation2 + $0x3c] sm:$0xf]  ;;  %v9939_v41 = vor.u32 %v9938_v20, %v17482_v35  ;;  %v17494_v28 = vld [vmem:[#allocation2 + $0xd4] sm:$0x1] }
 0x53f   : > { %13415 = vmatprep.subr.bf16.mxu1 %v14148_v50  ;;  %v9947_v15 = vshrl.u32 %v9835_v17, 16  ;;  %v9950_v25 = vshll.u32 %v9835_v17, 16  ;;  %v14151_v17 = vld [vmem:[#allocation2 + $0xcc] sm:$0xff]  }
 0x542   : > { %13416 = vmatpush3.bf16.msra.mxu1 %v14148_v50  ;;  %v9918_v50 = vshll.u32 %v18118_v48, 16  ;;  %v9971_v48 = vshrl.u32 %v9838_v55, 16 }
 0x543   : > { %13449 = vmatprep.subr.bf16.mxu1 %v17458_v43 }
 0x545   : > { %13386 = vmatmul.mubr.msk.bf16.gmra.mrb[8].mxu1 %vm1331_vm8, %v14139_v29  ;;  %v9897_v29 = vsel %vm14364_vm10, %v9892_v36, %v9896_v60  ;;  %v10751_v36 = vrot.slane %v17492_v23, 5  ;;  %v9962_v60 = vrot.slane %v9960_v1, 4  ;;  %v9966_v1 = vshll.u32 %v18122_v31, 16 }
 0x546   : > { %13389 = vmatprep.mubr.msk.bf16.mxu1 %vm1331_vm8, %v14140_v22  ;;  %v9905_v22 = vor.u32 %v9904_v27, %v9901_v12  ;;  %v9984_v12 = vshrl.u32 %v17033_v2, 16  ;;  %v10754_v27 = vrot.slane %v17494_v28, 5  ;;  %v9974_v2 = vshll.u32 %v9838_v55, 16 }
 0x548   : > { %v9906_v5 = vrot.slane %v9905_v22, 4  ;;  %v17504_v22 = vrot.slane %v9980_v52, 5  ;;  %v9963_v52 = vor.u32 %v9962_v60, %v17502_v38  ;;  %v9968_v60 = vrot.slane %v9966_v1, 5 }
 0x54d   : > { %13390 = vmatmul.mubr.msk.bf16.gmra.mrb[12].mxu1 %vm1331_vm8, %v14141_v63  ;;  %v9925_v63 = vrot.slane %v9923_v58, 4  ;;  %v9952_v58 = vrot.slane %v9950_v25, 5  ;;  %v10010_v25 = vrot.slane %v10008_v59, 4 }
 0x54e   : > { %13393 = vmatprep.mubr.msk.bf16.mxu1 %vm1331_vm8, %v14142_v34  ;;  %v9915_v34 = vor.u32 %v9914_v18, %v17472_v26  ;;  %v9841_v18 = vld [vmem:[#allocation2 + $0x54] sm:$0xf] }
 0x54f   : > { %v9929_v16 = vor.u32 %v9928_v49, %v9925_v63  ;;  %v9995_v49 = vshrl.u32 %v9841_v18, 16  ;;  %v9998_v20 = vshll.u32 %v9841_v18, 16 }
 0x550   : > { %v9916_v8 = vrot.slane %v9915_v34, 4  ;;  %v9986_v34 = vrot.slane %v9984_v12, 4  ;;  %v9973_v12 = vrot.slane %v9971_v48, 4  ;;  %v18124_v48 = vld [vmem:[#allocation47_spill] sm:$0xff] }
 0x551   : > { %v9930_v21 = vrot.slane %v9929_v16, 4 }
 0x553   : > { %v9935_v18 = vsel %vm14364_vm10, %v9930_v21, %v17482_v35  ;;  %v14153_v35 = vld [vmem:[%s17868_s2 + $0x108] sm:$0xff]  }
 0x555   : > { %13394 = vmatmul.mubr.msk.bf16.gmra.mrb[16].mxu1 %vm1331_vm8, %v14144_v37  ;;  %v12212_v37 = vcombine.low %v9887_v6, %v9897_v29  ;;  %v9940_v29 = vrot.slane %v9939_v41, 4 }
 0x556   : > { %13397 = vmatprep.mubr.msk.bf16.mxu1 %vm1331_vm8, %v14145_v56  ;;  %v9920_v56 = vrot.slane %v9918_v50, 5  ;;  %v10753_v50 = vrot.slane %v10751_v36, 4 }
 0x558   : > { %v17512_v6 = vsel %vm14833_vm15, %v10753_v50, %v10754_v27  ;;  %v9921_v30 = vsel %vm14364_vm10, %v9916_v8, %v9920_v56  ;;  %v10000_v56 = vrot.slane %v9998_v20, 5  ;;  %v10022_v27 = vshll.u32 %v9844_v0, 16 }
 0x559   : > { %v10014_v50 = vshll.u32 %v18124_v48, 16 }
 0x55b   : > { %v10016_v1 = vrot.slane %v10014_v50, 5 }
 0x55d   : > { %13398 = vmatmul.mubr.msk.bf16.gmra.mrb[20].mxu1 %vm1331_vm8, %v14146_v42  ;;  %v9949_v42 = vrot.slane %v9947_v15, 4  ;;  %v9944_v15 = vrot.slane %v9942_v33, 5 }
 0x55e   : > { %13401 = vmatprep.mubr.msk.bf16.mxu1 %vm1331_vm8, %v14147_v57  ;;  %v10595_v57 = vld [vmem:[#allocation2 + $0xcc] sm:$0xe] }
 0x55f   : > { %v12263_v51 = vrot.slane %v10595_v57, 9  ;;  %v9945_v33 = vsel %vm14364_vm10, %v9940_v29, %v9944_v15  ;;  %v9953_v41 = vor.u32 %v9952_v58, %v9949_v42  ;;  %v9976_v57 = vrot.slane %v9974_v2, 5  ;;  %v18123_v42 = vld [vmem:[#allocation42_spill] sm:$0xff] }
 0x560   : > { %v9990_v58 = vshll.u32 %v18123_v42, 16  ;;  %v12214_v59 = vcombine.low %v9935_v18, %v9945_v33  ;;  %v10024_v15 = vrot.slane %v10022_v27, 5 }
 0x561   : > { %v17508_v63 = vsel %vm14833_vm15, %v12263_v51, %v10751_v36  ;;  %v10019_v36 = vshrl.u32 %v9844_v0, 16  ;;  %v9954_v51 = vrot.slane %v9953_v41, 4  ;;  %v9977_v29 = vor.u32 %v9976_v57, %v9973_v12  ;;  %v18125_v0 = vld [vmem:[#allocation50_spill] sm:$0xff] }
 0x562   : > { %v12287_v55 = vcombine.low %v17508_v63, %v17512_v6  ;;  %v10052_v33 = vshll.u32 %v18125_v0, 16  ;;  %v10056_v41 = vshrl.u32 %v18125_v0, 16 }
 0x563   : > { %v10021_v20 = vrot.slane %v10019_v36, 4  ;;  %v9959_v31 = vsel %vm14364_vm10, %v9954_v51, %v17502_v38  ;;  %v9978_v57 = vrot.slane %v9977_v29, 4 }
 0x565   : > { %13402 = vmatmul.mubr.msk.bf16.gmra.mrb[24].mxu1 %vm1331_vm8, %v14149_v32  ;;  %v17514_v32 = vrot.slane %v10004_v10, 5  ;;  %v9847_v10 = vld [vmem:[#allocation2 + $0x6c] sm:$0xf]  ;;  %v9983_v48 = vsel %vm14364_vm10, %v9978_v57, %v17504_v22 }
 0x566   : > { %13405 = vmatprep.mubr.msk.bf16.mxu1 %vm1331_vm8, %v14150_v13  ;;  %v9911_v13 = vsel %vm14364_vm10, %v9906_v5, %v17472_v26  ;;  %v9987_v26 = vor.u32 %v9986_v34, %v17504_v22  ;;  %v9997_v5 = vrot.slane %v9995_v49, 4  ;;  %v10046_v21 = vshll.u32 %v9847_v10, 16 }
 0x567   : > { %v12213_v8 = vcombine.low %v9911_v13, %v9921_v30  ;;  %v10011_v16 = vor.u32 %v10010_v25, %v17514_v32  ;;  %v10043_v25 = vshrl.u32 %v9847_v10, 16  ;;  %v9992_v13 = vrot.slane %v9990_v58, 5  ;;  %v18127_v10 = vld [vmem:[#allocation52_spill] sm:$0xff] }
 0x568   : > { %v9988_v2 = vrot.slane %v9987_v26, 4  ;;  %v10001_v34 = vor.u32 %v10000_v56, %v9997_v5  ;;  %v10025_v56 = vor.u32 %v10024_v15, %v10021_v20  ;;  %v10048_v18 = vrot.slane %v10046_v21, 5  ;;  %v14155_v20 = vld [vmem:[%s17868_s2 + $0x118] sm:$0xff]   ;;  %v9856_v21 = vld [vmem:[#allocation2 + $0x90] sm:$0xf] }
 0x569   : > { %v10012_v49 = vrot.slane %v10011_v16, 4  ;;  %v10045_v36 = vrot.slane %v10043_v25, 4  ;;  %v10080_v51 = vshrl.u32 %v18127_v10, 16  ;;  %v18128_v25 = vld [vmem:[#allocation55_spill] sm:$0xff]  ;;  %v10115_v57 = vshrl.u32 %v9856_v21, 16 }
 0x56a   : > { %v9993_v26 = vsel %vm14364_vm10, %v9988_v2, %v9992_v13  ;;  %v10002_v5 = vrot.slane %v10001_v34, 4  ;;  %v10026_v2 = vrot.slane %v10025_v56, 4  ;;  %v10062_v13 = vshll.u32 %v18128_v25, 16 }
 0x56b   : > { %v10017_v38 = vsel %vm14364_vm10, %v10012_v49, %v10016_v1  ;;  %v9853_v49 = vld [vmem:[#allocation2 + $0x84] sm:$0xf]  ;;  %v10049_v15 = vor.u32 %v10048_v18, %v10045_v36  ;;  %v10082_v1 = vrot.slane %v10080_v51, 4 }
 0x56c   : > { %v10007_v50 = vsel %vm14364_vm10, %v10002_v5, %v17514_v32  ;;  %v10091_v0 = vshrl.u32 %v9853_v49, 16  ;;  %v18130_v5 = vld [vmem:[#allocation60_spill] sm:$0xff]  ;;  %v10064_v36 = vrot.slane %v10062_v13, 5 }
 0x56d   : > { %13406 = vmatmul.mubr.msk.bf16.gmra.mrb[28].mxu1 %vm1331_vm8, %v14151_v17  ;;  %v9964_v17 = vrot.slane %v9963_v52, 4  ;;  %v9850_v52 = vld [vmem:[#allocation2 + $0x78] sm:$0xf]  ;;  %v12217_v29 = vcombine.low %v10007_v50, %v10017_v38  ;;  %v10124_v38 = vshll.u32 %v18130_v5, 16  ;;  %v10128_v56 = vshrl.u32 %v18130_v5, 16 }
 0x56e   : > { %13417 = vmatprep.mubr.msk.bf16.mxu1 %vm1331_vm8, %v12212_v37  ;;  %v10032_v37 = vshrl.u32 %v17054_v19, 16  ;;  %v17541_v19 = vrot.slane %v10028_v61, 5  ;;  %v10067_v42 = vshrl.u32 %v9850_v52, 16  ;;  %v10070_v58 = vshll.u32 %v9850_v52, 16  ;;  %v14213_v5 = vld [vmem:[#allocation2 + $0x98] sm:$0x1] }
 0x56f   : > { %v9969_v12 = vsel %vm14364_vm10, %v9964_v17, %v9968_v60  ;;  %v17562_v61 = vrot.slane %v10052_v33, 5  ;;  %v12216_v17 = vcombine.low %v9983_v48, %v9993_v26  ;;  %v10094_v33 = vshll.u32 %v9853_v49, 16 }
 0x570   : > { %v10034_v30 = vrot.slane %v10032_v37, 4  ;;  %v10058_v37 = vrot.slane %v10056_v41, 4  ;;  %v12215_v60 = vcombine.low %v9959_v31, %v9969_v12  ;;  %v10072_v22 = vrot.slane %v10070_v58, 5  ;;  %v18129_v41 = vld [vmem:[#allocation58_spill] sm:$0xff]  ;;  %v14210_v58 = vld [vmem:[#allocation2 + $0x80] sm:$0x1] }
 0x571   : > { %v10100_v52 = vshll.u32 %v18129_v41, 16  ;;  %v10104_v12 = vshrl.u32 %v18129_v41, 16  ;;  %v10118_v26 = vshll.u32 %v9856_v21, 16  ;;  %v10117_v48 = vrot.slane %v10115_v57, 4  ;;  %v14212_v41 = vld [vmem:[#allocation2 + $0xa0] sm:$0xf] }
 0x572   : > { %v10035_v27 = vor.u32 %v10034_v30, %v17541_v19  ;;  %v10069_v30 = vrot.slane %v10067_v42, 4  ;;  %v9862_v57 = vld [vmem:[#allocation2 + $0xa8] sm:$0xf] }
 0x573   : > { %v17591_v51 = vrot.slane %v10100_v52, 5  ;;  %v10120_v50 = vrot.slane %v10118_v26, 5  ;;  %v10148_v52 = vshll.u32 %v14212_v41, 16 }
 0x574   : > { %v10036_v32 = vrot.slane %v10035_v27, 4  ;;  %v10073_v27 = vor.u32 %v10072_v22, %v10069_v30 }
 0x575   : > { %13418 = vmatmul.mubr.msk.bf16.vlgmr.msra.gmra.mrb[0].mxu1 %vm1331_vm8, %v12213_v8  ;;  %v18126_v8 = vld [vmem:[#allocation48_spill] sm:$0xff] }
 0x576   : > { %13450 = vmatpush3.bf16.msra.mxu1 %v17458_v43  ;;  %13421 = vmatprep.mubr.msk.bf16.mxu1 %vm1331_vm8, %v12214_v59  ;;  %v10038_v16 = vshll.u32 %v18126_v8, 16  ;;  %v14154_v43 = vld [vmem:[%s17868_s2 + $0x110] sm:$0xff]   ;;  %v10076_v59 = vshll.u32 %v18127_v10, 16  ;;  %v10031_v8 = vsel %vm14364_vm10, %v10026_v2, %v17541_v19  ;;  %v10093_v10 = vrot.slane %v10091_v0, 4  ;;  %v9859_v2 = vld [vmem:[#allocation2 + $0x9c] sm:$0xf] }
 0x577   : > { %13451 = vmatprep.subr.bf16.mxu1 %v14153_v35  ;;  %v17593_v19 = vrot.slane %v10124_v38, 5  ;;  %v10139_v22 = vshrl.u32 %v9859_v2, 16  ;;  %v10142_v21 = vshll.u32 %v9859_v2, 16  ;;  %v10121_v0 = vor.u32 %v10120_v50, %v10117_v48 }
 0x578   : > { %v10040_v34 = vrot.slane %v10038_v16, 5  ;;  %v17578_v31 = vrot.slane %v10076_v59, 5  ;;  %v10050_v16 = vrot.slane %v10049_v15, 4  ;;  %v10096_v59 = vrot.slane %v10094_v33, 5 }
 0x579   : > { %v10074_v15 = vrot.slane %v10073_v27, 4  ;;  %v10134_v38 = vshll.u32 %v14213_v5, 16 }
 0x57a   : > { %13452 = vmatpush3.bf16.msra.mxu1 %v14153_v35  ;;  %v10059_v35 = vor.u32 %v10058_v37, %v17562_v61  ;;  %v10041_v18 = vsel %vm14364_vm10, %v10036_v32, %v10040_v34  ;;  %v10086_v37 = vshll.u32 %v14210_v58, 16  ;;  %v10055_v34 = vsel %vm14364_vm10, %v10050_v16, %v17562_v61 }
 0x57b   : > { %13453 = vmatprep.subr.bf16.mxu1 %v14154_v43  ;;  %v12218_v49 = vcombine.low %v10031_v8, %v10041_v18  ;;  %v10079_v61 = vsel %vm14364_vm10, %v10074_v15, %v17578_v31  ;;  %v10141_v18 = vrot.slane %v10139_v22, 4  ;;  %v10136_v50 = vrot.slane %v10134_v38, 5 }
 0x57c   : > { %v10060_v42 = vrot.slane %v10059_v35, 4  ;;  %v10088_v32 = vrot.slane %v10086_v37, 5  ;;  %v14211_v35 = vld [vmem:[#allocation2 + $0x8c] sm:$0x1]  ;;  %v10163_v37 = vshrl.u32 %v9862_v57, 16 }
 0x57d   : > { %13422 = vmatmul.mubr.msk.bf16.gmra.mrb[4].mxu1 %vm1331_vm8, %v12215_v60  ;;  %v10106_v60 = vrot.slane %v10104_v12, 4  ;;  %v10152_v12 = vshrl.u32 %v14212_v41, 16 }
 0x57e   : > { %13425 = vmatprep.mubr.msk.bf16.mxu1 %vm1331_vm8, %v12216_v17  ;;  %13454 = vmatpush3.bf16.msra.mxu1 %v14154_v43  ;;  %v10083_v43 = vor.u32 %v10082_v1, %v17578_v31  ;;  %v10130_v17 = vrot.slane %v10128_v56, 4  ;;  %v10065_v25 = vsel %vm14364_vm10, %v10060_v42, %v10064_v36  ;;  %v10110_v1 = vshll.u32 %v14211_v35, 16  ;;  %v14214_v56 = vld [vmem:[#allocation2 + $0xac] sm:$0xf] }
 0x57f   : > { %13455 = vmatprep.subr.bf16.mxu1 %v14155_v20  ;;  %v10107_v30 = vor.u32 %v10106_v60, %v17591_v51  ;;  %v12219_v33 = vcombine.low %v10055_v34, %v10065_v25  ;;  %v10172_v8 = vshll.u32 %v14214_v56, 16  ;;  %v10176_v16 = vshrl.u32 %v14214_v56, 16 }
 0x580   : > { %v10084_v13 = vrot.slane %v10083_v43, 4  ;;  %v10144_v42 = vrot.slane %v10142_v21, 5  ;;  %v10122_v43 = vrot.slane %v10121_v0, 4  ;;  %v10166_v31 = vshll.u32 %v9862_v57, 16  ;;  %v14216_v0 = vld [vmem:[#allocation2 + $0xb8] sm:$0xf] }
 0x581   : > { %v10108_v27 = vrot.slane %v10107_v30, 4  ;;  %v17609_v60 = vrot.slane %v10148_v52, 5  ;;  %v10154_v48 = vrot.slane %v10152_v12, 4  ;;  %v10178_v2 = vrot.slane %v10176_v16, 4  ;;  %v14217_v52 = vld [vmem:[#allocation2 + $0xc4] sm:$0xf] }
 0x582   : > { %13456 = vmatpush3.bf16.msra.mxu1 %v14155_v20  ;;  %v10097_v20 = vor.u32 %v10096_v59, %v10093_v10  ;;  %v10089_v26 = vsel %vm14364_vm10, %v10084_v13, %v10088_v32  ;;  %v10112_v59 = vrot.slane %v10110_v1, 5  ;;  %v10145_v25 = vor.u32 %v10144_v42, %v10141_v18  ;;  %v14215_v13 = vld [vmem:[#allocation2 + $0xa4] sm:$0x1]  ;;  %v9871_v18 = vld [vmem:[#allocation2 + $0xcc] sm:$0xf] }
 0x583   : > { %v12220_v10 = vcombine.low %v10079_v61, %v10089_v26  ;;  %v10127_v30 = vsel %vm14364_vm10, %v10122_v43, %v17593_v19  ;;  %v10165_v21 = vrot.slane %v10163_v37, 4  ;;  %v10168_v32 = vrot.slane %v10166_v31, 5 }
 0x584   : > { %v10098_v36 = vrot.slane %v10097_v20, 4  ;;  %v10113_v34 = vsel %vm14364_vm10, %v10108_v27, %v10112_v59  ;;  %v10158_v20 = vshll.u32 %v14215_v13, 16  ;;  %v10155_v35 = vor.u32 %v10154_v48, %v17609_v60 }
 0x585   : > { %13426 = vmatmul.mubr.msk.bf16.gmra.mrb[8].mxu1 %vm1331_vm8, %v12217_v29  ;;  %v10131_v29 = vor.u32 %v10130_v17, %v17593_v19  ;;  %v17612_v17 = vrot.slane %v10172_v8, 5  ;;  %v10220_v12 = vshll.u32 %v14217_v52, 16  ;;  %v10224_v57 = vshrl.u32 %v14217_v52, 16  ;;  %v14218_v8 = vld [vmem:[#allocation2 + $0xb0] sm:$0x1] }
 0x586   : > { %13429 = vmatprep.mubr.msk.bf16.mxu1 %vm1331_vm8, %v12218_v49  ;;  %v9865_v49 = vld [vmem:[#allocation2 + $0xb4] sm:$0xf]  ;;  %v10103_v15 = vsel %vm14364_vm10, %v10098_v36, %v17591_v51  ;;  %v10196_v51 = vshll.u32 %v14216_v0, 16  ;;  %v10146_v5 = vrot.slane %v10145_v25, 4  ;;  %v10160_v38 = vrot.slane %v10158_v20, 5 }
 0x587   : > { %v10132_v58 = vrot.slane %v10131_v29, 4  ;;  %v10187_v1 = vshrl.u32 %v9865_v49, 16  ;;  %v10200_v29 = vshrl.u32 %v14216_v0, 16  ;;  %v10179_v61 = vor.u32 %v10178_v2, %v17612_v17 }
 0x588   : > { %v10190_v41 = vshll.u32 %v9865_v49, 16  ;;  %v12221_v26 = vcombine.low %v10103_v15, %v10113_v34  ;;  %v10169_v56 = vor.u32 %v10168_v32, %v10165_v21  ;;  %v10182_v16 = vshll.u32 %v14218_v8, 16 }
 0x589   : > { %v10137_v22 = vsel %vm14364_vm10, %v10132_v58, %v10136_v50  ;;  %v10156_v42 = vrot.slane %v10155_v35, 4  ;;  %v10189_v43 = vrot.slane %v10187_v1, 4  ;;  %v10198_v58 = vrot.slane %v10196_v51, 5  ;;  %v14219_v1 = vld [vmem:[#allocation2 + $0xbc] sm:$0x1] }
 0x58a   : > { %v12222_v19 = vcombine.low %v10127_v30, %v10137_v22  ;;  %v10202_v37 = vrot.slane %v10200_v29, 4  ;;  %v10180_v31 = vrot.slane %v10179_v61, 4  ;;  %v10222_v59 = vrot.slane %v10220_v12, 5  ;;  %v14220_v12 = vld [vmem:[#allocation2 + $0xc8] sm:$0x1] }
 0x58b   : > { %v10226_v48 = vrot.slane %v10224_v57, 4  ;;  %v10235_v50 = vshrl.u32 %v9871_v18, 16  ;;  %v10238_v2 = vshll.u32 %v9871_v18, 16  ;;  %v10244_v49 = vshll.u32 %v17492_v23, 16 }
 0x58c   : > { %v10248_v15 = vshrl.u32 %v17492_v23, 16  ;;  %v10170_v34 = vrot.slane %v10169_v56, 4  ;;  %v10184_v25 = vrot.slane %v10182_v16, 5  ;;  %v10151_v30 = vsel %vm14364_vm10, %v10146_v5, %v17609_v60 }
 0x58d   : > { %13430 = vmatmul.mubr.msk.bf16.gmra.mrb[12].mxu1 %vm1331_vm8, %v12219_v33  ;;  %v9868_v33 = vld [vmem:[#allocation2 + $0xc0] sm:$0xf]  ;;  %v10161_v22 = vsel %vm14364_vm10, %v10156_v42, %v10160_v38  ;;  %v10203_v21 = vor.u32 %v10202_v37, %v10198_v58  ;;  %v10206_v0 = vshll.u32 %v14219_v1, 16  ;;  %v10227_v51 = vor.u32 %v10226_v48, %v10222_v59  ;;  %v18143_v1 = vld [vmem:[#allocation54_spill] sm:$0xff] }
 0x58e   : > { %13433 = vmatprep.mubr.msk.bf16.mxu1 %vm1331_vm8, %v12220_v10  ;;  %v10211_v36 = vshrl.u32 %v9868_v33, 16  ;;  %v10214_v27 = vshll.u32 %v9868_v33, 16  ;;  %v10192_v10 = vrot.slane %v10190_v41, 5  ;;  %v10185_v32 = vsel %vm14364_vm10, %v10180_v31, %v10184_v25 }
 0x58f   : > { %v10237_v23 = vrot.slane %v10235_v50, 4  ;;  %v10240_v29 = vrot.slane %v10238_v2, 5  ;;  %v10246_v33 = vrot.slane %v10244_v49, 5  ;;  %v10250_v61 = vrot.slane %v10248_v15, 4 }
 0x590   : > { %v10213_v13 = vrot.slane %v10211_v36, 4  ;;  %v10216_v20 = vrot.slane %v10214_v27, 5  ;;  %v10193_v35 = vor.u32 %v10192_v10, %v10189_v43  ;;  %v12223_v41 = vcombine.low %v10151_v30, %v10161_v22  ;;  %v18137_v30 = vld [vmem:[#allocation46_spill] sm:$0xff]  ;;  %v18138_v22 = vld [vmem:[#allocation49_spill] sm:$0xff] }
 0x591   : > { %v10175_v60 = vsel %vm14364_vm10, %v10170_v34, %v17612_v17  ;;  %v10230_v57 = vshll.u32 %v14220_v12, 16  ;;  %v10208_v5 = vrot.slane %v10206_v0, 5  ;;  %v10228_v38 = vrot.slane %v10227_v51, 4  ;;  %v18132_v34 = vld [vmem:[#allocation41_spill] sm:$0xff]  ;;  %v18144_v0 = vld [vmem:[#allocation56_spill] sm:$0xff] }
 0x592   : > { %v10217_v52 = vor.u32 %v10216_v20, %v10213_v13  ;;  %v10194_v56 = vrot.slane %v10193_v35, 4  ;;  %v10241_v8 = vor.u32 %v10240_v29, %v10237_v23  ;;  %v10251_v16 = vor.u32 %v10250_v61, %v10246_v33  ;;  %v18135_v13 = vld [vmem:[#allocation45_spill] sm:$0xff]  ;;  %v18147_v29 = vld [vmem:[#allocation59_spill] sm:$0xff]  ;;  %v18153_v12 = vld [vmem:[#allocation64_spill] sm:$0xff] }
 0x593   : > { %v10254_v36 = vshll.u32 %v17494_v28, 16  ;;  %v10232_v18 = vrot.slane %v10230_v57, 5  ;;  %v18145_v51 = vcombine.low %v18143_v1, %v18144_v0  ;;  %v18146_v23 = vld [vmem:[#allocation57_spill] sm:$0xff] }
 0x594   : > { %v10218_v27 = vrot.slane %v10217_v52, 4  ;;  %v10199_v43 = vsel %vm14364_vm10, %v10194_v56, %v10198_v58  ;;  %v10242_v37 = vrot.slane %v10241_v8, 4  ;;  %v10252_v31 = vrot.slane %v10251_v16, 4  ;;  %v18131_v58 = vld [vmem:[#allocation40_spill] sm:$0xff]  ;;  %v18149_v61 = vld [vmem:[#allocation61_spill] sm:$0xff]  ;;  %v18152_v52 = vld [vmem:[#allocation63_spill] sm:$0xff] }
 0x595   : > { %13434 = vmatmul.mubr.msk.bf16.gmra.mrb[16].mxu1 %vm1331_vm8, %v12221_v26  ;;  %v12224_v26 = vcombine.low %v10175_v60, %v10185_v32  ;;  %v10233_v42 = vsel %vm14364_vm10, %v10228_v38, %v10232_v18  ;;  %v10256_v10 = vrot.slane %v10254_v36, 5  ;;  %v18133_v25 = vcombine.low %v18131_v58, %v18132_v34  ;;  %v18141_v32 = vld [vmem:[#allocation53_spill] sm:$0xff] }
 0x596   : > { %13437 = vmatprep.mubr.msk.bf16.mxu1 %vm1331_vm8, %v12222_v19  ;;  %v10204_v19 = vrot.slane %v10203_v21, 4  ;;  %v10223_v50 = vsel %vm14364_vm10, %v10218_v27, %v10222_v59  ;;  %v10247_v28 = vsel %vm14364_vm10, %v10242_v37, %v10246_v33  ;;  %v18134_v59 = vld [vmem:[#allocation44_spill] sm:$0xff]  ;;  %v18139_v21 = vcombine.low %v18137_v30, %v18138_v22 }
 0x597   : > { %v12226_v2 = vcombine.low %v10223_v50, %v10233_v42  ;;  %v10257_v49 = vsel %vm14364_vm10, %v10252_v31, %v10256_v10  ;;  %v18136_v20 = vcombine.low %v18134_v59, %v18135_v13  ;;  %v18142_v35 = vcombine.low %v18140_v40, %v18141_v32 }
 0x598   : > { %v10209_v17 = vsel %vm14364_vm10, %v10204_v19, %v10208_v5  ;;  %v12227_v15 = vcombine.low %v10247_v28, %v10257_v49  ;;  %v18148_v33 = vcombine.low %v18146_v23, %v18147_v29  ;;  %v18154_v57 = vcombine.low %v18152_v52, %v18153_v12  ;;  %v18156_v19 = vld [vmem:[#allocation65_spill] sm:$0xff]  ;;  %v18157_v5 = vld [vmem:[#allocation66_spill] sm:$0xff]  ;;  %v14227_v49 = vld [vmem:[%s14354_s9 + $0x1c] sm:$0xf] }
 0x599   : > { %v12225_v48 = vcombine.low %v10199_v43, %v10209_v17  ;;  %v18158_v38 = vcombine.low %v18156_v19, %v18157_v5  ;;  %v18159_v56 = vcombine.low %v17196_v53, %v17200_v54  ;;  %v14225_v43 = vld [vmem:[%s14354_s9 + $0x18] sm:$0xf]  ;;  %v14231_v12 = vld [vmem:[%s14354_s9 + $0x2c] sm:$0xf]  ;;  %v14232_v5 = vld [vmem:[%s14354_s9 + $0x24] sm:$0xf] }
 0x59a   : > { %v11121_v37 = vunpack.c.l.bf16 %v14225_v43 }
 0x59d   : > { %13438 = vmatmul.mubr.msk.bf16.gmra.mrb[20].mxu1 %vm1331_vm8, %v12223_v41  ;;  %v18150_v41 = vld [vmem:[#allocation62_spill] sm:$0xff] }
 0x59e   : > { %13441 = vmatprep.mubr.msk.bf16.mxu1 %vm1331_vm8, %v12224_v26  ;;  %v18151_v60 = vcombine.low %v18149_v61, %v18150_v41  ;;  %v18155_v26 = vcombine.low %v17165_v3, %v17177_v4  ;;  %v18160_v3 = vcombine.low %v17227_v44, %v17231_v9  ;;  %v14221_v4 = vld [vmem:[%s14354_s9 + $0x8] sm:$0xf]  ;;  %v14230_v61 = vld [vmem:[%s14354_s9 + $0x20] sm:$0xf] }
 0x59f   : > { %v11117_v53 = vunpack.c.l.bf16 %v14221_v4  ;;  %v11123_v41 = vunpack.c.l.bf16 %v14230_v61 }
 0x5a5   : > { %13442 = vmatmul.mubr.msk.bf16.gmra.mrb[24].mxu1 %vm1331_vm8, %v12225_v48  ;;  %v14226_v48 = vld [vmem:[%s14354_s9 + $0x10] sm:$0xf] }
 0x5a6   : > { %13445 = vmatprep.mubr.msk.bf16.mxu1 %vm1331_vm8, %v12226_v2  ;;  %v11119_v50 = vunpack.c.l.bf16 %v14226_v48 }
 0x5ad   : > { %13446 = vmatmul.mubr.msk.bf16.gmra.mrb[28].mxu1 %vm1331_vm8, %v12227_v15  ;;  %v11122_v15 = vunpack.c.l.bf16 %v14227_v49 }
 0x5ae   : > { %13457 = vmatprep.mubr.msk.bf16.mxu1 %vm1331_vm8, %v18133_v25  ;;  %v14228_v25 = vld [vmem:[%s14354_s9 + $0x14] sm:$0xf] }
 0x5af   : > { %v11120_v59 = vunpack.c.l.bf16 %v14228_v25 }
 0x5b5   : > { %13458 = vmatmul.mubr.msk.bf16.vlgmr.msra.gmra.mrb[0].mxu1 %vm1331_vm8, %v18136_v20 }
 0x5b6   : > { %13461 = vmatprep.mubr.msk.bf16.mxu1 %vm1331_vm8, %v18139_v21 }
 0x5bd   : > { %13462 = vmatmul.mubr.msk.bf16.gmra.mrb[4].mxu1 %vm1331_vm8, %v18142_v35 }
 0x5be   : > { %13465 = vmatprep.mubr.msk.bf16.mxu1 %vm1331_vm8, %v18145_v51  ;;  %v14229_v51 = vld [vmem:[%s14354_s9 + $0x28] sm:$0xf] }
 0x5bf   : > { %v11125_v23 = vunpack.c.l.bf16 %v14229_v51 }
 0x5c5   : > { %13466 = vmatmul.mubr.msk.bf16.gmra.mrb[8].mxu1 %vm1331_vm8, %v18148_v33 }
 0x5c6   : > { %13469 = vmatprep.mubr.msk.bf16.mxu1 %vm1331_vm8, %v18151_v60 }
 0x5cd   : > { %13470 = vmatmul.mubr.msk.bf16.gmra.mrb[12].mxu1 %vm1331_vm8, %v18154_v57  ;;  %v11126_v57 = vunpack.c.l.bf16 %v14231_v12 }
 0x5ce   : > { %13473 = vmatprep.mubr.msk.bf16.mxu1 %vm1331_vm8, %v18155_v26 }
 0x5d5   : > { %13474 = vmatmul.mubr.msk.bf16.gmra.mrb[16].mxu1 %vm1331_vm8, %v18158_v38  ;;  %v11124_v38 = vunpack.c.l.bf16 %v14232_v5 }
 0x5d6   : > { %13477 = vmatprep.mubr.msk.bf16.mxu1 %vm1331_vm8, %v18159_v56 }
 0x5dd   : > { %13478 = vmatmul.mubr.msk.bf16.gmra.mrb[20].mxu1 %vm1331_vm8, %v12283_v47  ;;  %v11115_v47 = vunpack.c.l.bf16 %v14222_v11 }
 0x5de   : > { %13481 = vmatprep.mubr.msk.bf16.mxu1 %vm1331_vm8, %v18160_v3 }
 0x5e5   : > { %13482 = vmatmul.mubr.msk.bf16.gmra.mrb[24].mxu1 %vm1331_vm8, %v12285_v39 }
 0x5e6   : > { %13485 = vmatprep.mubr.msk.bf16.mxu1 %vm1331_vm8, %v12286_v14  ;;  %v11116_v14 = vunpack.c.l.bf16 %v14224_v46 }
 0x5ed   : > { %13486 = vmatmul.mubr.msk.bf16.gmra.mrb[28].mxu1 %vm1331_vm8, %v12287_v55 }
 0x688   : > { %v13459_v54 = vpop.f32.mrb[0].mxu1 }
 0x689   : > { %v11085_v44 = vadd.f32 %v13459_v54, %v17726_v7  ;;  %v10919_v9 = vpop.f32.mrb[1].mxu1 }
 0x68a   : > { %v11083_v62 = vadd.f32 %v17726_v7, %v10919_v9  ;;  %v13460_v39 = vpop.f32.mrb[2].mxu1 }
 0x68b   : > { %v11149_v63 = vadd.f32 %v11117_v53, %v11085_v44  ;;  %v11086_v6 = vadd.f32 %v13460_v39, %v17726_v7  ;;  %v10922_v55 = vpop.f32.mrb[3].mxu1 }
 0x68c   : > { %v11147_v8 = vadd.f32 %v11115_v47, %v11083_v62  ;;  %v11084_v16 = vadd.f32 %v17726_v7, %v10922_v55 }
 0x68d   : > { %v12379_v36 = vpack.c.bf16 %v11149_v63, %v11149_v63  ;;  %v11150_v27 = vadd.f32 %v11118_v24, %v11086_v6  ;;  %v14233_v24 = vld [vmem:[%s14354_s9 + $0x38] sm:$0xf] }
 0x68e   : > { %v12377_v18 = vpack.c.bf16 %v11147_v8, %v11147_v8  ;;  %v11148_v17 = vadd.f32 %v11116_v14, %v11084_v16  ;;  %v11129_v62 = vunpack.c.l.bf16 %v14233_v24  ;;  %v14234_v14 = vld [vmem:[%s14354_s9 + $0x30] sm:$0xf]  ;;  %v14235_v8 = vld [vmem:[%s14354_s9 + $0x3c] sm:$0xf] }
 0x68f   : > { %11309 = vst.msk [vmem:[%s17740_s24 + $0x8] sm:$0xf] %vm228_vm0, %v12379_v36  ;;  %v12380_v42 = vpack.c.bf16 %v11150_v27, %v11150_v27  ;;  %v11127_v63 = vunpack.c.l.bf16 %v14234_v14  ;;  %v11130_v16 = vunpack.c.l.bf16 %v14235_v8 }
 0x690   : > { %11307 = vst.msk [vmem:[%s17740_s24] sm:$0xf] %vm228_vm0, %v12377_v18  ;;  %v12378_v31 = vpack.c.bf16 %v11148_v17, %v11148_v17  ;;  %v13463_v10 = vpop.f32.mrb[4].mxu1  ;;  %v14236_v18 = vld [vmem:[%s14354_s9 + $0x34] sm:$0xf] }
 0x691   : > { %11310 = vst.msk [vmem:[%s17740_s24 + $0xc] sm:$0xf] %vm228_vm0, %v12380_v42  ;;  %v11089_v2 = vadd.f32 %v13463_v10, %v17726_v7  ;;  %v10935_v28 = vpop.f32.mrb[5].mxu1  ;;  %v11128_v17 = vunpack.c.l.bf16 %v14236_v18 }
 0x692   : > { %11308 = vst.msk [vmem:[%s17740_s24 + $0x4] sm:$0xf] %vm228_vm0, %v12378_v31  ;;  %v11087_v58 = vadd.f32 %v17726_v7, %v10935_v28  ;;  %v13464_v34 = vpop.f32.mrb[6].mxu1 }
 0x693   : > { %v11153_v13 = vadd.f32 %v11121_v37, %v11089_v2  ;;  %v11090_v20 = vadd.f32 %v13464_v34, %v17726_v7  ;;  %v10938_v30 = vpop.f32.mrb[7].mxu1 }
 0x694   : > { %v11151_v22 = vadd.f32 %v11119_v50, %v11087_v58  ;;  %v11088_v21 = vadd.f32 %v17726_v7, %v10938_v30 }
 0x695   : > { %v12383_v40 = vpack.c.bf16 %v11153_v13, %v11153_v13  ;;  %v11154_v32 = vadd.f32 %v11122_v15, %v11090_v20  ;;  %v14237_v15 = vld [vmem:[%s14354_s9 + $0x48] sm:$0xf] }
 0x696   : > { %v12381_v35 = vpack.c.bf16 %v11151_v22, %v11151_v22  ;;  %v11152_v1 = vadd.f32 %v11120_v59, %v11088_v21  ;;  %v11133_v58 = vunpack.c.l.bf16 %v14237_v15  ;;  %v14238_v59 = vld [vmem:[%s14354_s9 + $0x40] sm:$0xf]  ;;  %v14239_v22 = vld [vmem:[%s14354_s9 + $0x4c] sm:$0xf] }
 0x697   : > { %11313 = vst.msk [vmem:[%s17740_s24 + $0x18] sm:$0xf] %vm228_vm0, %v12383_v40  ;;  %v12384_v0 = vpack.c.bf16 %v11154_v32, %v11154_v32  ;;  %v11131_v13 = vunpack.c.l.bf16 %v14238_v59  ;;  %v11134_v21 = vunpack.c.l.bf16 %v14239_v22 }
 0x698   : > { %11311 = vst.msk [vmem:[%s17740_s24 + $0x10] sm:$0xf] %vm228_vm0, %v12381_v35  ;;  %v12382_v29 = vpack.c.bf16 %v11152_v1, %v11152_v1  ;;  %v13467_v33 = vpop.f32.mrb[8].mxu1  ;;  %v14240_v35 = vld [vmem:[%s14354_s9 + $0x44] sm:$0xf] }
 0x699   : > { %11314 = vst.msk [vmem:[%s17740_s24 + $0x1c] sm:$0xf] %vm228_vm0, %v12384_v0  ;;  %v11093_v60 = vadd.f32 %v13467_v33, %v17726_v7  ;;  %v10951_v52 = vpop.f32.mrb[9].mxu1  ;;  %v11132_v1 = vunpack.c.l.bf16 %v14240_v35 }
 0x69a   : > { %11312 = vst.msk [vmem:[%s17740_s24 + $0x14] sm:$0xf] %vm228_vm0, %v12382_v29  ;;  %v11091_v26 = vadd.f32 %v17726_v7, %v10951_v52  ;;  %v13468_v19 = vpop.f32.mrb[10].mxu1 }
 0x69b   : > { %v11157_v56 = vadd.f32 %v11125_v23, %v11093_v60  ;;  %v11094_v3 = vadd.f32 %v13468_v19, %v17726_v7  ;;  %v10954_v4 = vpop.f32.mrb[11].mxu1 }
 0x69c   : > { %v11155_v53 = vadd.f32 %v11123_v41, %v11091_v26  ;;  %v11092_v54 = vadd.f32 %v17726_v7, %v10954_v4 }
 0x69d   : > { %v12387_v11 = vpack.c.bf16 %v11157_v56, %v11157_v56  ;;  %v11158_v47 = vadd.f32 %v11126_v57, %v11094_v3  ;;  %v14241_v57 = vld [vmem:[%s14354_s9 + $0x58] sm:$0xf] }
 0x69e   : > { %v12385_v44 = vpack.c.bf16 %v11155_v53, %v11155_v53  ;;  %v11156_v9 = vadd.f32 %v11124_v38, %v11092_v54  ;;  %v11137_v26 = vunpack.c.l.bf16 %v14241_v57  ;;  %v14242_v38 = vld [vmem:[%s14354_s9 + $0x50] sm:$0xf]  ;;  %v14243_v53 = vld [vmem:[%s14354_s9 + $0x5c] sm:$0xf] }
 0x69f   : > { %11317 = vst.msk [vmem:[%s17740_s24 + $0x28] sm:$0xf] %vm228_vm0, %v12387_v11  ;;  %v12388_v45 = vpack.c.bf16 %v11158_v47, %v11158_v47  ;;  %v11135_v56 = vunpack.c.l.bf16 %v14242_v38  ;;  %v11138_v54 = vunpack.c.l.bf16 %v14243_v53 }
 0x6a0   : > { %11315 = vst.msk [vmem:[%s17740_s24 + $0x20] sm:$0xf] %vm228_vm0, %v12385_v44  ;;  %v12386_v39 = vpack.c.bf16 %v11156_v9, %v11156_v9  ;;  %v13471_v46 = vpop.f32.mrb[12].mxu1  ;;  %v14244_v44 = vld [vmem:[%s14354_s9 + $0x54] sm:$0xf] }
 0x6a1   : > { %11318 = vst.msk [vmem:[%s17740_s24 + $0x2c] sm:$0xf] %vm228_vm0, %v12388_v45  ;;  %v11097_v6 = vadd.f32 %v13471_v46, %v17726_v7  ;;  %v10967_v55 = vpop.f32.mrb[13].mxu1  ;;  %v11136_v9 = vunpack.c.l.bf16 %v14244_v44 }
 0x6a2   : > { %11316 = vst.msk [vmem:[%s17740_s24 + $0x24] sm:$0xf] %vm228_vm0, %v12386_v39  ;;  %v11095_v36 = vadd.f32 %v17726_v7, %v10967_v55  ;;  %v13472_v27 = vpop.f32.mrb[14].mxu1 }
 0x6a3   : > { %v11161_v42 = vadd.f32 %v11129_v62, %v11097_v6  ;;  %v11098_v43 = vadd.f32 %v13472_v27, %v17726_v7  ;;  %v10970_v37 = vpop.f32.mrb[15].mxu1 }
 0x6a4   : > { %v11159_v31 = vadd.f32 %v11127_v63, %v11095_v36  ;;  %v11096_v10 = vadd.f32 %v17726_v7, %v10970_v37 }
 0x6a5   : > { %v12391_v48 = vpack.c.bf16 %v11161_v42, %v11161_v42  ;;  %v11162_v50 = vadd.f32 %v11130_v16, %v11098_v43  ;;  %v14245_v16 = vld [vmem:[%s14354_s9 + $0x68] sm:$0xf] }
 0x6a6   : > { %v12389_v2 = vpack.c.bf16 %v11159_v31, %v11159_v31  ;;  %v11160_v28 = vadd.f32 %v11128_v17, %v11096_v10  ;;  %v11141_v36 = vunpack.c.l.bf16 %v14245_v16  ;;  %v14246_v17 = vld [vmem:[%s14354_s9 + $0x60] sm:$0xf]  ;;  %v14247_v31 = vld [vmem:[%s14354_s9 + $0x6c] sm:$0xf] }
 0x6a7   : > { %11321 = vst.msk [vmem:[%s17740_s24 + $0x38] sm:$0xf] %vm228_vm0, %v12391_v48  ;;  %v12392_v49 = vpack.c.bf16 %v11162_v50, %v11162_v50  ;;  %v11139_v42 = vunpack.c.l.bf16 %v14246_v17  ;;  %v11142_v10 = vunpack.c.l.bf16 %v14247_v31 }
 0x6a8   : > { %11319 = vst.msk [vmem:[%s17740_s24 + $0x30] sm:$0xf] %vm228_vm0, %v12389_v2  ;;  %v12390_v34 = vpack.c.bf16 %v11160_v28, %v11160_v28  ;;  %v13475_v25 = vpop.f32.mrb[16].mxu1  ;;  %v14248_v2 = vld [vmem:[%s14354_s9 + $0x64] sm:$0xf] }
 0x6a9   : > { %11322 = vst.msk [vmem:[%s17740_s24 + $0x3c] sm:$0xf] %vm228_vm0, %v12392_v49  ;;  %v11101_v20 = vadd.f32 %v13475_v25, %v17726_v7  ;;  %v10983_v30 = vpop.f32.mrb[17].mxu1  ;;  %v11140_v28 = vunpack.c.l.bf16 %v14248_v2 }
 0x6aa   : > { %11320 = vst.msk [vmem:[%s17740_s24 + $0x34] sm:$0xf] %vm228_vm0, %v12390_v34  ;;  %v11099_v40 = vadd.f32 %v17726_v7, %v10983_v30  ;;  %v13476_v32 = vpop.f32.mrb[18].mxu1 }
 0x6ab   : > { %v11165_v0 = vadd.f32 %v11133_v58, %v11101_v20  ;;  %v11102_v51 = vadd.f32 %v13476_v32, %v17726_v7  ;;  %v10986_v23 = vpop.f32.mrb[19].mxu1 }
 0x6ac   : > { %v11163_v29 = vadd.f32 %v11131_v13, %v11099_v40  ;;  %v11100_v33 = vadd.f32 %v17726_v7, %v10986_v23 }
 0x6ad   : > { %v12395_v61 = vpack.c.bf16 %v11165_v0, %v11165_v0  ;;  %v11166_v41 = vadd.f32 %v11134_v21, %v11102_v51  ;;  %v14249_v21 = vld [vmem:[%s14354_s9 + $0x78] sm:$0xf] }
 0x6ae   : > { %v12393_v60 = vpack.c.bf16 %v11163_v29, %v11163_v29  ;;  %v11164_v52 = vadd.f32 %v11132_v1, %v11100_v33  ;;  %v11145_v40 = vunpack.c.l.bf16 %v14249_v21  ;;  %v14250_v1 = vld [vmem:[%s14354_s9 + $0x70] sm:$0xf]  ;;  %v14251_v29 = vld [vmem:[%s14354_s9 + $0x7c] sm:$0xf] }
 0x6af   : > { %11325 = vst.msk [vmem:[%s17740_s24 + $0x48] sm:$0xf] %vm228_vm0, %v12395_v61  ;;  %v12396_v12 = vpack.c.bf16 %v11166_v41, %v11166_v41  ;;  %v11143_v0 = vunpack.c.l.bf16 %v14250_v1  ;;  %v11146_v33 = vunpack.c.l.bf16 %v14251_v29 }
 0x6b0   : > { %11323 = vst.msk [vmem:[%s17740_s24 + $0x40] sm:$0xf] %vm228_vm0, %v12393_v60  ;;  %v12394_v19 = vpack.c.bf16 %v11164_v52, %v11164_v52  ;;  %v13479_v5 = vpop.f32.mrb[20].mxu1  ;;  %v14252_v60 = vld [vmem:[%s14354_s9 + $0x74] sm:$0xf] }
 0x6b1   : > { %11326 = vst.msk [vmem:[%s17740_s24 + $0x4c] sm:$0xf] %vm228_vm0, %v12396_v12  ;;  %v11105_v3 = vadd.f32 %v13479_v5, %v17726_v7  ;;  %v10999_v4 = vpop.f32.mrb[21].mxu1  ;;  %v11144_v52 = vunpack.c.l.bf16 %v14252_v60 }
 0x6b2   : > { %11324 = vst.msk [vmem:[%s17740_s24 + $0x44] sm:$0xf] %vm228_vm0, %v12394_v19  ;;  %v11103_v11 = vadd.f32 %v17726_v7, %v10999_v4  ;;  %v13480_v47 = vpop.f32.mrb[22].mxu1 }
 0x6b3   : > { %v11169_v45 = vadd.f32 %v11137_v26, %v11105_v3  ;;  %v11106_v24 = vadd.f32 %v13480_v47, %v17726_v7  ;;  %v11002_v62 = vpop.f32.mrb[23].mxu1 }
 0x6b4   : > { %v11167_v39 = vadd.f32 %v11135_v56, %v11103_v11  ;;  %v11104_v46 = vadd.f32 %v17726_v7, %v11002_v62 }
 0x6b5   : > { %v12399_v14 = vpack.c.bf16 %v11169_v45, %v11169_v45  ;;  %v11170_v63 = vadd.f32 %v11138_v54, %v11106_v24 }
 0x6b6   : > { %v12397_v6 = vpack.c.bf16 %v11167_v39, %v11167_v39  ;;  %v11168_v55 = vadd.f32 %v11136_v9, %v11104_v46 }
 0x6b7   : > { %11329 = vst.msk [vmem:[%s17740_s24 + $0x58] sm:$0xf] %vm228_vm0, %v12399_v14  ;;  %v12400_v8 = vpack.c.bf16 %v11170_v63, %v11170_v63 }
 0x6b8   : > { %11327 = vst.msk [vmem:[%s17740_s24 + $0x50] sm:$0xf] %vm228_vm0, %v12397_v6  ;;  %v12398_v27 = vpack.c.bf16 %v11168_v55, %v11168_v55  ;;  %v13483_v18 = vpop.f32.mrb[24].mxu1 }
 0x6b9   : > { %11330 = vst.msk [vmem:[%s17740_s24 + $0x5c] sm:$0xf] %vm228_vm0, %v12400_v8  ;;  %v11109_v43 = vadd.f32 %v13483_v18, %v17726_v7  ;;  %v11015_v37 = vpop.f32.mrb[25].mxu1 }
 0x6ba   : > { %11328 = vst.msk [vmem:[%s17740_s24 + $0x54] sm:$0xf] %vm228_vm0, %v12398_v27  ;;  %v11107_v48 = vadd.f32 %v17726_v7, %v11015_v37  ;;  %v13484_v50 = vpop.f32.mrb[26].mxu1 }
 0x6bb   : > { %v11173_v49 = vadd.f32 %v11141_v36, %v11109_v43  ;;  %v11110_v15 = vadd.f32 %v13484_v50, %v17726_v7  ;;  %v11018_v58 = vpop.f32.mrb[27].mxu1 }
 0x6bc   : > { %v11171_v34 = vadd.f32 %v11139_v42, %v11107_v48  ;;  %v11108_v25 = vadd.f32 %v17726_v7, %v11018_v58 }
 0x6bd   : > { %v12403_v59 = vpack.c.bf16 %v11173_v49, %v11173_v49  ;;  %v11174_v13 = vadd.f32 %v11142_v10, %v11110_v15 }
 0x6be   : > { %v12401_v20 = vpack.c.bf16 %v11171_v34, %v11171_v34  ;;  %v11172_v30 = vadd.f32 %v11140_v28, %v11108_v25 }
 0x6bf   : > { %11333 = vst.msk [vmem:[%s17740_s24 + $0x68] sm:$0xf] %vm228_vm0, %v12403_v59  ;;  %v12404_v22 = vpack.c.bf16 %v11174_v13, %v11174_v13 }
 0x6c0   : > { %11331 = vst.msk [vmem:[%s17740_s24 + $0x60] sm:$0xf] %vm228_vm0, %v12401_v20  ;;  %v12402_v32 = vpack.c.bf16 %v11172_v30, %v11172_v30  ;;  %v13487_v35 = vpop.f32.mrb[28].mxu1 }
 0x6c1   : > { %11334 = vst.msk [vmem:[%s17740_s24 + $0x6c] sm:$0xf] %vm228_vm0, %v12404_v22  ;;  %v11113_v51 = vadd.f32 %v13487_v35, %v17726_v7  ;;  %v11031_v23 = vpop.f32.mrb[29].mxu1 }
 0x6c2   : > { %11332 = vst.msk [vmem:[%s17740_s24 + $0x64] sm:$0xf] %vm228_vm0, %v12402_v32  ;;  %v11111_v61 = vadd.f32 %v17726_v7, %v11031_v23  ;;  %v13488_v41 = vpop.f32.mrb[30].mxu1 }
 0x6c3   : > { %v11177_v12 = vadd.f32 %v11145_v40, %v11113_v51  ;;  %v11114_v57 = vadd.f32 %v13488_v41, %v17726_v7  ;;  %v11034_v26 = vpop.f32.mrb[31].mxu1 }
 0x6c4   : > { %v11175_v19 = vadd.f32 %v11143_v0, %v11111_v61  ;;  %v11112_v5 = vadd.f32 %v17726_v7, %v11034_v26 }
 0x6c5   : > { %v12407_v38 = vpack.c.bf16 %v11177_v12, %v11177_v12  ;;  %v11178_v56 = vadd.f32 %v11146_v33, %v11114_v57 }
 0x6c6   : > { %v12405_v3 = vpack.c.bf16 %v11175_v19, %v11175_v19  ;;  %v11176_v4 = vadd.f32 %v11144_v52, %v11112_v5 }
 0x6c7   : > { %11337 = vst.msk [vmem:[%s17740_s24 + $0x78] sm:$0xf] %vm228_vm0, %v12407_v38  ;;  %v12408_v53 = vpack.c.bf16 %v11178_v56, %v11178_v56 }
 0x6c8   : > { %11335 = vst.msk [vmem:[%s17740_s24 + $0x70] sm:$0xf] %vm228_vm0, %v12405_v3  ;;  %v12406_v54 = vpack.c.bf16 %v11176_v4, %v11176_v4 }
 0x6c9   : > { %11338 = vst.msk [vmem:[%s17740_s24 + $0x7c] sm:$0xf] %vm228_vm0, %v12408_v53 }
 0x6ca   : > { %11336 = vst.msk [vmem:[%s17740_s24 + $0x74] sm:$0xf] %vm228_vm0, %v12406_v54 }
 0x6cb PF: > { %s16_s20 = sadd.s32 1, %s14259_s20  }
 0x6cc   : > { %p13_p4 = scmp.ge.s32.totalorder %s16_s20, 4  }
 0x6ce   :  { %15 = sbr.rel (!%p13_p4) target bundleno = 2 (0x2), region = 89 }

</bundles_post_ra>
